<compile_context>
chip_gen: v6e
topology: v6e:2x2x1
jax: 0.10.0
libtpu: 0.0.40
codegen_flags: <defaults>
</compile_context>

<pallas_src>
import functools

import jax
import jax.numpy as jnp
from jax.experimental import pallas as pl
from jax.experimental.pallas import tpu as pltpu


def _fused_lstm2_kernel(gx0_ref, whh0_ref, w1_ref, b1_ref,
                        hN_ref, cN_ref,
                        h0_sc, c0_sc, h1_sc, c1_sc):
    """Fused 2-layer LSTM recurrence. Grid axis 0 = time blocks (sequential).

    gx0_ref:  (Tt, B, 4H)  precomputed layer-0 input gates (x@W_ih0^T + b0),
                           gate columns already permuted to (i, f, o, g)
    whh0_ref: (H, 4H)      layer-0 hidden->gates weight (transposed, permuted)
    w1_ref:   (2H, 4H)     layer-1 [input; hidden]->gates weight; rows 0:H
                           multiply layer-0's h_t, rows H:2H multiply layer-1's
                           previous h (transposed, permuted)
    b1_ref:   (1, 4H)      layer-1 combined bias (permuted)
    hN_ref:   (2, B, H)    final hidden states (both layers)
    cN_ref:   (2, B, H)    final cell states (both layers)
    *_sc:     (B, H) f32 VMEM scratch carried across time blocks
    """
    tb = pl.program_id(0)
    Tt = gx0_ref.shape[0]
    H = whh0_ref.shape[0]

    @pl.when(tb == 0)
    def _():
        h0_sc[...] = jnp.zeros_like(h0_sc)
        c0_sc[...] = jnp.zeros_like(c0_sc)
        h1_sc[...] = jnp.zeros_like(h1_sc)
        c1_sc[...] = jnp.zeros_like(c1_sc)

    # Hoist weight / bias loads out of the time loop.
    whh0 = whh0_ref[...]
    w1 = w1_ref[...]
    b1 = b1_ref[...]
    mxu_dtype = whh0.dtype

    def lstm_cell(gates, c_prev):
        # Gate order (i, f, o, g): one wide sigmoid over 3H lanes, one tanh.
        sig = jax.nn.sigmoid(gates[:, :3 * H])
        g_g = jnp.tanh(gates[:, 3 * H:])
        i_g = sig[:, 0 * H:1 * H]
        f_g = sig[:, 1 * H:2 * H]
        o_g = sig[:, 2 * H:3 * H]
        c_new = f_g * c_prev + i_g * g_g
        h_new = o_g * jnp.tanh(c_new)
        return h_new, c_new

    def step(t, carry):
        h0, c0, h1, c1 = carry
        # Layer 0: input projection was hoisted; only h @ W_hh on the
        # serial path.
        gates0 = gx0_ref[t] + jnp.dot(h0.astype(mxu_dtype), whh0,
                                      preferred_element_type=jnp.float32)
        h0, c0 = lstm_cell(gates0, c0)
        # Layer 1: fused [x; h] @ W as a single matmul (x = layer-0 h_t).
        x1 = jnp.concatenate([h0, h1], axis=1).astype(mxu_dtype)   # (B, 2H)
        gates1 = jnp.dot(x1, w1, preferred_element_type=jnp.float32) + b1
        h1, c1 = lstm_cell(gates1, c1)
        return h0, c0, h1, c1

    carry = (h0_sc[...], c0_sc[...], h1_sc[...], c1_sc[...])
    h0, c0, h1, c1 = jax.lax.fori_loop(0, Tt, step, carry, unroll=True)
    h0_sc[...] = h0
    c0_sc[...] = c0
    h1_sc[...] = h1
    c1_sc[...] = c1

    # Final states written only on the last time block; the resident output
    # block (constant index_map) is flushed at grid end.  Grid always has
    # >= 1 step (asserted in the wrapper), so outputs are always written.
    @pl.when(tb == pl.num_programs(0) - 1)
    def _():
        hN_ref[0] = h0.astype(hN_ref.dtype)
        hN_ref[1] = h1.astype(hN_ref.dtype)
        cN_ref[0] = c0.astype(cN_ref.dtype)
        cN_ref[1] = c1.astype(cN_ref.dtype)


def _pick_time_block(T, max_tt=32):
    """Largest divisor of T that is <= max_tt (time steps per grid step)."""
    for tt in range(min(T, max_tt), 0, -1):
        if T % tt == 0:
            return tt
    return 1


def fused_lstm2(gx0, whh0_t, w1_t, b1, *, time_block=None,
                vmem_limit_bytes=None):
    """Run the fused 2-layer LSTM recurrence over the whole sequence.

    gx0:    (T, B, 4H) f32 precomputed layer-0 input gates
    whh0_t: (H, 4H)        layer-0 hidden weights (transposed, gate-permuted)
    w1_t:   (2H, 4H)       layer-1 stacked [ih; hh] weights
    b1:     (1, 4H)  f32   layer-1 combined bias
    returns (hidden, cell), each (2, B, H) f32.
    """
    T, B, H4 = gx0.shape
    H = whh0_t.shape[0]
    assert H4 == 4 * H and w1_t.shape == (2 * H, H4) and b1.shape == (1, H4)
    assert T >= 1, "LSTM over an empty sequence is not supported"
    Tt = time_block if time_block is not None else _pick_time_block(T)
    assert T % Tt == 0

    out_shapes = (
        jax.ShapeDtypeStruct((2, B, H), jnp.float32),   # hidden (layers, B, H)
        jax.ShapeDtypeStruct((2, B, H), jnp.float32),   # cell
    )

    grid_spec = pltpu.PrefetchScalarGridSpec(
        num_scalar_prefetch=0,
        grid=(T // Tt,),
        in_specs=[
            pl.BlockSpec((Tt, B, 4 * H), lambda tb: (tb, 0, 0)),
            pl.BlockSpec((H, 4 * H), lambda tb: (0, 0)),
            pl.BlockSpec((2 * H, 4 * H), lambda tb: (0, 0)),
            pl.BlockSpec((1, 4 * H), lambda tb: (0, 0)),
        ],
        out_specs=[
            pl.BlockSpec((2, B, H), lambda tb: (0, 0, 0)),
            pl.BlockSpec((2, B, H), lambda tb: (0, 0, 0)),
        ],
        scratch_shapes=[pltpu.VMEM((B, H), jnp.float32)] * 4,
    )

    return pl.pallas_call(
        _fused_lstm2_kernel,
        out_shape=out_shapes,
        grid_spec=grid_spec,
        compiler_params=pltpu.CompilerParams(
            dimension_semantics=("arbitrary",),   # time recurrence: serial
            vmem_limit_bytes=vmem_limit_bytes,    # raise at production H (v7x)
        ),
    )(gx0, whh0_t, w1_t, b1)


def init_encoder_params(key, input_size, embedding_size, hidden_size,
                        num_layers):
    """PyTorch-layout parameters (for the reference + one-time preparation)."""
    assert num_layers == 2, "fused kernel is specialized for num_layers=2"
    params = {}
    k_emb, key = jax.random.split(key)
    params["embedding"] = jax.random.normal(
        k_emb, (input_size, embedding_size), jnp.float32)

    bound = 1.0 / jnp.sqrt(hidden_size)
    layers = []
    for layer in range(num_layers):
        in_dim = embedding_size if layer == 0 else hidden_size
        k1, k2, k3, k4, key = jax.random.split(key, 5)
        w_ih = jax.random.uniform(k1, (4 * hidden_size, in_dim),
                                  jnp.float32, -bound, bound)
        w_hh = jax.random.uniform(k2, (4 * hidden_size, hidden_size),
                                  jnp.float32, -bound, bound)
        b_ih = jax.random.uniform(k3, (4 * hidden_size,), jnp.float32,
                                  -bound, bound)
        b_hh = jax.random.uniform(k4, (4 * hidden_size,), jnp.float32,
                                  -bound, bound)
        layers.append((w_ih, w_hh, b_ih, b_hh))
    params["lstm"] = layers
    return params


def _permute_ifgo_to_ifog(w, H, axis=-1):
    """Reorder PyTorch's (i, f, g, o) gate blocks to (i, f, o, g)."""
    i_f = jax.lax.slice_in_dim(w, 0, 2 * H, axis=axis)
    g = jax.lax.slice_in_dim(w, 2 * H, 3 * H, axis=axis)
    o = jax.lax.slice_in_dim(w, 3 * H, 4 * H, axis=axis)
    return jnp.concatenate([i_f, o, g], axis=axis)


def prepare_encoder_params(params, param_dtype=jnp.float32):
    """One-time transform: transpose, gate-permute to (i,f,o,g), sum biases.

    param_dtype=jnp.bfloat16 is recommended on v6e/v7x (MXU inputs); biases,
    gate math and h/c state stay in f32 (v5e has no bf16 VPU/EUP path).
    """
    (w_ih0, w_hh0, b_ih0, b_hh0), (w_ih1, w_hh1, b_ih1, b_hh1) = params["lstm"]
    H = w_hh0.shape[1]

    wih0_t = _permute_ifgo_to_ifog(jnp.transpose(w_ih0), H).astype(param_dtype)
    whh0_t = _permute_ifgo_to_ifog(jnp.transpose(w_hh0), H).astype(param_dtype)
    b0 = _permute_ifgo_to_ifog(b_ih0 + b_hh0, H)[None, :].astype(jnp.float32)

    # Layer 1: stack [W_ih^T; W_hh^T] so the recurrence uses one matmul.
    w1_t = jnp.concatenate(
        [jnp.transpose(w_ih1), jnp.transpose(w_hh1)], axis=0)
    w1_t = _permute_ifgo_to_ifog(w1_t, H).astype(param_dtype)
    b1 = _permute_ifgo_to_ifog(b_ih1 + b_hh1, H)[None, :].astype(jnp.float32)

    return {
        "embedding": params["embedding"],
        "wih0_t": wih0_t, "whh0_t": whh0_t, "b0": b0,
        "w1_t": w1_t, "b1": b1,
    }


@jax.jit
def encoder_forward(prepared, x):
    """x: (T, B) int32 token ids -> (hidden, cell), each (num_layers, B, H).

    nn.Dropout on the embedding and the inter-layer LSTM dropout are identity
    here (inference / eval semantics).
    """
    emb = jnp.take(prepared["embedding"], x, axis=0)           # (T, B, E)
    T, B, E = emb.shape
    H = prepared["whh0_t"].shape[0]

    # Layer-0 input projection hoisted out of the recurrence: one big
    # (T*B, E) x (E, 4H) matmul with the bias folded in once.
    wih0_t = prepared["wih0_t"]
    gx0 = jnp.dot(emb.reshape(T * B, E).astype(wih0_t.dtype), wih0_t,
                  preferred_element_type=jnp.float32)
    gx0 = gx0.reshape(T, B, 4 * H) + prepared["b0"]            # (T, B, 4H)

    hidden, cell = fused_lstm2(gx0, prepared["whh0_t"],
                               prepared["w1_t"], prepared["b1"])
    return hidden, cell


def _reference_forward(params, x, num_layers):
    """Pure-JAX reference (lax.scan LSTM, PyTorch gate order)."""
    emb = jnp.take(params["embedding"], x, axis=0)
    layer_in = emb
    hiddens, cells = [], []
    for layer in range(num_layers):
        w_ih, w_hh, b_ih, b_hh = params["lstm"][layer]
        H = w_hh.shape[1]
        b = b_ih + b_hh

        def step(carry, x_t):
            h, c = carry
            gates = x_t @ w_ih.T + h @ w_hh.T + b
            i = jax.nn.sigmoid(gates[:, 0 * H:1 * H])
            f = jax.nn.sigmoid(gates[:, 1 * H:2 * H])
            g = jnp.tanh(gates[:, 2 * H:3 * H])
            o = jax.nn.sigmoid(gates[:, 3 * H:4 * H])
            c_new = f * c + i * g
            h_new = o * jnp.tanh(c_new)
            return (h_new, c_new), h_new

        B = layer_in.shape[1]
        init = (jnp.zeros((B, H), jnp.float32), jnp.zeros((B, H), jnp.float32))
        (h_T, c_T), outs = jax.lax.scan(step, init, layer_in)
        hiddens.append(h_T)
        cells.append(c_T)
        layer_in = outs
    return jnp.stack(hiddens, 0), jnp.stack(cells, 0)


if __name__ == "__main__":
    # Small shapes consistent with the module (num_layers=2 per the spec).
    VOCAB = 64          # input_size
    EMB = 128           # embedding_size
    HID = 128           # hidden_size
    NUM_LAYERS = 2
    T, B = 8, 8         # seq_len, batch

    key = jax.random.PRNGKey(0)
    k_params, k_x = jax.random.split(key)
    params = init_encoder_params(k_params, VOCAB, EMB, HID, NUM_LAYERS)
    # One-time weight preparation (transpose / gate-permute / bias-sum).
    # Use param_dtype=jnp.bfloat16 for production throughput on v6e/v7x.
    prepared = prepare_encoder_params(params, param_dtype=jnp.float32)
    x = jax.random.randint(k_x, (T, B), 0, VOCAB, dtype=jnp.int32)

    hidden, cell = encoder_forward(prepared, x)
    jax.block_until_ready((hidden, cell))

    assert hidden.shape == (NUM_LAYERS, B, HID)
    assert cell.shape == (NUM_LAYERS, B, HID)

    # Sanity-check against a pure-JAX reference (loose tol: MXU default
    # precision compounds slightly across the recurrence).
    h_ref, c_ref = _reference_forward(params, x, NUM_LAYERS)
    assert jnp.allclose(hidden, h_ref, atol=2e-2, rtol=2e-2)
    assert jnp.allclose(cell, c_ref, atol=2e-2, rtol=2e-2)

    print("KERNEL_OK")
</pallas_src>

<mosaic_0001>
module attributes {stable_mosaic.version = 11 : i64} {
  func.func @_fused_lstm2_kernel(%arg0: i32, %arg1: memref<8x8x512xf32, #tpu.memory_space<vmem>>, %arg2: memref<128x512xf32, #tpu.memory_space<vmem>>, %arg3: memref<256x512xf32, #tpu.memory_space<vmem>>, %arg4: memref<1x512xf32, #tpu.memory_space<vmem>>, %arg5: memref<2x8x128xf32, #tpu.memory_space<vmem>>, %arg6: memref<2x8x128xf32, #tpu.memory_space<vmem>>, %arg7: memref<8x128xf32, #tpu.memory_space<vmem>>, %arg8: memref<8x128xf32, #tpu.memory_space<vmem>>, %arg9: memref<8x128xf32, #tpu.memory_space<vmem>>, %arg10: memref<8x128xf32, #tpu.memory_space<vmem>>) attributes {dimension_semantics = [#tpu.dimension_semantics<arbitrary>], iteration_bounds = array<i64: 1>, scalar_prefetch = 0 : i64, scratch_operands = 4 : i64, tpu.core_type = #tpu.core_type<tc>, window_params = [{transform_indices = @transform_0, window_bounds = array<i64: 8, 8, 512>}, {pipeline_mode = #tpu.pipeline_mode<synchronous>, transform_indices = @transform_1, window_bounds = array<i64: 128, 512>}, {pipeline_mode = #tpu.pipeline_mode<synchronous>, transform_indices = @transform_2, window_bounds = array<i64: 256, 512>}, {pipeline_mode = #tpu.pipeline_mode<synchronous>, transform_indices = @transform_3, window_bounds = array<i64: 1, 512>}, {pipeline_mode = #tpu.pipeline_mode<synchronous>, transform_indices = @transform_4, window_bounds = array<i64: 2, 8, 128>}, {pipeline_mode = #tpu.pipeline_mode<synchronous>, transform_indices = @transform_5, window_bounds = array<i64: 2, 8, 128>}]} {
    %c0_i32 = arith.constant 0 : i32
    %0 = arith.cmpi eq, %arg0, %c0_i32 : i32
    %1 = arith.extui %0 : i1 to i32
    %c0_i32_0 = arith.constant 0 : i32
    %2 = arith.cmpi ne, %1, %c0_i32_0 : i32
    scf.if %2 {
      %cst_72 = arith.constant 0.000000e+00 : f32
      %345 = vector.broadcast %cst_72 : f32 to vector<8x128xf32>
      %c0_73 = arith.constant 0 : index
      %c0_74 = arith.constant 0 : index
      %346 = vector.load %arg7[%c0_73, %c0_74] : memref<8x128xf32, #tpu.memory_space<vmem>>, vector<8x128xf32>
      tpu.vector_store %arg7[%c0_73, %c0_74], %345 {strides = array<i32>} : memref<8x128xf32, #tpu.memory_space<vmem>>, vector<8x128xf32>,
      %cst_75 = arith.constant 0.000000e+00 : f32
      %347 = vector.broadcast %cst_75 : f32 to vector<8x128xf32>
      %c0_76 = arith.constant 0 : index
      %c0_77 = arith.constant 0 : index
      %348 = vector.load %arg8[%c0_76, %c0_77] : memref<8x128xf32, #tpu.memory_space<vmem>>, vector<8x128xf32>
      tpu.vector_store %arg8[%c0_76, %c0_77], %347 {strides = array<i32>} : memref<8x128xf32, #tpu.memory_space<vmem>>, vector<8x128xf32>,
      %cst_78 = arith.constant 0.000000e+00 : f32
      %349 = vector.broadcast %cst_78 : f32 to vector<8x128xf32>
      %c0_79 = arith.constant 0 : index
      %c0_80 = arith.constant 0 : index
      %350 = vector.load %arg9[%c0_79, %c0_80] : memref<8x128xf32, #tpu.memory_space<vmem>>, vector<8x128xf32>
      tpu.vector_store %arg9[%c0_79, %c0_80], %349 {strides = array<i32>} : memref<8x128xf32, #tpu.memory_space<vmem>>, vector<8x128xf32>,
      %cst_81 = arith.constant 0.000000e+00 : f32
      %351 = vector.broadcast %cst_81 : f32 to vector<8x128xf32>
      %c0_82 = arith.constant 0 : index
      %c0_83 = arith.constant 0 : index
      %352 = vector.load %arg10[%c0_82, %c0_83] : memref<8x128xf32, #tpu.memory_space<vmem>>, vector<8x128xf32>
      tpu.vector_store %arg10[%c0_82, %c0_83], %351 {strides = array<i32>} : memref<8x128xf32, #tpu.memory_space<vmem>>, vector<8x128xf32>,
    } else {
    }
    %c0 = arith.constant 0 : index
    %c0_1 = arith.constant 0 : index
    %3 = vector.load %arg2[%c0, %c0_1] : memref<128x512xf32, #tpu.memory_space<vmem>>, vector<128x512xf32>
    %c0_2 = arith.constant 0 : index
    %c0_3 = arith.constant 0 : index
    %4 = vector.load %arg3[%c0_2, %c0_3] : memref<256x512xf32, #tpu.memory_space<vmem>>, vector<256x512xf32>
    %c0_4 = arith.constant 0 : index
    %c0_5 = arith.constant 0 : index
    %5 = vector.load %arg4[%c0_4, %c0_5] : memref<1x512xf32, #tpu.memory_space<vmem>>, vector<1x512xf32>
    %c0_6 = arith.constant 0 : index
    %c0_7 = arith.constant 0 : index
    %6 = vector.load %arg7[%c0_6, %c0_7] : memref<8x128xf32, #tpu.memory_space<vmem>>, vector<8x128xf32>
    %c0_8 = arith.constant 0 : index
    %c0_9 = arith.constant 0 : index
    %7 = vector.load %arg8[%c0_8, %c0_9] : memref<8x128xf32, #tpu.memory_space<vmem>>, vector<8x128xf32>
    %c0_10 = arith.constant 0 : index
    %c0_11 = arith.constant 0 : index
    %8 = vector.load %arg9[%c0_10, %c0_11] : memref<8x128xf32, #tpu.memory_space<vmem>>, vector<8x128xf32>
    %c0_12 = arith.constant 0 : index
    %c0_13 = arith.constant 0 : index
    %9 = vector.load %arg10[%c0_12, %c0_13] : memref<8x128xf32, #tpu.memory_space<vmem>>, vector<8x128xf32>
    %c0_i32_14 = arith.constant 0 : i32
    %10 = arith.index_cast %c0_i32_14 : i32 to index
    %c0_15 = arith.constant 0 : index
    %c0_16 = arith.constant 0 : index
    %11 = vector.load %arg1[%10, %c0_15, %c0_16] : memref<8x8x512xf32, #tpu.memory_space<vmem>>, vector<1x8x512xf32>
    %12 = vector.shape_cast %11 : vector<1x8x512xf32> to vector<8x512xf32>
    %cst = arith.constant dense<0.000000e+00> : vector<8x512xf32>
    %13 = tpu.matmul %6, %3, %cst {dimension_numbers = #tpu.dot_dimension_numbers<[1], [0], [0], [1], [0, 0, 1, 1], [], []>} : vector<8x128xf32>, vector<128x512xf32>, vector<8x512xf32> -> vector<8x512xf32>
    %14 = arith.addf %12, %13 : vector<8x512xf32>
    %15 = vector.extract_strided_slice %14 {offsets = [0, 0], sizes = [8, 384], strides = [1, 1]} : vector<8x512xf32> to vector<8x384xf32>
    %16 = arith.negf %15 : vector<8x384xf32>
    %17 = math.exp %16 : vector<8x384xf32>
    %cst_17 = arith.constant 1.000000e+00 : f32
    %18 = vector.broadcast %cst_17 : f32 to vector<8x384xf32>
    %19 = arith.addf %18, %17 : vector<8x384xf32>
    %20 = arith.divf %18, %19 : vector<8x384xf32>
    %21 = vector.extract_strided_slice %14 {offsets = [0, 384], sizes = [8, 128], strides = [1, 1]} : vector<8x512xf32> to vector<8x128xf32>
    %22 = math.tanh %21 : vector<8x128xf32>
    %23 = vector.extract_strided_slice %20 {offsets = [0, 0], sizes = [8, 128], strides = [1, 1]} : vector<8x384xf32> to vector<8x128xf32>
    %24 = vector.extract_strided_slice %20 {offsets = [0, 128], sizes = [8, 128], strides = [1, 1]} : vector<8x384xf32> to vector<8x128xf32>
    %25 = vector.extract_strided_slice %20 {offsets = [0, 256], sizes = [8, 128], strides = [1, 1]} : vector<8x384xf32> to vector<8x128xf32>
    %26 = arith.mulf %24, %7 : vector<8x128xf32>
    %27 = arith.mulf %23, %22 : vector<8x128xf32>
    %28 = arith.addf %26, %27 : vector<8x128xf32>
    %29 = math.tanh %28 : vector<8x128xf32>
    %30 = arith.mulf %25, %29 : vector<8x128xf32>
    %31 = tpu.concatenate %30, %8 in 1 : vector<8x128xf32>, vector<8x128xf32> -> vector<8x256xf32>
    %cst_18 = arith.constant dense<0.000000e+00> : vector<8x512xf32>
    %32 = tpu.matmul %31, %4, %cst_18 {dimension_numbers = #tpu.dot_dimension_numbers<[1], [0], [0], [1], [0, 0, 1, 1], [], []>} : vector<8x256xf32>, vector<256x512xf32>, vector<8x512xf32> -> vector<8x512xf32>
    %33 = vector.broadcast %5 : vector<1x512xf32> to vector<8x512xf32>
    %34 = arith.addf %32, %33 : vector<8x512xf32>
    %35 = vector.extract_strided_slice %34 {offsets = [0, 0], sizes = [8, 384], strides = [1, 1]} : vector<8x512xf32> to vector<8x384xf32>
    %36 = arith.negf %35 : vector<8x384xf32>
    %37 = math.exp %36 : vector<8x384xf32>
    %cst_19 = arith.constant 1.000000e+00 : f32
    %38 = vector.broadcast %cst_19 : f32 to vector<8x384xf32>
    %39 = arith.addf %38, %37 : vector<8x384xf32>
    %40 = arith.divf %38, %39 : vector<8x384xf32>
    %41 = vector.extract_strided_slice %34 {offsets = [0, 384], sizes = [8, 128], strides = [1, 1]} : vector<8x512xf32> to vector<8x128xf32>
    %42 = math.tanh %41 : vector<8x128xf32>
    %43 = vector.extract_strided_slice %40 {offsets = [0, 0], sizes = [8, 128], strides = [1, 1]} : vector<8x384xf32> to vector<8x128xf32>
    %44 = vector.extract_strided_slice %40 {offsets = [0, 128], sizes = [8, 128], strides = [1, 1]} : vector<8x384xf32> to vector<8x128xf32>
    %45 = vector.extract_strided_slice %40 {offsets = [0, 256], sizes = [8, 128], strides = [1, 1]} : vector<8x384xf32> to vector<8x128xf32>
    %46 = arith.mulf %44, %9 : vector<8x128xf32>
    %47 = arith.mulf %43, %42 : vector<8x128xf32>
    %48 = arith.addf %46, %47 : vector<8x128xf32>
    %49 = math.tanh %48 : vector<8x128xf32>
    %50 = arith.mulf %45, %49 : vector<8x128xf32>
    %c1_i32 = arith.constant 1 : i32
    %51 = arith.index_cast %c1_i32 : i32 to index
    %c0_20 = arith.constant 0 : index
    %c0_21 = arith.constant 0 : index
    %52 = vector.load %arg1[%51, %c0_20, %c0_21] : memref<8x8x512xf32, #tpu.memory_space<vmem>>, vector<1x8x512xf32>
    %53 = vector.shape_cast %52 : vector<1x8x512xf32> to vector<8x512xf32>
    %cst_22 = arith.constant dense<0.000000e+00> : vector<8x512xf32>
    %54 = tpu.matmul %30, %3, %cst_22 {dimension_numbers = #tpu.dot_dimension_numbers<[1], [0], [0], [1], [0, 0, 1, 1], [], []>} : vector<8x128xf32>, vector<128x512xf32>, vector<8x512xf32> -> vector<8x512xf32>
    %55 = arith.addf %53, %54 : vector<8x512xf32>
    %56 = vector.extract_strided_slice %55 {offsets = [0, 0], sizes = [8, 384], strides = [1, 1]} : vector<8x512xf32> to vector<8x384xf32>
    %57 = arith.negf %56 : vector<8x384xf32>
    %58 = math.exp %57 : vector<8x384xf32>
    %cst_23 = arith.constant 1.000000e+00 : f32
    %59 = vector.broadcast %cst_23 : f32 to vector<8x384xf32>
    %60 = arith.addf %59, %58 : vector<8x384xf32>
    %61 = arith.divf %59, %60 : vector<8x384xf32>
    %62 = vector.extract_strided_slice %55 {offsets = [0, 384], sizes = [8, 128], strides = [1, 1]} : vector<8x512xf32> to vector<8x128xf32>
    %63 = math.tanh %62 : vector<8x128xf32>
    %64 = vector.extract_strided_slice %61 {offsets = [0, 0], sizes = [8, 128], strides = [1, 1]} : vector<8x384xf32> to vector<8x128xf32>
    %65 = vector.extract_strided_slice %61 {offsets = [0, 128], sizes = [8, 128], strides = [1, 1]} : vector<8x384xf32> to vector<8x128xf32>
    %66 = vector.extract_strided_slice %61 {offsets = [0, 256], sizes = [8, 128], strides = [1, 1]} : vector<8x384xf32> to vector<8x128xf32>
    %67 = arith.mulf %65, %28 : vector<8x128xf32>
    %68 = arith.mulf %64, %63 : vector<8x128xf32>
    %69 = arith.addf %67, %68 : vector<8x128xf32>
    %70 = math.tanh %69 : vector<8x128xf32>
    %71 = arith.mulf %66, %70 : vector<8x128xf32>
    %72 = tpu.concatenate %71, %50 in 1 : vector<8x128xf32>, vector<8x128xf32> -> vector<8x256xf32>
    %cst_24 = arith.constant dense<0.000000e+00> : vector<8x512xf32>
    %73 = tpu.matmul %72, %4, %cst_24 {dimension_numbers = #tpu.dot_dimension_numbers<[1], [0], [0], [1], [0, 0, 1, 1], [], []>} : vector<8x256xf32>, vector<256x512xf32>, vector<8x512xf32> -> vector<8x512xf32>
    %74 = vector.broadcast %5 : vector<1x512xf32> to vector<8x512xf32>
    %75 = arith.addf %73, %74 : vector<8x512xf32>
    %76 = vector.extract_strided_slice %75 {offsets = [0, 0], sizes = [8, 384], strides = [1, 1]} : vector<8x512xf32> to vector<8x384xf32>
    %77 = arith.negf %76 : vector<8x384xf32>
    %78 = math.exp %77 : vector<8x384xf32>
    %cst_25 = arith.constant 1.000000e+00 : f32
    %79 = vector.broadcast %cst_25 : f32 to vector<8x384xf32>
    %80 = arith.addf %79, %78 : vector<8x384xf32>
    %81 = arith.divf %79, %80 : vector<8x384xf32>
    %82 = vector.extract_strided_slice %75 {offsets = [0, 384], sizes = [8, 128], strides = [1, 1]} : vector<8x512xf32> to vector<8x128xf32>
    %83 = math.tanh %82 : vector<8x128xf32>
    %84 = vector.extract_strided_slice %81 {offsets = [0, 0], sizes = [8, 128], strides = [1, 1]} : vector<8x384xf32> to vector<8x128xf32>
    %85 = vector.extract_strided_slice %81 {offsets = [0, 128], sizes = [8, 128], strides = [1, 1]} : vector<8x384xf32> to vector<8x128xf32>
    %86 = vector.extract_strided_slice %81 {offsets = [0, 256], sizes = [8, 128], strides = [1, 1]} : vector<8x384xf32> to vector<8x128xf32>
    %87 = arith.mulf %85, %48 : vector<8x128xf32>
    %88 = arith.mulf %84, %83 : vector<8x128xf32>
    %89 = arith.addf %87, %88 : vector<8x128xf32>
    %90 = math.tanh %89 : vector<8x128xf32>
    %91 = arith.mulf %86, %90 : vector<8x128xf32>
    %c2_i32 = arith.constant 2 : i32
    %92 = arith.index_cast %c2_i32 : i32 to index
    %c0_26 = arith.constant 0 : index
    %c0_27 = arith.constant 0 : index
    %93 = vector.load %arg1[%92, %c0_26, %c0_27] : memref<8x8x512xf32, #tpu.memory_space<vmem>>, vector<1x8x512xf32>
    %94 = vector.shape_cast %93 : vector<1x8x512xf32> to vector<8x512xf32>
    %cst_28 = arith.constant dense<0.000000e+00> : vector<8x512xf32>
    %95 = tpu.matmul %71, %3, %cst_28 {dimension_numbers = #tpu.dot_dimension_numbers<[1], [0], [0], [1], [0, 0, 1, 1], [], []>} : vector<8x128xf32>, vector<128x512xf32>, vector<8x512xf32> -> vector<8x512xf32>
    %96 = arith.addf %94, %95 : vector<8x512xf32>
    %97 = vector.extract_strided_slice %96 {offsets = [0, 0], sizes = [8, 384], strides = [1, 1]} : vector<8x512xf32> to vector<8x384xf32>
    %98 = arith.negf %97 : vector<8x384xf32>
    %99 = math.exp %98 : vector<8x384xf32>
    %cst_29 = arith.constant 1.000000e+00 : f32
    %100 = vector.broadcast %cst_29 : f32 to vector<8x384xf32>
    %101 = arith.addf %100, %99 : vector<8x384xf32>
    %102 = arith.divf %100, %101 : vector<8x384xf32>
    %103 = vector.extract_strided_slice %96 {offsets = [0, 384], sizes = [8, 128], strides = [1, 1]} : vector<8x512xf32> to vector<8x128xf32>
    %104 = math.tanh %103 : vector<8x128xf32>
    %105 = vector.extract_strided_slice %102 {offsets = [0, 0], sizes = [8, 128], strides = [1, 1]} : vector<8x384xf32> to vector<8x128xf32>
    %106 = vector.extract_strided_slice %102 {offsets = [0, 128], sizes = [8, 128], strides = [1, 1]} : vector<8x384xf32> to vector<8x128xf32>
    %107 = vector.extract_strided_slice %102 {offsets = [0, 256], sizes = [8, 128], strides = [1, 1]} : vector<8x384xf32> to vector<8x128xf32>
    %108 = arith.mulf %106, %69 : vector<8x128xf32>
    %109 = arith.mulf %105, %104 : vector<8x128xf32>
    %110 = arith.addf %108, %109 : vector<8x128xf32>
    %111 = math.tanh %110 : vector<8x128xf32>
    %112 = arith.mulf %107, %111 : vector<8x128xf32>
    %113 = tpu.concatenate %112, %91 in 1 : vector<8x128xf32>, vector<8x128xf32> -> vector<8x256xf32>
    %cst_30 = arith.constant dense<0.000000e+00> : vector<8x512xf32>
    %114 = tpu.matmul %113, %4, %cst_30 {dimension_numbers = #tpu.dot_dimension_numbers<[1], [0], [0], [1], [0, 0, 1, 1], [], []>} : vector<8x256xf32>, vector<256x512xf32>, vector<8x512xf32> -> vector<8x512xf32>
    %115 = vector.broadcast %5 : vector<1x512xf32> to vector<8x512xf32>
    %116 = arith.addf %114, %115 : vector<8x512xf32>
    %117 = vector.extract_strided_slice %116 {offsets = [0, 0], sizes = [8, 384], strides = [1, 1]} : vector<8x512xf32> to vector<8x384xf32>
    %118 = arith.negf %117 : vector<8x384xf32>
    %119 = math.exp %118 : vector<8x384xf32>
    %cst_31 = arith.constant 1.000000e+00 : f32
    %120 = vector.broadcast %cst_31 : f32 to vector<8x384xf32>
    %121 = arith.addf %120, %119 : vector<8x384xf32>
    %122 = arith.divf %120, %121 : vector<8x384xf32>
    %123 = vector.extract_strided_slice %116 {offsets = [0, 384], sizes = [8, 128], strides = [1, 1]} : vector<8x512xf32> to vector<8x128xf32>
    %124 = math.tanh %123 : vector<8x128xf32>
    %125 = vector.extract_strided_slice %122 {offsets = [0, 0], sizes = [8, 128], strides = [1, 1]} : vector<8x384xf32> to vector<8x128xf32>
    %126 = vector.extract_strided_slice %122 {offsets = [0, 128], sizes = [8, 128], strides = [1, 1]} : vector<8x384xf32> to vector<8x128xf32>
    %127 = vector.extract_strided_slice %122 {offsets = [0, 256], sizes = [8, 128], strides = [1, 1]} : vector<8x384xf32> to vector<8x128xf32>
    %128 = arith.mulf %126, %89 : vector<8x128xf32>
    %129 = arith.mulf %125, %124 : vector<8x128xf32>
    %130 = arith.addf %128, %129 : vector<8x128xf32>
    %131 = math.tanh %130 : vector<8x128xf32>
    %132 = arith.mulf %127, %131 : vector<8x128xf32>
    %c3_i32 = arith.constant 3 : i32
    %133 = arith.index_cast %c3_i32 : i32 to index
    %c0_32 = arith.constant 0 : index
    %c0_33 = arith.constant 0 : index
    %134 = vector.load %arg1[%133, %c0_32, %c0_33] : memref<8x8x512xf32, #tpu.memory_space<vmem>>, vector<1x8x512xf32>
    %135 = vector.shape_cast %134 : vector<1x8x512xf32> to vector<8x512xf32>
    %cst_34 = arith.constant dense<0.000000e+00> : vector<8x512xf32>
    %136 = tpu.matmul %112, %3, %cst_34 {dimension_numbers = #tpu.dot_dimension_numbers<[1], [0], [0], [1], [0, 0, 1, 1], [], []>} : vector<8x128xf32>, vector<128x512xf32>, vector<8x512xf32> -> vector<8x512xf32>
    %137 = arith.addf %135, %136 : vector<8x512xf32>
    %138 = vector.extract_strided_slice %137 {offsets = [0, 0], sizes = [8, 384], strides = [1, 1]} : vector<8x512xf32> to vector<8x384xf32>
    %139 = arith.negf %138 : vector<8x384xf32>
    %140 = math.exp %139 : vector<8x384xf32>
    %cst_35 = arith.constant 1.000000e+00 : f32
    %141 = vector.broadcast %cst_35 : f32 to vector<8x384xf32>
    %142 = arith.addf %141, %140 : vector<8x384xf32>
    %143 = arith.divf %141, %142 : vector<8x384xf32>
    %144 = vector.extract_strided_slice %137 {offsets = [0, 384], sizes = [8, 128], strides = [1, 1]} : vector<8x512xf32> to vector<8x128xf32>
    %145 = math.tanh %144 : vector<8x128xf32>
    %146 = vector.extract_strided_slice %143 {offsets = [0, 0], sizes = [8, 128], strides = [1, 1]} : vector<8x384xf32> to vector<8x128xf32>
    %147 = vector.extract_strided_slice %143 {offsets = [0, 128], sizes = [8, 128], strides = [1, 1]} : vector<8x384xf32> to vector<8x128xf32>
    %148 = vector.extract_strided_slice %143 {offsets = [0, 256], sizes = [8, 128], strides = [1, 1]} : vector<8x384xf32> to vector<8x128xf32>
    %149 = arith.mulf %147, %110 : vector<8x128xf32>
    %150 = arith.mulf %146, %145 : vector<8x128xf32>
    %151 = arith.addf %149, %150 : vector<8x128xf32>
    %152 = math.tanh %151 : vector<8x128xf32>
    %153 = arith.mulf %148, %152 : vector<8x128xf32>
    %154 = tpu.concatenate %153, %132 in 1 : vector<8x128xf32>, vector<8x128xf32> -> vector<8x256xf32>
    %cst_36 = arith.constant dense<0.000000e+00> : vector<8x512xf32>
    %155 = tpu.matmul %154, %4, %cst_36 {dimension_numbers = #tpu.dot_dimension_numbers<[1], [0], [0], [1], [0, 0, 1, 1], [], []>} : vector<8x256xf32>, vector<256x512xf32>, vector<8x512xf32> -> vector<8x512xf32>
    %156 = vector.broadcast %5 : vector<1x512xf32> to vector<8x512xf32>
    %157 = arith.addf %155, %156 : vector<8x512xf32>
    %158 = vector.extract_strided_slice %157 {offsets = [0, 0], sizes = [8, 384], strides = [1, 1]} : vector<8x512xf32> to vector<8x384xf32>
    %159 = arith.negf %158 : vector<8x384xf32>
    %160 = math.exp %159 : vector<8x384xf32>
    %cst_37 = arith.constant 1.000000e+00 : f32
    %161 = vector.broadcast %cst_37 : f32 to vector<8x384xf32>
    %162 = arith.addf %161, %160 : vector<8x384xf32>
    %163 = arith.divf %161, %162 : vector<8x384xf32>
    %164 = vector.extract_strided_slice %157 {offsets = [0, 384], sizes = [8, 128], strides = [1, 1]} : vector<8x512xf32> to vector<8x128xf32>
    %165 = math.tanh %164 : vector<8x128xf32>
    %166 = vector.extract_strided_slice %163 {offsets = [0, 0], sizes = [8, 128], strides = [1, 1]} : vector<8x384xf32> to vector<8x128xf32>
    %167 = vector.extract_strided_slice %163 {offsets = [0, 128], sizes = [8, 128], strides = [1, 1]} : vector<8x384xf32> to vector<8x128xf32>
    %168 = vector.extract_strided_slice %163 {offsets = [0, 256], sizes = [8, 128], strides = [1, 1]} : vector<8x384xf32> to vector<8x128xf32>
    %169 = arith.mulf %167, %130 : vector<8x128xf32>
    %170 = arith.mulf %166, %165 : vector<8x128xf32>
    %171 = arith.addf %169, %170 : vector<8x128xf32>
    %172 = math.tanh %171 : vector<8x128xf32>
    %173 = arith.mulf %168, %172 : vector<8x128xf32>
    %c4_i32 = arith.constant 4 : i32
    %174 = arith.index_cast %c4_i32 : i32 to index
    %c0_38 = arith.constant 0 : index
    %c0_39 = arith.constant 0 : index
    %175 = vector.load %arg1[%174, %c0_38, %c0_39] : memref<8x8x512xf32, #tpu.memory_space<vmem>>, vector<1x8x512xf32>
    %176 = vector.shape_cast %175 : vector<1x8x512xf32> to vector<8x512xf32>
    %cst_40 = arith.constant dense<0.000000e+00> : vector<8x512xf32>
    %177 = tpu.matmul %153, %3, %cst_40 {dimension_numbers = #tpu.dot_dimension_numbers<[1], [0], [0], [1], [0, 0, 1, 1], [], []>} : vector<8x128xf32>, vector<128x512xf32>, vector<8x512xf32> -> vector<8x512xf32>
    %178 = arith.addf %176, %177 : vector<8x512xf32>
    %179 = vector.extract_strided_slice %178 {offsets = [0, 0], sizes = [8, 384], strides = [1, 1]} : vector<8x512xf32> to vector<8x384xf32>
    %180 = arith.negf %179 : vector<8x384xf32>
    %181 = math.exp %180 : vector<8x384xf32>
    %cst_41 = arith.constant 1.000000e+00 : f32
    %182 = vector.broadcast %cst_41 : f32 to vector<8x384xf32>
    %183 = arith.addf %182, %181 : vector<8x384xf32>
    %184 = arith.divf %182, %183 : vector<8x384xf32>
    %185 = vector.extract_strided_slice %178 {offsets = [0, 384], sizes = [8, 128], strides = [1, 1]} : vector<8x512xf32> to vector<8x128xf32>
    %186 = math.tanh %185 : vector<8x128xf32>
    %187 = vector.extract_strided_slice %184 {offsets = [0, 0], sizes = [8, 128], strides = [1, 1]} : vector<8x384xf32> to vector<8x128xf32>
    %188 = vector.extract_strided_slice %184 {offsets = [0, 128], sizes = [8, 128], strides = [1, 1]} : vector<8x384xf32> to vector<8x128xf32>
    %189 = vector.extract_strided_slice %184 {offsets = [0, 256], sizes = [8, 128], strides = [1, 1]} : vector<8x384xf32> to vector<8x128xf32>
    %190 = arith.mulf %188, %151 : vector<8x128xf32>
    %191 = arith.mulf %187, %186 : vector<8x128xf32>
    %192 = arith.addf %190, %191 : vector<8x128xf32>
    %193 = math.tanh %192 : vector<8x128xf32>
    %194 = arith.mulf %189, %193 : vector<8x128xf32>
    %195 = tpu.concatenate %194, %173 in 1 : vector<8x128xf32>, vector<8x128xf32> -> vector<8x256xf32>
    %cst_42 = arith.constant dense<0.000000e+00> : vector<8x512xf32>
    %196 = tpu.matmul %195, %4, %cst_42 {dimension_numbers = #tpu.dot_dimension_numbers<[1], [0], [0], [1], [0, 0, 1, 1], [], []>} : vector<8x256xf32>, vector<256x512xf32>, vector<8x512xf32> -> vector<8x512xf32>
    %197 = vector.broadcast %5 : vector<1x512xf32> to vector<8x512xf32>
    %198 = arith.addf %196, %197 : vector<8x512xf32>
    %199 = vector.extract_strided_slice %198 {offsets = [0, 0], sizes = [8, 384], strides = [1, 1]} : vector<8x512xf32> to vector<8x384xf32>
    %200 = arith.negf %199 : vector<8x384xf32>
    %201 = math.exp %200 : vector<8x384xf32>
    %cst_43 = arith.constant 1.000000e+00 : f32
    %202 = vector.broadcast %cst_43 : f32 to vector<8x384xf32>
    %203 = arith.addf %202, %201 : vector<8x384xf32>
    %204 = arith.divf %202, %203 : vector<8x384xf32>
    %205 = vector.extract_strided_slice %198 {offsets = [0, 384], sizes = [8, 128], strides = [1, 1]} : vector<8x512xf32> to vector<8x128xf32>
    %206 = math.tanh %205 : vector<8x128xf32>
    %207 = vector.extract_strided_slice %204 {offsets = [0, 0], sizes = [8, 128], strides = [1, 1]} : vector<8x384xf32> to vector<8x128xf32>
    %208 = vector.extract_strided_slice %204 {offsets = [0, 128], sizes = [8, 128], strides = [1, 1]} : vector<8x384xf32> to vector<8x128xf32>
    %209 = vector.extract_strided_slice %204 {offsets = [0, 256], sizes = [8, 128], strides = [1, 1]} : vector<8x384xf32> to vector<8x128xf32>
    %210 = arith.mulf %208, %171 : vector<8x128xf32>
    %211 = arith.mulf %207, %206 : vector<8x128xf32>
    %212 = arith.addf %210, %211 : vector<8x128xf32>
    %213 = math.tanh %212 : vector<8x128xf32>
    %214 = arith.mulf %209, %213 : vector<8x128xf32>
    %c5_i32 = arith.constant 5 : i32
    %215 = arith.index_cast %c5_i32 : i32 to index
    %c0_44 = arith.constant 0 : index
    %c0_45 = arith.constant 0 : index
    %216 = vector.load %arg1[%215, %c0_44, %c0_45] : memref<8x8x512xf32, #tpu.memory_space<vmem>>, vector<1x8x512xf32>
    %217 = vector.shape_cast %216 : vector<1x8x512xf32> to vector<8x512xf32>
    %cst_46 = arith.constant dense<0.000000e+00> : vector<8x512xf32>
    %218 = tpu.matmul %194, %3, %cst_46 {dimension_numbers = #tpu.dot_dimension_numbers<[1], [0], [0], [1], [0, 0, 1, 1], [], []>} : vector<8x128xf32>, vector<128x512xf32>, vector<8x512xf32> -> vector<8x512xf32>
    %219 = arith.addf %217, %218 : vector<8x512xf32>
    %220 = vector.extract_strided_slice %219 {offsets = [0, 0], sizes = [8, 384], strides = [1, 1]} : vector<8x512xf32> to vector<8x384xf32>
    %221 = arith.negf %220 : vector<8x384xf32>
    %222 = math.exp %221 : vector<8x384xf32>
    %cst_47 = arith.constant 1.000000e+00 : f32
    %223 = vector.broadcast %cst_47 : f32 to vector<8x384xf32>
    %224 = arith.addf %223, %222 : vector<8x384xf32>
    %225 = arith.divf %223, %224 : vector<8x384xf32>
    %226 = vector.extract_strided_slice %219 {offsets = [0, 384], sizes = [8, 128], strides = [1, 1]} : vector<8x512xf32> to vector<8x128xf32>
    %227 = math.tanh %226 : vector<8x128xf32>
    %228 = vector.extract_strided_slice %225 {offsets = [0, 0], sizes = [8, 128], strides = [1, 1]} : vector<8x384xf32> to vector<8x128xf32>
    %229 = vector.extract_strided_slice %225 {offsets = [0, 128], sizes = [8, 128], strides = [1, 1]} : vector<8x384xf32> to vector<8x128xf32>
    %230 = vector.extract_strided_slice %225 {offsets = [0, 256], sizes = [8, 128], strides = [1, 1]} : vector<8x384xf32> to vector<8x128xf32>
    %231 = arith.mulf %229, %192 : vector<8x128xf32>
    %232 = arith.mulf %228, %227 : vector<8x128xf32>
    %233 = arith.addf %231, %232 : vector<8x128xf32>
    %234 = math.tanh %233 : vector<8x128xf32>
    %235 = arith.mulf %230, %234 : vector<8x128xf32>
    %236 = tpu.concatenate %235, %214 in 1 : vector<8x128xf32>, vector<8x128xf32> -> vector<8x256xf32>
    %cst_48 = arith.constant dense<0.000000e+00> : vector<8x512xf32>
    %237 = tpu.matmul %236, %4, %cst_48 {dimension_numbers = #tpu.dot_dimension_numbers<[1], [0], [0], [1], [0, 0, 1, 1], [], []>} : vector<8x256xf32>, vector<256x512xf32>, vector<8x512xf32> -> vector<8x512xf32>
    %238 = vector.broadcast %5 : vector<1x512xf32> to vector<8x512xf32>
    %239 = arith.addf %237, %238 : vector<8x512xf32>
    %240 = vector.extract_strided_slice %239 {offsets = [0, 0], sizes = [8, 384], strides = [1, 1]} : vector<8x512xf32> to vector<8x384xf32>
    %241 = arith.negf %240 : vector<8x384xf32>
    %242 = math.exp %241 : vector<8x384xf32>
    %cst_49 = arith.constant 1.000000e+00 : f32
    %243 = vector.broadcast %cst_49 : f32 to vector<8x384xf32>
    %244 = arith.addf %243, %242 : vector<8x384xf32>
    %245 = arith.divf %243, %244 : vector<8x384xf32>
    %246 = vector.extract_strided_slice %239 {offsets = [0, 384], sizes = [8, 128], strides = [1, 1]} : vector<8x512xf32> to vector<8x128xf32>
    %247 = math.tanh %246 : vector<8x128xf32>
    %248 = vector.extract_strided_slice %245 {offsets = [0, 0], sizes = [8, 128], strides = [1, 1]} : vector<8x384xf32> to vector<8x128xf32>
    %249 = vector.extract_strided_slice %245 {offsets = [0, 128], sizes = [8, 128], strides = [1, 1]} : vector<8x384xf32> to vector<8x128xf32>
    %250 = vector.extract_strided_slice %245 {offsets = [0, 256], sizes = [8, 128], strides = [1, 1]} : vector<8x384xf32> to vector<8x128xf32>
    %251 = arith.mulf %249, %212 : vector<8x128xf32>
    %252 = arith.mulf %248, %247 : vector<8x128xf32>
    %253 = arith.addf %251, %252 : vector<8x128xf32>
    %254 = math.tanh %253 : vector<8x128xf32>
    %255 = arith.mulf %250, %254 : vector<8x128xf32>
    %c6_i32 = arith.constant 6 : i32
    %256 = arith.index_cast %c6_i32 : i32 to index
    %c0_50 = arith.constant 0 : index
    %c0_51 = arith.constant 0 : index
    %257 = vector.load %arg1[%256, %c0_50, %c0_51] : memref<8x8x512xf32, #tpu.memory_space<vmem>>, vector<1x8x512xf32>
    %258 = vector.shape_cast %257 : vector<1x8x512xf32> to vector<8x512xf32>
    %cst_52 = arith.constant dense<0.000000e+00> : vector<8x512xf32>
    %259 = tpu.matmul %235, %3, %cst_52 {dimension_numbers = #tpu.dot_dimension_numbers<[1], [0], [0], [1], [0, 0, 1, 1], [], []>} : vector<8x128xf32>, vector<128x512xf32>, vector<8x512xf32> -> vector<8x512xf32>
    %260 = arith.addf %258, %259 : vector<8x512xf32>
    %261 = vector.extract_strided_slice %260 {offsets = [0, 0], sizes = [8, 384], strides = [1, 1]} : vector<8x512xf32> to vector<8x384xf32>
    %262 = arith.negf %261 : vector<8x384xf32>
    %263 = math.exp %262 : vector<8x384xf32>
    %cst_53 = arith.constant 1.000000e+00 : f32
    %264 = vector.broadcast %cst_53 : f32 to vector<8x384xf32>
    %265 = arith.addf %264, %263 : vector<8x384xf32>
    %266 = arith.divf %264, %265 : vector<8x384xf32>
    %267 = vector.extract_strided_slice %260 {offsets = [0, 384], sizes = [8, 128], strides = [1, 1]} : vector<8x512xf32> to vector<8x128xf32>
    %268 = math.tanh %267 : vector<8x128xf32>
    %269 = vector.extract_strided_slice %266 {offsets = [0, 0], sizes = [8, 128], strides = [1, 1]} : vector<8x384xf32> to vector<8x128xf32>
    %270 = vector.extract_strided_slice %266 {offsets = [0, 128], sizes = [8, 128], strides = [1, 1]} : vector<8x384xf32> to vector<8x128xf32>
    %271 = vector.extract_strided_slice %266 {offsets = [0, 256], sizes = [8, 128], strides = [1, 1]} : vector<8x384xf32> to vector<8x128xf32>
    %272 = arith.mulf %270, %233 : vector<8x128xf32>
    %273 = arith.mulf %269, %268 : vector<8x128xf32>
    %274 = arith.addf %272, %273 : vector<8x128xf32>
    %275 = math.tanh %274 : vector<8x128xf32>
    %276 = arith.mulf %271, %275 : vector<8x128xf32>
    %277 = tpu.concatenate %276, %255 in 1 : vector<8x128xf32>, vector<8x128xf32> -> vector<8x256xf32>
    %cst_54 = arith.constant dense<0.000000e+00> : vector<8x512xf32>
    %278 = tpu.matmul %277, %4, %cst_54 {dimension_numbers = #tpu.dot_dimension_numbers<[1], [0], [0], [1], [0, 0, 1, 1], [], []>} : vector<8x256xf32>, vector<256x512xf32>, vector<8x512xf32> -> vector<8x512xf32>
    %279 = vector.broadcast %5 : vector<1x512xf32> to vector<8x512xf32>
    %280 = arith.addf %278, %279 : vector<8x512xf32>
    %281 = vector.extract_strided_slice %280 {offsets = [0, 0], sizes = [8, 384], strides = [1, 1]} : vector<8x512xf32> to vector<8x384xf32>
    %282 = arith.negf %281 : vector<8x384xf32>
    %283 = math.exp %282 : vector<8x384xf32>
    %cst_55 = arith.constant 1.000000e+00 : f32
    %284 = vector.broadcast %cst_55 : f32 to vector<8x384xf32>
    %285 = arith.addf %284, %283 : vector<8x384xf32>
    %286 = arith.divf %284, %285 : vector<8x384xf32>
    %287 = vector.extract_strided_slice %280 {offsets = [0, 384], sizes = [8, 128], strides = [1, 1]} : vector<8x512xf32> to vector<8x128xf32>
    %288 = math.tanh %287 : vector<8x128xf32>
    %289 = vector.extract_strided_slice %286 {offsets = [0, 0], sizes = [8, 128], strides = [1, 1]} : vector<8x384xf32> to vector<8x128xf32>
    %290 = vector.extract_strided_slice %286 {offsets = [0, 128], sizes = [8, 128], strides = [1, 1]} : vector<8x384xf32> to vector<8x128xf32>
    %291 = vector.extract_strided_slice %286 {offsets = [0, 256], sizes = [8, 128], strides = [1, 1]} : vector<8x384xf32> to vector<8x128xf32>
    %292 = arith.mulf %290, %253 : vector<8x128xf32>
    %293 = arith.mulf %289, %288 : vector<8x128xf32>
    %294 = arith.addf %292, %293 : vector<8x128xf32>
    %295 = math.tanh %294 : vector<8x128xf32>
    %296 = arith.mulf %291, %295 : vector<8x128xf32>
    %c7_i32 = arith.constant 7 : i32
    %297 = arith.index_cast %c7_i32 : i32 to index
    %c0_56 = arith.constant 0 : index
    %c0_57 = arith.constant 0 : index
    %298 = vector.load %arg1[%297, %c0_56, %c0_57] : memref<8x8x512xf32, #tpu.memory_space<vmem>>, vector<1x8x512xf32>
    %299 = vector.shape_cast %298 : vector<1x8x512xf32> to vector<8x512xf32>
    %cst_58 = arith.constant dense<0.000000e+00> : vector<8x512xf32>
    %300 = tpu.matmul %276, %3, %cst_58 {dimension_numbers = #tpu.dot_dimension_numbers<[1], [0], [0], [1], [0, 0, 1, 1], [], []>} : vector<8x128xf32>, vector<128x512xf32>, vector<8x512xf32> -> vector<8x512xf32>
    %301 = arith.addf %299, %300 : vector<8x512xf32>
    %302 = vector.extract_strided_slice %301 {offsets = [0, 0], sizes = [8, 384], strides = [1, 1]} : vector<8x512xf32> to vector<8x384xf32>
    %303 = arith.negf %302 : vector<8x384xf32>
    %304 = math.exp %303 : vector<8x384xf32>
    %cst_59 = arith.constant 1.000000e+00 : f32
    %305 = vector.broadcast %cst_59 : f32 to vector<8x384xf32>
    %306 = arith.addf %305, %304 : vector<8x384xf32>
    %307 = arith.divf %305, %306 : vector<8x384xf32>
    %308 = vector.extract_strided_slice %301 {offsets = [0, 384], sizes = [8, 128], strides = [1, 1]} : vector<8x512xf32> to vector<8x128xf32>
    %309 = math.tanh %308 : vector<8x128xf32>
    %310 = vector.extract_strided_slice %307 {offsets = [0, 0], sizes = [8, 128], strides = [1, 1]} : vector<8x384xf32> to vector<8x128xf32>
    %311 = vector.extract_strided_slice %307 {offsets = [0, 128], sizes = [8, 128], strides = [1, 1]} : vector<8x384xf32> to vector<8x128xf32>
    %312 = vector.extract_strided_slice %307 {offsets = [0, 256], sizes = [8, 128], strides = [1, 1]} : vector<8x384xf32> to vector<8x128xf32>
    %313 = arith.mulf %311, %274 : vector<8x128xf32>
    %314 = arith.mulf %310, %309 : vector<8x128xf32>
    %315 = arith.addf %313, %314 : vector<8x128xf32>
    %316 = math.tanh %315 : vector<8x128xf32>
    %317 = arith.mulf %312, %316 : vector<8x128xf32>
    %318 = tpu.concatenate %317, %296 in 1 : vector<8x128xf32>, vector<8x128xf32> -> vector<8x256xf32>
    %cst_60 = arith.constant dense<0.000000e+00> : vector<8x512xf32>
    %319 = tpu.matmul %318, %4, %cst_60 {dimension_numbers = #tpu.dot_dimension_numbers<[1], [0], [0], [1], [0, 0, 1, 1], [], []>} : vector<8x256xf32>, vector<256x512xf32>, vector<8x512xf32> -> vector<8x512xf32>
    %320 = vector.broadcast %5 : vector<1x512xf32> to vector<8x512xf32>
    %321 = arith.addf %319, %320 : vector<8x512xf32>
    %322 = vector.extract_strided_slice %321 {offsets = [0, 0], sizes = [8, 384], strides = [1, 1]} : vector<8x512xf32> to vector<8x384xf32>
    %323 = arith.negf %322 : vector<8x384xf32>
    %324 = math.exp %323 : vector<8x384xf32>
    %cst_61 = arith.constant 1.000000e+00 : f32
    %325 = vector.broadcast %cst_61 : f32 to vector<8x384xf32>
    %326 = arith.addf %325, %324 : vector<8x384xf32>
    %327 = arith.divf %325, %326 : vector<8x384xf32>
    %328 = vector.extract_strided_slice %321 {offsets = [0, 384], sizes = [8, 128], strides = [1, 1]} : vector<8x512xf32> to vector<8x128xf32>
    %329 = math.tanh %328 : vector<8x128xf32>
    %330 = vector.extract_strided_slice %327 {offsets = [0, 0], sizes = [8, 128], strides = [1, 1]} : vector<8x384xf32> to vector<8x128xf32>
    %331 = vector.extract_strided_slice %327 {offsets = [0, 128], sizes = [8, 128], strides = [1, 1]} : vector<8x384xf32> to vector<8x128xf32>
    %332 = vector.extract_strided_slice %327 {offsets = [0, 256], sizes = [8, 128], strides = [1, 1]} : vector<8x384xf32> to vector<8x128xf32>
    %333 = arith.mulf %331, %294 : vector<8x128xf32>
    %334 = arith.mulf %330, %329 : vector<8x128xf32>
    %335 = arith.addf %333, %334 : vector<8x128xf32>
    %336 = math.tanh %335 : vector<8x128xf32>
    %337 = arith.mulf %332, %336 : vector<8x128xf32>
    %c8_i32 = arith.constant 8 : i32
    %c0_62 = arith.constant 0 : index
    %c0_63 = arith.constant 0 : index
    %338 = vector.load %arg7[%c0_62, %c0_63] : memref<8x128xf32, #tpu.memory_space<vmem>>, vector<8x128xf32>
    tpu.vector_store %arg7[%c0_62, %c0_63], %317 {strides = array<i32>} : memref<8x128xf32, #tpu.memory_space<vmem>>, vector<8x128xf32>,
    %c0_64 = arith.constant 0 : index
    %c0_65 = arith.constant 0 : index
    %339 = vector.load %arg8[%c0_64, %c0_65] : memref<8x128xf32, #tpu.memory_space<vmem>>, vector<8x128xf32>
    tpu.vector_store %arg8[%c0_64, %c0_65], %315 {strides = array<i32>} : memref<8x128xf32, #tpu.memory_space<vmem>>, vector<8x128xf32>,
    %c0_66 = arith.constant 0 : index
    %c0_67 = arith.constant 0 : index
    %340 = vector.load %arg9[%c0_66, %c0_67] : memref<8x128xf32, #tpu.memory_space<vmem>>, vector<8x128xf32>
    tpu.vector_store %arg9[%c0_66, %c0_67], %337 {strides = array<i32>} : memref<8x128xf32, #tpu.memory_space<vmem>>, vector<8x128xf32>,
    %c0_68 = arith.constant 0 : index
    %c0_69 = arith.constant 0 : index
    %341 = vector.load %arg10[%c0_68, %c0_69] : memref<8x128xf32, #tpu.memory_space<vmem>>, vector<8x128xf32>
    tpu.vector_store %arg10[%c0_68, %c0_69], %335 {strides = array<i32>} : memref<8x128xf32, #tpu.memory_space<vmem>>, vector<8x128xf32>,
    %c0_i32_70 = arith.constant 0 : i32
    %342 = arith.cmpi eq, %arg0, %c0_i32_70 : i32
    %343 = arith.extui %342 : i1 to i32
    %c0_i32_71 = arith.constant 0 : i32
    %344 = arith.cmpi ne, %343, %c0_i32_71 : i32
    scf.if %344 {
      %c0_72 = arith.constant 0 : index
      %c0_73 = arith.constant 0 : index
      %c0_74 = arith.constant 0 : index
      %345 = vector.load %arg5[%c0_72, %c0_73, %c0_74] : memref<2x8x128xf32, #tpu.memory_space<vmem>>, vector<1x8x128xf32>
      %346 = vector.shape_cast %345 : vector<1x8x128xf32> to vector<8x128xf32>
      %347 = vector.shape_cast %317 : vector<8x128xf32> to vector<1x8x128xf32>
      tpu.vector_store %arg5[%c0_72, %c0_73, %c0_74], %347 {strides = array<i32>} : memref<2x8x128xf32, #tpu.memory_space<vmem>>, vector<1x8x128xf32>,
      %c1 = arith.constant 1 : index
      %c0_75 = arith.constant 0 : index
      %c0_76 = arith.constant 0 : index
      %348 = vector.load %arg5[%c1, %c0_75, %c0_76] : memref<2x8x128xf32, #tpu.memory_space<vmem>>, vector<1x8x128xf32>
      %349 = vector.shape_cast %348 : vector<1x8x128xf32> to vector<8x128xf32>
      %350 = vector.shape_cast %337 : vector<8x128xf32> to vector<1x8x128xf32>
      tpu.vector_store %arg5[%c1, %c0_75, %c0_76], %350 {strides = array<i32>} : memref<2x8x128xf32, #tpu.memory_space<vmem>>, vector<1x8x128xf32>,
      %c0_77 = arith.constant 0 : index
      %c0_78 = arith.constant 0 : index
      %c0_79 = arith.constant 0 : index
      %351 = vector.load %arg6[%c0_77, %c0_78, %c0_79] : memref<2x8x128xf32, #tpu.memory_space<vmem>>, vector<1x8x128xf32>
      %352 = vector.shape_cast %351 : vector<1x8x128xf32> to vector<8x128xf32>
      %353 = vector.shape_cast %315 : vector<8x128xf32> to vector<1x8x128xf32>
      tpu.vector_store %arg6[%c0_77, %c0_78, %c0_79], %353 {strides = array<i32>} : memref<2x8x128xf32, #tpu.memory_space<vmem>>, vector<1x8x128xf32>,
      %c1_80 = arith.constant 1 : index
      %c0_81 = arith.constant 0 : index
      %c0_82 = arith.constant 0 : index
      %354 = vector.load %arg6[%c1_80, %c0_81, %c0_82] : memref<2x8x128xf32, #tpu.memory_space<vmem>>, vector<1x8x128xf32>
      %355 = vector.shape_cast %354 : vector<1x8x128xf32> to vector<8x128xf32>
      %356 = vector.shape_cast %335 : vector<8x128xf32> to vector<1x8x128xf32>
      tpu.vector_store %arg6[%c1_80, %c0_81, %c0_82], %356 {strides = array<i32>} : memref<2x8x128xf32, #tpu.memory_space<vmem>>, vector<1x8x128xf32>,
    } else {
    }
    return
  }
  func.func @transform_0(%arg0: i32) -> (i32, i32, i32) {
    %c0_i32 = arith.constant 0 : i32
    %c0_i32_0 = arith.constant 0 : i32
    %c0_i32_1 = arith.constant 0 : i32
    return %arg0, %c0_i32, %c0_i32_0 : i32, i32, i32
  }
  func.func @transform_1(%arg0: i32) -> (i32, i32) {
    %c0_i32 = arith.constant 0 : i32
    %c0_i32_0 = arith.constant 0 : i32
    %c0_i32_1 = arith.constant 0 : i32
    return %c0_i32, %c0_i32_0 : i32, i32
  }
  func.func @transform_2(%arg0: i32) -> (i32, i32) {
    %c0_i32 = arith.constant 0 : i32
    %c0_i32_0 = arith.constant 0 : i32
    %c0_i32_1 = arith.constant 0 : i32
    return %c0_i32, %c0_i32_0 : i32, i32
  }
  func.func @transform_3(%arg0: i32) -> (i32, i32) {
    %c0_i32 = arith.constant 0 : i32
    %c0_i32_0 = arith.constant 0 : i32
    %c0_i32_1 = arith.constant 0 : i32
    return %c0_i32, %c0_i32_0 : i32, i32
  }
  func.func @transform_4(%arg0: i32) -> (i32, i32, i32) {
    %c0_i32 = arith.constant 0 : i32
    %c0_i32_0 = arith.constant 0 : i32
    %c0_i32_1 = arith.constant 0 : i32
    %c0_i32_2 = arith.constant 0 : i32
    return %c0_i32, %c0_i32_0, %c0_i32_1 : i32, i32, i32
  }
  func.func @transform_5(%arg0: i32) -> (i32, i32, i32) {
    %c0_i32 = arith.constant 0 : i32
    %c0_i32_0 = arith.constant 0 : i32
    %c0_i32_1 = arith.constant 0 : i32
    %c0_i32_2 = arith.constant 0 : i32
    return %c0_i32, %c0_i32_0, %c0_i32_1 : i32, i32, i32
  }
}

</mosaic_0001>

<bundles_post_ra>
// kernel: encoder_forward.1
= control target key start
LH: loop header
LB: loop body
LE: loop exit
PB: predicated region body
PF: predicated region fallthrough
CT: control target
= control target key end

     0   :  { %11 = vsyncpa [#allocation7], 0  ;;  %s8928_s0 = inlined_call_operand.vmem [shape: f32[8,8,512], index: 0, kind: input, shape index: {}]   ;;  %s8929_s1 = inlined_call_operand.hbm [shape: f32[128,512], index: 1, kind: input, shape index: {}]   ;;  %s8930_s2 = inlined_call_operand.vmem [shape: f32[256,512], index: 2, kind: input, shape index: {}]   ;;  %s8931_s3 = inlined_call_operand.vmem [shape: f32[1,512], index: 3, kind: input, shape index: {}]   ;;  %s8932_s4 = inlined_call_operand.hbm [shape: f32[2,8,128], index: 4, kind: output, shape index: {0}]   ;;  %s8933_s5 = inlined_call_operand.hbm [shape: f32[2,8,128], index: 5, kind: output, shape index: {1}]  }
   0x1   :  { %12 = vsyncpa [#allocation8], 0 }
   0x2   :  { %13 = vsyncpa [#allocation11], 0  ;;  %s4016_s18 = smov [#allocation6]  }
   0x3   :  { %s21_s19 = sshll.u32 %s4016_s18, 4  ;;  %s22_s19 = int_to_ptr.vmem [resolvable:$true] %s21_s19 }
   0x4   :  { %s3958_s20 = scalar_lea.vmem %s22_s19, 8192  ;;  %p3963_p1 = scmp.lt.s32.totalorder %s22_s19, %s22_s19 }
   0x5   :  { %p3959_p0 = scmp.ne.s32.totalorder %s22_s19, %s3958_s20  ;;  %p3964_p2 = scmp.lt.s32.totalorder %s3958_s20, %s3958_s20 }
   0x7   :  { %p3965_p3 = por %p3964_p2, %p3963_p1 }
   0x9   :  { %p3966_p4 = pnand %p3965_p3, %p3959_p0 }
   0xb   :  { %3969 = shalt.err (!%p3966_p4)
}
   0xc   :  { %s4017_s21 = smov 512   ;;  %s4018_s22 = smov 32  }
   0xd   :  { %27 = dma.hbm_to_vmem [thread:$0]  %s8929_s1, 8192, %s22_s19, [#allocation7], %s4017_s21, %s4017_s21, %s4018_s22  }
   0xe   :  { %4010 = dma.done.wait [#allocation7], 8192  }
   0xf   :  { %4011 = vsyncadd [#allocation7], 4294959104  ;;  %v8934_v0 = vmov 0.0   ;;  %v4059_v1 = vld [vmem:[#allocation6 + $0x1e8] sm:$0xff]  ;;  %v4061_v2 = vld [vmem:[#allocation6 + $0x1e0] sm:$0xff] }
  0x10   :  { %308 = vmatprep.mubr.f32.mxu0 %v8934_v0  ;;  %379 = vmatprep.mubr.f32.mxu1 %v8934_v0  ;;  %v4063_v3 = vld [vmem:[#allocation6 + $0x1c8] sm:$0xff]  ;;  %v4066_v4 = vld [vmem:[#allocation6 + $0x1c0] sm:$0xff]  ;;  %v4080_v9 = vld [vmem:[#allocation6 + $0x1f8] sm:$0xff] }
  0x11   :  { %244 = vmatprep.subr.mxu0 %v4059_v1  ;;  %v4069_v5 = vld [vmem:[#allocation6 + $0x1a8] sm:$0xff]  ;;  %v4072_v6 = vld [vmem:[#allocation6 + $0x1a0] sm:$0xff]  ;;  %315 = vmatprep.subr.mxu1 %v4080_v9  ;;  %v4086_v11 = vld [vmem:[#allocation6 + $0x1f0] sm:$0xff] }
  0x12   :  { %245 = vmatpush1.msra.mxu0 %v4061_v2  ;;  %v4075_v7 = vld [vmem:[#allocation6 + $0x188] sm:$0xff]  ;;  %v4078_v8 = vld [vmem:[#allocation6 + $0x180] sm:$0xff]  ;;  %316 = vmatpush1.msra.mxu1 %v4086_v11  ;;  %v4092_v13 = vld [vmem:[#allocation6 + $0x1d8] sm:$0xff] }
  0x13   :  { %246 = vmatprep.subr.mxu0 %v4063_v3  ;;  %v4083_v10 = vld [vmem:[#allocation6 + $0x168] sm:$0xff]  ;;  %v4089_v12 = vld [vmem:[#allocation6 + $0x160] sm:$0xff]  ;;  %v4094_v14 = vld [vmem:[#allocation6 + $0x1d0] sm:$0xff]  ;;  %317 = vmatprep.subr.mxu1 %v4092_v13 }
  0x14   :  { %247 = vmatpush1.msra.mxu0 %v4066_v4  ;;  %v4097_v15 = vld [vmem:[#allocation6 + $0x148] sm:$0xff]  ;;  %v4100_v16 = vld [vmem:[#allocation6 + $0x1b8] sm:$0xff]  ;;  %v4103_v17 = vld [vmem:[#allocation6 + $0x140] sm:$0xff]  ;;  %318 = vmatpush1.msra.mxu1 %v4094_v14 }
  0x15   :  { %248 = vmatprep.subr.mxu0 %v4069_v5  ;;  %v4106_v18 = vld [vmem:[#allocation6 + $0x1b0] sm:$0xff]  ;;  %v4108_v19 = vld [vmem:[#allocation6 + $0x198] sm:$0xff]  ;;  %v4111_v20 = vld [vmem:[#allocation6 + $0x128] sm:$0xff]  ;;  %319 = vmatprep.subr.mxu1 %v4100_v16 }
  0x16   :  { %249 = vmatpush1.msra.mxu0 %v4072_v6  ;;  %v4114_v21 = vld [vmem:[#allocation6 + $0x190] sm:$0xff]  ;;  %v4117_v22 = vld [vmem:[#allocation6 + $0x120] sm:$0xff]  ;;  %320 = vmatpush1.msra.mxu1 %v4106_v18  ;;  %v4120_v23 = vld [vmem:[#allocation6 + $0x178] sm:$0xff] }
  0x17   :  { %250 = vmatprep.subr.mxu0 %v4075_v7  ;;  %v4123_v24 = vld [vmem:[#allocation6 + $0x108] sm:$0xff]  ;;  %321 = vmatprep.subr.mxu1 %v4108_v19  ;;  %v4126_v25 = vld [vmem:[#allocation6 + $0x170] sm:$0xff]  ;;  %v4129_v26 = vld [vmem:[#allocation6 + $0x100] sm:$0xff] }
  0x18   :  { %251 = vmatpush1.msra.mxu0 %v4078_v8  ;;  %322 = vmatpush1.msra.mxu1 %v4114_v21  ;;  %v4132_v27 = vld [vmem:[#allocation6 + $0x158] sm:$0xff]  ;;  %v4135_v28 = vld [vmem:[#allocation6 + $0xe8] sm:$0xff]  ;;  %v4138_v29 = vld [vmem:[#allocation6 + $0x150] sm:$0xff] }
  0x19   :  { %252 = vmatprep.subr.mxu0 %v4083_v10  ;;  %323 = vmatprep.subr.mxu1 %v4120_v23  ;;  %v4141_v30 = vld [vmem:[#allocation6 + $0xe0] sm:$0xff]  ;;  %v4144_v31 = vld [vmem:[#allocation6 + $0x138] sm:$0xff]  ;;  %v4147_v32 = vld [vmem:[#allocation6 + $0xc8] sm:$0xff] }
  0x1a   :  { %253 = vmatpush1.msra.mxu0 %v4089_v12  ;;  %324 = vmatpush1.msra.mxu1 %v4126_v25  ;;  %v4150_v33 = vld [vmem:[#allocation6 + $0x130] sm:$0xff]  ;;  %v4153_v34 = vld [vmem:[#allocation6 + $0xc0] sm:$0xff]  ;;  %v4156_v35 = vld [vmem:[#allocation6 + $0x118] sm:$0xff] }
  0x1b   :  { %254 = vmatprep.subr.mxu0 %v4097_v15  ;;  %325 = vmatprep.subr.mxu1 %v4132_v27  ;;  %v4159_v36 = vld [vmem:[#allocation6 + $0xa8] sm:$0xff]  ;;  %v4162_v37 = vld [vmem:[#allocation6 + $0x110] sm:$0xff]  ;;  %v4165_v38 = vld [vmem:[#allocation6 + $0xa0] sm:$0xff] }
  0x1c   :  { %255 = vmatpush1.msra.mxu0 %v4103_v17  ;;  %326 = vmatpush1.msra.mxu1 %v4138_v29  ;;  %v4168_v39 = vld [vmem:[#allocation6 + $0xf8] sm:$0xff]  ;;  %v4171_v40 = vld [vmem:[#allocation6 + $0x88] sm:$0xff]  ;;  %v4174_v41 = vld [vmem:[#allocation6 + $0xf0] sm:$0xff] }
  0x1d   :  { %256 = vmatprep.subr.mxu0 %v4111_v20  ;;  %327 = vmatprep.subr.mxu1 %v4144_v31  ;;  %v4177_v42 = vld [vmem:[#allocation6 + $0x80] sm:$0xff]  ;;  %v4180_v43 = vld [vmem:[#allocation6 + $0xd8] sm:$0xff]  ;;  %v4183_v44 = vld [vmem:[#allocation6 + $0x68] sm:$0xff] }
  0x1e   :  { %257 = vmatpush1.msra.mxu0 %v4117_v22  ;;  %328 = vmatpush1.msra.mxu1 %v4150_v33  ;;  %v4186_v45 = vld [vmem:[#allocation6 + $0xd0] sm:$0xff]  ;;  %v4189_v46 = vld [vmem:[#allocation6 + $0x60] sm:$0xff]  ;;  %v4192_v47 = vld [vmem:[#allocation6 + $0xb8] sm:$0xff] }
  0x1f   :  { %258 = vmatprep.subr.mxu0 %v4123_v24  ;;  %329 = vmatprep.subr.mxu1 %v4156_v35  ;;  %9533 = vst [vmem:[#allocation15_spill] sm:$0xff] %v4189_v46  ;;  %v4195_v48 = vld [vmem:[#allocation6 + $0x48] sm:$0xff]  ;;  %v4198_v49 = vld [vmem:[#allocation6 + $0xb0] sm:$0xff]  ;;  %v4201_v50 = vld [vmem:[#allocation6 + $0x40] sm:$0xff] }
  0x20   :  { %259 = vmatpush1.msra.mxu0 %v4129_v26  ;;  %330 = vmatpush1.msra.mxu1 %v4162_v37  ;;  %9534 = vst [vmem:[#allocation16_spill] sm:$0xff] %v4195_v48  ;;  %9535 = vst [vmem:[#allocation17_spill] sm:$0xff] %v4201_v50  ;;  %v4204_v51 = vld [vmem:[#allocation6 + $0x98] sm:$0xff]  ;;  %v4207_v52 = vld [vmem:[#allocation6 + $0x28] sm:$0xff] }
  0x21   :  { %260 = vmatprep.subr.mxu0 %v4135_v28  ;;  %331 = vmatprep.subr.mxu1 %v4168_v39  ;;  %9536 = vst [vmem:[#allocation18_spill] sm:$0xff] %v4207_v52  ;;  %v4210_v53 = vld [vmem:[#allocation6 + $0x90] sm:$0xff]  ;;  %v4213_v54 = vld [vmem:[#allocation6 + $0x20] sm:$0xff]  ;;  %v4216_v55 = vld [vmem:[#allocation6 + $0x78] sm:$0xff] }
  0x22   :  { %261 = vmatpush1.msra.mxu0 %v4141_v30  ;;  %332 = vmatpush1.msra.mxu1 %v4174_v41  ;;  %9537 = vst [vmem:[#allocation19_spill] sm:$0xff] %v4213_v54  ;;  %9538 = vst [vmem:[#allocation20_spill] sm:$0xff] %v4216_v55  ;;  %v4219_v56 = vld [vmem:[#allocation6 + $0x8] sm:$0xff]  ;;  %v4222_v57 = vld [vmem:[#allocation6 + $0x70] sm:$0xff] }
  0x23   :  { %262 = vmatprep.subr.mxu0 %v4147_v32  ;;  %333 = vmatprep.subr.mxu1 %v4180_v43  ;;  %9539 = vst [vmem:[#allocation21_spill] sm:$0xff] %v4219_v56  ;;  %9540 = vst [vmem:[#allocation22_spill] sm:$0xff] %v4222_v57  ;;  %v4225_v58 = vld [vmem:[#allocation6] sm:$0xff]  ;;  %v4228_v59 = vld [vmem:[#allocation6 + $0x58] sm:$0xff] }
  0x24   :  { %263 = vmatpush1.msra.mxu0 %v4153_v34  ;;  %334 = vmatpush1.msra.mxu1 %v4186_v45  ;;  %9541 = vst [vmem:[#allocation23_spill] sm:$0xff] %v4225_v58  ;;  %9542 = vst [vmem:[#allocation24_spill] sm:$0xff] %v4228_v59  ;;  %v4232_v60 = vld [vmem:[#allocation6 + $0x50] sm:$0xff]  ;;  %v4236_v61 = vld [vmem:[#allocation6 + $0x38] sm:$0xff] }
  0x25   :  { %264 = vmatprep.subr.mxu0 %v4159_v36  ;;  %335 = vmatprep.subr.mxu1 %v4192_v47  ;;  %9543 = vst [vmem:[#allocation25_spill] sm:$0xff] %v4232_v60  ;;  %9544 = vst [vmem:[#allocation26_spill] sm:$0xff] %v4236_v61  ;;  %v4241_v62 = vld [vmem:[%s8930_s2 + $0x1e8] sm:$0xff]  ;;  %v4245_v63 = vld [vmem:[#allocation6 + $0x30] sm:$0xff] }
  0x26   :  { %265 = vmatpush1.msra.mxu0 %v4165_v38  ;;  %336 = vmatpush1.msra.mxu1 %v4198_v49  ;;  %9545 = vst [vmem:[#allocation27_spill] sm:$0xff] %v4241_v62  ;;  %9546 = vst [vmem:[#allocation28_spill] sm:$0xff] %v4245_v63  ;;  %v4250_v0 = vld [vmem:[%s8930_s2 + $0x1e0] sm:$0xff] }
  0x27   :  { %266 = vmatprep.subr.mxu0 %v4171_v40  ;;  %337 = vmatprep.subr.mxu1 %v4204_v51  ;;  %9547 = vst [vmem:[#allocation29_spill] sm:$0xff] %v4250_v0 }
  0x28   :  { %267 = vmatpush1.msra.mxu0 %v4177_v42  ;;  %338 = vmatpush1.msra.mxu1 %v4210_v53 }
  0x29   :  { %268 = vmatprep.subr.mxu0 %v4183_v44  ;;  %339 = vmatprep.subr.mxu1 %v4216_v55 }
  0x2a   :  { %269 = vmatpush1.msra.mxu0 %v4189_v46  ;;  %340 = vmatpush1.msra.mxu1 %v4222_v57 }
  0x2b   :  { %270 = vmatprep.subr.mxu0 %v4195_v48  ;;  %341 = vmatprep.subr.mxu1 %v4228_v59 }
  0x2c   :  { %271 = vmatpush1.msra.mxu0 %v4201_v50  ;;  %342 = vmatpush1.msra.mxu1 %v4232_v60  ;;  %v4268_v50 = vld [vmem:[%s8930_s2 + $0x1c0] sm:$0xff]  ;;  %v4274_v60 = vld [vmem:[%s8930_s2 + $0x1f8] sm:$0xff] }
  0x2d   :  { %272 = vmatprep.subr.mxu0 %v4207_v52  ;;  %v4259_v52 = vld [vmem:[%s8930_s2 + $0x1c8] sm:$0xff]  ;;  %343 = vmatprep.subr.mxu1 %v4236_v61  ;;  %9552 = vst [vmem:[#allocation33_spill] sm:$0xff] %v4268_v50  ;;  %9553 = vst [vmem:[#allocation34_spill] sm:$0xff] %v4274_v60  ;;  %v243_v61 = vld [vmem:[%s8928_s0 + $0x18] sm:$0xff] }
  0x2e   :  { %273 = vmatpush1.msra.mxu0 %v4213_v54  ;;  %v4254_v54 = vld [vmem:[#allocation6 + $0x18] sm:$0xff]  ;;  %9550 = vst [vmem:[#allocation31_spill] sm:$0xff] %v4259_v52  ;;  %344 = vmatpush1.msra.mxu1 %v4245_v63  ;;  %v4287_v63 = vld [vmem:[%s8930_s2 + $0x1a8] sm:$0xff] }
  0x2f   :  { %274 = vmatprep.subr.mxu0 %v4219_v56  ;;  %v9548_v56 = vmov 0.0   ;;  %9549 = vst [vmem:[#allocation30_spill] sm:$0xff] %v4254_v54  ;;  %345 = vmatprep.subr.mxu1 %v4254_v54  ;;  %9555 = vst [vmem:[#allocation36_spill] sm:$0xff] %v4287_v63  ;;  %v4299_v54 = vld [vmem:[%s8930_s2 + $0x1a0] sm:$0xff] }
  0x30   :  { %275 = vmatpush1.msra.mxu0 %v4225_v58  ;;  %v4262_v58 = vld [vmem:[#allocation6 + $0x10] sm:$0xff]  ;;  %9557 = vst [vmem:[#allocation38_spill] sm:$0xff] %v4299_v54 }
  0x31   :  { %309 = vmatmul.mubr.f32.vlgmr.msra.gmra.mxu0 %v9548_v56  ;;  %9551 = vst [vmem:[#allocation32_spill] sm:$0xff] %v4262_v58  ;;  %435 = vmatprep.subr.mxu0 %v4241_v62  ;;  %v4281_v62 = vld [vmem:[%s8930_s2 + $0x1f0] sm:$0xff] }
  0x32   :  { %436 = vmatpush1.msra.mxu0 %v4250_v0  ;;  %9554 = vst [vmem:[#allocation35_spill] sm:$0xff] %v4281_v62  ;;  %346 = vmatpush1.msra.mxu1 %v4262_v58  ;;  %v4293_v0 = vld [vmem:[%s8930_s2 + $0x1d8] sm:$0xff]  ;;  %v4311_v58 = vld [vmem:[%s8930_s2 + $0x188] sm:$0xff] }
  0x33   :  { %437 = vmatprep.subr.mxu0 %v4259_v52  ;;  %9556 = vst [vmem:[#allocation37_spill] sm:$0xff] %v4293_v0  ;;  %380 = vmatmul.mubr.f32.vlgmr.msra.gmra.mxu1 %v9548_v56  ;;  %v4306_v52 = vld [vmem:[%s8930_s2 + $0x1d0] sm:$0xff]  ;;  %9559 = vst [vmem:[#allocation40_spill] sm:$0xff] %v4311_v58 }
  0x34   :  { %438 = vmatpush1.msra.mxu0 %v4268_v50  ;;  %506 = vmatprep.subr.mxu1 %v4274_v60  ;;  %9558 = vst [vmem:[#allocation39_spill] sm:$0xff] %v4306_v52  ;;  %v4318_v50 = vld [vmem:[%s8930_s2 + $0x1b8] sm:$0xff]  ;;  %v4323_v60 = vld [vmem:[%s8930_s2 + $0x180] sm:$0xff] }
  0x35   :  { %507 = vmatpush1.msra.mxu1 %v4281_v62  ;;  %439 = vmatprep.subr.mxu0 %v4287_v63  ;;  %9560 = vst [vmem:[#allocation41_spill] sm:$0xff] %v4318_v50  ;;  %9561 = vst [vmem:[#allocation42_spill] sm:$0xff] %v4323_v60  ;;  %v4330_v62 = vld [vmem:[%s8930_s2 + $0x1b0] sm:$0xff]  ;;  %v4337_v63 = vld [vmem:[%s8930_s2 + $0x198] sm:$0xff] }
  0x36   :  { %508 = vmatprep.subr.mxu1 %v4293_v0  ;;  %440 = vmatpush1.msra.mxu0 %v4299_v54  ;;  %9562 = vst [vmem:[#allocation43_spill] sm:$0xff] %v4330_v62  ;;  %9563 = vst [vmem:[#allocation44_spill] sm:$0xff] %v4337_v63  ;;  %v4344_v54 = vld [vmem:[%s8930_s2 + $0x190] sm:$0xff]  ;;  %v4901_v0 = vld [vmem:[%s8930_s2 + $0x288] sm:$0xff] }
  0x37   :  { %509 = vmatpush1.msra.mxu1 %v4306_v52  ;;  %441 = vmatprep.subr.mxu0 %v4311_v58  ;;  %9564 = vst [vmem:[#allocation45_spill] sm:$0xff] %v4344_v54  ;;  %v4354_v58 = vld [vmem:[%s8930_s2 + $0x168] sm:$0xff]  ;;  %v4884_v52 = vld [vmem:[%s8930_s2 + $0x2b8] sm:$0xff]  ;;  %9657 = vst [vmem:[#allocation138_spill] sm:$0xff] %v4901_v0 }
  0x38   :  { %510 = vmatprep.subr.mxu1 %v4318_v50  ;;  %442 = vmatpush1.msra.mxu0 %v4323_v60  ;;  %9565 = vst [vmem:[#allocation46_spill] sm:$0xff] %v4354_v58  ;;  %v4359_v60 = vld [vmem:[%s8930_s2 + $0x178] sm:$0xff]  ;;  %v4867_v50 = vld [vmem:[%s8930_s2 + $0x2c0] sm:$0xff]  ;;  %9654 = vst [vmem:[#allocation135_spill] sm:$0xff] %v4884_v52 }
  0x39   :  { %511 = vmatpush1.msra.mxu1 %v4330_v62  ;;  %499 = vmatprep.mubr.f32.mxu0 %v9548_v56  ;;  %9566 = vst [vmem:[#allocation47_spill] sm:$0xff] %v4359_v60  ;;  %v4593_v62 = vld [vmem:[%s8930_s2 + $0x28] sm:$0xff]  ;;  %9651 = vst [vmem:[#allocation132_spill] sm:$0xff] %v4867_v50 }
  0x3a   :  { %512 = vmatprep.subr.mxu1 %v4337_v63  ;;  %570 = vmatprep.mubr.f32.mxu1 %v9548_v56  ;;  %v4366_v63 = vld [vmem:[%s8930_s2 + $0x160] sm:$0xff]  ;;  %9605 = vst [vmem:[#allocation86_spill] sm:$0xff] %v4593_v62 }
  0x3b   :  { %513 = vmatpush1.msra.mxu1 %v4344_v54  ;;  %443 = vmatprep.subr.mxu0 %v4354_v58  ;;  %9567 = vst [vmem:[#allocation48_spill] sm:$0xff] %v4366_v63  ;;  %v4371_v54 = vld [vmem:[%s8930_s2 + $0x170] sm:$0xff]  ;;  %v4378_v58 = vld [vmem:[%s8930_s2 + $0x148] sm:$0xff] }
  0x3c   :  { %514 = vmatprep.subr.mxu1 %v4359_v60  ;;  %9568 = vst [vmem:[#allocation49_spill] sm:$0xff] %v4371_v54  ;;  %444 = vmatpush1.msra.mxu0 %v4366_v63  ;;  %9569 = vst [vmem:[#allocation50_spill] sm:$0xff] %v4378_v58  ;;  %v4383_v60 = vld [vmem:[%s8930_s2 + $0x158] sm:$0xff]  ;;  %v4390_v63 = vld [vmem:[%s8930_s2 + $0x140] sm:$0xff] }
  0x3d   :  { %515 = vmatpush1.msra.mxu1 %v4371_v54  ;;  %9570 = vst [vmem:[#allocation51_spill] sm:$0xff] %v4383_v60  ;;  %445 = vmatprep.subr.mxu0 %v4378_v58  ;;  %9571 = vst [vmem:[#allocation52_spill] sm:$0xff] %v4390_v63  ;;  %v4395_v54 = vld [vmem:[%s8930_s2 + $0x150] sm:$0xff]  ;;  %v4402_v58 = vld [vmem:[%s8930_s2 + $0x128] sm:$0xff] }
  0x3e   :  { %516 = vmatprep.subr.mxu1 %v4383_v60  ;;  %9572 = vst [vmem:[#allocation53_spill] sm:$0xff] %v4395_v54  ;;  %446 = vmatpush1.msra.mxu0 %v4390_v63  ;;  %9573 = vst [vmem:[#allocation54_spill] sm:$0xff] %v4402_v58  ;;  %v4407_v60 = vld [vmem:[%s8930_s2 + $0x138] sm:$0xff]  ;;  %v4414_v63 = vld [vmem:[%s8930_s2 + $0x120] sm:$0xff] }
  0x3f   :  { %517 = vmatpush1.msra.mxu1 %v4395_v54  ;;  %9574 = vst [vmem:[#allocation55_spill] sm:$0xff] %v4407_v60  ;;  %447 = vmatprep.subr.mxu0 %v4402_v58  ;;  %9575 = vst [vmem:[#allocation56_spill] sm:$0xff] %v4414_v63  ;;  %v4419_v54 = vld [vmem:[%s8930_s2 + $0x130] sm:$0xff]  ;;  %v4426_v58 = vld [vmem:[%s8930_s2 + $0x108] sm:$0xff] }
  0x40   :  { %518 = vmatprep.subr.mxu1 %v4407_v60  ;;  %9576 = vst [vmem:[#allocation57_spill] sm:$0xff] %v4419_v54  ;;  %448 = vmatpush1.msra.mxu0 %v4414_v63  ;;  %9577 = vst [vmem:[#allocation58_spill] sm:$0xff] %v4426_v58  ;;  %v4431_v60 = vld [vmem:[%s8930_s2 + $0x118] sm:$0xff]  ;;  %v4438_v63 = vld [vmem:[%s8930_s2 + $0x100] sm:$0xff] }
  0x41   :  { %519 = vmatpush1.msra.mxu1 %v4419_v54  ;;  %9578 = vst [vmem:[#allocation59_spill] sm:$0xff] %v4431_v60  ;;  %449 = vmatprep.subr.mxu0 %v4426_v58  ;;  %9579 = vst [vmem:[#allocation60_spill] sm:$0xff] %v4438_v63  ;;  %v4443_v54 = vld [vmem:[%s8930_s2 + $0x110] sm:$0xff]  ;;  %v4450_v58 = vld [vmem:[%s8930_s2 + $0xe8] sm:$0xff] }
  0x42   :  { %520 = vmatprep.subr.mxu1 %v4431_v60  ;;  %9580 = vst [vmem:[#allocation61_spill] sm:$0xff] %v4443_v54  ;;  %450 = vmatpush1.msra.mxu0 %v4438_v63  ;;  %9581 = vst [vmem:[#allocation62_spill] sm:$0xff] %v4450_v58  ;;  %v4455_v60 = vld [vmem:[%s8930_s2 + $0xf8] sm:$0xff]  ;;  %v4462_v63 = vld [vmem:[%s8930_s2 + $0xe0] sm:$0xff] }
  0x43   :  { %521 = vmatpush1.msra.mxu1 %v4443_v54  ;;  %9582 = vst [vmem:[#allocation63_spill] sm:$0xff] %v4455_v60  ;;  %451 = vmatprep.subr.mxu0 %v4450_v58  ;;  %9583 = vst [vmem:[#allocation64_spill] sm:$0xff] %v4462_v63  ;;  %v4467_v54 = vld [vmem:[%s8930_s2 + $0xf0] sm:$0xff]  ;;  %v4474_v58 = vld [vmem:[%s8930_s2 + $0xc8] sm:$0xff] }
  0x44   :  { %522 = vmatprep.subr.mxu1 %v4455_v60  ;;  %9584 = vst [vmem:[#allocation65_spill] sm:$0xff] %v4467_v54  ;;  %452 = vmatpush1.msra.mxu0 %v4462_v63  ;;  %9585 = vst [vmem:[#allocation66_spill] sm:$0xff] %v4474_v58  ;;  %v4479_v60 = vld [vmem:[%s8930_s2 + $0xd8] sm:$0xff]  ;;  %v4486_v63 = vld [vmem:[%s8930_s2 + $0xc0] sm:$0xff] }
  0x45   :  { %523 = vmatpush1.msra.mxu1 %v4467_v54  ;;  %9586 = vst [vmem:[#allocation67_spill] sm:$0xff] %v4479_v60  ;;  %453 = vmatprep.subr.mxu0 %v4474_v58  ;;  %9587 = vst [vmem:[#allocation68_spill] sm:$0xff] %v4486_v63  ;;  %v4491_v54 = vld [vmem:[%s8930_s2 + $0xd0] sm:$0xff]  ;;  %v4498_v58 = vld [vmem:[%s8930_s2 + $0xa8] sm:$0xff] }
  0x46   :  { %524 = vmatprep.subr.mxu1 %v4479_v60  ;;  %9588 = vst [vmem:[#allocation69_spill] sm:$0xff] %v4491_v54  ;;  %454 = vmatpush1.msra.mxu0 %v4486_v63  ;;  %9589 = vst [vmem:[#allocation70_spill] sm:$0xff] %v4498_v58  ;;  %v4503_v60 = vld [vmem:[%s8930_s2 + $0xb8] sm:$0xff]  ;;  %v4510_v63 = vld [vmem:[%s8930_s2 + $0xa0] sm:$0xff] }
  0x47   :  { %525 = vmatpush1.msra.mxu1 %v4491_v54  ;;  %9590 = vst [vmem:[#allocation71_spill] sm:$0xff] %v4503_v60  ;;  %455 = vmatprep.subr.mxu0 %v4498_v58  ;;  %9591 = vst [vmem:[#allocation72_spill] sm:$0xff] %v4510_v63  ;;  %v4515_v54 = vld [vmem:[%s8930_s2 + $0xb0] sm:$0xff]  ;;  %v4522_v58 = vld [vmem:[%s8930_s2 + $0x88] sm:$0xff] }
  0x48   :  { %526 = vmatprep.subr.mxu1 %v4503_v60  ;;  %9592 = vst [vmem:[#allocation73_spill] sm:$0xff] %v4515_v54  ;;  %456 = vmatpush1.msra.mxu0 %v4510_v63  ;;  %9593 = vst [vmem:[#allocation74_spill] sm:$0xff] %v4522_v58  ;;  %v4527_v60 = vld [vmem:[%s8930_s2 + $0x98] sm:$0xff]  ;;  %v4534_v63 = vld [vmem:[%s8930_s2 + $0x80] sm:$0xff] }
  0x49   :  { %527 = vmatpush1.msra.mxu1 %v4515_v54  ;;  %9594 = vst [vmem:[#allocation75_spill] sm:$0xff] %v4527_v60  ;;  %457 = vmatprep.subr.mxu0 %v4522_v58  ;;  %9595 = vst [vmem:[#allocation76_spill] sm:$0xff] %v4534_v63  ;;  %v4539_v54 = vld [vmem:[%s8930_s2 + $0x90] sm:$0xff]  ;;  %v4546_v58 = vld [vmem:[%s8930_s2 + $0x68] sm:$0xff] }
  0x4a   :  { %528 = vmatprep.subr.mxu1 %v4527_v60  ;;  %9596 = vst [vmem:[#allocation77_spill] sm:$0xff] %v4539_v54  ;;  %458 = vmatpush1.msra.mxu0 %v4534_v63  ;;  %9597 = vst [vmem:[#allocation78_spill] sm:$0xff] %v4546_v58  ;;  %v4551_v60 = vld [vmem:[%s8930_s2 + $0x78] sm:$0xff]  ;;  %v4558_v63 = vld [vmem:[%s8930_s2 + $0x60] sm:$0xff] }
  0x4b   :  { %529 = vmatpush1.msra.mxu1 %v4539_v54  ;;  %9598 = vst [vmem:[#allocation79_spill] sm:$0xff] %v4551_v60  ;;  %459 = vmatprep.subr.mxu0 %v4546_v58  ;;  %9599 = vst [vmem:[#allocation80_spill] sm:$0xff] %v4558_v63  ;;  %v4563_v54 = vld [vmem:[%s8930_s2 + $0x70] sm:$0xff]  ;;  %v4570_v58 = vld [vmem:[%s8930_s2 + $0x48] sm:$0xff] }
  0x4c   :  { %530 = vmatprep.subr.mxu1 %v4551_v60  ;;  %9600 = vst [vmem:[#allocation81_spill] sm:$0xff] %v4563_v54  ;;  %460 = vmatpush1.msra.mxu0 %v4558_v63  ;;  %9601 = vst [vmem:[#allocation82_spill] sm:$0xff] %v4570_v58  ;;  %v4575_v60 = vld [vmem:[%s8930_s2 + $0x58] sm:$0xff]  ;;  %v4582_v63 = vld [vmem:[%s8930_s2 + $0x40] sm:$0xff] }
  0x4d   :  { %531 = vmatpush1.msra.mxu1 %v4563_v54  ;;  %9602 = vst [vmem:[#allocation83_spill] sm:$0xff] %v4575_v60  ;;  %461 = vmatprep.subr.mxu0 %v4570_v58  ;;  %9603 = vst [vmem:[#allocation84_spill] sm:$0xff] %v4582_v63  ;;  %v4588_v54 = vld [vmem:[%s8930_s2 + $0x50] sm:$0xff] }
  0x4e   :  { %532 = vmatprep.subr.mxu1 %v4575_v60  ;;  %462 = vmatpush1.msra.mxu0 %v4582_v63  ;;  %9604 = vst [vmem:[#allocation85_spill] sm:$0xff] %v4588_v54  ;;  %v4598_v60 = vld [vmem:[%s8930_s2 + $0x38] sm:$0xff]  ;;  %v4605_v63 = vld [vmem:[%s8930_s2 + $0x20] sm:$0xff]  ;;  %v4610_v58 = vld [vmem:[%s8930_s2 + $0x30] sm:$0xff] }
  0x4f   :  { %9606 = vst [vmem:[#allocation87_spill] sm:$0xff] %v4598_v60  ;;  %533 = vmatpush1.msra.mxu1 %v4588_v54  ;;  %463 = vmatprep.subr.mxu0 %v4593_v62  ;;  %9607 = vst [vmem:[#allocation88_spill] sm:$0xff] %v4605_v63  ;;  %v4617_v54 = vld [vmem:[%s8930_s2 + $0x8] sm:$0xff]  ;;  %v4622_v62 = vld [vmem:[%s8930_s2 + $0x18] sm:$0xff] }
  0x50   :  { %9608 = vst [vmem:[#allocation89_spill] sm:$0xff] %v4610_v58  ;;  %534 = vmatprep.subr.mxu1 %v4598_v60  ;;  %464 = vmatpush1.msra.mxu0 %v4605_v63  ;;  %9609 = vst [vmem:[#allocation90_spill] sm:$0xff] %v4617_v54  ;;  %v4629_v60 = vld [vmem:[%s8930_s2] sm:$0xff]  ;;  %v4634_v63 = vld [vmem:[%s8930_s2 + $0x10] sm:$0xff] }
  0x51   :  { %9610 = vst [vmem:[#allocation91_spill] sm:$0xff] %v4622_v62  ;;  %535 = vmatpush1.msra.mxu1 %v4610_v58  ;;  %465 = vmatprep.subr.mxu0 %v4617_v54  ;;  %9611 = vst [vmem:[#allocation92_spill] sm:$0xff] %v4629_v60  ;;  %v4641_v58 = vld [vmem:[%s8930_s2 + $0x3e8] sm:$0xff]  ;;  %v4646_v54 = vld [vmem:[%s8930_s2 + $0x3f8] sm:$0xff] }
  0x52   :  { %9612 = vst [vmem:[#allocation93_spill] sm:$0xff] %v4634_v63  ;;  %536 = vmatprep.subr.mxu1 %v4622_v62  ;;  %466 = vmatpush1.msra.mxu0 %v4629_v60  ;;  %9613 = vst [vmem:[#allocation94_spill] sm:$0xff] %v4641_v58  ;;  %v4653_v62 = vld [vmem:[%s8930_s2 + $0x3e0] sm:$0xff]  ;;  %v4658_v60 = vld [vmem:[%s8930_s2 + $0x3f0] sm:$0xff] }
  0x53   :  { %9614 = vst [vmem:[#allocation95_spill] sm:$0xff] %v4646_v54  ;;  %537 = vmatpush1.msra.mxu1 %v4634_v63  ;;  %467 = vmatprep.subr.mxu0 %v4641_v58  ;;  %9615 = vst [vmem:[#allocation96_spill] sm:$0xff] %v4653_v62  ;;  %v4665_v63 = vld [vmem:[%s8930_s2 + $0x3c8] sm:$0xff]  ;;  %v4670_v58 = vld [vmem:[%s8930_s2 + $0x3d8] sm:$0xff] }
  0x54   :  { %9616 = vst [vmem:[#allocation97_spill] sm:$0xff] %v4658_v60  ;;  %538 = vmatprep.subr.mxu1 %v4646_v54  ;;  %468 = vmatpush2.msra.mxu0 %v4653_v62  ;;  %9617 = vst [vmem:[#allocation98_spill] sm:$0xff] %v4665_v63  ;;  %v4677_v54 = vld [vmem:[%s8930_s2 + $0x3c0] sm:$0xff]  ;;  %v4682_v62 = vld [vmem:[%s8930_s2 + $0x3d0] sm:$0xff] }
  0x55   :  { %9618 = vst [vmem:[#allocation99_spill] sm:$0xff] %v4670_v58  ;;  %539 = vmatpush2.msra.mxu1 %v4658_v60  ;;  %469 = vmatprep.subr.mxu0 %v4665_v63  ;;  %9619 = vst [vmem:[#allocation100_spill] sm:$0xff] %v4677_v54  ;;  %v4689_v60 = vld [vmem:[%s8930_s2 + $0x3a8] sm:$0xff]  ;;  %v4694_v63 = vld [vmem:[%s8930_s2 + $0x3b8] sm:$0xff] }
  0x56   :  { %9620 = vst [vmem:[#allocation101_spill] sm:$0xff] %v4682_v62  ;;  %540 = vmatprep.subr.mxu1 %v4670_v58  ;;  %470 = vmatpush2.msra.mxu0 %v4677_v54  ;;  %9621 = vst [vmem:[#allocation102_spill] sm:$0xff] %v4689_v60  ;;  %v4701_v58 = vld [vmem:[%s8930_s2 + $0x3a0] sm:$0xff]  ;;  %v4706_v54 = vld [vmem:[%s8930_s2 + $0x3b0] sm:$0xff] }
  0x57   :  { %9622 = vst [vmem:[#allocation103_spill] sm:$0xff] %v4694_v63  ;;  %541 = vmatpush2.msra.mxu1 %v4682_v62  ;;  %471 = vmatprep.subr.mxu0 %v4689_v60  ;;  %9623 = vst [vmem:[#allocation104_spill] sm:$0xff] %v4701_v58  ;;  %v4713_v62 = vld [vmem:[%s8930_s2 + $0x388] sm:$0xff]  ;;  %v4718_v60 = vld [vmem:[%s8930_s2 + $0x398] sm:$0xff] }
  0x58   :  { %9624 = vst [vmem:[#allocation105_spill] sm:$0xff] %v4706_v54  ;;  %542 = vmatprep.subr.mxu1 %v4694_v63  ;;  %472 = vmatpush2.msra.mxu0 %v4701_v58  ;;  %9625 = vst [vmem:[#allocation106_spill] sm:$0xff] %v4713_v62  ;;  %v4725_v63 = vld [vmem:[%s8930_s2 + $0x380] sm:$0xff]  ;;  %v4730_v58 = vld [vmem:[%s8930_s2 + $0x390] sm:$0xff] }
  0x59   :  { %9626 = vst [vmem:[#allocation107_spill] sm:$0xff] %v4718_v60  ;;  %543 = vmatpush2.msra.mxu1 %v4706_v54  ;;  %473 = vmatprep.subr.mxu0 %v4713_v62  ;;  %9627 = vst [vmem:[#allocation108_spill] sm:$0xff] %v4725_v63  ;;  %v4737_v54 = vld [vmem:[%s8930_s2 + $0x368] sm:$0xff]  ;;  %v4742_v62 = vld [vmem:[%s8930_s2 + $0x378] sm:$0xff] }
  0x5a   :  { %9628 = vst [vmem:[#allocation109_spill] sm:$0xff] %v4730_v58  ;;  %544 = vmatprep.subr.mxu1 %v4718_v60  ;;  %474 = vmatpush2.msra.mxu0 %v4725_v63  ;;  %9629 = vst [vmem:[#allocation110_spill] sm:$0xff] %v4737_v54  ;;  %v4749_v60 = vld [vmem:[%s8930_s2 + $0x360] sm:$0xff]  ;;  %v4754_v63 = vld [vmem:[%s8930_s2 + $0x370] sm:$0xff] }
  0x5b   :  { %9630 = vst [vmem:[#allocation111_spill] sm:$0xff] %v4742_v62  ;;  %545 = vmatpush2.msra.mxu1 %v4730_v58  ;;  %475 = vmatprep.subr.mxu0 %v4737_v54  ;;  %9631 = vst [vmem:[#allocation112_spill] sm:$0xff] %v4749_v60  ;;  %v4761_v58 = vld [vmem:[%s8930_s2 + $0x348] sm:$0xff]  ;;  %v4766_v54 = vld [vmem:[%s8930_s2 + $0x358] sm:$0xff] }
  0x5c   :  { %9632 = vst [vmem:[#allocation113_spill] sm:$0xff] %v4754_v63  ;;  %546 = vmatprep.subr.mxu1 %v4742_v62  ;;  %476 = vmatpush2.msra.mxu0 %v4749_v60  ;;  %9633 = vst [vmem:[#allocation114_spill] sm:$0xff] %v4761_v58  ;;  %v4773_v62 = vld [vmem:[%s8930_s2 + $0x340] sm:$0xff]  ;;  %v4778_v60 = vld [vmem:[%s8930_s2 + $0x350] sm:$0xff] }
  0x5d   :  { %9634 = vst [vmem:[#allocation115_spill] sm:$0xff] %v4766_v54  ;;  %547 = vmatpush2.msra.mxu1 %v4754_v63  ;;  %477 = vmatprep.subr.mxu0 %v4761_v58  ;;  %9635 = vst [vmem:[#allocation116_spill] sm:$0xff] %v4773_v62  ;;  %v4785_v63 = vld [vmem:[%s8930_s2 + $0x328] sm:$0xff]  ;;  %v4790_v58 = vld [vmem:[%s8930_s2 + $0x338] sm:$0xff] }
  0x5e   :  { %9636 = vst [vmem:[#allocation117_spill] sm:$0xff] %v4778_v60  ;;  %548 = vmatprep.subr.mxu1 %v4766_v54  ;;  %478 = vmatpush2.msra.mxu0 %v4773_v62  ;;  %9637 = vst [vmem:[#allocation118_spill] sm:$0xff] %v4785_v63  ;;  %v4797_v54 = vld [vmem:[%s8930_s2 + $0x320] sm:$0xff]  ;;  %v4802_v62 = vld [vmem:[%s8930_s2 + $0x330] sm:$0xff] }
  0x5f   :  { %9638 = vst [vmem:[#allocation119_spill] sm:$0xff] %v4790_v58  ;;  %549 = vmatpush2.msra.mxu1 %v4778_v60  ;;  %479 = vmatprep.subr.mxu0 %v4785_v63  ;;  %9639 = vst [vmem:[#allocation120_spill] sm:$0xff] %v4797_v54  ;;  %v4809_v60 = vld [vmem:[%s8930_s2 + $0x308] sm:$0xff]  ;;  %v4814_v63 = vld [vmem:[%s8930_s2 + $0x318] sm:$0xff] }
  0x60   :  { %9640 = vst [vmem:[#allocation121_spill] sm:$0xff] %v4802_v62  ;;  %550 = vmatprep.subr.mxu1 %v4790_v58  ;;  %480 = vmatpush2.msra.mxu0 %v4797_v54  ;;  %9641 = vst [vmem:[#allocation122_spill] sm:$0xff] %v4809_v60  ;;  %v4821_v58 = vld [vmem:[%s8930_s2 + $0x300] sm:$0xff]  ;;  %v4826_v54 = vld [vmem:[%s8930_s2 + $0x310] sm:$0xff] }
  0x61   :  { %9642 = vst [vmem:[#allocation123_spill] sm:$0xff] %v4814_v63  ;;  %551 = vmatpush2.msra.mxu1 %v4802_v62  ;;  %481 = vmatprep.subr.mxu0 %v4809_v60  ;;  %9643 = vst [vmem:[#allocation124_spill] sm:$0xff] %v4821_v58  ;;  %v4833_v62 = vld [vmem:[%s8930_s2 + $0x2e8] sm:$0xff]  ;;  %v4838_v60 = vld [vmem:[%s8930_s2 + $0x2f8] sm:$0xff] }
  0x62   :  { %9644 = vst [vmem:[#allocation125_spill] sm:$0xff] %v4826_v54  ;;  %552 = vmatprep.subr.mxu1 %v4814_v63  ;;  %482 = vmatpush2.msra.mxu0 %v4821_v58  ;;  %9645 = vst [vmem:[#allocation126_spill] sm:$0xff] %v4833_v62  ;;  %v4845_v63 = vld [vmem:[%s8930_s2 + $0x2e0] sm:$0xff]  ;;  %v4850_v58 = vld [vmem:[%s8930_s2 + $0x2f0] sm:$0xff] }
  0x63   :  { %9646 = vst [vmem:[#allocation127_spill] sm:$0xff] %v4838_v60  ;;  %553 = vmatpush2.msra.mxu1 %v4826_v54  ;;  %483 = vmatprep.subr.mxu0 %v4833_v62  ;;  %9647 = vst [vmem:[#allocation128_spill] sm:$0xff] %v4845_v63  ;;  %v4857_v54 = vld [vmem:[%s8930_s2 + $0x2c8] sm:$0xff]  ;;  %v4862_v62 = vld [vmem:[%s8930_s2 + $0x2d8] sm:$0xff] }
  0x64   :  { %9648 = vst [vmem:[#allocation129_spill] sm:$0xff] %v4850_v58  ;;  %554 = vmatprep.subr.mxu1 %v4838_v60  ;;  %484 = vmatpush2.msra.mxu0 %v4845_v63  ;;  %9649 = vst [vmem:[#allocation130_spill] sm:$0xff] %v4857_v54  ;;  %v4874_v63 = vld [vmem:[%s8930_s2 + $0x2d0] sm:$0xff]  ;;  %v4879_v60 = vld [vmem:[%s8930_s2 + $0x2a8] sm:$0xff] }
  0x65   :  { %9650 = vst [vmem:[#allocation131_spill] sm:$0xff] %v4862_v62  ;;  %555 = vmatpush2.msra.mxu1 %v4850_v58  ;;  %485 = vmatprep.subr.mxu0 %v4857_v54  ;;  %9652 = vst [vmem:[#allocation133_spill] sm:$0xff] %v4874_v63  ;;  %v4891_v54 = vld [vmem:[%s8930_s2 + $0x2a0] sm:$0xff]  ;;  %v4896_v58 = vld [vmem:[%s8930_s2 + $0x2b0] sm:$0xff] }
  0x66   :  { %9653 = vst [vmem:[#allocation134_spill] sm:$0xff] %v4879_v60  ;;  %556 = vmatprep.subr.mxu1 %v4862_v62  ;;  %486 = vmatpush2.msra.mxu0 %v4867_v50  ;;  %9655 = vst [vmem:[#allocation136_spill] sm:$0xff] %v4891_v54  ;;  %v4908_v50 = vld [vmem:[%s8930_s2 + $0x298] sm:$0xff]  ;;  %v4913_v62 = vld [vmem:[%s8930_s2 + $0x280] sm:$0xff] }
  0x67   :  { %9656 = vst [vmem:[#allocation137_spill] sm:$0xff] %v4896_v58  ;;  %557 = vmatpush2.msra.mxu1 %v4874_v63  ;;  %487 = vmatprep.subr.mxu0 %v4879_v60  ;;  %9658 = vst [vmem:[#allocation139_spill] sm:$0xff] %v4908_v50  ;;  %v4920_v63 = vld [vmem:[%s8930_s2 + $0x290] sm:$0xff]  ;;  %v4925_v60 = vld [vmem:[%s8930_s2 + $0x268] sm:$0xff] }
  0x68   :  { %9659 = vst [vmem:[#allocation140_spill] sm:$0xff] %v4913_v62  ;;  %558 = vmatprep.subr.mxu1 %v4884_v52  ;;  %488 = vmatpush2.msra.mxu0 %v4891_v54  ;;  %9660 = vst [vmem:[#allocation141_spill] sm:$0xff] %v4920_v63  ;;  %v4932_v52 = vld [vmem:[%s8930_s2 + $0x278] sm:$0xff]  ;;  %v4937_v54 = vld [vmem:[%s8930_s2 + $0x260] sm:$0xff] }
  0x69   :  { %9661 = vst [vmem:[#allocation142_spill] sm:$0xff] %v4925_v60  ;;  %559 = vmatpush2.msra.mxu1 %v4896_v58  ;;  %489 = vmatprep.subr.mxu0 %v4901_v0  ;;  %9662 = vst [vmem:[#allocation143_spill] sm:$0xff] %v4932_v52  ;;  %v4944_v58 = vld [vmem:[%s8930_s2 + $0x270] sm:$0xff]  ;;  %v4949_v0 = vld [vmem:[%s8930_s2 + $0x248] sm:$0xff] }
  0x6a   :  { %9663 = vst [vmem:[#allocation144_spill] sm:$0xff] %v4937_v54  ;;  %560 = vmatprep.subr.mxu1 %v4908_v50  ;;  %490 = vmatpush2.msra.mxu0 %v4913_v62  ;;  %9664 = vst [vmem:[#allocation145_spill] sm:$0xff] %v4944_v58  ;;  %v4956_v50 = vld [vmem:[%s8930_s2 + $0x258] sm:$0xff]  ;;  %v4961_v62 = vld [vmem:[%s8930_s2 + $0x240] sm:$0xff] }
  0x6b   :  { %9665 = vst [vmem:[#allocation146_spill] sm:$0xff] %v4949_v0  ;;  %561 = vmatpush2.msra.mxu1 %v4920_v63  ;;  %491 = vmatprep.subr.mxu0 %v4925_v60  ;;  %9666 = vst [vmem:[#allocation147_spill] sm:$0xff] %v4956_v50  ;;  %v4968_v63 = vld [vmem:[%s8930_s2 + $0x250] sm:$0xff]  ;;  %v4973_v60 = vld [vmem:[%s8930_s2 + $0x228] sm:$0xff] }
  0x6c   :  { %9667 = vst [vmem:[#allocation148_spill] sm:$0xff] %v4961_v62  ;;  %562 = vmatprep.subr.mxu1 %v4932_v52  ;;  %492 = vmatpush2.msra.mxu0 %v4937_v54  ;;  %9668 = vst [vmem:[#allocation149_spill] sm:$0xff] %v4968_v63  ;;  %v4980_v52 = vld [vmem:[%s8930_s2 + $0x238] sm:$0xff]  ;;  %v4985_v54 = vld [vmem:[%s8930_s2 + $0x220] sm:$0xff] }
  0x6d   :  { %9669 = vst [vmem:[#allocation150_spill] sm:$0xff] %v4973_v60  ;;  %563 = vmatpush2.msra.mxu1 %v4944_v58  ;;  %493 = vmatprep.subr.mxu0 %v4949_v0  ;;  %9670 = vst [vmem:[#allocation151_spill] sm:$0xff] %v4980_v52  ;;  %v4992_v58 = vld [vmem:[%s8930_s2 + $0x230] sm:$0xff]  ;;  %v4997_v0 = vld [vmem:[%s8930_s2 + $0x208] sm:$0xff] }
  0x6e   :  { %9671 = vst [vmem:[#allocation152_spill] sm:$0xff] %v4985_v54  ;;  %564 = vmatprep.subr.mxu1 %v4956_v50  ;;  %494 = vmatpush2.msra.mxu0 %v4961_v62  ;;  %9672 = vst [vmem:[#allocation153_spill] sm:$0xff] %v4992_v58  ;;  %v5004_v50 = vld [vmem:[%s8930_s2 + $0x218] sm:$0xff]  ;;  %v5009_v62 = vld [vmem:[%s8930_s2 + $0x200] sm:$0xff] }
  0x6f   :  { %9673 = vst [vmem:[#allocation154_spill] sm:$0xff] %v4997_v0  ;;  %565 = vmatpush2.msra.mxu1 %v4968_v63  ;;  %495 = vmatprep.subr.mxu0 %v4973_v60  ;;  %9674 = vst [vmem:[#allocation155_spill] sm:$0xff] %v5004_v50  ;;  %v5016_v63 = vld [vmem:[%s8930_s2 + $0x210] sm:$0xff] }
  0x70   :  { %9675 = vst [vmem:[#allocation156_spill] sm:$0xff] %v5009_v62  ;;  %566 = vmatprep.subr.mxu1 %v4980_v52  ;;  %496 = vmatpush2.msra.mxu0 %v4985_v54  ;;  %9676 = vst [vmem:[#allocation157_spill] sm:$0xff] %v5016_v63  ;;  %v240_v54 = vld [vmem:[%s8928_s0] sm:$0xff] }
  0x71   :  { %567 = vmatpush2.msra.mxu1 %v4992_v58  ;;  %497 = vmatprep.subr.mxu0 %v4997_v0  ;;  %v241_v58 = vld [vmem:[%s8928_s0 + $0x8] sm:$0xff] }
  0x72   :  { %568 = vmatprep.subr.mxu1 %v5004_v50  ;;  %498 = vmatpush2.msra.mxu0 %v5009_v62 }
  0x73   :  { %569 = vmatpush2.msra.mxu1 %v5016_v63  ;;  %606 = vmatprep.subr.mxu0 %v4059_v1  ;;  %v242_v1 = vld [vmem:[%s8928_s0 + $0x10] sm:$0xff] }
  0x74   :  { %677 = vmatprep.subr.mxu1 %v4080_v9 }
  0xf1   :  { %v310_v52 = vpop.f32.mrf.mxu0 }
  0xf2   :  { %v386_v0 = vadd.f32 %v310_v52, %v240_v54 }
  0xf3   :  { %v312_v60 = vpop.f32.mrf.mxu0  ;;  %v381_v9 = vpop.f32.mrf.mxu1 }
  0xf4   :  { %v3034_v50 = vmul.f32 -1.442695, %v386_v0  ;;  %v387_v56 = vadd.f32 %v312_v60, %v241_v58  ;;  %v388_v63 = vadd.f32 %v381_v9, %v242_v1 }
  0xf5   :  { %v383_v59 = vpop.f32.mrf.mxu1 }
  0xf6   :  { %3118 = vpow2.f32 %v3034_v50  ;;  %v3035_v62 = vmul.f32 -1.442695, %v387_v56  ;;  %v3036_v48 = vmul.f32 -1.442695, %v388_v63  ;;  %v389_v57 = vadd.f32 %v383_v59, %v243_v61  ;;  %v9726_v63 = vld [vmem:[#allocation63_spill] sm:$0xff] }
  0xf8   :  { %3120 = vpow2.f32 %v3035_v62 }
  0xf9   :  { %3122 = vpow2.f32 %v3036_v48 }
  0xfa   :  { %3124 = vtanh.f32 %v389_v57  ;;  %v9725_v57 = vld [vmem:[#allocation62_spill] sm:$0xff] }
 0x103   :  { %v3119_v52 = vpop.eup %3118 }
 0x104   :  { %v399_v54 = vadd.f32 1.0, %v3119_v52  ;;  %v9727_v52 = vld [vmem:[#allocation64_spill] sm:$0xff] }
 0x105   :  { %v3121_v0 = vpop.eup %3120 }
 0x106   :  { %3126 = vrcp.f32 %v399_v54  ;;  %v400_v50 = vadd.f32 1.0, %v3121_v0  ;;  %v3123_v56 = vpop.eup %3122  ;;  %v9728_v54 = vld [vmem:[#allocation65_spill] sm:$0xff]  ;;  %v9729_v0 = vld [vmem:[#allocation66_spill] sm:$0xff] }
 0x107   :  { %v3125_v58 = vpop.eup %3124  ;;  %v401_v1 = vadd.f32 1.0, %v3123_v56  ;;  %v9731_v56 = vld [vmem:[#allocation68_spill] sm:$0xff] }
 0x108   :  { %3128 = vrcp.f32 %v400_v50  ;;  %v9730_v50 = vld [vmem:[#allocation67_spill] sm:$0xff] }
 0x109   :  { %3130 = vrcp.f32 %v401_v1  ;;  %v9735_v1 = vld [vmem:[#allocation72_spill] sm:$0xff] }
 0x113   :  { %v3127_v60 = vpop.eup %3126 }
 0x114   :  { %v410_v46 = vmul.f32 %v3127_v60, %v3125_v58  ;;  %v9732_v58 = vld [vmem:[#allocation69_spill] sm:$0xff]  ;;  %v9733_v60 = vld [vmem:[#allocation70_spill] sm:$0xff] }
 0x115   :  { %v3129_v62 = vpop.eup %3128 }
 0x116   :  { %v409_v9 = vmul.f32 0.0, %v3129_v62  ;;  %v3131_v59 = vpop.eup %3130  ;;  %v9734_v62 = vld [vmem:[#allocation71_spill] sm:$0xff] }
 0x118   :  { %v5037_v55 = vadd.f32 %v410_v46, %v409_v9  ;;  %v9720_v46 = vld [vmem:[#allocation57_spill] sm:$0xff] }
 0x119   :  { %v9736_v9 = vld [vmem:[#allocation73_spill] sm:$0xff] }
 0x11a   :  { %3132 = vtanh.f32 %v5037_v55 }
 0x127   :  { %v3133_v61 = vpop.eup %3132 }
 0x128   :  { %v5040_v48 = vmul.f32 %v3133_v61, %v3131_v59  ;;  %v9737_v59 = vld [vmem:[#allocation74_spill] sm:$0xff]  ;;  %v9738_v61 = vld [vmem:[#allocation75_spill] sm:$0xff] }
 0x12a   :  { %500 = vmatmul.mubr.f32.vlgmr.msra.gmra.mxu0 %v5040_v48  ;;  %571 = vmatmul.mubr.f32.vlgmr.msra.gmra.mxu1 %v5040_v48 }
 0x12b   :  { %607 = vmatpush1.msra.mxu0 %v4061_v2  ;;  %678 = vmatpush1.msra.mxu1 %v4086_v11  ;;  %v9677_v2 = vld [vmem:[#allocation20_spill] sm:$0xff]  ;;  %v9685_v11 = vld [vmem:[#allocation26_spill] sm:$0xff] }
 0x12c   :  { %608 = vmatprep.subr.mxu0 %v4063_v3  ;;  %679 = vmatprep.subr.mxu1 %v4092_v13  ;;  %v9678_v3 = vld [vmem:[#allocation15_spill] sm:$0xff]  ;;  %v9687_v13 = vld [vmem:[#allocation28_spill] sm:$0xff] }
 0x12d   :  { %609 = vmatpush1.msra.mxu0 %v4066_v4  ;;  %680 = vmatpush1.msra.mxu1 %v4094_v14  ;;  %v9679_v4 = vld [vmem:[#allocation22_spill] sm:$0xff]  ;;  %v9688_v14 = vld [vmem:[#allocation21_spill] sm:$0xff] }
 0x12e   :  { %610 = vmatprep.subr.mxu0 %v4069_v5  ;;  %681 = vmatprep.subr.mxu1 %v4100_v16  ;;  %v9680_v5 = vld [vmem:[#allocation16_spill] sm:$0xff]  ;;  %v9690_v16 = vld [vmem:[#allocation23_spill] sm:$0xff] }
 0x12f   :  { %611 = vmatpush1.msra.mxu0 %v4072_v6  ;;  %682 = vmatpush1.msra.mxu1 %v4106_v18  ;;  %v9681_v6 = vld [vmem:[#allocation24_spill] sm:$0xff] }
 0x130   :  { %612 = vmatprep.subr.mxu0 %v4075_v7  ;;  %683 = vmatprep.subr.mxu1 %v4108_v19  ;;  %v9682_v7 = vld [vmem:[#allocation17_spill] sm:$0xff]  ;;  %v9692_v18 = vld [vmem:[#allocation32_spill] sm:$0xff]  ;;  %v9693_v19 = vld [vmem:[#allocation27_spill] sm:$0xff] }
 0x131   :  { %613 = vmatpush1.msra.mxu0 %v4078_v8  ;;  %684 = vmatpush1.msra.mxu1 %v4114_v21  ;;  %v9683_v8 = vld [vmem:[#allocation25_spill] sm:$0xff] }
 0x132   :  { %614 = vmatprep.subr.mxu0 %v4083_v10  ;;  %685 = vmatprep.subr.mxu1 %v4120_v23  ;;  %v9684_v10 = vld [vmem:[#allocation18_spill] sm:$0xff]  ;;  %v9695_v21 = vld [vmem:[#allocation29_spill] sm:$0xff]  ;;  %v9697_v23 = vld [vmem:[#allocation31_spill] sm:$0xff] }
 0x133   :  { %615 = vmatpush1.msra.mxu0 %v4089_v12  ;;  %686 = vmatpush1.msra.mxu1 %v4126_v25  ;;  %v9686_v12 = vld [vmem:[#allocation19_spill] sm:$0xff]  ;;  %v9699_v25 = vld [vmem:[#allocation33_spill] sm:$0xff] }
 0x134   :  { %616 = vmatprep.subr.mxu0 %v4097_v15  ;;  %687 = vmatprep.subr.mxu1 %v4132_v27  ;;  %v9689_v15 = vld [vmem:[#allocation30_spill] sm:$0xff]  ;;  %v9701_v27 = vld [vmem:[#allocation36_spill] sm:$0xff] }
 0x135   :  { %617 = vmatpush1.msra.mxu0 %v4103_v17  ;;  %688 = vmatpush1.msra.mxu1 %v4138_v29  ;;  %v9691_v17 = vmov 0.0   ;;  %v9703_v29 = vld [vmem:[#allocation38_spill] sm:$0xff] }
 0x136   :  { %618 = vmatprep.subr.mxu0 %v4111_v20  ;;  %689 = vmatprep.subr.mxu1 %v4144_v31  ;;  %v9694_v20 = vld [vmem:[#allocation34_spill] sm:$0xff]  ;;  %v9705_v31 = vld [vmem:[#allocation40_spill] sm:$0xff] }
 0x137   :  { %619 = vmatpush1.msra.mxu0 %v4117_v22  ;;  %690 = vmatpush1.msra.mxu1 %v4150_v33  ;;  %v9696_v22 = vld [vmem:[#allocation35_spill] sm:$0xff]  ;;  %v9707_v33 = vld [vmem:[#allocation42_spill] sm:$0xff] }
 0x138   :  { %620 = vmatprep.subr.mxu0 %v4123_v24  ;;  %691 = vmatprep.subr.mxu1 %v4156_v35  ;;  %v9698_v24 = vld [vmem:[#allocation37_spill] sm:$0xff]  ;;  %v9709_v35 = vld [vmem:[#allocation46_spill] sm:$0xff] }
 0x139   :  { %621 = vmatpush1.msra.mxu0 %v4129_v26  ;;  %692 = vmatpush1.msra.mxu1 %v4162_v37  ;;  %v9700_v26 = vld [vmem:[#allocation39_spill] sm:$0xff]  ;;  %v9711_v37 = vld [vmem:[#allocation48_spill] sm:$0xff] }
 0x13a   :  { %622 = vmatprep.subr.mxu0 %v4135_v28  ;;  %693 = vmatprep.subr.mxu1 %v4168_v39  ;;  %v9702_v28 = vld [vmem:[#allocation41_spill] sm:$0xff]  ;;  %v9713_v39 = vld [vmem:[#allocation50_spill] sm:$0xff] }
 0x13b   :  { %623 = vmatpush1.msra.mxu0 %v4141_v30  ;;  %694 = vmatpush1.msra.mxu1 %v4174_v41  ;;  %v9704_v30 = vld [vmem:[#allocation43_spill] sm:$0xff]  ;;  %v9715_v41 = vld [vmem:[#allocation52_spill] sm:$0xff] }
 0x13c   :  { %624 = vmatprep.subr.mxu0 %v4147_v32  ;;  %695 = vmatprep.subr.mxu1 %v4180_v43  ;;  %v9706_v32 = vld [vmem:[#allocation44_spill] sm:$0xff]  ;;  %v9717_v43 = vld [vmem:[#allocation54_spill] sm:$0xff] }
 0x13d   :  { %625 = vmatpush1.msra.mxu0 %v4153_v34  ;;  %696 = vmatpush1.msra.mxu1 %v4186_v45  ;;  %v9708_v34 = vld [vmem:[#allocation45_spill] sm:$0xff]  ;;  %v9719_v45 = vld [vmem:[#allocation56_spill] sm:$0xff] }
 0x13e   :  { %626 = vmatprep.subr.mxu0 %v4159_v36  ;;  %697 = vmatprep.subr.mxu1 %v4192_v47  ;;  %v9710_v36 = vld [vmem:[#allocation47_spill] sm:$0xff]  ;;  %v9721_v47 = vld [vmem:[#allocation58_spill] sm:$0xff] }
 0x13f   :  { %627 = vmatpush1.msra.mxu0 %v4165_v38  ;;  %698 = vmatpush1.msra.mxu1 %v4198_v49  ;;  %v9712_v38 = vld [vmem:[#allocation49_spill] sm:$0xff]  ;;  %v9722_v49 = vld [vmem:[#allocation59_spill] sm:$0xff] }
 0x140   :  { %628 = vmatprep.subr.mxu0 %v4171_v40  ;;  %699 = vmatprep.subr.mxu1 %v4204_v51  ;;  %v9714_v40 = vld [vmem:[#allocation51_spill] sm:$0xff]  ;;  %v9723_v51 = vld [vmem:[#allocation60_spill] sm:$0xff] }
 0x141   :  { %629 = vmatpush1.msra.mxu0 %v4177_v42  ;;  %700 = vmatpush1.msra.mxu1 %v4210_v53  ;;  %v9716_v42 = vld [vmem:[#allocation53_spill] sm:$0xff] }
 0x142   :  { %630 = vmatprep.subr.mxu0 %v4183_v44  ;;  %701 = vmatprep.subr.mxu1 %v9677_v2  ;;  %v9718_v44 = vld [vmem:[#allocation55_spill] sm:$0xff]  ;;  %v9724_v53 = vld [vmem:[#allocation61_spill] sm:$0xff] }
 0x143   :  { %631 = vmatpush1.msra.mxu0 %v9678_v3  ;;  %702 = vmatpush1.msra.mxu1 %v9679_v4  ;;  %v9740_v2 = vld [vmem:[#allocation77_spill] sm:$0xff]  ;;  %v9741_v3 = vld [vmem:[#allocation78_spill] sm:$0xff]  ;;  %v9742_v4 = vld [vmem:[#allocation79_spill] sm:$0xff] }
 0x144   :  { %632 = vmatprep.subr.mxu0 %v9680_v5  ;;  %703 = vmatprep.subr.mxu1 %v9681_v6  ;;  %v9743_v5 = vld [vmem:[#allocation80_spill] sm:$0xff]  ;;  %v9744_v6 = vld [vmem:[#allocation81_spill] sm:$0xff] }
 0x145   :  { %633 = vmatpush1.msra.mxu0 %v9682_v7  ;;  %704 = vmatpush1.msra.mxu1 %v9683_v8  ;;  %v9745_v7 = vld [vmem:[#allocation82_spill] sm:$0xff]  ;;  %v9746_v8 = vld [vmem:[#allocation83_spill] sm:$0xff] }
 0x146   :  { %634 = vmatprep.subr.mxu0 %v9684_v10  ;;  %705 = vmatprep.subr.mxu1 %v9685_v11  ;;  %v9747_v10 = vld [vmem:[#allocation84_spill] sm:$0xff]  ;;  %v9748_v11 = vld [vmem:[#allocation85_spill] sm:$0xff] }
 0x147   :  { %635 = vmatpush1.msra.mxu0 %v9686_v12  ;;  %706 = vmatpush1.msra.mxu1 %v9687_v13  ;;  %v9749_v12 = vld [vmem:[#allocation86_spill] sm:$0xff]  ;;  %v9750_v13 = vld [vmem:[#allocation87_spill] sm:$0xff] }
 0x148   :  { %636 = vmatprep.subr.mxu0 %v9688_v14  ;;  %707 = vmatprep.subr.mxu1 %v9689_v15  ;;  %v9751_v14 = vld [vmem:[#allocation88_spill] sm:$0xff]  ;;  %v9752_v15 = vld [vmem:[#allocation89_spill] sm:$0xff] }
 0x149   :  { %637 = vmatpush1.msra.mxu0 %v9690_v16  ;;  %670 = vmatprep.mubr.f32.mxu0 %v9691_v17  ;;  %v9753_v16 = vld [vmem:[#allocation90_spill] sm:$0xff] }
 0x14a   :  { %708 = vmatpush1.msra.mxu1 %v9692_v18  ;;  %741 = vmatprep.mubr.f32.mxu1 %v9691_v17  ;;  %v9754_v18 = vld [vmem:[#allocation91_spill] sm:$0xff] }
 0x14b   :  { %671 = vmatmul.mubr.f32.vlgmr.msra.gmra.mxu0 %v5040_v48  ;;  %742 = vmatmul.mubr.f32.vlgmr.msra.gmra.mxu1 %v5040_v48  ;;  %v9739_v48 = vld [vmem:[#allocation76_spill] sm:$0xff] }
 0x14c   :  { %776 = vmatprep.subr.mxu0 %v9693_v19  ;;  %847 = vmatprep.subr.mxu1 %v9694_v20  ;;  %v9755_v19 = vld [vmem:[#allocation92_spill] sm:$0xff]  ;;  %v9756_v20 = vld [vmem:[#allocation93_spill] sm:$0xff] }
 0x14d   :  { %777 = vmatpush1.msra.mxu0 %v9695_v21  ;;  %848 = vmatpush1.msra.mxu1 %v9696_v22  ;;  %v9757_v21 = vld [vmem:[#allocation94_spill] sm:$0xff]  ;;  %v9758_v22 = vld [vmem:[#allocation95_spill] sm:$0xff] }
 0x14e   :  { %778 = vmatprep.subr.mxu0 %v9697_v23  ;;  %849 = vmatprep.subr.mxu1 %v9698_v24  ;;  %v9759_v23 = vld [vmem:[#allocation96_spill] sm:$0xff]  ;;  %v9760_v24 = vld [vmem:[#allocation97_spill] sm:$0xff] }
 0x14f   :  { %779 = vmatpush1.msra.mxu0 %v9699_v25  ;;  %850 = vmatpush1.msra.mxu1 %v9700_v26  ;;  %v9761_v25 = vld [vmem:[#allocation98_spill] sm:$0xff]  ;;  %v9762_v26 = vld [vmem:[#allocation99_spill] sm:$0xff] }
 0x150   :  { %780 = vmatprep.subr.mxu0 %v9701_v27  ;;  %851 = vmatprep.subr.mxu1 %v9702_v28  ;;  %v9763_v27 = vld [vmem:[#allocation100_spill] sm:$0xff]  ;;  %v9764_v28 = vld [vmem:[#allocation101_spill] sm:$0xff] }
 0x151   :  { %781 = vmatpush1.msra.mxu0 %v9703_v29  ;;  %852 = vmatpush1.msra.mxu1 %v9704_v30  ;;  %v9765_v29 = vld [vmem:[#allocation102_spill] sm:$0xff]  ;;  %v9766_v30 = vld [vmem:[#allocation103_spill] sm:$0xff] }
 0x152   :  { %782 = vmatprep.subr.mxu0 %v9705_v31  ;;  %853 = vmatprep.subr.mxu1 %v9706_v32  ;;  %v9767_v31 = vld [vmem:[#allocation104_spill] sm:$0xff]  ;;  %v9768_v32 = vld [vmem:[#allocation105_spill] sm:$0xff] }
 0x153   :  { %783 = vmatpush1.msra.mxu0 %v9707_v33  ;;  %854 = vmatpush1.msra.mxu1 %v9708_v34  ;;  %v9769_v33 = vld [vmem:[#allocation106_spill] sm:$0xff]  ;;  %v9770_v34 = vld [vmem:[#allocation107_spill] sm:$0xff] }
 0x154   :  { %784 = vmatprep.subr.mxu0 %v9709_v35  ;;  %855 = vmatprep.subr.mxu1 %v9710_v36  ;;  %v9771_v35 = vld [vmem:[#allocation108_spill] sm:$0xff]  ;;  %v9772_v36 = vld [vmem:[#allocation109_spill] sm:$0xff] }
 0x155   :  { %785 = vmatpush1.msra.mxu0 %v9711_v37  ;;  %856 = vmatpush1.msra.mxu1 %v9712_v38  ;;  %v9773_v37 = vld [vmem:[#allocation110_spill] sm:$0xff]  ;;  %v9774_v38 = vld [vmem:[#allocation111_spill] sm:$0xff] }
 0x156   :  { %786 = vmatprep.subr.mxu0 %v9713_v39  ;;  %857 = vmatprep.subr.mxu1 %v9714_v40  ;;  %v9775_v39 = vld [vmem:[#allocation112_spill] sm:$0xff]  ;;  %v9776_v40 = vld [vmem:[#allocation113_spill] sm:$0xff] }
 0x157   :  { %787 = vmatpush1.msra.mxu0 %v9715_v41  ;;  %858 = vmatpush1.msra.mxu1 %v9716_v42  ;;  %v9777_v41 = vld [vmem:[#allocation114_spill] sm:$0xff]  ;;  %v9778_v42 = vld [vmem:[#allocation115_spill] sm:$0xff] }
 0x158   :  { %788 = vmatprep.subr.mxu0 %v9717_v43  ;;  %859 = vmatprep.subr.mxu1 %v9718_v44  ;;  %v9779_v43 = vld [vmem:[#allocation116_spill] sm:$0xff]  ;;  %v9780_v44 = vld [vmem:[#allocation117_spill] sm:$0xff] }
 0x159   :  { %789 = vmatpush1.msra.mxu0 %v9719_v45  ;;  %860 = vmatpush1.msra.mxu1 %v9720_v46  ;;  %v9781_v45 = vld [vmem:[#allocation118_spill] sm:$0xff]  ;;  %v9782_v46 = vld [vmem:[#allocation119_spill] sm:$0xff] }
 0x15a   :  { %790 = vmatprep.subr.mxu0 %v9721_v47  ;;  %861 = vmatprep.subr.mxu1 %v9722_v49  ;;  %v9783_v47 = vld [vmem:[#allocation120_spill] sm:$0xff]  ;;  %v9784_v49 = vld [vmem:[#allocation121_spill] sm:$0xff] }
 0x15b   :  { %791 = vmatpush1.msra.mxu0 %v9723_v51  ;;  %862 = vmatpush1.msra.mxu1 %v9724_v53  ;;  %v9785_v51 = vld [vmem:[#allocation122_spill] sm:$0xff]  ;;  %v9786_v53 = vld [vmem:[#allocation123_spill] sm:$0xff] }
 0x15c   :  { %792 = vmatprep.subr.mxu0 %v9725_v57  ;;  %863 = vmatprep.subr.mxu1 %v9726_v63  ;;  %v9787_v57 = vld [vmem:[#allocation124_spill] sm:$0xff]  ;;  %v9788_v63 = vld [vmem:[#allocation125_spill] sm:$0xff] }
 0x15d   :  { %793 = vmatpush1.msra.mxu0 %v9727_v52  ;;  %864 = vmatpush1.msra.mxu1 %v9728_v54  ;;  %v9789_v52 = vld [vmem:[#allocation126_spill] sm:$0xff]  ;;  %v9790_v54 = vld [vmem:[#allocation127_spill] sm:$0xff] }
 0x15e   :  { %794 = vmatprep.subr.mxu0 %v9729_v0  ;;  %865 = vmatprep.subr.mxu1 %v9730_v50  ;;  %v9791_v0 = vld [vmem:[#allocation128_spill] sm:$0xff]  ;;  %v9792_v50 = vld [vmem:[#allocation129_spill] sm:$0xff] }
 0x15f   :  { %795 = vmatpush1.msra.mxu0 %v9731_v56  ;;  %866 = vmatpush1.msra.mxu1 %v9732_v58  ;;  %v9793_v56 = vld [vmem:[#allocation130_spill] sm:$0xff]  ;;  %v9794_v58 = vld [vmem:[#allocation131_spill] sm:$0xff] }
 0x160   :  { %796 = vmatprep.subr.mxu0 %v9733_v60  ;;  %867 = vmatprep.subr.mxu1 %v9734_v62  ;;  %v9795_v60 = vld [vmem:[#allocation132_spill] sm:$0xff]  ;;  %v9796_v62 = vld [vmem:[#allocation133_spill] sm:$0xff] }
 0x161   :  { %797 = vmatpush1.msra.mxu0 %v9735_v1  ;;  %868 = vmatpush1.msra.mxu1 %v9736_v9  ;;  %v9797_v1 = vld [vmem:[#allocation134_spill] sm:$0xff]  ;;  %v9798_v9 = vld [vmem:[#allocation135_spill] sm:$0xff] }
 0x162   :  { %798 = vmatprep.subr.mxu0 %v9737_v59  ;;  %869 = vmatprep.subr.mxu1 %v9738_v61  ;;  %v9799_v59 = vld [vmem:[#allocation136_spill] sm:$0xff]  ;;  %v9800_v61 = vld [vmem:[#allocation137_spill] sm:$0xff] }
 0x163   :  { %799 = vmatpush1.msra.mxu0 %v9739_v48  ;;  %870 = vmatpush1.msra.mxu1 %v9740_v2  ;;  %v9801_v48 = vld [vmem:[#allocation138_spill] sm:$0xff]  ;;  %v9802_v2 = vld [vmem:[#allocation139_spill] sm:$0xff] }
 0x164   :  { %800 = vmatprep.subr.mxu0 %v9741_v3  ;;  %871 = vmatprep.subr.mxu1 %v9742_v4  ;;  %v9803_v3 = vld [vmem:[#allocation140_spill] sm:$0xff]  ;;  %v9804_v4 = vld [vmem:[#allocation141_spill] sm:$0xff] }
 0x165   :  { %801 = vmatpush1.msra.mxu0 %v9743_v5  ;;  %872 = vmatpush1.msra.mxu1 %v9744_v6  ;;  %v9805_v5 = vld [vmem:[#allocation142_spill] sm:$0xff]  ;;  %v9806_v6 = vld [vmem:[#allocation143_spill] sm:$0xff] }
 0x166   :  { %802 = vmatprep.subr.mxu0 %v9745_v7  ;;  %873 = vmatprep.subr.mxu1 %v9746_v8  ;;  %v9807_v7 = vld [vmem:[#allocation144_spill] sm:$0xff]  ;;  %v9808_v8 = vld [vmem:[#allocation145_spill] sm:$0xff] }
 0x167   :  { %803 = vmatpush1.msra.mxu0 %v9747_v10  ;;  %874 = vmatpush1.msra.mxu1 %v9748_v11  ;;  %v9809_v10 = vld [vmem:[#allocation146_spill] sm:$0xff]  ;;  %v9810_v11 = vld [vmem:[#allocation147_spill] sm:$0xff] }
 0x168   :  { %804 = vmatprep.subr.mxu0 %v9749_v12  ;;  %875 = vmatprep.subr.mxu1 %v9750_v13  ;;  %v9811_v12 = vld [vmem:[#allocation148_spill] sm:$0xff]  ;;  %v9812_v13 = vld [vmem:[#allocation149_spill] sm:$0xff] }
 0x169   :  { %805 = vmatpush1.msra.mxu0 %v9751_v14  ;;  %876 = vmatpush1.msra.mxu1 %v9752_v15  ;;  %v9813_v14 = vld [vmem:[#allocation150_spill] sm:$0xff]  ;;  %v9814_v15 = vld [vmem:[#allocation151_spill] sm:$0xff] }
 0x16a   :  { %806 = vmatprep.subr.mxu0 %v9753_v16  ;;  %877 = vmatprep.subr.mxu1 %v9754_v18  ;;  %v9815_v16 = vld [vmem:[#allocation152_spill] sm:$0xff]  ;;  %v9816_v18 = vld [vmem:[#allocation153_spill] sm:$0xff] }
 0x16b   :  { %807 = vmatpush1.msra.mxu0 %v9755_v19  ;;  %878 = vmatpush1.msra.mxu1 %v9756_v20  ;;  %v9817_v19 = vld [vmem:[#allocation154_spill] sm:$0xff]  ;;  %v9818_v20 = vld [vmem:[#allocation155_spill] sm:$0xff] }
 0x16c   :  { %808 = vmatprep.subr.mxu0 %v9757_v21  ;;  %879 = vmatprep.subr.mxu1 %v9758_v22  ;;  %v9819_v21 = vld [vmem:[#allocation156_spill] sm:$0xff]  ;;  %v9820_v22 = vld [vmem:[#allocation157_spill] sm:$0xff] }
 0x16d   :  { %809 = vmatpush2.msra.mxu0 %v9759_v23  ;;  %880 = vmatpush2.msra.mxu1 %v9760_v24  ;;  %v5238_v23 = vld [vmem:[#allocation6 + $0x1e8] sm:$0xff]  ;;  %v5241_v24 = vld [vmem:[#allocation6 + $0x1f8] sm:$0xff] }
 0x16e   :  { %810 = vmatprep.subr.mxu0 %v9761_v25  ;;  %881 = vmatprep.subr.mxu1 %v9762_v26  ;;  %v415_v25 = vlaneseq }
 0x16f   :  { %811 = vmatpush2.msra.mxu0 %v9763_v27  ;;  %882 = vmatpush2.msra.mxu1 %v9764_v28  ;;  %v235_v28 = vld [vmem:[%s8931_s3] sm:$0xf] }
 0x170   :  { %812 = vmatprep.subr.mxu0 %v9765_v29  ;;  %883 = vmatprep.subr.mxu1 %v9766_v30  ;;  %v416_v26 = vshrl.u32 %v415_v25, 7 }
 0x171   :  { %813 = vmatpush2.msra.mxu0 %v9767_v31  ;;  %884 = vmatpush2.msra.mxu1 %v9768_v32 }
 0x172   :  { %814 = vmatprep.subr.mxu0 %v9769_v33  ;;  %885 = vmatprep.subr.mxu1 %v9770_v34  ;;  %v417_v27 = vsub.s32 0, %v416_v26  ;;  %v421_v29 = vsub.s32 1, %v416_v26 }
 0x173   :  { %815 = vmatpush2.msra.mxu0 %v9771_v35  ;;  %886 = vmatpush2.msra.mxu1 %v9772_v36 }
 0x174   :  { %816 = vmatprep.subr.mxu0 %v9773_v37  ;;  %887 = vmatprep.subr.mxu1 %v9774_v38  ;;  %v5247_v30 = vrot.slane %v235_v28, %v417_v27  ;;  %v5249_v31 = vrot.slane %v235_v28, %v421_v29  ;;  %v425_v37 = vsub.s32 2, %v416_v26 }
 0x175   :  { %817 = vmatpush2.msra.mxu0 %v9775_v39  ;;  %888 = vmatpush2.msra.mxu1 %v9776_v40 }
 0x176   :  { %818 = vmatprep.subr.mxu0 %v9777_v41  ;;  %889 = vmatprep.subr.mxu1 %v9778_v42  ;;  %9821 = vst [vmem:[#allocation20_spill] sm:$0xff] %v5249_v31  ;;  %v5253_v39 = vrot.slane %v235_v28, %v425_v37  ;;  %v429_v41 = vsub.s32 3, %v416_v26  ;;  %v5294_v37 = vld [vmem:[#allocation6 + $0x1c0] sm:$0xff] }
 0x177   :  { %819 = vmatpush2.msra.mxu0 %v9779_v43  ;;  %890 = vmatpush2.msra.mxu1 %v9780_v44 }
 0x178   :  { %820 = vmatprep.subr.mxu0 %v9781_v45  ;;  %891 = vmatprep.subr.mxu1 %v9782_v46  ;;  %9822 = vst [vmem:[#allocation15_spill] sm:$0xff] %v5253_v39  ;;  %v5256_v43 = vrot.slane %v235_v28, %v429_v41  ;;  %v5303_v41 = vld [vmem:[#allocation6 + $0x1b8] sm:$0xff] }
 0x179   :  { %821 = vmatpush2.msra.mxu0 %v9783_v47  ;;  %892 = vmatpush2.msra.mxu1 %v9784_v49 }
 0x17a   :  { %822 = vmatprep.subr.mxu0 %v9785_v51  ;;  %893 = vmatprep.subr.mxu1 %v9786_v53  ;;  %9823 = vst [vmem:[#allocation22_spill] sm:$0xff] %v5256_v43 }
 0x17b   :  { %823 = vmatpush2.msra.mxu0 %v9787_v57  ;;  %894 = vmatpush2.msra.mxu1 %v9788_v63  ;;  %v3040_v57 = vld [vmem:[%s8928_s0 + $0x20] sm:$0xff] }
 0x17c   :  { %824 = vmatprep.subr.mxu0 %v9789_v52  ;;  %895 = vmatprep.subr.mxu1 %v9790_v54  ;;  %v3041_v54 = vld [vmem:[%s8928_s0 + $0x28] sm:$0xff] }
 0x17d   :  { %825 = vmatpush2.msra.mxu0 %v9791_v0  ;;  %896 = vmatpush2.msra.mxu1 %v9792_v50 }
 0x17e   :  { %826 = vmatprep.subr.mxu0 %v9793_v56  ;;  %897 = vmatprep.subr.mxu1 %v9794_v58 }
 0x17f   :  { %827 = vmatpush2.msra.mxu0 %v9795_v60  ;;  %898 = vmatpush2.msra.mxu1 %v9796_v62 }
 0x180   :  { %828 = vmatprep.subr.mxu0 %v9797_v1  ;;  %899 = vmatprep.subr.mxu1 %v9798_v9 }
 0x181   :  { %829 = vmatpush2.msra.mxu0 %v9799_v59  ;;  %900 = vmatpush2.msra.mxu1 %v9800_v61 }
 0x182   :  { %830 = vmatprep.subr.mxu0 %v9801_v48  ;;  %901 = vmatprep.subr.mxu1 %v9802_v2 }
 0x183   :  { %831 = vmatpush2.msra.mxu0 %v9803_v3  ;;  %902 = vmatpush2.msra.mxu1 %v9804_v4  ;;  %v3042_v3 = vld [vmem:[%s8928_s0 + $0x30] sm:$0xff] }
 0x184   :  { %832 = vmatprep.subr.mxu0 %v9805_v5  ;;  %903 = vmatprep.subr.mxu1 %v9806_v6  ;;  %v3043_v6 = vld [vmem:[%s8928_s0 + $0x38] sm:$0xff] }
 0x185   :  { %833 = vmatpush2.msra.mxu0 %v9807_v7  ;;  %904 = vmatpush2.msra.mxu1 %v9808_v8 }
 0x186   :  { %834 = vmatprep.subr.mxu0 %v9809_v10  ;;  %905 = vmatprep.subr.mxu1 %v9810_v11 }
 0x187   :  { %835 = vmatpush2.msra.mxu0 %v9811_v12  ;;  %906 = vmatpush2.msra.mxu1 %v9812_v13 }
 0x188   :  { %836 = vmatprep.subr.mxu0 %v9813_v14  ;;  %907 = vmatprep.subr.mxu1 %v9814_v15 }
 0x189   :  { %837 = vmatpush2.msra.mxu0 %v9815_v16  ;;  %908 = vmatpush2.msra.mxu1 %v9816_v18 }
 0x18a   :  { %838 = vmatprep.subr.mxu0 %v9817_v19  ;;  %909 = vmatprep.subr.mxu1 %v9818_v20 }
 0x18b   :  { %839 = vmatpush2.msra.mxu0 %v9819_v21  ;;  %910 = vmatpush2.msra.mxu1 %v9820_v22 }
 0x18c   :  { %947 = vmatprep.subr.mxu0 %v5238_v23  ;;  %1018 = vmatprep.subr.mxu1 %v5241_v24 }
 0x1ea   :  { %v501_v32 = vpop.f32.mrf.mxu0  ;;  %v572_v40 = vpop.f32.mrf.mxu1 }
 0x1eb   :  { %v502_v33 = vadd.f32 %v501_v32, %v5247_v30  ;;  %v573_v42 = vadd.f32 %v572_v40, %v5253_v39  ;;  %v5300_v40 = vld [vmem:[#allocation6 + $0x1a8] sm:$0xff] }
 0x1ec   :  { %v503_v34 = vpop.f32.mrf.mxu0  ;;  %v574_v44 = vpop.f32.mrf.mxu1 }
 0x1ed   :  { %v3037_v35 = vmul.f32 -1.442695, %v502_v33  ;;  %v504_v36 = vadd.f32 %v503_v34, %v5249_v31  ;;  %v3039_v45 = vmul.f32 -1.442695, %v573_v42  ;;  %v575_v47 = vadd.f32 %v574_v44, %v5256_v43  ;;  %v5282_v34 = vld [vmem:[#allocation6 + $0x1e0] sm:$0xff]  ;;  %v5309_v44 = vld [vmem:[#allocation6 + $0x1b0] sm:$0xff] }
 0x1ee   :  { %v5306_v42 = vld [vmem:[#allocation6 + $0x1a0] sm:$0xff] }
 0x1ef   :  { %3134 = vpow2.f32 %v3037_v35  ;;  %v3038_v38 = vmul.f32 -1.442695, %v504_v36  ;;  %v5285_v35 = vld [vmem:[#allocation6 + $0x1f0] sm:$0xff]  ;;  %v5291_v36 = vld [vmem:[#allocation6 + $0x1d8] sm:$0xff] }
 0x1f1   :  { %3136 = vpow2.f32 %v3038_v38  ;;  %v5297_v38 = vld [vmem:[#allocation6 + $0x1d0] sm:$0xff] }
 0x1f2   :  { %3138 = vpow2.f32 %v3039_v45  ;;  %v5312_v45 = vld [vmem:[#allocation6 + $0x188] sm:$0xff] }
 0x1fc   :  { %v3135_v46 = vpop.eup %3134 }
 0x1fd   :  { %v586_v49 = vadd.f32 1.0, %v3135_v46  ;;  %v5315_v46 = vld [vmem:[#allocation6 + $0x198] sm:$0xff] }
 0x1fe   :  { %v3137_v51 = vpop.eup %3136 }
 0x1ff   :  { %3140 = vrcp.f32 %v586_v49  ;;  %v587_v53 = vadd.f32 1.0, %v3137_v51  ;;  %v3139_v63 = vpop.eup %3138  ;;  %v5321_v49 = vld [vmem:[#allocation6 + $0x190] sm:$0xff]  ;;  %v5324_v51 = vld [vmem:[#allocation6 + $0x168] sm:$0xff] }
 0x200   :  { %3142 = vtanh.f32 %v575_v47  ;;  %v588_v9 = vadd.f32 1.0, %v3139_v63  ;;  %v5318_v47 = vld [vmem:[#allocation6 + $0x180] sm:$0xff]  ;;  %v5333_v63 = vld [vmem:[#allocation6 + $0x170] sm:$0xff] }
 0x201   :  { %3144 = vrcp.f32 %v587_v53  ;;  %v5327_v53 = vld [vmem:[#allocation6 + $0x178] sm:$0xff] }
 0x20b   :  { %v672_v52 = vpop.f32.mrf.mxu0  ;;  %v743_v4 = vpop.f32.mrf.mxu1 }
 0x20c   :  { %v3141_v0 = vpop.eup %3140  ;;  %v748_v50 = vadd.f32 %v3040_v57, %v672_v52  ;;  %v750_v5 = vadd.f32 %v3042_v3, %v743_v4  ;;  %v5330_v57 = vld [vmem:[#allocation6 + $0x160] sm:$0xff]  ;;  %v5336_v52 = vld [vmem:[#allocation6 + $0x148] sm:$0xff]  ;;  %v5375_v3 = vld [vmem:[#allocation6 + $0xf8] sm:$0xff] }
 0x20d   :  { %v3143_v56 = vpop.eup %3142  ;;  %v674_v58 = vpop.f32.mrf.mxu0  ;;  %v5378_v4 = vld [vmem:[#allocation6 + $0xe0] sm:$0xff] }
 0x20e   :  { %v3145_v60 = vpop.eup %3144  ;;  %v3044_v62 = vmul.f32 -1.442695, %v748_v50  ;;  %v749_v1 = vadd.f32 %v3041_v54, %v674_v58  ;;  %v597_v61 = vmul.f32 %v3143_v56, %v3141_v0  ;;  %v745_v7 = vpop.f32.mrf.mxu1  ;;  %v3046_v8 = vmul.f32 -1.442695, %v750_v5  ;;  %v5339_v54 = vld [vmem:[#allocation6 + $0x158] sm:$0xff]  ;;  %v5342_v0 = vld [vmem:[#allocation6 + $0x140] sm:$0xff] }
 0x20f   :  { %v596_v59 = vmul.f32 0.0, %v3145_v60  ;;  %v751_v11 = vadd.f32 %v3043_v6, %v745_v7  ;;  %v5345_v50 = vld [vmem:[#allocation6 + $0x150] sm:$0xff]  ;;  %v5348_v56 = vld [vmem:[#allocation6 + $0x128] sm:$0xff]  ;;  %v5351_v58 = vld [vmem:[#allocation6 + $0x138] sm:$0xff] }
 0x210   :  { %3146 = vpow2.f32 %v3044_v62  ;;  %v3045_v48 = vmul.f32 -1.442695, %v749_v1  ;;  %v5354_v60 = vld [vmem:[#allocation6 + $0x120] sm:$0xff]  ;;  %v5357_v62 = vld [vmem:[#allocation6 + $0x130] sm:$0xff]  ;;  %v5360_v1 = vld [vmem:[#allocation6 + $0x108] sm:$0xff] }
 0x211   :  { %v5265_v2 = vadd.f32 %v597_v61, %v596_v59  ;;  %v5366_v59 = vld [vmem:[#allocation6 + $0x100] sm:$0xff]  ;;  %v5369_v61 = vld [vmem:[#allocation6 + $0x110] sm:$0xff]  ;;  %v5384_v6 = vld [vmem:[#allocation6 + $0xc8] sm:$0xff] }
 0x212   :  { %3148 = vpow2.f32 %v3045_v48  ;;  %v5372_v48 = vld [vmem:[#allocation6 + $0xe8] sm:$0xff]  ;;  %v5381_v5 = vld [vmem:[#allocation6 + $0xf0] sm:$0xff]  ;;  %v5387_v7 = vld [vmem:[#allocation6 + $0xd8] sm:$0xff] }
 0x213   :  { %3150 = vrcp.f32 %v588_v9  ;;  %v5363_v9 = vld [vmem:[#allocation6 + $0x118] sm:$0xff] }
 0x214   :  { %3152 = vtanh.f32 %v5265_v2 }
 0x215   :  { %3154 = vpow2.f32 %v3046_v8  ;;  %v5390_v8 = vld [vmem:[#allocation6 + $0xc0] sm:$0xff] }
 0x21d   :  { %v3147_v10 = vpop.eup %3146 }
 0x21e   :  { %v761_v12 = vadd.f32 1.0, %v3147_v10  ;;  %v5393_v10 = vld [vmem:[#allocation6 + $0xd0] sm:$0xff] }
 0x21f   :  { %v3149_v13 = vpop.eup %3148 }
 0x220   :  { %v3151_v14 = vpop.eup %3150  ;;  %3156 = vrcp.f32 %v761_v12  ;;  %v762_v15 = vadd.f32 1.0, %v3149_v13  ;;  %v5399_v12 = vld [vmem:[#allocation6 + $0xb8] sm:$0xff]  ;;  %v5402_v13 = vld [vmem:[#allocation6 + $0xa0] sm:$0xff] }
 0x221   :  { %v3153_v16 = vpop.eup %3152  ;;  %3158 = vtanh.f32 %v751_v11  ;;  %v5396_v11 = vld [vmem:[#allocation6 + $0xa8] sm:$0xff] }
 0x222   :  { %3160 = vrcp.f32 %v762_v15  ;;  %v600_v18 = vmul.f32 %v3153_v16, %v3151_v14  ;;  %v3155_v19 = vpop.eup %3154  ;;  %v5405_v14 = vld [vmem:[#allocation6 + $0xb0] sm:$0xff]  ;;  %v5408_v15 = vld [vmem:[#allocation6 + $0x88] sm:$0xff]  ;;  %v5411_v16 = vld [vmem:[#allocation6 + $0x98] sm:$0xff] }
 0x223   :  { %v763_v25 = vadd.f32 1.0, %v3155_v19  ;;  %v5417_v19 = vld [vmem:[#allocation6 + $0x90] sm:$0xff] }
 0x224   :  { %840 = vmatprep.mubr.f32.mxu0 %v600_v18  ;;  %911 = vmatprep.mubr.f32.mxu1 %v600_v18  ;;  %v5414_v18 = vld [vmem:[#allocation6 + $0x80] sm:$0xff]  ;;  %9825 = vst [vmem:[#allocation24_spill] sm:$0xff] %v5417_v19 }
 0x225   :  { %3162 = vrcp.f32 %v763_v25  ;;  %9824 = vst [vmem:[#allocation16_spill] sm:$0xff] %v5414_v18  ;;  %v5429_v25 = vld [vmem:[#allocation6 + $0x70] sm:$0xff] }
 0x226   :  { %9829 = vst [vmem:[#allocation26_spill] sm:$0xff] %v5429_v25 }
 0x22d   :  { %v3157_v20 = vpop.eup %3156 }
 0x22e   :  { %v3159_v21 = vpop.eup %3158 }
 0x22f   :  { %v3161_v22 = vpop.eup %3160  ;;  %v772_v27 = vmul.f32 %v3159_v21, %v3157_v20  ;;  %v5420_v20 = vld [vmem:[#allocation6 + $0x68] sm:$0xff]  ;;  %v5423_v21 = vld [vmem:[#allocation6 + $0x78] sm:$0xff] }
 0x230   :  { %v771_v26 = vmul.f32 %v3161_v22, %v5037_v55  ;;  %v5288_v55 = vld [vmem:[#allocation6 + $0x1c8] sm:$0xff]  ;;  %9826 = vst [vmem:[#allocation17_spill] sm:$0xff] %v5420_v20  ;;  %9827 = vst [vmem:[#allocation25_spill] sm:$0xff] %v5423_v21  ;;  %v5426_v22 = vld [vmem:[#allocation6 + $0x60] sm:$0xff] }
 0x231   :  { %9828 = vst [vmem:[#allocation18_spill] sm:$0xff] %v5426_v22 }
 0x232   :  { %v5275_v28 = vadd.f32 %v772_v27, %v771_v26  ;;  %v3163_v29 = vpop.eup %3162  ;;  %v5432_v26 = vld [vmem:[#allocation6 + $0x48] sm:$0xff]  ;;  %v5435_v27 = vld [vmem:[#allocation6 + $0x58] sm:$0xff] }
 0x233   :  { %9830 = vst [vmem:[#allocation19_spill] sm:$0xff] %v5432_v26  ;;  %9831 = vst [vmem:[#allocation28_spill] sm:$0xff] %v5435_v27 }
 0x234   :  { %3164 = vtanh.f32 %v5275_v28 }
 0x241   :  { %v3165_v32 = vpop.eup %3164 }
 0x242   :  { %v5278_v33 = vmul.f32 %v3165_v32, %v3163_v29  ;;  %v5438_v29 = vld [vmem:[#allocation6 + $0x40] sm:$0xff]  ;;  %v5441_v32 = vld [vmem:[#allocation6 + $0x50] sm:$0xff] }
 0x243   :  { %9832 = vst [vmem:[#allocation21_spill] sm:$0xff] %v5438_v29  ;;  %9833 = vst [vmem:[#allocation30_spill] sm:$0xff] %v5441_v32 }
 0x244   :  { %841 = vmatmul.mubr.f32.vlgmr.msra.gmra.mxu0 %v5278_v33  ;;  %912 = vmatmul.mubr.f32.vlgmr.msra.gmra.mxu1 %v5278_v33 }
 0x245   :  { %948 = vmatpush1.msra.mxu0 %v5282_v34  ;;  %1019 = vmatpush1.msra.mxu1 %v5285_v35 }
 0x246   :  { %949 = vmatprep.subr.mxu0 %v5288_v55  ;;  %1020 = vmatprep.subr.mxu1 %v5291_v36 }
 0x247   :  { %950 = vmatpush1.msra.mxu0 %v5294_v37  ;;  %1021 = vmatpush1.msra.mxu1 %v5297_v38 }
 0x248   :  { %951 = vmatprep.subr.mxu0 %v5300_v40  ;;  %1022 = vmatprep.subr.mxu1 %v5303_v41 }
 0x249   :  { %952 = vmatpush1.msra.mxu0 %v5306_v42  ;;  %1023 = vmatpush1.msra.mxu1 %v5309_v44 }
 0x24a   :  { %953 = vmatprep.subr.mxu0 %v5312_v45  ;;  %1024 = vmatprep.subr.mxu1 %v5315_v46 }
 0x24b   :  { %954 = vmatpush1.msra.mxu0 %v5318_v47  ;;  %1025 = vmatpush1.msra.mxu1 %v5321_v49 }
 0x24c   :  { %955 = vmatprep.subr.mxu0 %v5324_v51  ;;  %1026 = vmatprep.subr.mxu1 %v5327_v53 }
 0x24d   :  { %956 = vmatpush1.msra.mxu0 %v5330_v57  ;;  %1027 = vmatpush1.msra.mxu1 %v5333_v63 }
 0x24e   :  { %957 = vmatprep.subr.mxu0 %v5336_v52  ;;  %1028 = vmatprep.subr.mxu1 %v5339_v54 }
 0x24f   :  { %958 = vmatpush1.msra.mxu0 %v5342_v0  ;;  %1029 = vmatpush1.msra.mxu1 %v5345_v50 }
 0x250   :  { %959 = vmatprep.subr.mxu0 %v5348_v56  ;;  %1030 = vmatprep.subr.mxu1 %v5351_v58 }
 0x251   :  { %960 = vmatpush1.msra.mxu0 %v5354_v60  ;;  %1031 = vmatpush1.msra.mxu1 %v5357_v62 }
 0x252   :  { %961 = vmatprep.subr.mxu0 %v5360_v1  ;;  %1032 = vmatprep.subr.mxu1 %v5363_v9 }
 0x253   :  { %962 = vmatpush1.msra.mxu0 %v5366_v59  ;;  %1033 = vmatpush1.msra.mxu1 %v5369_v61 }
 0x254   :  { %963 = vmatprep.subr.mxu0 %v5372_v48  ;;  %1034 = vmatprep.subr.mxu1 %v5375_v3 }
 0x255   :  { %964 = vmatpush1.msra.mxu0 %v5378_v4  ;;  %1035 = vmatpush1.msra.mxu1 %v5381_v5 }
 0x256   :  { %965 = vmatprep.subr.mxu0 %v5384_v6  ;;  %1036 = vmatprep.subr.mxu1 %v5387_v7 }
 0x257   :  { %966 = vmatpush1.msra.mxu0 %v5390_v8  ;;  %1037 = vmatpush1.msra.mxu1 %v5393_v10 }
 0x258   :  { %967 = vmatprep.subr.mxu0 %v5396_v11  ;;  %1038 = vmatprep.subr.mxu1 %v5399_v12 }
 0x259   :  { %968 = vmatpush1.msra.mxu0 %v5402_v13  ;;  %1039 = vmatpush1.msra.mxu1 %v5405_v14 }
 0x25a   :  { %969 = vmatprep.subr.mxu0 %v5408_v15  ;;  %1040 = vmatprep.subr.mxu1 %v5411_v16 }
 0x25b   :  { %970 = vmatpush1.msra.mxu0 %v5414_v18  ;;  %1041 = vmatpush1.msra.mxu1 %v5417_v19 }
 0x25c   :  { %971 = vmatprep.subr.mxu0 %v5420_v20  ;;  %1042 = vmatprep.subr.mxu1 %v5423_v21 }
 0x25d   :  { %972 = vmatpush1.msra.mxu0 %v5426_v22  ;;  %1043 = vmatpush1.msra.mxu1 %v5429_v25  ;;  %v5444_v22 = vld [vmem:[#allocation6 + $0x28] sm:$0xff]  ;;  %v5447_v25 = vld [vmem:[#allocation6 + $0x38] sm:$0xff] }
 0x25e   :  { %973 = vmatprep.subr.mxu0 %v5432_v26  ;;  %1044 = vmatprep.subr.mxu1 %v5435_v27  ;;  %9834 = vst [vmem:[#allocation23_spill] sm:$0xff] %v5444_v22  ;;  %9835 = vst [vmem:[#allocation32_spill] sm:$0xff] %v5447_v25  ;;  %v5450_v26 = vld [vmem:[#allocation6 + $0x20] sm:$0xff]  ;;  %v5453_v27 = vld [vmem:[#allocation6 + $0x30] sm:$0xff] }
 0x25f   :  { %974 = vmatpush1.msra.mxu0 %v5438_v29  ;;  %1045 = vmatpush1.msra.mxu1 %v5441_v32  ;;  %9836 = vst [vmem:[#allocation27_spill] sm:$0xff] %v5450_v26  ;;  %9837 = vst [vmem:[#allocation34_spill] sm:$0xff] %v5453_v27  ;;  %v5456_v29 = vld [vmem:[#allocation6 + $0x8] sm:$0xff]  ;;  %v5459_v32 = vld [vmem:[#allocation6 + $0x18] sm:$0xff] }
 0x260   :  { %975 = vmatprep.subr.mxu0 %v5444_v22  ;;  %1046 = vmatprep.subr.mxu1 %v5447_v25  ;;  %9838 = vst [vmem:[#allocation29_spill] sm:$0xff] %v5456_v29  ;;  %9839 = vst [vmem:[#allocation35_spill] sm:$0xff] %v5459_v32  ;;  %v5462_v22 = vld [vmem:[#allocation6] sm:$0xff]  ;;  %v5466_v25 = vld [vmem:[#allocation6 + $0x10] sm:$0xff] }
 0x261   :  { %976 = vmatpush1.msra.mxu0 %v5450_v26  ;;  %1047 = vmatpush1.msra.mxu1 %v5453_v27  ;;  %9840 = vst [vmem:[#allocation31_spill] sm:$0xff] %v5462_v22  ;;  %9841 = vst [vmem:[#allocation37_spill] sm:$0xff] %v5466_v25 }
 0x262   :  { %977 = vmatprep.subr.mxu0 %v5456_v29  ;;  %1048 = vmatprep.subr.mxu1 %v5459_v32  ;;  %v5475_v32 = vld [vmem:[%s8930_s2 + $0x1e8] sm:$0xff] }
 0x263   :  { %978 = vmatpush1.msra.mxu0 %v5462_v22  ;;  %1011 = vmatprep.mubr.f32.mxu0 %v9691_v17  ;;  %9842 = vst [vmem:[#allocation33_spill] sm:$0xff] %v5475_v32  ;;  %v5481_v22 = vld [vmem:[%s8930_s2 + $0x1f8] sm:$0xff] }
 0x264   :  { %1049 = vmatpush1.msra.mxu1 %v5466_v25  ;;  %1082 = vmatprep.mubr.f32.mxu1 %v9691_v17  ;;  %9843 = vst [vmem:[#allocation39_spill] sm:$0xff] %v5481_v22  ;;  %v5487_v25 = vld [vmem:[%s8930_s2 + $0x1e0] sm:$0xff] }
 0x265   :  { %1012 = vmatmul.mubr.f32.vlgmr.msra.gmra.mxu0 %v5278_v33  ;;  %1083 = vmatmul.mubr.f32.vlgmr.msra.gmra.mxu1 %v5278_v33  ;;  %9844 = vst [vmem:[#allocation36_spill] sm:$0xff] %v5487_v25  ;;  %v5493_v33 = vld [vmem:[%s8930_s2 + $0x1f0] sm:$0xff] }
 0x266   :  { %1117 = vmatprep.subr.mxu0 %v5475_v32  ;;  %1188 = vmatprep.subr.mxu1 %v5481_v22  ;;  %9845 = vst [vmem:[#allocation41_spill] sm:$0xff] %v5493_v33  ;;  %v5499_v32 = vld [vmem:[%s8930_s2 + $0x1c8] sm:$0xff]  ;;  %v5505_v22 = vld [vmem:[%s8930_s2 + $0x1d8] sm:$0xff] }
 0x267   :  { %1118 = vmatpush1.msra.mxu0 %v5487_v25  ;;  %1189 = vmatpush1.msra.mxu1 %v5493_v33  ;;  %9846 = vst [vmem:[#allocation38_spill] sm:$0xff] %v5499_v32  ;;  %9847 = vst [vmem:[#allocation43_spill] sm:$0xff] %v5505_v22  ;;  %v5511_v25 = vld [vmem:[%s8930_s2 + $0x1c0] sm:$0xff]  ;;  %v5517_v33 = vld [vmem:[%s8930_s2 + $0x1d0] sm:$0xff] }
 0x268   :  { %1119 = vmatprep.subr.mxu0 %v5499_v32  ;;  %1190 = vmatprep.subr.mxu1 %v5505_v22  ;;  %9848 = vst [vmem:[#allocation40_spill] sm:$0xff] %v5511_v25  ;;  %9849 = vst [vmem:[#allocation44_spill] sm:$0xff] %v5517_v33  ;;  %v5523_v32 = vld [vmem:[%s8930_s2 + $0x1a8] sm:$0xff]  ;;  %v5529_v22 = vld [vmem:[%s8930_s2 + $0x1b8] sm:$0xff] }
 0x269   :  { %1120 = vmatpush1.msra.mxu0 %v5511_v25  ;;  %1191 = vmatpush1.msra.mxu1 %v5517_v33  ;;  %9850 = vst [vmem:[#allocation42_spill] sm:$0xff] %v5523_v32  ;;  %9851 = vst [vmem:[#allocation45_spill] sm:$0xff] %v5529_v22  ;;  %v5535_v25 = vld [vmem:[%s8930_s2 + $0x1a0] sm:$0xff]  ;;  %v5541_v33 = vld [vmem:[%s8930_s2 + $0x1b0] sm:$0xff] }
 0x26a   :  { %1121 = vmatprep.subr.mxu0 %v5523_v32  ;;  %1192 = vmatprep.subr.mxu1 %v5529_v22  ;;  %9852 = vst [vmem:[#allocation46_spill] sm:$0xff] %v5535_v25  ;;  %9853 = vst [vmem:[#allocation47_spill] sm:$0xff] %v5541_v33  ;;  %v5547_v32 = vld [vmem:[%s8930_s2 + $0x188] sm:$0xff]  ;;  %v5553_v22 = vld [vmem:[%s8930_s2 + $0x198] sm:$0xff] }
 0x26b   :  { %1122 = vmatpush1.msra.mxu0 %v5535_v25  ;;  %1193 = vmatpush1.msra.mxu1 %v5541_v33  ;;  %9854 = vst [vmem:[#allocation48_spill] sm:$0xff] %v5547_v32  ;;  %9855 = vst [vmem:[#allocation49_spill] sm:$0xff] %v5553_v22  ;;  %v5559_v25 = vld [vmem:[%s8930_s2 + $0x180] sm:$0xff]  ;;  %v5565_v33 = vld [vmem:[%s8930_s2 + $0x190] sm:$0xff] }
 0x26c   :  { %1123 = vmatprep.subr.mxu0 %v5547_v32  ;;  %1194 = vmatprep.subr.mxu1 %v5553_v22  ;;  %9856 = vst [vmem:[#allocation50_spill] sm:$0xff] %v5559_v25  ;;  %9857 = vst [vmem:[#allocation51_spill] sm:$0xff] %v5565_v33  ;;  %v5571_v32 = vld [vmem:[%s8930_s2 + $0x168] sm:$0xff]  ;;  %v5577_v22 = vld [vmem:[%s8930_s2 + $0x178] sm:$0xff] }
 0x26d   :  { %1124 = vmatpush1.msra.mxu0 %v5559_v25  ;;  %1195 = vmatpush1.msra.mxu1 %v5565_v33  ;;  %9858 = vst [vmem:[#allocation52_spill] sm:$0xff] %v5571_v32  ;;  %9859 = vst [vmem:[#allocation53_spill] sm:$0xff] %v5577_v22  ;;  %v5583_v25 = vld [vmem:[%s8930_s2 + $0x160] sm:$0xff]  ;;  %v5589_v33 = vld [vmem:[%s8930_s2 + $0x170] sm:$0xff] }
 0x26e   :  { %1125 = vmatprep.subr.mxu0 %v5571_v32  ;;  %1196 = vmatprep.subr.mxu1 %v5577_v22  ;;  %9860 = vst [vmem:[#allocation54_spill] sm:$0xff] %v5583_v25  ;;  %9861 = vst [vmem:[#allocation55_spill] sm:$0xff] %v5589_v33  ;;  %v5595_v32 = vld [vmem:[%s8930_s2 + $0x148] sm:$0xff]  ;;  %v5601_v22 = vld [vmem:[%s8930_s2 + $0x158] sm:$0xff] }
 0x26f   :  { %1126 = vmatpush1.msra.mxu0 %v5583_v25  ;;  %1197 = vmatpush1.msra.mxu1 %v5589_v33  ;;  %9862 = vst [vmem:[#allocation56_spill] sm:$0xff] %v5595_v32  ;;  %9863 = vst [vmem:[#allocation57_spill] sm:$0xff] %v5601_v22  ;;  %v5607_v25 = vld [vmem:[%s8930_s2 + $0x140] sm:$0xff]  ;;  %v5613_v33 = vld [vmem:[%s8930_s2 + $0x150] sm:$0xff] }
 0x270   :  { %1127 = vmatprep.subr.mxu0 %v5595_v32  ;;  %1198 = vmatprep.subr.mxu1 %v5601_v22  ;;  %9864 = vst [vmem:[#allocation58_spill] sm:$0xff] %v5607_v25  ;;  %9865 = vst [vmem:[#allocation59_spill] sm:$0xff] %v5613_v33  ;;  %v5619_v32 = vld [vmem:[%s8930_s2 + $0x128] sm:$0xff]  ;;  %v5625_v22 = vld [vmem:[%s8930_s2 + $0x138] sm:$0xff] }
 0x271   :  { %1128 = vmatpush1.msra.mxu0 %v5607_v25  ;;  %1199 = vmatpush1.msra.mxu1 %v5613_v33  ;;  %9866 = vst [vmem:[#allocation60_spill] sm:$0xff] %v5619_v32  ;;  %9867 = vst [vmem:[#allocation61_spill] sm:$0xff] %v5625_v22  ;;  %v5631_v25 = vld [vmem:[%s8930_s2 + $0x120] sm:$0xff]  ;;  %v5637_v33 = vld [vmem:[%s8930_s2 + $0x130] sm:$0xff] }
 0x272   :  { %1129 = vmatprep.subr.mxu0 %v5619_v32  ;;  %1200 = vmatprep.subr.mxu1 %v5625_v22  ;;  %9868 = vst [vmem:[#allocation62_spill] sm:$0xff] %v5631_v25  ;;  %9869 = vst [vmem:[#allocation63_spill] sm:$0xff] %v5637_v33  ;;  %v5643_v32 = vld [vmem:[%s8930_s2 + $0x108] sm:$0xff]  ;;  %v5649_v22 = vld [vmem:[%s8930_s2 + $0x118] sm:$0xff] }
 0x273   :  { %1130 = vmatpush1.msra.mxu0 %v5631_v25  ;;  %1201 = vmatpush1.msra.mxu1 %v5637_v33  ;;  %9870 = vst [vmem:[#allocation64_spill] sm:$0xff] %v5643_v32  ;;  %9871 = vst [vmem:[#allocation65_spill] sm:$0xff] %v5649_v22  ;;  %v5655_v25 = vld [vmem:[%s8930_s2 + $0x100] sm:$0xff]  ;;  %v5661_v33 = vld [vmem:[%s8930_s2 + $0x110] sm:$0xff] }
 0x274   :  { %1131 = vmatprep.subr.mxu0 %v5643_v32  ;;  %1202 = vmatprep.subr.mxu1 %v5649_v22  ;;  %9872 = vst [vmem:[#allocation66_spill] sm:$0xff] %v5655_v25  ;;  %9873 = vst [vmem:[#allocation67_spill] sm:$0xff] %v5661_v33  ;;  %v5667_v32 = vld [vmem:[%s8930_s2 + $0xe8] sm:$0xff]  ;;  %v5673_v22 = vld [vmem:[%s8930_s2 + $0xf8] sm:$0xff] }
 0x275   :  { %1132 = vmatpush1.msra.mxu0 %v5655_v25  ;;  %1203 = vmatpush1.msra.mxu1 %v5661_v33  ;;  %9874 = vst [vmem:[#allocation68_spill] sm:$0xff] %v5667_v32  ;;  %9875 = vst [vmem:[#allocation69_spill] sm:$0xff] %v5673_v22  ;;  %v5679_v25 = vld [vmem:[%s8930_s2 + $0xe0] sm:$0xff]  ;;  %v5685_v33 = vld [vmem:[%s8930_s2 + $0xf0] sm:$0xff] }
 0x276   :  { %1133 = vmatprep.subr.mxu0 %v5667_v32  ;;  %1204 = vmatprep.subr.mxu1 %v5673_v22  ;;  %9876 = vst [vmem:[#allocation70_spill] sm:$0xff] %v5679_v25  ;;  %9877 = vst [vmem:[#allocation71_spill] sm:$0xff] %v5685_v33  ;;  %v5691_v32 = vld [vmem:[%s8930_s2 + $0xc8] sm:$0xff]  ;;  %v5697_v22 = vld [vmem:[%s8930_s2 + $0xd8] sm:$0xff] }
 0x277   :  { %1134 = vmatpush1.msra.mxu0 %v5679_v25  ;;  %1205 = vmatpush1.msra.mxu1 %v5685_v33  ;;  %9878 = vst [vmem:[#allocation72_spill] sm:$0xff] %v5691_v32  ;;  %9879 = vst [vmem:[#allocation73_spill] sm:$0xff] %v5697_v22  ;;  %v5703_v25 = vld [vmem:[%s8930_s2 + $0xc0] sm:$0xff]  ;;  %v5709_v33 = vld [vmem:[%s8930_s2 + $0xd0] sm:$0xff] }
 0x278   :  { %1135 = vmatprep.subr.mxu0 %v5691_v32  ;;  %1206 = vmatprep.subr.mxu1 %v5697_v22  ;;  %9880 = vst [vmem:[#allocation74_spill] sm:$0xff] %v5703_v25  ;;  %9881 = vst [vmem:[#allocation75_spill] sm:$0xff] %v5709_v33  ;;  %v5715_v32 = vld [vmem:[%s8930_s2 + $0xa8] sm:$0xff]  ;;  %v5721_v22 = vld [vmem:[%s8930_s2 + $0xb8] sm:$0xff] }
 0x279   :  { %1136 = vmatpush1.msra.mxu0 %v5703_v25  ;;  %1207 = vmatpush1.msra.mxu1 %v5709_v33  ;;  %9882 = vst [vmem:[#allocation76_spill] sm:$0xff] %v5715_v32  ;;  %9883 = vst [vmem:[#allocation77_spill] sm:$0xff] %v5721_v22  ;;  %v5727_v25 = vld [vmem:[%s8930_s2 + $0xa0] sm:$0xff]  ;;  %v5733_v33 = vld [vmem:[%s8930_s2 + $0xb0] sm:$0xff] }
 0x27a   :  { %1137 = vmatprep.subr.mxu0 %v5715_v32  ;;  %1208 = vmatprep.subr.mxu1 %v5721_v22  ;;  %9884 = vst [vmem:[#allocation78_spill] sm:$0xff] %v5727_v25  ;;  %9885 = vst [vmem:[#allocation79_spill] sm:$0xff] %v5733_v33  ;;  %v5739_v32 = vld [vmem:[%s8930_s2 + $0x88] sm:$0xff]  ;;  %v5745_v22 = vld [vmem:[%s8930_s2 + $0x98] sm:$0xff] }
 0x27b   :  { %1138 = vmatpush1.msra.mxu0 %v5727_v25  ;;  %1209 = vmatpush1.msra.mxu1 %v5733_v33  ;;  %9886 = vst [vmem:[#allocation80_spill] sm:$0xff] %v5739_v32  ;;  %9887 = vst [vmem:[#allocation81_spill] sm:$0xff] %v5745_v22  ;;  %v5751_v25 = vld [vmem:[%s8930_s2 + $0x80] sm:$0xff]  ;;  %v5757_v33 = vld [vmem:[%s8930_s2 + $0x90] sm:$0xff] }
 0x27c   :  { %1139 = vmatprep.subr.mxu0 %v5739_v32  ;;  %1210 = vmatprep.subr.mxu1 %v5745_v22  ;;  %9888 = vst [vmem:[#allocation82_spill] sm:$0xff] %v5751_v25  ;;  %9889 = vst [vmem:[#allocation83_spill] sm:$0xff] %v5757_v33  ;;  %v5763_v32 = vld [vmem:[%s8930_s2 + $0x68] sm:$0xff]  ;;  %v5769_v22 = vld [vmem:[%s8930_s2 + $0x78] sm:$0xff] }
 0x27d   :  { %1140 = vmatpush1.msra.mxu0 %v5751_v25  ;;  %1211 = vmatpush1.msra.mxu1 %v5757_v33  ;;  %9890 = vst [vmem:[#allocation84_spill] sm:$0xff] %v5763_v32  ;;  %9891 = vst [vmem:[#allocation85_spill] sm:$0xff] %v5769_v22  ;;  %v5775_v25 = vld [vmem:[%s8930_s2 + $0x60] sm:$0xff]  ;;  %v5781_v33 = vld [vmem:[%s8930_s2 + $0x70] sm:$0xff] }
 0x27e   :  { %1141 = vmatprep.subr.mxu0 %v5763_v32  ;;  %1212 = vmatprep.subr.mxu1 %v5769_v22  ;;  %9892 = vst [vmem:[#allocation86_spill] sm:$0xff] %v5775_v25  ;;  %9893 = vst [vmem:[#allocation87_spill] sm:$0xff] %v5781_v33  ;;  %v5787_v32 = vld [vmem:[%s8930_s2 + $0x48] sm:$0xff]  ;;  %v5793_v22 = vld [vmem:[%s8930_s2 + $0x58] sm:$0xff] }
 0x27f   :  { %1142 = vmatpush1.msra.mxu0 %v5775_v25  ;;  %1213 = vmatpush1.msra.mxu1 %v5781_v33  ;;  %9894 = vst [vmem:[#allocation88_spill] sm:$0xff] %v5787_v32  ;;  %9895 = vst [vmem:[#allocation89_spill] sm:$0xff] %v5793_v22  ;;  %v5799_v25 = vld [vmem:[%s8930_s2 + $0x40] sm:$0xff]  ;;  %v5805_v33 = vld [vmem:[%s8930_s2 + $0x50] sm:$0xff] }
 0x280   :  { %1143 = vmatprep.subr.mxu0 %v5787_v32  ;;  %1214 = vmatprep.subr.mxu1 %v5793_v22  ;;  %9896 = vst [vmem:[#allocation90_spill] sm:$0xff] %v5799_v25  ;;  %9897 = vst [vmem:[#allocation91_spill] sm:$0xff] %v5805_v33  ;;  %v5811_v32 = vld [vmem:[%s8930_s2 + $0x28] sm:$0xff]  ;;  %v5817_v22 = vld [vmem:[%s8930_s2 + $0x38] sm:$0xff] }
 0x281   :  { %1144 = vmatpush1.msra.mxu0 %v5799_v25  ;;  %1215 = vmatpush1.msra.mxu1 %v5805_v33  ;;  %9898 = vst [vmem:[#allocation92_spill] sm:$0xff] %v5811_v32  ;;  %9899 = vst [vmem:[#allocation93_spill] sm:$0xff] %v5817_v22  ;;  %v5823_v25 = vld [vmem:[%s8930_s2 + $0x20] sm:$0xff]  ;;  %v5829_v33 = vld [vmem:[%s8930_s2 + $0x30] sm:$0xff] }
 0x282   :  { %1145 = vmatprep.subr.mxu0 %v5811_v32  ;;  %1216 = vmatprep.subr.mxu1 %v5817_v22  ;;  %9900 = vst [vmem:[#allocation94_spill] sm:$0xff] %v5823_v25  ;;  %9901 = vst [vmem:[#allocation95_spill] sm:$0xff] %v5829_v33  ;;  %v5835_v32 = vld [vmem:[%s8930_s2 + $0x8] sm:$0xff]  ;;  %v5841_v22 = vld [vmem:[%s8930_s2 + $0x18] sm:$0xff] }
 0x283   :  { %1146 = vmatpush1.msra.mxu0 %v5823_v25  ;;  %1217 = vmatpush1.msra.mxu1 %v5829_v33  ;;  %9902 = vst [vmem:[#allocation96_spill] sm:$0xff] %v5835_v32  ;;  %9903 = vst [vmem:[#allocation97_spill] sm:$0xff] %v5841_v22  ;;  %v5847_v25 = vld [vmem:[%s8930_s2] sm:$0xff]  ;;  %v5853_v33 = vld [vmem:[%s8930_s2 + $0x10] sm:$0xff] }
 0x284   :  { %1147 = vmatprep.subr.mxu0 %v5835_v32  ;;  %1218 = vmatprep.subr.mxu1 %v5841_v22  ;;  %9904 = vst [vmem:[#allocation98_spill] sm:$0xff] %v5847_v25  ;;  %9905 = vst [vmem:[#allocation99_spill] sm:$0xff] %v5853_v33  ;;  %v5859_v32 = vld [vmem:[%s8930_s2 + $0x3e8] sm:$0xff]  ;;  %v5865_v22 = vld [vmem:[%s8930_s2 + $0x3f8] sm:$0xff] }
 0x285   :  { %1148 = vmatpush1.msra.mxu0 %v5847_v25  ;;  %1219 = vmatpush1.msra.mxu1 %v5853_v33  ;;  %9906 = vst [vmem:[#allocation100_spill] sm:$0xff] %v5859_v32  ;;  %9907 = vst [vmem:[#allocation101_spill] sm:$0xff] %v5865_v22  ;;  %v5871_v25 = vld [vmem:[%s8930_s2 + $0x3e0] sm:$0xff]  ;;  %v5877_v33 = vld [vmem:[%s8930_s2 + $0x3f0] sm:$0xff] }
 0x286   :  { %1149 = vmatprep.subr.mxu0 %v5859_v32  ;;  %1220 = vmatprep.subr.mxu1 %v5865_v22  ;;  %9908 = vst [vmem:[#allocation102_spill] sm:$0xff] %v5871_v25  ;;  %9909 = vst [vmem:[#allocation103_spill] sm:$0xff] %v5877_v33  ;;  %v5883_v32 = vld [vmem:[%s8930_s2 + $0x3c8] sm:$0xff]  ;;  %v5889_v22 = vld [vmem:[%s8930_s2 + $0x3d8] sm:$0xff] }
 0x287   :  { %1150 = vmatpush2.msra.mxu0 %v5871_v25  ;;  %1221 = vmatpush2.msra.mxu1 %v5877_v33  ;;  %9910 = vst [vmem:[#allocation104_spill] sm:$0xff] %v5883_v32  ;;  %9911 = vst [vmem:[#allocation105_spill] sm:$0xff] %v5889_v22  ;;  %v5895_v25 = vld [vmem:[%s8930_s2 + $0x3c0] sm:$0xff]  ;;  %v5901_v33 = vld [vmem:[%s8930_s2 + $0x3d0] sm:$0xff] }
 0x288   :  { %1151 = vmatprep.subr.mxu0 %v5883_v32  ;;  %1222 = vmatprep.subr.mxu1 %v5889_v22  ;;  %9912 = vst [vmem:[#allocation106_spill] sm:$0xff] %v5895_v25  ;;  %9913 = vst [vmem:[#allocation107_spill] sm:$0xff] %v5901_v33  ;;  %v5907_v32 = vld [vmem:[%s8930_s2 + $0x3a8] sm:$0xff]  ;;  %v5913_v22 = vld [vmem:[%s8930_s2 + $0x3b8] sm:$0xff] }
 0x289   :  { %1152 = vmatpush2.msra.mxu0 %v5895_v25  ;;  %1223 = vmatpush2.msra.mxu1 %v5901_v33  ;;  %9914 = vst [vmem:[#allocation108_spill] sm:$0xff] %v5907_v32  ;;  %9915 = vst [vmem:[#allocation109_spill] sm:$0xff] %v5913_v22  ;;  %v5919_v25 = vld [vmem:[%s8930_s2 + $0x3a0] sm:$0xff]  ;;  %v5925_v33 = vld [vmem:[%s8930_s2 + $0x3b0] sm:$0xff] }
 0x28a   :  { %1153 = vmatprep.subr.mxu0 %v5907_v32  ;;  %1224 = vmatprep.subr.mxu1 %v5913_v22  ;;  %9916 = vst [vmem:[#allocation110_spill] sm:$0xff] %v5919_v25  ;;  %9917 = vst [vmem:[#allocation111_spill] sm:$0xff] %v5925_v33  ;;  %v5931_v32 = vld [vmem:[%s8930_s2 + $0x388] sm:$0xff]  ;;  %v5937_v22 = vld [vmem:[%s8930_s2 + $0x398] sm:$0xff] }
 0x28b   :  { %1154 = vmatpush2.msra.mxu0 %v5919_v25  ;;  %1225 = vmatpush2.msra.mxu1 %v5925_v33  ;;  %9918 = vst [vmem:[#allocation112_spill] sm:$0xff] %v5931_v32  ;;  %9919 = vst [vmem:[#allocation113_spill] sm:$0xff] %v5937_v22  ;;  %v5943_v25 = vld [vmem:[%s8930_s2 + $0x380] sm:$0xff]  ;;  %v5949_v33 = vld [vmem:[%s8930_s2 + $0x390] sm:$0xff] }
 0x28c   :  { %1155 = vmatprep.subr.mxu0 %v5931_v32  ;;  %1226 = vmatprep.subr.mxu1 %v5937_v22  ;;  %9920 = vst [vmem:[#allocation114_spill] sm:$0xff] %v5943_v25  ;;  %9921 = vst [vmem:[#allocation115_spill] sm:$0xff] %v5949_v33  ;;  %v5955_v32 = vld [vmem:[%s8930_s2 + $0x368] sm:$0xff]  ;;  %v5961_v22 = vld [vmem:[%s8930_s2 + $0x378] sm:$0xff] }
 0x28d   :  { %1156 = vmatpush2.msra.mxu0 %v5943_v25  ;;  %1227 = vmatpush2.msra.mxu1 %v5949_v33  ;;  %9922 = vst [vmem:[#allocation116_spill] sm:$0xff] %v5955_v32  ;;  %9923 = vst [vmem:[#allocation117_spill] sm:$0xff] %v5961_v22  ;;  %v5967_v25 = vld [vmem:[%s8930_s2 + $0x360] sm:$0xff]  ;;  %v5973_v33 = vld [vmem:[%s8930_s2 + $0x370] sm:$0xff] }
 0x28e   :  { %1157 = vmatprep.subr.mxu0 %v5955_v32  ;;  %1228 = vmatprep.subr.mxu1 %v5961_v22  ;;  %9924 = vst [vmem:[#allocation118_spill] sm:$0xff] %v5967_v25  ;;  %9925 = vst [vmem:[#allocation119_spill] sm:$0xff] %v5973_v33  ;;  %v5979_v32 = vld [vmem:[%s8930_s2 + $0x348] sm:$0xff]  ;;  %v5985_v22 = vld [vmem:[%s8930_s2 + $0x358] sm:$0xff] }
 0x28f   :  { %1158 = vmatpush2.msra.mxu0 %v5967_v25  ;;  %1229 = vmatpush2.msra.mxu1 %v5973_v33  ;;  %9926 = vst [vmem:[#allocation120_spill] sm:$0xff] %v5979_v32  ;;  %9927 = vst [vmem:[#allocation121_spill] sm:$0xff] %v5985_v22  ;;  %v5991_v25 = vld [vmem:[%s8930_s2 + $0x340] sm:$0xff]  ;;  %v5997_v33 = vld [vmem:[%s8930_s2 + $0x350] sm:$0xff] }
 0x290   :  { %1159 = vmatprep.subr.mxu0 %v5979_v32  ;;  %1230 = vmatprep.subr.mxu1 %v5985_v22  ;;  %9928 = vst [vmem:[#allocation122_spill] sm:$0xff] %v5991_v25  ;;  %9929 = vst [vmem:[#allocation123_spill] sm:$0xff] %v5997_v33  ;;  %v6003_v32 = vld [vmem:[%s8930_s2 + $0x328] sm:$0xff]  ;;  %v6009_v22 = vld [vmem:[%s8930_s2 + $0x338] sm:$0xff] }
 0x291   :  { %1160 = vmatpush2.msra.mxu0 %v5991_v25  ;;  %1231 = vmatpush2.msra.mxu1 %v5997_v33  ;;  %9930 = vst [vmem:[#allocation124_spill] sm:$0xff] %v6003_v32  ;;  %9931 = vst [vmem:[#allocation125_spill] sm:$0xff] %v6009_v22  ;;  %v6015_v25 = vld [vmem:[%s8930_s2 + $0x320] sm:$0xff]  ;;  %v6021_v33 = vld [vmem:[%s8930_s2 + $0x330] sm:$0xff] }
 0x292   :  { %1161 = vmatprep.subr.mxu0 %v6003_v32  ;;  %1232 = vmatprep.subr.mxu1 %v6009_v22  ;;  %9932 = vst [vmem:[#allocation126_spill] sm:$0xff] %v6015_v25  ;;  %9933 = vst [vmem:[#allocation127_spill] sm:$0xff] %v6021_v33  ;;  %v6027_v32 = vld [vmem:[%s8930_s2 + $0x308] sm:$0xff]  ;;  %v6033_v22 = vld [vmem:[%s8930_s2 + $0x318] sm:$0xff] }
 0x293   :  { %1162 = vmatpush2.msra.mxu0 %v6015_v25  ;;  %1233 = vmatpush2.msra.mxu1 %v6021_v33  ;;  %9934 = vst [vmem:[#allocation128_spill] sm:$0xff] %v6027_v32  ;;  %9935 = vst [vmem:[#allocation129_spill] sm:$0xff] %v6033_v22  ;;  %v6039_v25 = vld [vmem:[%s8930_s2 + $0x300] sm:$0xff]  ;;  %v6045_v33 = vld [vmem:[%s8930_s2 + $0x310] sm:$0xff] }
 0x294   :  { %1163 = vmatprep.subr.mxu0 %v6027_v32  ;;  %1234 = vmatprep.subr.mxu1 %v6033_v22  ;;  %9936 = vst [vmem:[#allocation130_spill] sm:$0xff] %v6039_v25  ;;  %9937 = vst [vmem:[#allocation131_spill] sm:$0xff] %v6045_v33  ;;  %v6051_v32 = vld [vmem:[%s8930_s2 + $0x2e8] sm:$0xff]  ;;  %v6057_v22 = vld [vmem:[%s8930_s2 + $0x2f8] sm:$0xff] }
 0x295   :  { %1164 = vmatpush2.msra.mxu0 %v6039_v25  ;;  %1235 = vmatpush2.msra.mxu1 %v6045_v33  ;;  %9938 = vst [vmem:[#allocation132_spill] sm:$0xff] %v6051_v32  ;;  %9939 = vst [vmem:[#allocation133_spill] sm:$0xff] %v6057_v22  ;;  %v6063_v25 = vld [vmem:[%s8930_s2 + $0x2e0] sm:$0xff]  ;;  %v6069_v33 = vld [vmem:[%s8930_s2 + $0x2f0] sm:$0xff] }
 0x296   :  { %1165 = vmatprep.subr.mxu0 %v6051_v32  ;;  %1236 = vmatprep.subr.mxu1 %v6057_v22  ;;  %9940 = vst [vmem:[#allocation134_spill] sm:$0xff] %v6063_v25  ;;  %9941 = vst [vmem:[#allocation135_spill] sm:$0xff] %v6069_v33  ;;  %v6075_v32 = vld [vmem:[%s8930_s2 + $0x2c8] sm:$0xff]  ;;  %v6081_v22 = vld [vmem:[%s8930_s2 + $0x2d8] sm:$0xff] }
 0x297   :  { %1166 = vmatpush2.msra.mxu0 %v6063_v25  ;;  %1237 = vmatpush2.msra.mxu1 %v6069_v33  ;;  %9942 = vst [vmem:[#allocation136_spill] sm:$0xff] %v6075_v32  ;;  %9943 = vst [vmem:[#allocation137_spill] sm:$0xff] %v6081_v22  ;;  %v6087_v25 = vld [vmem:[%s8930_s2 + $0x2c0] sm:$0xff]  ;;  %v6093_v33 = vld [vmem:[%s8930_s2 + $0x2d0] sm:$0xff] }
 0x298   :  { %1167 = vmatprep.subr.mxu0 %v6075_v32  ;;  %1238 = vmatprep.subr.mxu1 %v6081_v22  ;;  %9944 = vst [vmem:[#allocation138_spill] sm:$0xff] %v6087_v25  ;;  %9945 = vst [vmem:[#allocation139_spill] sm:$0xff] %v6093_v33  ;;  %v6099_v32 = vld [vmem:[%s8930_s2 + $0x2a8] sm:$0xff]  ;;  %v6105_v22 = vld [vmem:[%s8930_s2 + $0x2b8] sm:$0xff] }
 0x299   :  { %1168 = vmatpush2.msra.mxu0 %v6087_v25  ;;  %1239 = vmatpush2.msra.mxu1 %v6093_v33  ;;  %9946 = vst [vmem:[#allocation140_spill] sm:$0xff] %v6099_v32  ;;  %9947 = vst [vmem:[#allocation141_spill] sm:$0xff] %v6105_v22  ;;  %v6111_v25 = vld [vmem:[%s8930_s2 + $0x2a0] sm:$0xff]  ;;  %v6117_v33 = vld [vmem:[%s8930_s2 + $0x2b0] sm:$0xff] }
 0x29a   :  { %1169 = vmatprep.subr.mxu0 %v6099_v32  ;;  %1240 = vmatprep.subr.mxu1 %v6105_v22  ;;  %9948 = vst [vmem:[#allocation142_spill] sm:$0xff] %v6111_v25  ;;  %9949 = vst [vmem:[#allocation143_spill] sm:$0xff] %v6117_v33  ;;  %v6123_v32 = vld [vmem:[%s8930_s2 + $0x288] sm:$0xff]  ;;  %v6129_v22 = vld [vmem:[%s8930_s2 + $0x298] sm:$0xff] }
 0x29b   :  { %1170 = vmatpush2.msra.mxu0 %v6111_v25  ;;  %1241 = vmatpush2.msra.mxu1 %v6117_v33  ;;  %9950 = vst [vmem:[#allocation144_spill] sm:$0xff] %v6123_v32  ;;  %9951 = vst [vmem:[#allocation145_spill] sm:$0xff] %v6129_v22  ;;  %v6135_v25 = vld [vmem:[%s8930_s2 + $0x280] sm:$0xff]  ;;  %v6141_v33 = vld [vmem:[%s8930_s2 + $0x290] sm:$0xff] }
 0x29c   :  { %1171 = vmatprep.subr.mxu0 %v6123_v32  ;;  %1242 = vmatprep.subr.mxu1 %v6129_v22  ;;  %9952 = vst [vmem:[#allocation146_spill] sm:$0xff] %v6135_v25  ;;  %9953 = vst [vmem:[#allocation147_spill] sm:$0xff] %v6141_v33  ;;  %v6147_v32 = vld [vmem:[%s8930_s2 + $0x268] sm:$0xff]  ;;  %v6153_v22 = vld [vmem:[%s8930_s2 + $0x278] sm:$0xff] }
 0x29d   :  { %1172 = vmatpush2.msra.mxu0 %v6135_v25  ;;  %1243 = vmatpush2.msra.mxu1 %v6141_v33  ;;  %9954 = vst [vmem:[#allocation148_spill] sm:$0xff] %v6147_v32  ;;  %9955 = vst [vmem:[#allocation149_spill] sm:$0xff] %v6153_v22  ;;  %v6159_v25 = vld [vmem:[%s8930_s2 + $0x260] sm:$0xff]  ;;  %v6165_v33 = vld [vmem:[%s8930_s2 + $0x270] sm:$0xff] }
 0x29e   :  { %1173 = vmatprep.subr.mxu0 %v6147_v32  ;;  %1244 = vmatprep.subr.mxu1 %v6153_v22  ;;  %9956 = vst [vmem:[#allocation150_spill] sm:$0xff] %v6159_v25  ;;  %9957 = vst [vmem:[#allocation151_spill] sm:$0xff] %v6165_v33  ;;  %v6171_v32 = vld [vmem:[%s8930_s2 + $0x248] sm:$0xff]  ;;  %v6177_v22 = vld [vmem:[%s8930_s2 + $0x258] sm:$0xff] }
 0x29f   :  { %1174 = vmatpush2.msra.mxu0 %v6159_v25  ;;  %1245 = vmatpush2.msra.mxu1 %v6165_v33  ;;  %9958 = vst [vmem:[#allocation152_spill] sm:$0xff] %v6171_v32  ;;  %9959 = vst [vmem:[#allocation153_spill] sm:$0xff] %v6177_v22  ;;  %v6183_v25 = vld [vmem:[%s8930_s2 + $0x240] sm:$0xff]  ;;  %v6189_v33 = vld [vmem:[%s8930_s2 + $0x250] sm:$0xff] }
 0x2a0   :  { %1175 = vmatprep.subr.mxu0 %v6171_v32  ;;  %1246 = vmatprep.subr.mxu1 %v6177_v22  ;;  %9960 = vst [vmem:[#allocation154_spill] sm:$0xff] %v6183_v25  ;;  %9961 = vst [vmem:[#allocation155_spill] sm:$0xff] %v6189_v33  ;;  %v6195_v32 = vld [vmem:[%s8930_s2 + $0x228] sm:$0xff]  ;;  %v6201_v22 = vld [vmem:[%s8930_s2 + $0x238] sm:$0xff] }
 0x2a1   :  { %1176 = vmatpush2.msra.mxu0 %v6183_v25  ;;  %1247 = vmatpush2.msra.mxu1 %v6189_v33  ;;  %9962 = vst [vmem:[#allocation156_spill] sm:$0xff] %v6195_v32  ;;  %9963 = vst [vmem:[#allocation157_spill] sm:$0xff] %v6201_v22  ;;  %v6207_v25 = vld [vmem:[%s8930_s2 + $0x220] sm:$0xff]  ;;  %v6213_v33 = vld [vmem:[%s8930_s2 + $0x230] sm:$0xff] }
 0x2a2   :  { %1177 = vmatprep.subr.mxu0 %v6195_v32  ;;  %1248 = vmatprep.subr.mxu1 %v6201_v22  ;;  %9964 = vst [vmem:[#allocation158_spill] sm:$0xff] %v6207_v25  ;;  %9965 = vst [vmem:[#allocation159_spill] sm:$0xff] %v6213_v33  ;;  %v6219_v32 = vld [vmem:[%s8930_s2 + $0x208] sm:$0xff]  ;;  %v6225_v22 = vld [vmem:[%s8930_s2 + $0x218] sm:$0xff] }
 0x2a3   :  { %1178 = vmatpush2.msra.mxu0 %v6207_v25  ;;  %1249 = vmatpush2.msra.mxu1 %v6213_v33  ;;  %9966 = vst [vmem:[#allocation160_spill] sm:$0xff] %v6219_v32  ;;  %9967 = vst [vmem:[#allocation161_spill] sm:$0xff] %v6225_v22  ;;  %v6231_v25 = vld [vmem:[%s8930_s2 + $0x200] sm:$0xff]  ;;  %v6237_v33 = vld [vmem:[%s8930_s2 + $0x210] sm:$0xff] }
 0x2a4   :  { %1179 = vmatprep.subr.mxu0 %v6219_v32  ;;  %1250 = vmatprep.subr.mxu1 %v6225_v22  ;;  %9968 = vst [vmem:[#allocation162_spill] sm:$0xff] %v6231_v25  ;;  %9969 = vst [vmem:[#allocation163_spill] sm:$0xff] %v6237_v33 }
 0x2a5   :  { %1180 = vmatpush2.msra.mxu0 %v6231_v25  ;;  %1251 = vmatpush2.msra.mxu1 %v6237_v33 }
 0x2a6   :  { %1288 = vmatprep.subr.mxu0 %v5238_v23  ;;  %1359 = vmatprep.subr.mxu1 %v5241_v24 }
 0x304   :  { %v842_v32 = vpop.f32.mrf.mxu0  ;;  %v913_v26 = vpop.f32.mrf.mxu1 }
 0x305   :  { %v843_v22 = vadd.f32 %v842_v32, %v5247_v30  ;;  %v914_v21 = vadd.f32 %v913_v26, %v5253_v39 }
 0x306   :  { %v844_v17 = vpop.f32.mrf.mxu0  ;;  %v915_v20 = vpop.f32.mrf.mxu1 }
 0x307   :  { %v3047_v29 = vmul.f32 -1.442695, %v843_v22  ;;  %v845_v27 = vadd.f32 %v844_v17, %v5249_v31  ;;  %v3049_v19 = vmul.f32 -1.442695, %v914_v21  ;;  %v916_v23 = vadd.f32 %v915_v20, %v5256_v43  ;;  %v3050_v17 = vld [vmem:[%s8928_s0 + $0x40] sm:$0xff]  ;;  %v3051_v21 = vld [vmem:[%s8928_s0 + $0x48] sm:$0xff] }
 0x308   :  { %v3052_v31 = vld [vmem:[%s8928_s0 + $0x50] sm:$0xff] }
 0x309   :  { %3166 = vpow2.f32 %v3047_v29  ;;  %v3048_v25 = vmul.f32 -1.442695, %v845_v27 }
 0x30b   :  { %3168 = vpow2.f32 %v3048_v25 }
 0x30c   :  { %3170 = vpow2.f32 %v3049_v19 }
 0x316   :  { %v3167_v33 = vpop.eup %3166 }
 0x317   :  { %v927_v18 = vadd.f32 1.0, %v3167_v33 }
 0x318   :  { %v3169_v24 = vpop.eup %3168 }
 0x319   :  { %3172 = vrcp.f32 %v927_v18  ;;  %v928_v32 = vadd.f32 1.0, %v3169_v24  ;;  %v3171_v22 = vpop.eup %3170 }
 0x31a   :  { %3174 = vtanh.f32 %v916_v23  ;;  %v929_v24 = vadd.f32 1.0, %v3171_v22  ;;  %v3053_v22 = vld [vmem:[%s8928_s0 + $0x58] sm:$0xff] }
 0x31b   :  { %3176 = vrcp.f32 %v928_v32 }
 0x325   :  { %v1013_v25 = vpop.f32.mrf.mxu0 }
 0x326   :  { %v3173_v26 = vpop.eup %3172  ;;  %v1089_v27 = vadd.f32 %v3050_v17, %v1013_v25  ;;  %v1084_v17 = vpop.f32.mrf.mxu1 }
 0x327   :  { %v3175_v20 = vpop.eup %3174  ;;  %v1015_v29 = vpop.f32.mrf.mxu0  ;;  %v1091_v25 = vadd.f32 %v3052_v31, %v1084_v17 }
 0x328   :  { %v3177_v33 = vpop.eup %3176  ;;  %v3054_v19 = vmul.f32 -1.442695, %v1089_v27  ;;  %v1090_v18 = vadd.f32 %v3051_v21, %v1015_v29  ;;  %v938_v32 = vmul.f32 %v3175_v20, %v3173_v26 }
 0x329   :  { %v937_v23 = vmul.f32 %v3177_v33, %v5265_v2  ;;  %v1086_v2 = vpop.f32.mrf.mxu1  ;;  %v3056_v21 = vmul.f32 -1.442695, %v1091_v25 }
 0x32a   :  { %3178 = vpow2.f32 %v3054_v19  ;;  %v3055_v43 = vmul.f32 -1.442695, %v1090_v18  ;;  %v1092_v27 = vadd.f32 %v3053_v22, %v1086_v2 }
 0x32b   :  { %v6253_v39 = vadd.f32 %v938_v32, %v937_v23 }
 0x32c   :  { %3180 = vpow2.f32 %v3055_v43 }
 0x32d   :  { %3182 = vrcp.f32 %v929_v24 }
 0x32e   :  { %3184 = vtanh.f32 %v6253_v39 }
 0x32f   :  { %3186 = vpow2.f32 %v3056_v21 }
 0x337   :  { %v3179_v26 = vpop.eup %3178 }
 0x338   :  { %v1102_v20 = vadd.f32 1.0, %v3179_v26 }
 0x339   :  { %v3181_v29 = vpop.eup %3180 }
 0x33a   :  { %v3183_v43 = vpop.eup %3182  ;;  %3188 = vrcp.f32 %v1102_v20  ;;  %v1103_v33 = vadd.f32 1.0, %v3181_v29  ;;  %v10015_v20 = vld [vmem:[#allocation62_spill] sm:$0xff]  ;;  %v10016_v29 = vld [vmem:[#allocation63_spill] sm:$0xff] }
 0x33b   :  { %v3185_v19 = vpop.eup %3184  ;;  %3190 = vtanh.f32 %v1092_v27 }
 0x33c   :  { %3192 = vrcp.f32 %v1103_v33  ;;  %v941_v18 = vmul.f32 %v3185_v19, %v3183_v43  ;;  %v3187_v31 = vpop.eup %3186  ;;  %v10017_v43 = vld [vmem:[#allocation64_spill] sm:$0xff]  ;;  %v10018_v33 = vld [vmem:[#allocation65_spill] sm:$0xff]  ;;  %v10019_v19 = vld [vmem:[#allocation66_spill] sm:$0xff] }
 0x33d   :  { %v1104_v17 = vadd.f32 1.0, %v3187_v31  ;;  %v10021_v31 = vld [vmem:[#allocation68_spill] sm:$0xff] }
 0x33e   :  { %1181 = vmatprep.mubr.f32.mxu0 %v941_v18  ;;  %1252 = vmatprep.mubr.f32.mxu1 %v941_v18  ;;  %v10020_v18 = vld [vmem:[#allocation67_spill] sm:$0xff] }
 0x33f   :  { %3194 = vrcp.f32 %v1104_v17  ;;  %v10025_v17 = vld [vmem:[#allocation72_spill] sm:$0xff] }
 0x347   :  { %v3189_v24 = vpop.eup %3188 }
 0x348   :  { %v3191_v23 = vpop.eup %3190 }
 0x349   :  { %v3193_v32 = vpop.eup %3192  ;;  %v1113_v22 = vmul.f32 %v3191_v23, %v3189_v24  ;;  %v10022_v24 = vld [vmem:[#allocation69_spill] sm:$0xff]  ;;  %v10023_v23 = vld [vmem:[#allocation70_spill] sm:$0xff] }
 0x34a   :  { %v1112_v25 = vmul.f32 %v3193_v32, %v5275_v28  ;;  %v9970_v28 = vld [vmem:[#allocation16_spill] sm:$0xff]  ;;  %v10024_v32 = vld [vmem:[#allocation71_spill] sm:$0xff] }
 0x34c   :  { %v6263_v2 = vadd.f32 %v1113_v22, %v1112_v25  ;;  %v3195_v21 = vpop.eup %3194  ;;  %v10026_v25 = vld [vmem:[#allocation73_spill] sm:$0xff]  ;;  %v10027_v22 = vld [vmem:[#allocation74_spill] sm:$0xff] }
 0x34e   :  { %3196 = vtanh.f32 %v6263_v2 }
 0x35b   :  { %v3197_v26 = vpop.eup %3196 }
 0x35c   :  { %v6266_v27 = vmul.f32 %v3197_v26, %v3195_v21  ;;  %v10028_v21 = vld [vmem:[#allocation75_spill] sm:$0xff]  ;;  %v10029_v26 = vld [vmem:[#allocation76_spill] sm:$0xff] }
 0x35e   :  { %1182 = vmatmul.mubr.f32.vlgmr.msra.gmra.mxu0 %v6266_v27  ;;  %1253 = vmatmul.mubr.f32.vlgmr.msra.gmra.mxu1 %v6266_v27 }
 0x35f   :  { %1289 = vmatpush1.msra.mxu0 %v5282_v34  ;;  %1360 = vmatpush1.msra.mxu1 %v5285_v35  ;;  %v9971_v34 = vld [vmem:[#allocation24_spill] sm:$0xff]  ;;  %v9972_v35 = vld [vmem:[#allocation17_spill] sm:$0xff] }
 0x360   :  { %1290 = vmatprep.subr.mxu0 %v5288_v55  ;;  %1361 = vmatprep.subr.mxu1 %v5291_v36  ;;  %v9973_v55 = vld [vmem:[#allocation25_spill] sm:$0xff]  ;;  %v9974_v36 = vld [vmem:[#allocation18_spill] sm:$0xff] }
 0x361   :  { %1291 = vmatpush1.msra.mxu0 %v5294_v37  ;;  %1362 = vmatpush1.msra.mxu1 %v5297_v38  ;;  %v9975_v37 = vld [vmem:[#allocation26_spill] sm:$0xff]  ;;  %v9976_v38 = vld [vmem:[#allocation19_spill] sm:$0xff] }
 0x362   :  { %1292 = vmatprep.subr.mxu0 %v5300_v40  ;;  %1363 = vmatprep.subr.mxu1 %v5303_v41  ;;  %v9977_v40 = vld [vmem:[#allocation28_spill] sm:$0xff]  ;;  %v9978_v41 = vld [vmem:[#allocation21_spill] sm:$0xff] }
 0x363   :  { %1293 = vmatpush1.msra.mxu0 %v5306_v42  ;;  %1364 = vmatpush1.msra.mxu1 %v5309_v44  ;;  %v9979_v42 = vld [vmem:[#allocation30_spill] sm:$0xff]  ;;  %v9980_v44 = vld [vmem:[#allocation23_spill] sm:$0xff] }
 0x364   :  { %1294 = vmatprep.subr.mxu0 %v5312_v45  ;;  %1365 = vmatprep.subr.mxu1 %v5315_v46  ;;  %v9981_v45 = vld [vmem:[#allocation32_spill] sm:$0xff]  ;;  %v9982_v46 = vld [vmem:[#allocation27_spill] sm:$0xff] }
 0x365   :  { %1295 = vmatpush1.msra.mxu0 %v5318_v47  ;;  %1366 = vmatpush1.msra.mxu1 %v5321_v49  ;;  %v9983_v47 = vld [vmem:[#allocation34_spill] sm:$0xff]  ;;  %v9984_v49 = vld [vmem:[#allocation29_spill] sm:$0xff] }
 0x366   :  { %1296 = vmatprep.subr.mxu0 %v5324_v51  ;;  %1367 = vmatprep.subr.mxu1 %v5327_v53  ;;  %v9985_v51 = vld [vmem:[#allocation35_spill] sm:$0xff] }
 0x367   :  { %1297 = vmatpush1.msra.mxu0 %v5330_v57  ;;  %1368 = vmatpush1.msra.mxu1 %v5333_v63  ;;  %v9986_v53 = vld [vmem:[#allocation31_spill] sm:$0xff]  ;;  %v9987_v57 = vmov 0.0   ;;  %v9988_v63 = vld [vmem:[#allocation37_spill] sm:$0xff] }
 0x368   :  { %1298 = vmatprep.subr.mxu0 %v5336_v52  ;;  %1369 = vmatprep.subr.mxu1 %v5339_v54  ;;  %v9989_v52 = vld [vmem:[#allocation33_spill] sm:$0xff]  ;;  %v9990_v54 = vld [vmem:[#allocation39_spill] sm:$0xff] }
 0x369   :  { %1299 = vmatpush1.msra.mxu0 %v5342_v0  ;;  %1370 = vmatpush1.msra.mxu1 %v5345_v50  ;;  %v9991_v0 = vld [vmem:[#allocation36_spill] sm:$0xff]  ;;  %v9992_v50 = vld [vmem:[#allocation41_spill] sm:$0xff] }
 0x36a   :  { %1300 = vmatprep.subr.mxu0 %v5348_v56  ;;  %1371 = vmatprep.subr.mxu1 %v5351_v58  ;;  %v9993_v56 = vld [vmem:[#allocation38_spill] sm:$0xff]  ;;  %v9994_v58 = vld [vmem:[#allocation43_spill] sm:$0xff] }
 0x36b   :  { %1301 = vmatpush1.msra.mxu0 %v5354_v60  ;;  %1372 = vmatpush1.msra.mxu1 %v5357_v62  ;;  %v9995_v60 = vld [vmem:[#allocation40_spill] sm:$0xff] }
 0x36c   :  { %1302 = vmatprep.subr.mxu0 %v5360_v1  ;;  %1373 = vmatprep.subr.mxu1 %v5363_v9  ;;  %v9996_v62 = vld [vmem:[#allocation44_spill] sm:$0xff]  ;;  %v9997_v1 = vld [vmem:[#allocation42_spill] sm:$0xff]  ;;  %v9998_v9 = vld [vmem:[#allocation45_spill] sm:$0xff] }
 0x36d   :  { %1303 = vmatpush1.msra.mxu0 %v5366_v59  ;;  %1374 = vmatpush1.msra.mxu1 %v5369_v61  ;;  %v9999_v59 = vld [vmem:[#allocation46_spill] sm:$0xff]  ;;  %v10000_v61 = vld [vmem:[#allocation47_spill] sm:$0xff] }
 0x36e   :  { %1304 = vmatprep.subr.mxu0 %v5372_v48  ;;  %1375 = vmatprep.subr.mxu1 %v5375_v3  ;;  %v10001_v48 = vld [vmem:[#allocation48_spill] sm:$0xff]  ;;  %v10002_v3 = vld [vmem:[#allocation49_spill] sm:$0xff] }
 0x36f   :  { %1305 = vmatpush1.msra.mxu0 %v5378_v4  ;;  %1376 = vmatpush1.msra.mxu1 %v5381_v5  ;;  %v10003_v4 = vld [vmem:[#allocation50_spill] sm:$0xff]  ;;  %v10004_v5 = vld [vmem:[#allocation51_spill] sm:$0xff] }
 0x370   :  { %1306 = vmatprep.subr.mxu0 %v5384_v6  ;;  %1377 = vmatprep.subr.mxu1 %v5387_v7  ;;  %v10005_v6 = vld [vmem:[#allocation52_spill] sm:$0xff]  ;;  %v10006_v7 = vld [vmem:[#allocation53_spill] sm:$0xff] }
 0x371   :  { %1307 = vmatpush1.msra.mxu0 %v5390_v8  ;;  %1378 = vmatpush1.msra.mxu1 %v5393_v10  ;;  %v10007_v8 = vld [vmem:[#allocation54_spill] sm:$0xff]  ;;  %v10008_v10 = vld [vmem:[#allocation55_spill] sm:$0xff] }
 0x372   :  { %1308 = vmatprep.subr.mxu0 %v5396_v11  ;;  %1379 = vmatprep.subr.mxu1 %v5399_v12  ;;  %v10009_v11 = vld [vmem:[#allocation56_spill] sm:$0xff]  ;;  %v10010_v12 = vld [vmem:[#allocation57_spill] sm:$0xff] }
 0x373   :  { %1309 = vmatpush1.msra.mxu0 %v5402_v13  ;;  %1380 = vmatpush1.msra.mxu1 %v5405_v14  ;;  %v10011_v13 = vld [vmem:[#allocation58_spill] sm:$0xff]  ;;  %v10012_v14 = vld [vmem:[#allocation59_spill] sm:$0xff] }
 0x374   :  { %1310 = vmatprep.subr.mxu0 %v5408_v15  ;;  %1381 = vmatprep.subr.mxu1 %v5411_v16  ;;  %v10013_v15 = vld [vmem:[#allocation60_spill] sm:$0xff]  ;;  %v10014_v16 = vld [vmem:[#allocation61_spill] sm:$0xff] }
 0x375   :  { %1311 = vmatpush1.msra.mxu0 %v9970_v28  ;;  %1382 = vmatpush1.msra.mxu1 %v9971_v34  ;;  %v10031_v28 = vld [vmem:[#allocation78_spill] sm:$0xff]  ;;  %v10032_v34 = vld [vmem:[#allocation79_spill] sm:$0xff] }
 0x376   :  { %1312 = vmatprep.subr.mxu0 %v9972_v35  ;;  %1383 = vmatprep.subr.mxu1 %v9973_v55  ;;  %v10033_v35 = vld [vmem:[#allocation80_spill] sm:$0xff]  ;;  %v10034_v55 = vld [vmem:[#allocation81_spill] sm:$0xff] }
 0x377   :  { %1313 = vmatpush1.msra.mxu0 %v9974_v36  ;;  %1384 = vmatpush1.msra.mxu1 %v9975_v37  ;;  %v10035_v36 = vld [vmem:[#allocation82_spill] sm:$0xff]  ;;  %v10036_v37 = vld [vmem:[#allocation83_spill] sm:$0xff] }
 0x378   :  { %1314 = vmatprep.subr.mxu0 %v9976_v38  ;;  %1385 = vmatprep.subr.mxu1 %v9977_v40  ;;  %v10037_v38 = vld [vmem:[#allocation84_spill] sm:$0xff]  ;;  %v10038_v40 = vld [vmem:[#allocation85_spill] sm:$0xff] }
 0x379   :  { %1315 = vmatpush1.msra.mxu0 %v9978_v41  ;;  %1386 = vmatpush1.msra.mxu1 %v9979_v42  ;;  %v10039_v41 = vld [vmem:[#allocation86_spill] sm:$0xff]  ;;  %v10040_v42 = vld [vmem:[#allocation87_spill] sm:$0xff] }
 0x37a   :  { %1316 = vmatprep.subr.mxu0 %v9980_v44  ;;  %1387 = vmatprep.subr.mxu1 %v9981_v45  ;;  %v10041_v44 = vld [vmem:[#allocation88_spill] sm:$0xff]  ;;  %v10042_v45 = vld [vmem:[#allocation89_spill] sm:$0xff] }
 0x37b   :  { %1317 = vmatpush1.msra.mxu0 %v9982_v46  ;;  %1388 = vmatpush1.msra.mxu1 %v9983_v47  ;;  %v10043_v46 = vld [vmem:[#allocation90_spill] sm:$0xff]  ;;  %v10044_v47 = vld [vmem:[#allocation91_spill] sm:$0xff] }
 0x37c   :  { %1318 = vmatprep.subr.mxu0 %v9984_v49  ;;  %1389 = vmatprep.subr.mxu1 %v9985_v51  ;;  %v10045_v49 = vld [vmem:[#allocation92_spill] sm:$0xff]  ;;  %v10046_v51 = vld [vmem:[#allocation93_spill] sm:$0xff] }
 0x37d   :  { %1319 = vmatpush1.msra.mxu0 %v9986_v53  ;;  %1352 = vmatprep.mubr.f32.mxu0 %v9987_v57  ;;  %v10047_v53 = vld [vmem:[#allocation94_spill] sm:$0xff] }
 0x37e   :  { %1390 = vmatpush1.msra.mxu1 %v9988_v63  ;;  %1423 = vmatprep.mubr.f32.mxu1 %v9987_v57  ;;  %v10048_v63 = vld [vmem:[#allocation95_spill] sm:$0xff] }
 0x37f   :  { %1353 = vmatmul.mubr.f32.vlgmr.msra.gmra.mxu0 %v6266_v27  ;;  %1424 = vmatmul.mubr.f32.vlgmr.msra.gmra.mxu1 %v6266_v27  ;;  %v10030_v27 = vld [vmem:[#allocation77_spill] sm:$0xff] }
 0x380   :  { %1458 = vmatprep.subr.mxu0 %v9989_v52  ;;  %1529 = vmatprep.subr.mxu1 %v9990_v54  ;;  %v10049_v52 = vld [vmem:[#allocation96_spill] sm:$0xff]  ;;  %v10050_v54 = vld [vmem:[#allocation97_spill] sm:$0xff] }
 0x381   :  { %1459 = vmatpush1.msra.mxu0 %v9991_v0  ;;  %1530 = vmatpush1.msra.mxu1 %v9992_v50  ;;  %v10051_v0 = vld [vmem:[#allocation98_spill] sm:$0xff]  ;;  %v10052_v50 = vld [vmem:[#allocation99_spill] sm:$0xff] }
 0x382   :  { %1460 = vmatprep.subr.mxu0 %v9993_v56  ;;  %1531 = vmatprep.subr.mxu1 %v9994_v58  ;;  %v10053_v56 = vld [vmem:[#allocation100_spill] sm:$0xff]  ;;  %v10054_v58 = vld [vmem:[#allocation101_spill] sm:$0xff] }
 0x383   :  { %1461 = vmatpush1.msra.mxu0 %v9995_v60  ;;  %1532 = vmatpush1.msra.mxu1 %v9996_v62  ;;  %v10055_v60 = vld [vmem:[#allocation102_spill] sm:$0xff]  ;;  %v10056_v62 = vld [vmem:[#allocation103_spill] sm:$0xff] }
 0x384   :  { %1462 = vmatprep.subr.mxu0 %v9997_v1  ;;  %1533 = vmatprep.subr.mxu1 %v9998_v9  ;;  %v10057_v1 = vld [vmem:[#allocation104_spill] sm:$0xff]  ;;  %v10058_v9 = vld [vmem:[#allocation105_spill] sm:$0xff] }
 0x385   :  { %1463 = vmatpush1.msra.mxu0 %v9999_v59  ;;  %1534 = vmatpush1.msra.mxu1 %v10000_v61  ;;  %v10059_v59 = vld [vmem:[#allocation106_spill] sm:$0xff]  ;;  %v10060_v61 = vld [vmem:[#allocation107_spill] sm:$0xff] }
 0x386   :  { %1464 = vmatprep.subr.mxu0 %v10001_v48  ;;  %1535 = vmatprep.subr.mxu1 %v10002_v3  ;;  %v10061_v48 = vld [vmem:[#allocation108_spill] sm:$0xff]  ;;  %v10062_v3 = vld [vmem:[#allocation109_spill] sm:$0xff] }
 0x387   :  { %1465 = vmatpush1.msra.mxu0 %v10003_v4  ;;  %1536 = vmatpush1.msra.mxu1 %v10004_v5  ;;  %v10063_v4 = vld [vmem:[#allocation110_spill] sm:$0xff]  ;;  %v10064_v5 = vld [vmem:[#allocation111_spill] sm:$0xff] }
 0x388   :  { %1466 = vmatprep.subr.mxu0 %v10005_v6  ;;  %1537 = vmatprep.subr.mxu1 %v10006_v7  ;;  %v10065_v6 = vld [vmem:[#allocation112_spill] sm:$0xff]  ;;  %v10066_v7 = vld [vmem:[#allocation113_spill] sm:$0xff] }
 0x389   :  { %1467 = vmatpush1.msra.mxu0 %v10007_v8  ;;  %1538 = vmatpush1.msra.mxu1 %v10008_v10  ;;  %v10067_v8 = vld [vmem:[#allocation114_spill] sm:$0xff]  ;;  %v10068_v10 = vld [vmem:[#allocation115_spill] sm:$0xff] }
 0x38a   :  { %1468 = vmatprep.subr.mxu0 %v10009_v11  ;;  %1539 = vmatprep.subr.mxu1 %v10010_v12  ;;  %v10069_v11 = vld [vmem:[#allocation116_spill] sm:$0xff]  ;;  %v10070_v12 = vld [vmem:[#allocation117_spill] sm:$0xff] }
 0x38b   :  { %1469 = vmatpush1.msra.mxu0 %v10011_v13  ;;  %1540 = vmatpush1.msra.mxu1 %v10012_v14  ;;  %v10071_v13 = vld [vmem:[#allocation118_spill] sm:$0xff]  ;;  %v10072_v14 = vld [vmem:[#allocation119_spill] sm:$0xff] }
 0x38c   :  { %1470 = vmatprep.subr.mxu0 %v10013_v15  ;;  %1541 = vmatprep.subr.mxu1 %v10014_v16  ;;  %v10073_v15 = vld [vmem:[#allocation120_spill] sm:$0xff]  ;;  %v10074_v16 = vld [vmem:[#allocation121_spill] sm:$0xff] }
 0x38d   :  { %1471 = vmatpush1.msra.mxu0 %v10015_v20  ;;  %1542 = vmatpush1.msra.mxu1 %v10016_v29  ;;  %v10075_v20 = vld [vmem:[#allocation122_spill] sm:$0xff]  ;;  %v10076_v29 = vld [vmem:[#allocation123_spill] sm:$0xff] }
 0x38e   :  { %1472 = vmatprep.subr.mxu0 %v10017_v43  ;;  %1543 = vmatprep.subr.mxu1 %v10018_v33  ;;  %v10077_v43 = vld [vmem:[#allocation124_spill] sm:$0xff]  ;;  %v10078_v33 = vld [vmem:[#allocation125_spill] sm:$0xff] }
 0x38f   :  { %1473 = vmatpush1.msra.mxu0 %v10019_v19  ;;  %1544 = vmatpush1.msra.mxu1 %v10020_v18  ;;  %v10079_v19 = vld [vmem:[#allocation126_spill] sm:$0xff]  ;;  %v10080_v18 = vld [vmem:[#allocation127_spill] sm:$0xff] }
 0x390   :  { %1474 = vmatprep.subr.mxu0 %v10021_v31  ;;  %1545 = vmatprep.subr.mxu1 %v10022_v24  ;;  %v10081_v31 = vld [vmem:[#allocation128_spill] sm:$0xff]  ;;  %v10082_v24 = vld [vmem:[#allocation129_spill] sm:$0xff] }
 0x391   :  { %1475 = vmatpush1.msra.mxu0 %v10023_v23  ;;  %1546 = vmatpush1.msra.mxu1 %v10024_v32  ;;  %v10083_v23 = vld [vmem:[#allocation130_spill] sm:$0xff]  ;;  %v10084_v32 = vld [vmem:[#allocation131_spill] sm:$0xff] }
 0x392   :  { %1476 = vmatprep.subr.mxu0 %v10025_v17  ;;  %1547 = vmatprep.subr.mxu1 %v10026_v25  ;;  %v10085_v17 = vld [vmem:[#allocation132_spill] sm:$0xff]  ;;  %v10086_v25 = vld [vmem:[#allocation133_spill] sm:$0xff] }
 0x393   :  { %1477 = vmatpush1.msra.mxu0 %v10027_v22  ;;  %1548 = vmatpush1.msra.mxu1 %v10028_v21  ;;  %v10087_v22 = vld [vmem:[#allocation134_spill] sm:$0xff]  ;;  %v10088_v21 = vld [vmem:[#allocation135_spill] sm:$0xff] }
 0x394   :  { %1478 = vmatprep.subr.mxu0 %v10029_v26  ;;  %1549 = vmatprep.subr.mxu1 %v10030_v27  ;;  %v10089_v26 = vld [vmem:[#allocation136_spill] sm:$0xff]  ;;  %v10090_v27 = vld [vmem:[#allocation137_spill] sm:$0xff] }
 0x395   :  { %1479 = vmatpush1.msra.mxu0 %v10031_v28  ;;  %1550 = vmatpush1.msra.mxu1 %v10032_v34  ;;  %v10091_v28 = vld [vmem:[#allocation138_spill] sm:$0xff]  ;;  %v10092_v34 = vld [vmem:[#allocation139_spill] sm:$0xff] }
 0x396   :  { %1480 = vmatprep.subr.mxu0 %v10033_v35  ;;  %1551 = vmatprep.subr.mxu1 %v10034_v55  ;;  %v10093_v35 = vld [vmem:[#allocation140_spill] sm:$0xff]  ;;  %v10094_v55 = vld [vmem:[#allocation141_spill] sm:$0xff] }
 0x397   :  { %1481 = vmatpush1.msra.mxu0 %v10035_v36  ;;  %1552 = vmatpush1.msra.mxu1 %v10036_v37  ;;  %v10095_v36 = vld [vmem:[#allocation142_spill] sm:$0xff]  ;;  %v10096_v37 = vld [vmem:[#allocation143_spill] sm:$0xff] }
 0x398   :  { %1482 = vmatprep.subr.mxu0 %v10037_v38  ;;  %1553 = vmatprep.subr.mxu1 %v10038_v40  ;;  %v10097_v38 = vld [vmem:[#allocation144_spill] sm:$0xff]  ;;  %v10098_v40 = vld [vmem:[#allocation145_spill] sm:$0xff] }
 0x399   :  { %1483 = vmatpush1.msra.mxu0 %v10039_v41  ;;  %1554 = vmatpush1.msra.mxu1 %v10040_v42  ;;  %v10099_v41 = vld [vmem:[#allocation146_spill] sm:$0xff]  ;;  %v10100_v42 = vld [vmem:[#allocation147_spill] sm:$0xff] }
 0x39a   :  { %1484 = vmatprep.subr.mxu0 %v10041_v44  ;;  %1555 = vmatprep.subr.mxu1 %v10042_v45  ;;  %v10101_v44 = vld [vmem:[#allocation148_spill] sm:$0xff]  ;;  %v10102_v45 = vld [vmem:[#allocation149_spill] sm:$0xff] }
 0x39b   :  { %1485 = vmatpush1.msra.mxu0 %v10043_v46  ;;  %1556 = vmatpush1.msra.mxu1 %v10044_v47  ;;  %v10103_v46 = vld [vmem:[#allocation150_spill] sm:$0xff]  ;;  %v10104_v47 = vld [vmem:[#allocation151_spill] sm:$0xff] }
 0x39c   :  { %1486 = vmatprep.subr.mxu0 %v10045_v49  ;;  %1557 = vmatprep.subr.mxu1 %v10046_v51  ;;  %v10105_v49 = vld [vmem:[#allocation152_spill] sm:$0xff]  ;;  %v10106_v51 = vld [vmem:[#allocation153_spill] sm:$0xff] }
 0x39d   :  { %1487 = vmatpush1.msra.mxu0 %v10047_v53  ;;  %1558 = vmatpush1.msra.mxu1 %v10048_v63  ;;  %v10107_v53 = vld [vmem:[#allocation154_spill] sm:$0xff]  ;;  %v10108_v63 = vld [vmem:[#allocation155_spill] sm:$0xff] }
 0x39e   :  { %1488 = vmatprep.subr.mxu0 %v10049_v52  ;;  %1559 = vmatprep.subr.mxu1 %v10050_v54  ;;  %v10109_v52 = vld [vmem:[#allocation156_spill] sm:$0xff]  ;;  %v10110_v54 = vld [vmem:[#allocation157_spill] sm:$0xff] }
 0x39f   :  { %1489 = vmatpush1.msra.mxu0 %v10051_v0  ;;  %1560 = vmatpush1.msra.mxu1 %v10052_v50  ;;  %v10111_v0 = vld [vmem:[#allocation158_spill] sm:$0xff]  ;;  %v10112_v50 = vld [vmem:[#allocation159_spill] sm:$0xff] }
 0x3a0   :  { %1490 = vmatprep.subr.mxu0 %v10053_v56  ;;  %1561 = vmatprep.subr.mxu1 %v10054_v58  ;;  %v10113_v56 = vld [vmem:[#allocation160_spill] sm:$0xff]  ;;  %v10114_v58 = vld [vmem:[#allocation161_spill] sm:$0xff] }
 0x3a1   :  { %1491 = vmatpush2.msra.mxu0 %v10055_v60  ;;  %1562 = vmatpush2.msra.mxu1 %v10056_v62  ;;  %v10115_v60 = vld [vmem:[#allocation162_spill] sm:$0xff]  ;;  %v10116_v62 = vld [vmem:[#allocation163_spill] sm:$0xff] }
 0x3a2   :  { %1492 = vmatprep.subr.mxu0 %v10057_v1  ;;  %1563 = vmatprep.subr.mxu1 %v10058_v9  ;;  %v6464_v1 = vld [vmem:[#allocation6 + $0x1e8] sm:$0xff]  ;;  %v6467_v9 = vld [vmem:[#allocation6 + $0x1f8] sm:$0xff] }
 0x3a3   :  { %1493 = vmatpush2.msra.mxu0 %v10059_v59  ;;  %1564 = vmatpush2.msra.mxu1 %v10060_v61 }
 0x3a4   :  { %1494 = vmatprep.subr.mxu0 %v10061_v48  ;;  %1565 = vmatprep.subr.mxu1 %v10062_v3 }
 0x3a5   :  { %1495 = vmatpush2.msra.mxu0 %v10063_v4  ;;  %1566 = vmatpush2.msra.mxu1 %v10064_v5  ;;  %v10117_v4 = vld [vmem:[#allocation20_spill] sm:$0xff] }
 0x3a6   :  { %1496 = vmatprep.subr.mxu0 %v10065_v6  ;;  %1567 = vmatprep.subr.mxu1 %v10066_v7 }
 0x3a7   :  { %1497 = vmatpush2.msra.mxu0 %v10067_v8  ;;  %1568 = vmatpush2.msra.mxu1 %v10068_v10  ;;  %v10118_v8 = vld [vmem:[#allocation15_spill] sm:$0xff] }
 0x3a8   :  { %1498 = vmatprep.subr.mxu0 %v10069_v11  ;;  %1569 = vmatprep.subr.mxu1 %v10070_v12 }
 0x3a9   :  { %1499 = vmatpush2.msra.mxu0 %v10071_v13  ;;  %1570 = vmatpush2.msra.mxu1 %v10072_v14  ;;  %v10119_v14 = vld [vmem:[#allocation22_spill] sm:$0xff] }
 0x3aa   :  { %1500 = vmatprep.subr.mxu0 %v10073_v15  ;;  %1571 = vmatprep.subr.mxu1 %v10074_v16 }
 0x3ab   :  { %1501 = vmatpush2.msra.mxu0 %v10075_v20  ;;  %1572 = vmatpush2.msra.mxu1 %v10076_v29 }
 0x3ac   :  { %1502 = vmatprep.subr.mxu0 %v10077_v43  ;;  %1573 = vmatprep.subr.mxu1 %v10078_v33  ;;  %v3060_v43 = vld [vmem:[%s8928_s0 + $0x60] sm:$0xff] }
 0x3ad   :  { %1503 = vmatpush2.msra.mxu0 %v10079_v19  ;;  %1574 = vmatpush2.msra.mxu1 %v10080_v18  ;;  %v3061_v18 = vld [vmem:[%s8928_s0 + $0x68] sm:$0xff] }
 0x3ae   :  { %1504 = vmatprep.subr.mxu0 %v10081_v31  ;;  %1575 = vmatprep.subr.mxu1 %v10082_v24 }
 0x3af   :  { %1505 = vmatpush2.msra.mxu0 %v10083_v23  ;;  %1576 = vmatpush2.msra.mxu1 %v10084_v32 }
 0x3b0   :  { %1506 = vmatprep.subr.mxu0 %v10085_v17  ;;  %1577 = vmatprep.subr.mxu1 %v10086_v25 }
 0x3b1   :  { %1507 = vmatpush2.msra.mxu0 %v10087_v22  ;;  %1578 = vmatpush2.msra.mxu1 %v10088_v21 }
 0x3b2   :  { %1508 = vmatprep.subr.mxu0 %v10089_v26  ;;  %1579 = vmatprep.subr.mxu1 %v10090_v27 }
 0x3b3   :  { %1509 = vmatpush2.msra.mxu0 %v10091_v28  ;;  %1580 = vmatpush2.msra.mxu1 %v10092_v34 }
 0x3b4   :  { %1510 = vmatprep.subr.mxu0 %v10093_v35  ;;  %1581 = vmatprep.subr.mxu1 %v10094_v55  ;;  %v3062_v35 = vld [vmem:[%s8928_s0 + $0x70] sm:$0xff] }
 0x3b5   :  { %1511 = vmatpush2.msra.mxu0 %v10095_v36  ;;  %1582 = vmatpush2.msra.mxu1 %v10096_v37  ;;  %v3063_v37 = vld [vmem:[%s8928_s0 + $0x78] sm:$0xff] }
 0x3b6   :  { %1512 = vmatprep.subr.mxu0 %v10097_v38  ;;  %1583 = vmatprep.subr.mxu1 %v10098_v40 }
 0x3b7   :  { %1513 = vmatpush2.msra.mxu0 %v10099_v41  ;;  %1584 = vmatpush2.msra.mxu1 %v10100_v42 }
 0x3b8   :  { %1514 = vmatprep.subr.mxu0 %v10101_v44  ;;  %1585 = vmatprep.subr.mxu1 %v10102_v45 }
 0x3b9   :  { %1515 = vmatpush2.msra.mxu0 %v10103_v46  ;;  %1586 = vmatpush2.msra.mxu1 %v10104_v47 }
 0x3ba   :  { %1516 = vmatprep.subr.mxu0 %v10105_v49  ;;  %1587 = vmatprep.subr.mxu1 %v10106_v51 }
 0x3bb   :  { %1517 = vmatpush2.msra.mxu0 %v10107_v53  ;;  %1588 = vmatpush2.msra.mxu1 %v10108_v63 }
 0x3bc   :  { %1518 = vmatprep.subr.mxu0 %v10109_v52  ;;  %1589 = vmatprep.subr.mxu1 %v10110_v54 }
 0x3bd   :  { %1519 = vmatpush2.msra.mxu0 %v10111_v0  ;;  %1590 = vmatpush2.msra.mxu1 %v10112_v50 }
 0x3be   :  { %1520 = vmatprep.subr.mxu0 %v10113_v56  ;;  %1591 = vmatprep.subr.mxu1 %v10114_v58 }
 0x3bf   :  { %1521 = vmatpush2.msra.mxu0 %v10115_v60  ;;  %1592 = vmatpush2.msra.mxu1 %v10116_v62 }
 0x3c0   :  { %1629 = vmatprep.subr.mxu0 %v6464_v1  ;;  %1700 = vmatprep.subr.mxu1 %v6467_v9 }
 0x41e   :  { %v1183_v59 = vpop.f32.mrf.mxu0  ;;  %v1254_v7 = vpop.f32.mrf.mxu1 }
 0x41f   :  { %v1184_v61 = vadd.f32 %v1183_v59, %v5247_v30  ;;  %v1255_v10 = vadd.f32 %v1254_v7, %v10118_v8  ;;  %v6498_v59 = vld [vmem:[#allocation6 + $0x1e0] sm:$0xff]  ;;  %v6519_v7 = vld [vmem:[#allocation6 + $0x1b8] sm:$0xff] }
 0x420   :  { %v1185_v48 = vpop.f32.mrf.mxu0  ;;  %v1256_v11 = vpop.f32.mrf.mxu1 }
 0x421   :  { %v3057_v3 = vmul.f32 -1.442695, %v1184_v61  ;;  %v1186_v5 = vadd.f32 %v1185_v48, %v10117_v4  ;;  %v3059_v12 = vmul.f32 -1.442695, %v1255_v10  ;;  %v1257_v15 = vadd.f32 %v1256_v11, %v10119_v14  ;;  %v6501_v61 = vld [vmem:[#allocation6 + $0x1f0] sm:$0xff]  ;;  %v6507_v48 = vld [vmem:[#allocation6 + $0x1d8] sm:$0xff] }
 0x422   :  { %v6522_v10 = vld [vmem:[#allocation6 + $0x1a0] sm:$0xff]  ;;  %v6525_v11 = vld [vmem:[#allocation6 + $0x1b0] sm:$0xff] }
 0x423   :  { %3198 = vpow2.f32 %v3057_v3  ;;  %v3058_v6 = vmul.f32 -1.442695, %v1186_v5  ;;  %v6510_v3 = vld [vmem:[#allocation6 + $0x1c0] sm:$0xff]  ;;  %v6513_v5 = vld [vmem:[#allocation6 + $0x1d0] sm:$0xff] }
 0x425   :  { %3200 = vpow2.f32 %v3058_v6  ;;  %v6516_v6 = vld [vmem:[#allocation6 + $0x1a8] sm:$0xff] }
 0x426   :  { %3202 = vpow2.f32 %v3059_v12  ;;  %v6528_v12 = vld [vmem:[#allocation6 + $0x188] sm:$0xff] }
 0x430   :  { %v3199_v13 = vpop.eup %3198 }
 0x431   :  { %v1268_v16 = vadd.f32 1.0, %v3199_v13  ;;  %v6531_v13 = vld [vmem:[#allocation6 + $0x198] sm:$0xff] }
 0x432   :  { %v3201_v20 = vpop.eup %3200 }
 0x433   :  { %3204 = vrcp.f32 %v1268_v16  ;;  %v1269_v29 = vadd.f32 1.0, %v3201_v20  ;;  %v3203_v33 = vpop.eup %3202  ;;  %v6537_v16 = vld [vmem:[#allocation6 + $0x190] sm:$0xff]  ;;  %v6540_v20 = vld [vmem:[#allocation6 + $0x168] sm:$0xff] }
 0x434   :  { %3206 = vtanh.f32 %v1257_v15  ;;  %v1270_v21 = vadd.f32 1.0, %v3203_v33  ;;  %v6534_v15 = vld [vmem:[#allocation6 + $0x180] sm:$0xff]  ;;  %v6549_v33 = vld [vmem:[#allocation6 + $0x170] sm:$0xff] }
 0x435   :  { %3208 = vrcp.f32 %v1269_v29  ;;  %v6543_v29 = vld [vmem:[#allocation6 + $0x178] sm:$0xff] }
 0x43f   :  { %v1354_v19 = vpop.f32.mrf.mxu0  ;;  %v1425_v55 = vpop.f32.mrf.mxu1 }
 0x440   :  { %v3205_v31 = vpop.eup %3204  ;;  %v1430_v24 = vadd.f32 %v3060_v43, %v1354_v19  ;;  %v1432_v36 = vadd.f32 %v3062_v35, %v1425_v55  ;;  %v6546_v43 = vld [vmem:[#allocation6 + $0x160] sm:$0xff]  ;;  %v6552_v19 = vld [vmem:[#allocation6 + $0x148] sm:$0xff]  ;;  %v6591_v35 = vld [vmem:[#allocation6 + $0xf8] sm:$0xff] }
 0x441   :  { %v3207_v23 = vpop.eup %3206  ;;  %v1356_v32 = vpop.f32.mrf.mxu0  ;;  %v6594_v55 = vld [vmem:[#allocation6 + $0xe0] sm:$0xff] }
 0x442   :  { %v3209_v17 = vpop.eup %3208  ;;  %v3064_v25 = vmul.f32 -1.442695, %v1430_v24  ;;  %v1431_v22 = vadd.f32 %v3061_v18, %v1356_v32  ;;  %v1279_v27 = vmul.f32 %v3207_v23, %v3205_v31  ;;  %v3066_v38 = vmul.f32 -1.442695, %v1432_v36  ;;  %v6555_v18 = vld [vmem:[#allocation6 + $0x158] sm:$0xff]  ;;  %v6558_v31 = vld [vmem:[#allocation6 + $0x140] sm:$0xff] }
 0x443   :  { %v1278_v26 = vmul.f32 %v3209_v17, %v6253_v39  ;;  %v1427_v39 = vpop.f32.mrf.mxu1  ;;  %v6561_v24 = vld [vmem:[#allocation6 + $0x150] sm:$0xff]  ;;  %v6564_v23 = vld [vmem:[#allocation6 + $0x128] sm:$0xff]  ;;  %v6567_v32 = vld [vmem:[#allocation6 + $0x138] sm:$0xff] }
 0x444   :  { %3210 = vpow2.f32 %v3064_v25  ;;  %v3065_v28 = vmul.f32 -1.442695, %v1431_v22  ;;  %v1433_v41 = vadd.f32 %v3063_v37, %v1427_v39  ;;  %v6570_v17 = vld [vmem:[#allocation6 + $0x120] sm:$0xff]  ;;  %v6573_v25 = vld [vmem:[#allocation6 + $0x130] sm:$0xff]  ;;  %v6576_v22 = vld [vmem:[#allocation6 + $0x108] sm:$0xff] }
 0x445   :  { %v6481_v34 = vadd.f32 %v1279_v27, %v1278_v26  ;;  %v6582_v26 = vld [vmem:[#allocation6 + $0x100] sm:$0xff]  ;;  %v6585_v27 = vld [vmem:[#allocation6 + $0x110] sm:$0xff]  ;;  %v6600_v37 = vld [vmem:[#allocation6 + $0xc8] sm:$0xff] }
 0x446   :  { %3212 = vpow2.f32 %v3065_v28  ;;  %v6588_v28 = vld [vmem:[#allocation6 + $0xe8] sm:$0xff]  ;;  %v6597_v36 = vld [vmem:[#allocation6 + $0xf0] sm:$0xff]  ;;  %v6603_v39 = vld [vmem:[#allocation6 + $0xd8] sm:$0xff] }
 0x447   :  { %3214 = vrcp.f32 %v1270_v21  ;;  %v6579_v21 = vld [vmem:[#allocation6 + $0x118] sm:$0xff] }
 0x448   :  { %3216 = vtanh.f32 %v6481_v34 }
 0x449   :  { %3218 = vpow2.f32 %v3066_v38  ;;  %v6606_v38 = vld [vmem:[#allocation6 + $0xc0] sm:$0xff] }
 0x451   :  { %v3211_v40 = vpop.eup %3210 }
 0x452   :  { %v1443_v42 = vadd.f32 1.0, %v3211_v40  ;;  %v6609_v40 = vld [vmem:[#allocation6 + $0xd0] sm:$0xff] }
 0x453   :  { %v3213_v44 = vpop.eup %3212 }
 0x454   :  { %v3215_v45 = vpop.eup %3214  ;;  %3220 = vrcp.f32 %v1443_v42  ;;  %v1444_v46 = vadd.f32 1.0, %v3213_v44  ;;  %v6615_v42 = vld [vmem:[#allocation6 + $0xb8] sm:$0xff]  ;;  %v6618_v44 = vld [vmem:[#allocation6 + $0xa0] sm:$0xff] }
 0x455   :  { %v3217_v47 = vpop.eup %3216  ;;  %3222 = vtanh.f32 %v1433_v41  ;;  %v6612_v41 = vld [vmem:[#allocation6 + $0xa8] sm:$0xff] }
 0x456   :  { %3224 = vrcp.f32 %v1444_v46  ;;  %v1282_v49 = vmul.f32 %v3217_v47, %v3215_v45  ;;  %v3219_v51 = vpop.eup %3218  ;;  %v6621_v45 = vld [vmem:[#allocation6 + $0xb0] sm:$0xff]  ;;  %v6624_v46 = vld [vmem:[#allocation6 + $0x88] sm:$0xff]  ;;  %v6627_v47 = vld [vmem:[#allocation6 + $0x98] sm:$0xff] }
 0x457   :  { %v1445_v54 = vadd.f32 1.0, %v3219_v51  ;;  %v6633_v51 = vld [vmem:[#allocation6 + $0x90] sm:$0xff] }
 0x458   :  { %1522 = vmatprep.mubr.f32.mxu0 %v1282_v49  ;;  %1593 = vmatprep.mubr.f32.mxu1 %v1282_v49  ;;  %v6630_v49 = vld [vmem:[#allocation6 + $0x80] sm:$0xff]  ;;  %10121 = vst [vmem:[#allocation24_spill] sm:$0xff] %v6633_v51 }
 0x459   :  { %3226 = vrcp.f32 %v1445_v54  ;;  %10120 = vst [vmem:[#allocation16_spill] sm:$0xff] %v6630_v49  ;;  %v6645_v54 = vld [vmem:[#allocation6 + $0x70] sm:$0xff] }
 0x45a   :  { %10125 = vst [vmem:[#allocation26_spill] sm:$0xff] %v6645_v54 }
 0x461   :  { %v3221_v53 = vpop.eup %3220 }
 0x462   :  { %v3223_v63 = vpop.eup %3222 }
 0x463   :  { %v3225_v52 = vpop.eup %3224  ;;  %v1454_v50 = vmul.f32 %v3223_v63, %v3221_v53  ;;  %v6636_v53 = vld [vmem:[#allocation6 + $0x68] sm:$0xff]  ;;  %v6639_v63 = vld [vmem:[#allocation6 + $0x78] sm:$0xff] }
 0x464   :  { %v1453_v0 = vmul.f32 %v3225_v52, %v6263_v2  ;;  %v6504_v2 = vld [vmem:[#allocation6 + $0x1c8] sm:$0xff]  ;;  %10122 = vst [vmem:[#allocation17_spill] sm:$0xff] %v6636_v53  ;;  %10123 = vst [vmem:[#allocation25_spill] sm:$0xff] %v6639_v63  ;;  %v6642_v52 = vld [vmem:[#allocation6 + $0x60] sm:$0xff] }
 0x465   :  { %10124 = vst [vmem:[#allocation18_spill] sm:$0xff] %v6642_v52 }
 0x466   :  { %v6491_v56 = vadd.f32 %v1454_v50, %v1453_v0  ;;  %v3227_v58 = vpop.eup %3226  ;;  %v6648_v0 = vld [vmem:[#allocation6 + $0x48] sm:$0xff]  ;;  %v6651_v50 = vld [vmem:[#allocation6 + $0x58] sm:$0xff] }
 0x467   :  { %10126 = vst [vmem:[#allocation19_spill] sm:$0xff] %v6648_v0  ;;  %10127 = vst [vmem:[#allocation28_spill] sm:$0xff] %v6651_v50 }
 0x468   :  { %3228 = vtanh.f32 %v6491_v56 }
 0x475   :  { %v3229_v60 = vpop.eup %3228 }
 0x476   :  { %v6494_v62 = vmul.f32 %v3229_v60, %v3227_v58  ;;  %v6654_v58 = vld [vmem:[#allocation6 + $0x40] sm:$0xff]  ;;  %v6657_v60 = vld [vmem:[#allocation6 + $0x50] sm:$0xff] }
 0x477   :  { %10128 = vst [vmem:[#allocation21_spill] sm:$0xff] %v6654_v58  ;;  %10129 = vst [vmem:[#allocation30_spill] sm:$0xff] %v6657_v60 }
 0x478   :  { %1523 = vmatmul.mubr.f32.vlgmr.msra.gmra.mxu0 %v6494_v62  ;;  %1594 = vmatmul.mubr.f32.vlgmr.msra.gmra.mxu1 %v6494_v62 }
 0x479   :  { %1630 = vmatpush1.msra.mxu0 %v6498_v59  ;;  %1701 = vmatpush1.msra.mxu1 %v6501_v61 }
 0x47a   :  { %1631 = vmatprep.subr.mxu0 %v6504_v2  ;;  %1702 = vmatprep.subr.mxu1 %v6507_v48 }
 0x47b   :  { %1632 = vmatpush1.msra.mxu0 %v6510_v3  ;;  %1703 = vmatpush1.msra.mxu1 %v6513_v5 }
 0x47c   :  { %1633 = vmatprep.subr.mxu0 %v6516_v6  ;;  %1704 = vmatprep.subr.mxu1 %v6519_v7 }
 0x47d   :  { %1634 = vmatpush1.msra.mxu0 %v6522_v10  ;;  %1705 = vmatpush1.msra.mxu1 %v6525_v11 }
 0x47e   :  { %1635 = vmatprep.subr.mxu0 %v6528_v12  ;;  %1706 = vmatprep.subr.mxu1 %v6531_v13 }
 0x47f   :  { %1636 = vmatpush1.msra.mxu0 %v6534_v15  ;;  %1707 = vmatpush1.msra.mxu1 %v6537_v16 }
 0x480   :  { %1637 = vmatprep.subr.mxu0 %v6540_v20  ;;  %1708 = vmatprep.subr.mxu1 %v6543_v29 }
 0x481   :  { %1638 = vmatpush1.msra.mxu0 %v6546_v43  ;;  %1709 = vmatpush1.msra.mxu1 %v6549_v33 }
 0x482   :  { %1639 = vmatprep.subr.mxu0 %v6552_v19  ;;  %1710 = vmatprep.subr.mxu1 %v6555_v18 }
 0x483   :  { %1640 = vmatpush1.msra.mxu0 %v6558_v31  ;;  %1711 = vmatpush1.msra.mxu1 %v6561_v24 }
 0x484   :  { %1641 = vmatprep.subr.mxu0 %v6564_v23  ;;  %1712 = vmatprep.subr.mxu1 %v6567_v32 }
 0x485   :  { %1642 = vmatpush1.msra.mxu0 %v6570_v17  ;;  %1713 = vmatpush1.msra.mxu1 %v6573_v25 }
 0x486   :  { %1643 = vmatprep.subr.mxu0 %v6576_v22  ;;  %1714 = vmatprep.subr.mxu1 %v6579_v21 }
 0x487   :  { %1644 = vmatpush1.msra.mxu0 %v6582_v26  ;;  %1715 = vmatpush1.msra.mxu1 %v6585_v27 }
 0x488   :  { %1645 = vmatprep.subr.mxu0 %v6588_v28  ;;  %1716 = vmatprep.subr.mxu1 %v6591_v35 }
 0x489   :  { %1646 = vmatpush1.msra.mxu0 %v6594_v55  ;;  %1717 = vmatpush1.msra.mxu1 %v6597_v36 }
 0x48a   :  { %1647 = vmatprep.subr.mxu0 %v6600_v37  ;;  %1718 = vmatprep.subr.mxu1 %v6603_v39 }
 0x48b   :  { %1648 = vmatpush1.msra.mxu0 %v6606_v38  ;;  %1719 = vmatpush1.msra.mxu1 %v6609_v40 }
 0x48c   :  { %1649 = vmatprep.subr.mxu0 %v6612_v41  ;;  %1720 = vmatprep.subr.mxu1 %v6615_v42 }
 0x48d   :  { %1650 = vmatpush1.msra.mxu0 %v6618_v44  ;;  %1721 = vmatpush1.msra.mxu1 %v6621_v45 }
 0x48e   :  { %1651 = vmatprep.subr.mxu0 %v6624_v46  ;;  %1722 = vmatprep.subr.mxu1 %v6627_v47 }
 0x48f   :  { %1652 = vmatpush1.msra.mxu0 %v6630_v49  ;;  %1723 = vmatpush1.msra.mxu1 %v6633_v51 }
 0x490   :  { %1653 = vmatprep.subr.mxu0 %v6636_v53  ;;  %1724 = vmatprep.subr.mxu1 %v6639_v63 }
 0x491   :  { %1654 = vmatpush1.msra.mxu0 %v6642_v52  ;;  %1725 = vmatpush1.msra.mxu1 %v6645_v54  ;;  %v6660_v52 = vld [vmem:[#allocation6 + $0x28] sm:$0xff]  ;;  %v6663_v54 = vld [vmem:[#allocation6 + $0x38] sm:$0xff] }
 0x492   :  { %1655 = vmatprep.subr.mxu0 %v6648_v0  ;;  %1726 = vmatprep.subr.mxu1 %v6651_v50  ;;  %10130 = vst [vmem:[#allocation23_spill] sm:$0xff] %v6660_v52  ;;  %10131 = vst [vmem:[#allocation32_spill] sm:$0xff] %v6663_v54  ;;  %v6666_v0 = vld [vmem:[#allocation6 + $0x20] sm:$0xff]  ;;  %v6669_v50 = vld [vmem:[#allocation6 + $0x30] sm:$0xff] }
 0x493   :  { %1656 = vmatpush1.msra.mxu0 %v6654_v58  ;;  %1727 = vmatpush1.msra.mxu1 %v6657_v60  ;;  %10132 = vst [vmem:[#allocation27_spill] sm:$0xff] %v6666_v0  ;;  %10133 = vst [vmem:[#allocation34_spill] sm:$0xff] %v6669_v50  ;;  %v6672_v58 = vld [vmem:[#allocation6 + $0x8] sm:$0xff]  ;;  %v6675_v60 = vld [vmem:[#allocation6 + $0x18] sm:$0xff] }
 0x494   :  { %1657 = vmatprep.subr.mxu0 %v6660_v52  ;;  %1728 = vmatprep.subr.mxu1 %v6663_v54  ;;  %10134 = vst [vmem:[#allocation29_spill] sm:$0xff] %v6672_v58  ;;  %10135 = vst [vmem:[#allocation35_spill] sm:$0xff] %v6675_v60  ;;  %v6678_v52 = vld [vmem:[#allocation6] sm:$0xff]  ;;  %v6682_v54 = vld [vmem:[#allocation6 + $0x10] sm:$0xff] }
 0x495   :  { %1658 = vmatpush1.msra.mxu0 %v6666_v0  ;;  %1729 = vmatpush1.msra.mxu1 %v6669_v50  ;;  %10136 = vst [vmem:[#allocation31_spill] sm:$0xff] %v6678_v52  ;;  %10137 = vst [vmem:[#allocation37_spill] sm:$0xff] %v6682_v54 }
 0x496   :  { %1659 = vmatprep.subr.mxu0 %v6672_v58  ;;  %1730 = vmatprep.subr.mxu1 %v6675_v60  ;;  %v6691_v60 = vld [vmem:[%s8930_s2 + $0x1e8] sm:$0xff] }
 0x497   :  { %1660 = vmatpush1.msra.mxu0 %v6678_v52  ;;  %1693 = vmatprep.mubr.f32.mxu0 %v9987_v57  ;;  %10138 = vst [vmem:[#allocation33_spill] sm:$0xff] %v6691_v60  ;;  %v6697_v52 = vld [vmem:[%s8930_s2 + $0x1f8] sm:$0xff] }
 0x498   :  { %1731 = vmatpush1.msra.mxu1 %v6682_v54  ;;  %1764 = vmatprep.mubr.f32.mxu1 %v9987_v57  ;;  %10139 = vst [vmem:[#allocation39_spill] sm:$0xff] %v6697_v52  ;;  %v6703_v54 = vld [vmem:[%s8930_s2 + $0x1e0] sm:$0xff] }
 0x499   :  { %1694 = vmatmul.mubr.f32.vlgmr.msra.gmra.mxu0 %v6494_v62  ;;  %1765 = vmatmul.mubr.f32.vlgmr.msra.gmra.mxu1 %v6494_v62  ;;  %10140 = vst [vmem:[#allocation36_spill] sm:$0xff] %v6703_v54  ;;  %v6709_v62 = vld [vmem:[%s8930_s2 + $0x1f0] sm:$0xff] }
 0x49a   :  { %1799 = vmatprep.subr.mxu0 %v6691_v60  ;;  %1870 = vmatprep.subr.mxu1 %v6697_v52  ;;  %10141 = vst [vmem:[#allocation41_spill] sm:$0xff] %v6709_v62  ;;  %v6715_v60 = vld [vmem:[%s8930_s2 + $0x1c8] sm:$0xff]  ;;  %v6721_v52 = vld [vmem:[%s8930_s2 + $0x1d8] sm:$0xff] }
 0x49b   :  { %1800 = vmatpush1.msra.mxu0 %v6703_v54  ;;  %1871 = vmatpush1.msra.mxu1 %v6709_v62  ;;  %10142 = vst [vmem:[#allocation38_spill] sm:$0xff] %v6715_v60  ;;  %10143 = vst [vmem:[#allocation43_spill] sm:$0xff] %v6721_v52  ;;  %v6727_v54 = vld [vmem:[%s8930_s2 + $0x1c0] sm:$0xff]  ;;  %v6733_v62 = vld [vmem:[%s8930_s2 + $0x1d0] sm:$0xff] }
 0x49c   :  { %1801 = vmatprep.subr.mxu0 %v6715_v60  ;;  %1872 = vmatprep.subr.mxu1 %v6721_v52  ;;  %10144 = vst [vmem:[#allocation40_spill] sm:$0xff] %v6727_v54  ;;  %10145 = vst [vmem:[#allocation44_spill] sm:$0xff] %v6733_v62  ;;  %v6739_v60 = vld [vmem:[%s8930_s2 + $0x1a8] sm:$0xff]  ;;  %v6745_v52 = vld [vmem:[%s8930_s2 + $0x1b8] sm:$0xff] }
 0x49d   :  { %1802 = vmatpush1.msra.mxu0 %v6727_v54  ;;  %1873 = vmatpush1.msra.mxu1 %v6733_v62  ;;  %10146 = vst [vmem:[#allocation42_spill] sm:$0xff] %v6739_v60  ;;  %10147 = vst [vmem:[#allocation45_spill] sm:$0xff] %v6745_v52  ;;  %v6751_v54 = vld [vmem:[%s8930_s2 + $0x1a0] sm:$0xff]  ;;  %v6757_v62 = vld [vmem:[%s8930_s2 + $0x1b0] sm:$0xff] }
 0x49e   :  { %1803 = vmatprep.subr.mxu0 %v6739_v60  ;;  %1874 = vmatprep.subr.mxu1 %v6745_v52  ;;  %10148 = vst [vmem:[#allocation46_spill] sm:$0xff] %v6751_v54  ;;  %10149 = vst [vmem:[#allocation47_spill] sm:$0xff] %v6757_v62  ;;  %v6763_v60 = vld [vmem:[%s8930_s2 + $0x188] sm:$0xff]  ;;  %v6769_v52 = vld [vmem:[%s8930_s2 + $0x198] sm:$0xff] }
 0x49f   :  { %1804 = vmatpush1.msra.mxu0 %v6751_v54  ;;  %1875 = vmatpush1.msra.mxu1 %v6757_v62  ;;  %10150 = vst [vmem:[#allocation48_spill] sm:$0xff] %v6763_v60  ;;  %10151 = vst [vmem:[#allocation49_spill] sm:$0xff] %v6769_v52  ;;  %v6775_v54 = vld [vmem:[%s8930_s2 + $0x180] sm:$0xff]  ;;  %v6781_v62 = vld [vmem:[%s8930_s2 + $0x190] sm:$0xff] }
 0x4a0   :  { %1805 = vmatprep.subr.mxu0 %v6763_v60  ;;  %1876 = vmatprep.subr.mxu1 %v6769_v52  ;;  %10152 = vst [vmem:[#allocation50_spill] sm:$0xff] %v6775_v54  ;;  %10153 = vst [vmem:[#allocation51_spill] sm:$0xff] %v6781_v62  ;;  %v6787_v60 = vld [vmem:[%s8930_s2 + $0x168] sm:$0xff]  ;;  %v6793_v52 = vld [vmem:[%s8930_s2 + $0x178] sm:$0xff] }
 0x4a1   :  { %1806 = vmatpush1.msra.mxu0 %v6775_v54  ;;  %1877 = vmatpush1.msra.mxu1 %v6781_v62  ;;  %10154 = vst [vmem:[#allocation52_spill] sm:$0xff] %v6787_v60  ;;  %10155 = vst [vmem:[#allocation53_spill] sm:$0xff] %v6793_v52  ;;  %v6799_v54 = vld [vmem:[%s8930_s2 + $0x160] sm:$0xff]  ;;  %v6805_v62 = vld [vmem:[%s8930_s2 + $0x170] sm:$0xff] }
 0x4a2   :  { %1807 = vmatprep.subr.mxu0 %v6787_v60  ;;  %1878 = vmatprep.subr.mxu1 %v6793_v52  ;;  %10156 = vst [vmem:[#allocation54_spill] sm:$0xff] %v6799_v54  ;;  %10157 = vst [vmem:[#allocation55_spill] sm:$0xff] %v6805_v62  ;;  %v6811_v60 = vld [vmem:[%s8930_s2 + $0x148] sm:$0xff]  ;;  %v6817_v52 = vld [vmem:[%s8930_s2 + $0x158] sm:$0xff] }
 0x4a3   :  { %1808 = vmatpush1.msra.mxu0 %v6799_v54  ;;  %1879 = vmatpush1.msra.mxu1 %v6805_v62  ;;  %10158 = vst [vmem:[#allocation56_spill] sm:$0xff] %v6811_v60  ;;  %10159 = vst [vmem:[#allocation57_spill] sm:$0xff] %v6817_v52  ;;  %v6823_v54 = vld [vmem:[%s8930_s2 + $0x140] sm:$0xff]  ;;  %v6829_v62 = vld [vmem:[%s8930_s2 + $0x150] sm:$0xff] }
 0x4a4   :  { %1809 = vmatprep.subr.mxu0 %v6811_v60  ;;  %1880 = vmatprep.subr.mxu1 %v6817_v52  ;;  %10160 = vst [vmem:[#allocation58_spill] sm:$0xff] %v6823_v54  ;;  %10161 = vst [vmem:[#allocation59_spill] sm:$0xff] %v6829_v62  ;;  %v6835_v60 = vld [vmem:[%s8930_s2 + $0x128] sm:$0xff]  ;;  %v6841_v52 = vld [vmem:[%s8930_s2 + $0x138] sm:$0xff] }
 0x4a5   :  { %1810 = vmatpush1.msra.mxu0 %v6823_v54  ;;  %1881 = vmatpush1.msra.mxu1 %v6829_v62  ;;  %10162 = vst [vmem:[#allocation60_spill] sm:$0xff] %v6835_v60  ;;  %10163 = vst [vmem:[#allocation61_spill] sm:$0xff] %v6841_v52  ;;  %v6847_v54 = vld [vmem:[%s8930_s2 + $0x120] sm:$0xff]  ;;  %v6853_v62 = vld [vmem:[%s8930_s2 + $0x130] sm:$0xff] }
 0x4a6   :  { %1811 = vmatprep.subr.mxu0 %v6835_v60  ;;  %1882 = vmatprep.subr.mxu1 %v6841_v52  ;;  %10164 = vst [vmem:[#allocation62_spill] sm:$0xff] %v6847_v54  ;;  %10165 = vst [vmem:[#allocation63_spill] sm:$0xff] %v6853_v62  ;;  %v6859_v60 = vld [vmem:[%s8930_s2 + $0x108] sm:$0xff]  ;;  %v6865_v52 = vld [vmem:[%s8930_s2 + $0x118] sm:$0xff] }
 0x4a7   :  { %1812 = vmatpush1.msra.mxu0 %v6847_v54  ;;  %1883 = vmatpush1.msra.mxu1 %v6853_v62  ;;  %10166 = vst [vmem:[#allocation64_spill] sm:$0xff] %v6859_v60  ;;  %10167 = vst [vmem:[#allocation65_spill] sm:$0xff] %v6865_v52  ;;  %v6871_v54 = vld [vmem:[%s8930_s2 + $0x100] sm:$0xff]  ;;  %v6877_v62 = vld [vmem:[%s8930_s2 + $0x110] sm:$0xff] }
 0x4a8   :  { %1813 = vmatprep.subr.mxu0 %v6859_v60  ;;  %1884 = vmatprep.subr.mxu1 %v6865_v52  ;;  %10168 = vst [vmem:[#allocation66_spill] sm:$0xff] %v6871_v54  ;;  %10169 = vst [vmem:[#allocation67_spill] sm:$0xff] %v6877_v62  ;;  %v6883_v60 = vld [vmem:[%s8930_s2 + $0xe8] sm:$0xff]  ;;  %v6889_v52 = vld [vmem:[%s8930_s2 + $0xf8] sm:$0xff] }
 0x4a9   :  { %1814 = vmatpush1.msra.mxu0 %v6871_v54  ;;  %1885 = vmatpush1.msra.mxu1 %v6877_v62  ;;  %10170 = vst [vmem:[#allocation68_spill] sm:$0xff] %v6883_v60  ;;  %10171 = vst [vmem:[#allocation69_spill] sm:$0xff] %v6889_v52  ;;  %v6895_v54 = vld [vmem:[%s8930_s2 + $0xe0] sm:$0xff]  ;;  %v6901_v62 = vld [vmem:[%s8930_s2 + $0xf0] sm:$0xff] }
 0x4aa   :  { %1815 = vmatprep.subr.mxu0 %v6883_v60  ;;  %1886 = vmatprep.subr.mxu1 %v6889_v52  ;;  %10172 = vst [vmem:[#allocation70_spill] sm:$0xff] %v6895_v54  ;;  %10173 = vst [vmem:[#allocation71_spill] sm:$0xff] %v6901_v62  ;;  %v6907_v60 = vld [vmem:[%s8930_s2 + $0xc8] sm:$0xff]  ;;  %v6913_v52 = vld [vmem:[%s8930_s2 + $0xd8] sm:$0xff] }
 0x4ab   :  { %1816 = vmatpush1.msra.mxu0 %v6895_v54  ;;  %1887 = vmatpush1.msra.mxu1 %v6901_v62  ;;  %10174 = vst [vmem:[#allocation72_spill] sm:$0xff] %v6907_v60  ;;  %10175 = vst [vmem:[#allocation73_spill] sm:$0xff] %v6913_v52  ;;  %v6919_v54 = vld [vmem:[%s8930_s2 + $0xc0] sm:$0xff]  ;;  %v6925_v62 = vld [vmem:[%s8930_s2 + $0xd0] sm:$0xff] }
 0x4ac   :  { %1817 = vmatprep.subr.mxu0 %v6907_v60  ;;  %1888 = vmatprep.subr.mxu1 %v6913_v52  ;;  %10176 = vst [vmem:[#allocation74_spill] sm:$0xff] %v6919_v54  ;;  %10177 = vst [vmem:[#allocation75_spill] sm:$0xff] %v6925_v62  ;;  %v6931_v60 = vld [vmem:[%s8930_s2 + $0xa8] sm:$0xff]  ;;  %v6937_v52 = vld [vmem:[%s8930_s2 + $0xb8] sm:$0xff] }
 0x4ad   :  { %1818 = vmatpush1.msra.mxu0 %v6919_v54  ;;  %1889 = vmatpush1.msra.mxu1 %v6925_v62  ;;  %10178 = vst [vmem:[#allocation76_spill] sm:$0xff] %v6931_v60  ;;  %10179 = vst [vmem:[#allocation77_spill] sm:$0xff] %v6937_v52  ;;  %v6943_v54 = vld [vmem:[%s8930_s2 + $0xa0] sm:$0xff]  ;;  %v6949_v62 = vld [vmem:[%s8930_s2 + $0xb0] sm:$0xff] }
 0x4ae   :  { %1819 = vmatprep.subr.mxu0 %v6931_v60  ;;  %1890 = vmatprep.subr.mxu1 %v6937_v52  ;;  %10180 = vst [vmem:[#allocation78_spill] sm:$0xff] %v6943_v54  ;;  %10181 = vst [vmem:[#allocation79_spill] sm:$0xff] %v6949_v62  ;;  %v6955_v60 = vld [vmem:[%s8930_s2 + $0x88] sm:$0xff]  ;;  %v6961_v52 = vld [vmem:[%s8930_s2 + $0x98] sm:$0xff] }
 0x4af   :  { %1820 = vmatpush1.msra.mxu0 %v6943_v54  ;;  %1891 = vmatpush1.msra.mxu1 %v6949_v62  ;;  %10182 = vst [vmem:[#allocation80_spill] sm:$0xff] %v6955_v60  ;;  %10183 = vst [vmem:[#allocation81_spill] sm:$0xff] %v6961_v52  ;;  %v6967_v54 = vld [vmem:[%s8930_s2 + $0x80] sm:$0xff]  ;;  %v6973_v62 = vld [vmem:[%s8930_s2 + $0x90] sm:$0xff] }
 0x4b0   :  { %1821 = vmatprep.subr.mxu0 %v6955_v60  ;;  %1892 = vmatprep.subr.mxu1 %v6961_v52  ;;  %10184 = vst [vmem:[#allocation82_spill] sm:$0xff] %v6967_v54  ;;  %10185 = vst [vmem:[#allocation83_spill] sm:$0xff] %v6973_v62  ;;  %v6979_v60 = vld [vmem:[%s8930_s2 + $0x68] sm:$0xff]  ;;  %v6985_v52 = vld [vmem:[%s8930_s2 + $0x78] sm:$0xff] }
 0x4b1   :  { %1822 = vmatpush1.msra.mxu0 %v6967_v54  ;;  %1893 = vmatpush1.msra.mxu1 %v6973_v62  ;;  %10186 = vst [vmem:[#allocation84_spill] sm:$0xff] %v6979_v60  ;;  %10187 = vst [vmem:[#allocation85_spill] sm:$0xff] %v6985_v52  ;;  %v6991_v54 = vld [vmem:[%s8930_s2 + $0x60] sm:$0xff]  ;;  %v6997_v62 = vld [vmem:[%s8930_s2 + $0x70] sm:$0xff] }
 0x4b2   :  { %1823 = vmatprep.subr.mxu0 %v6979_v60  ;;  %1894 = vmatprep.subr.mxu1 %v6985_v52  ;;  %10188 = vst [vmem:[#allocation86_spill] sm:$0xff] %v6991_v54  ;;  %10189 = vst [vmem:[#allocation87_spill] sm:$0xff] %v6997_v62  ;;  %v7003_v60 = vld [vmem:[%s8930_s2 + $0x48] sm:$0xff]  ;;  %v7009_v52 = vld [vmem:[%s8930_s2 + $0x58] sm:$0xff] }
 0x4b3   :  { %1824 = vmatpush1.msra.mxu0 %v6991_v54  ;;  %1895 = vmatpush1.msra.mxu1 %v6997_v62  ;;  %10190 = vst [vmem:[#allocation88_spill] sm:$0xff] %v7003_v60  ;;  %10191 = vst [vmem:[#allocation89_spill] sm:$0xff] %v7009_v52  ;;  %v7015_v54 = vld [vmem:[%s8930_s2 + $0x40] sm:$0xff]  ;;  %v7021_v62 = vld [vmem:[%s8930_s2 + $0x50] sm:$0xff] }
 0x4b4   :  { %1825 = vmatprep.subr.mxu0 %v7003_v60  ;;  %1896 = vmatprep.subr.mxu1 %v7009_v52  ;;  %10192 = vst [vmem:[#allocation90_spill] sm:$0xff] %v7015_v54  ;;  %10193 = vst [vmem:[#allocation91_spill] sm:$0xff] %v7021_v62  ;;  %v7027_v60 = vld [vmem:[%s8930_s2 + $0x28] sm:$0xff]  ;;  %v7033_v52 = vld [vmem:[%s8930_s2 + $0x38] sm:$0xff] }
 0x4b5   :  { %1826 = vmatpush1.msra.mxu0 %v7015_v54  ;;  %1897 = vmatpush1.msra.mxu1 %v7021_v62  ;;  %10194 = vst [vmem:[#allocation92_spill] sm:$0xff] %v7027_v60  ;;  %10195 = vst [vmem:[#allocation93_spill] sm:$0xff] %v7033_v52  ;;  %v7039_v54 = vld [vmem:[%s8930_s2 + $0x20] sm:$0xff]  ;;  %v7045_v62 = vld [vmem:[%s8930_s2 + $0x30] sm:$0xff] }
 0x4b6   :  { %1827 = vmatprep.subr.mxu0 %v7027_v60  ;;  %1898 = vmatprep.subr.mxu1 %v7033_v52  ;;  %10196 = vst [vmem:[#allocation94_spill] sm:$0xff] %v7039_v54  ;;  %10197 = vst [vmem:[#allocation95_spill] sm:$0xff] %v7045_v62  ;;  %v7051_v60 = vld [vmem:[%s8930_s2 + $0x8] sm:$0xff]  ;;  %v7057_v52 = vld [vmem:[%s8930_s2 + $0x18] sm:$0xff] }
 0x4b7   :  { %1828 = vmatpush1.msra.mxu0 %v7039_v54  ;;  %1899 = vmatpush1.msra.mxu1 %v7045_v62  ;;  %10198 = vst [vmem:[#allocation96_spill] sm:$0xff] %v7051_v60  ;;  %10199 = vst [vmem:[#allocation97_spill] sm:$0xff] %v7057_v52  ;;  %v7063_v54 = vld [vmem:[%s8930_s2] sm:$0xff]  ;;  %v7069_v62 = vld [vmem:[%s8930_s2 + $0x10] sm:$0xff] }
 0x4b8   :  { %1829 = vmatprep.subr.mxu0 %v7051_v60  ;;  %1900 = vmatprep.subr.mxu1 %v7057_v52  ;;  %10200 = vst [vmem:[#allocation98_spill] sm:$0xff] %v7063_v54  ;;  %10201 = vst [vmem:[#allocation99_spill] sm:$0xff] %v7069_v62  ;;  %v7075_v60 = vld [vmem:[%s8930_s2 + $0x3e8] sm:$0xff]  ;;  %v7081_v52 = vld [vmem:[%s8930_s2 + $0x3f8] sm:$0xff] }
 0x4b9   :  { %1830 = vmatpush1.msra.mxu0 %v7063_v54  ;;  %1901 = vmatpush1.msra.mxu1 %v7069_v62  ;;  %10202 = vst [vmem:[#allocation100_spill] sm:$0xff] %v7075_v60  ;;  %10203 = vst [vmem:[#allocation101_spill] sm:$0xff] %v7081_v52  ;;  %v7087_v54 = vld [vmem:[%s8930_s2 + $0x3e0] sm:$0xff]  ;;  %v7093_v62 = vld [vmem:[%s8930_s2 + $0x3f0] sm:$0xff] }
 0x4ba   :  { %1831 = vmatprep.subr.mxu0 %v7075_v60  ;;  %1902 = vmatprep.subr.mxu1 %v7081_v52  ;;  %10204 = vst [vmem:[#allocation102_spill] sm:$0xff] %v7087_v54  ;;  %10205 = vst [vmem:[#allocation103_spill] sm:$0xff] %v7093_v62  ;;  %v7099_v60 = vld [vmem:[%s8930_s2 + $0x3c8] sm:$0xff]  ;;  %v7105_v52 = vld [vmem:[%s8930_s2 + $0x3d8] sm:$0xff] }
 0x4bb   :  { %1832 = vmatpush2.msra.mxu0 %v7087_v54  ;;  %1903 = vmatpush2.msra.mxu1 %v7093_v62  ;;  %10206 = vst [vmem:[#allocation104_spill] sm:$0xff] %v7099_v60  ;;  %10207 = vst [vmem:[#allocation105_spill] sm:$0xff] %v7105_v52  ;;  %v7111_v54 = vld [vmem:[%s8930_s2 + $0x3c0] sm:$0xff]  ;;  %v7117_v62 = vld [vmem:[%s8930_s2 + $0x3d0] sm:$0xff] }
 0x4bc   :  { %1833 = vmatprep.subr.mxu0 %v7099_v60  ;;  %1904 = vmatprep.subr.mxu1 %v7105_v52  ;;  %10208 = vst [vmem:[#allocation106_spill] sm:$0xff] %v7111_v54  ;;  %10209 = vst [vmem:[#allocation107_spill] sm:$0xff] %v7117_v62  ;;  %v7123_v60 = vld [vmem:[%s8930_s2 + $0x3a8] sm:$0xff]  ;;  %v7129_v52 = vld [vmem:[%s8930_s2 + $0x3b8] sm:$0xff] }
 0x4bd   :  { %1834 = vmatpush2.msra.mxu0 %v7111_v54  ;;  %1905 = vmatpush2.msra.mxu1 %v7117_v62  ;;  %10210 = vst [vmem:[#allocation108_spill] sm:$0xff] %v7123_v60  ;;  %10211 = vst [vmem:[#allocation109_spill] sm:$0xff] %v7129_v52  ;;  %v7135_v54 = vld [vmem:[%s8930_s2 + $0x3a0] sm:$0xff]  ;;  %v7141_v62 = vld [vmem:[%s8930_s2 + $0x3b0] sm:$0xff] }
 0x4be   :  { %1835 = vmatprep.subr.mxu0 %v7123_v60  ;;  %1906 = vmatprep.subr.mxu1 %v7129_v52  ;;  %10212 = vst [vmem:[#allocation110_spill] sm:$0xff] %v7135_v54  ;;  %10213 = vst [vmem:[#allocation111_spill] sm:$0xff] %v7141_v62  ;;  %v7147_v60 = vld [vmem:[%s8930_s2 + $0x388] sm:$0xff]  ;;  %v7153_v52 = vld [vmem:[%s8930_s2 + $0x398] sm:$0xff] }
 0x4bf   :  { %1836 = vmatpush2.msra.mxu0 %v7135_v54  ;;  %1907 = vmatpush2.msra.mxu1 %v7141_v62  ;;  %10214 = vst [vmem:[#allocation112_spill] sm:$0xff] %v7147_v60  ;;  %10215 = vst [vmem:[#allocation113_spill] sm:$0xff] %v7153_v52  ;;  %v7159_v54 = vld [vmem:[%s8930_s2 + $0x380] sm:$0xff]  ;;  %v7165_v62 = vld [vmem:[%s8930_s2 + $0x390] sm:$0xff] }
 0x4c0   :  { %1837 = vmatprep.subr.mxu0 %v7147_v60  ;;  %1908 = vmatprep.subr.mxu1 %v7153_v52  ;;  %10216 = vst [vmem:[#allocation114_spill] sm:$0xff] %v7159_v54  ;;  %10217 = vst [vmem:[#allocation115_spill] sm:$0xff] %v7165_v62  ;;  %v7171_v60 = vld [vmem:[%s8930_s2 + $0x368] sm:$0xff]  ;;  %v7177_v52 = vld [vmem:[%s8930_s2 + $0x378] sm:$0xff] }
 0x4c1   :  { %1838 = vmatpush2.msra.mxu0 %v7159_v54  ;;  %1909 = vmatpush2.msra.mxu1 %v7165_v62  ;;  %10218 = vst [vmem:[#allocation116_spill] sm:$0xff] %v7171_v60  ;;  %10219 = vst [vmem:[#allocation117_spill] sm:$0xff] %v7177_v52  ;;  %v7183_v54 = vld [vmem:[%s8930_s2 + $0x360] sm:$0xff]  ;;  %v7189_v62 = vld [vmem:[%s8930_s2 + $0x370] sm:$0xff] }
 0x4c2   :  { %1839 = vmatprep.subr.mxu0 %v7171_v60  ;;  %1910 = vmatprep.subr.mxu1 %v7177_v52  ;;  %10220 = vst [vmem:[#allocation118_spill] sm:$0xff] %v7183_v54  ;;  %10221 = vst [vmem:[#allocation119_spill] sm:$0xff] %v7189_v62  ;;  %v7195_v60 = vld [vmem:[%s8930_s2 + $0x348] sm:$0xff]  ;;  %v7201_v52 = vld [vmem:[%s8930_s2 + $0x358] sm:$0xff] }
 0x4c3   :  { %1840 = vmatpush2.msra.mxu0 %v7183_v54  ;;  %1911 = vmatpush2.msra.mxu1 %v7189_v62  ;;  %10222 = vst [vmem:[#allocation120_spill] sm:$0xff] %v7195_v60  ;;  %10223 = vst [vmem:[#allocation121_spill] sm:$0xff] %v7201_v52  ;;  %v7207_v54 = vld [vmem:[%s8930_s2 + $0x340] sm:$0xff]  ;;  %v7213_v62 = vld [vmem:[%s8930_s2 + $0x350] sm:$0xff] }
 0x4c4   :  { %1841 = vmatprep.subr.mxu0 %v7195_v60  ;;  %1912 = vmatprep.subr.mxu1 %v7201_v52  ;;  %10224 = vst [vmem:[#allocation122_spill] sm:$0xff] %v7207_v54  ;;  %10225 = vst [vmem:[#allocation123_spill] sm:$0xff] %v7213_v62  ;;  %v7219_v60 = vld [vmem:[%s8930_s2 + $0x328] sm:$0xff]  ;;  %v7225_v52 = vld [vmem:[%s8930_s2 + $0x338] sm:$0xff] }
 0x4c5   :  { %1842 = vmatpush2.msra.mxu0 %v7207_v54  ;;  %1913 = vmatpush2.msra.mxu1 %v7213_v62  ;;  %10226 = vst [vmem:[#allocation124_spill] sm:$0xff] %v7219_v60  ;;  %10227 = vst [vmem:[#allocation125_spill] sm:$0xff] %v7225_v52  ;;  %v7231_v54 = vld [vmem:[%s8930_s2 + $0x320] sm:$0xff]  ;;  %v7237_v62 = vld [vmem:[%s8930_s2 + $0x330] sm:$0xff] }
 0x4c6   :  { %1843 = vmatprep.subr.mxu0 %v7219_v60  ;;  %1914 = vmatprep.subr.mxu1 %v7225_v52  ;;  %10228 = vst [vmem:[#allocation126_spill] sm:$0xff] %v7231_v54  ;;  %10229 = vst [vmem:[#allocation127_spill] sm:$0xff] %v7237_v62  ;;  %v7243_v60 = vld [vmem:[%s8930_s2 + $0x308] sm:$0xff]  ;;  %v7249_v52 = vld [vmem:[%s8930_s2 + $0x318] sm:$0xff] }
 0x4c7   :  { %1844 = vmatpush2.msra.mxu0 %v7231_v54  ;;  %1915 = vmatpush2.msra.mxu1 %v7237_v62  ;;  %10230 = vst [vmem:[#allocation128_spill] sm:$0xff] %v7243_v60  ;;  %10231 = vst [vmem:[#allocation129_spill] sm:$0xff] %v7249_v52  ;;  %v7255_v54 = vld [vmem:[%s8930_s2 + $0x300] sm:$0xff]  ;;  %v7261_v62 = vld [vmem:[%s8930_s2 + $0x310] sm:$0xff] }
 0x4c8   :  { %1845 = vmatprep.subr.mxu0 %v7243_v60  ;;  %1916 = vmatprep.subr.mxu1 %v7249_v52  ;;  %10232 = vst [vmem:[#allocation130_spill] sm:$0xff] %v7255_v54  ;;  %10233 = vst [vmem:[#allocation131_spill] sm:$0xff] %v7261_v62  ;;  %v7267_v60 = vld [vmem:[%s8930_s2 + $0x2e8] sm:$0xff]  ;;  %v7273_v52 = vld [vmem:[%s8930_s2 + $0x2f8] sm:$0xff] }
 0x4c9   :  { %1846 = vmatpush2.msra.mxu0 %v7255_v54  ;;  %1917 = vmatpush2.msra.mxu1 %v7261_v62  ;;  %10234 = vst [vmem:[#allocation132_spill] sm:$0xff] %v7267_v60  ;;  %10235 = vst [vmem:[#allocation133_spill] sm:$0xff] %v7273_v52  ;;  %v7279_v54 = vld [vmem:[%s8930_s2 + $0x2e0] sm:$0xff]  ;;  %v7285_v62 = vld [vmem:[%s8930_s2 + $0x2f0] sm:$0xff] }
 0x4ca   :  { %1847 = vmatprep.subr.mxu0 %v7267_v60  ;;  %1918 = vmatprep.subr.mxu1 %v7273_v52  ;;  %10236 = vst [vmem:[#allocation134_spill] sm:$0xff] %v7279_v54  ;;  %10237 = vst [vmem:[#allocation135_spill] sm:$0xff] %v7285_v62  ;;  %v7291_v60 = vld [vmem:[%s8930_s2 + $0x2c8] sm:$0xff]  ;;  %v7297_v52 = vld [vmem:[%s8930_s2 + $0x2d8] sm:$0xff] }
 0x4cb   :  { %1848 = vmatpush2.msra.mxu0 %v7279_v54  ;;  %1919 = vmatpush2.msra.mxu1 %v7285_v62  ;;  %10238 = vst [vmem:[#allocation136_spill] sm:$0xff] %v7291_v60  ;;  %10239 = vst [vmem:[#allocation137_spill] sm:$0xff] %v7297_v52  ;;  %v7303_v54 = vld [vmem:[%s8930_s2 + $0x2c0] sm:$0xff]  ;;  %v7309_v62 = vld [vmem:[%s8930_s2 + $0x2d0] sm:$0xff] }
 0x4cc   :  { %1849 = vmatprep.subr.mxu0 %v7291_v60  ;;  %1920 = vmatprep.subr.mxu1 %v7297_v52  ;;  %10240 = vst [vmem:[#allocation138_spill] sm:$0xff] %v7303_v54  ;;  %10241 = vst [vmem:[#allocation139_spill] sm:$0xff] %v7309_v62  ;;  %v7315_v60 = vld [vmem:[%s8930_s2 + $0x2a8] sm:$0xff]  ;;  %v7321_v52 = vld [vmem:[%s8930_s2 + $0x2b8] sm:$0xff] }
 0x4cd   :  { %1850 = vmatpush2.msra.mxu0 %v7303_v54  ;;  %1921 = vmatpush2.msra.mxu1 %v7309_v62  ;;  %10242 = vst [vmem:[#allocation140_spill] sm:$0xff] %v7315_v60  ;;  %10243 = vst [vmem:[#allocation141_spill] sm:$0xff] %v7321_v52  ;;  %v7327_v54 = vld [vmem:[%s8930_s2 + $0x2a0] sm:$0xff]  ;;  %v7333_v62 = vld [vmem:[%s8930_s2 + $0x2b0] sm:$0xff] }
 0x4ce   :  { %1851 = vmatprep.subr.mxu0 %v7315_v60  ;;  %1922 = vmatprep.subr.mxu1 %v7321_v52  ;;  %10244 = vst [vmem:[#allocation142_spill] sm:$0xff] %v7327_v54  ;;  %10245 = vst [vmem:[#allocation143_spill] sm:$0xff] %v7333_v62  ;;  %v7339_v60 = vld [vmem:[%s8930_s2 + $0x288] sm:$0xff]  ;;  %v7345_v52 = vld [vmem:[%s8930_s2 + $0x298] sm:$0xff] }
 0x4cf   :  { %1852 = vmatpush2.msra.mxu0 %v7327_v54  ;;  %1923 = vmatpush2.msra.mxu1 %v7333_v62  ;;  %10246 = vst [vmem:[#allocation144_spill] sm:$0xff] %v7339_v60  ;;  %10247 = vst [vmem:[#allocation145_spill] sm:$0xff] %v7345_v52  ;;  %v7351_v54 = vld [vmem:[%s8930_s2 + $0x280] sm:$0xff]  ;;  %v7357_v62 = vld [vmem:[%s8930_s2 + $0x290] sm:$0xff] }
 0x4d0   :  { %1853 = vmatprep.subr.mxu0 %v7339_v60  ;;  %1924 = vmatprep.subr.mxu1 %v7345_v52  ;;  %10248 = vst [vmem:[#allocation146_spill] sm:$0xff] %v7351_v54  ;;  %10249 = vst [vmem:[#allocation147_spill] sm:$0xff] %v7357_v62  ;;  %v7363_v60 = vld [vmem:[%s8930_s2 + $0x268] sm:$0xff]  ;;  %v7369_v52 = vld [vmem:[%s8930_s2 + $0x278] sm:$0xff] }
 0x4d1   :  { %1854 = vmatpush2.msra.mxu0 %v7351_v54  ;;  %1925 = vmatpush2.msra.mxu1 %v7357_v62  ;;  %10250 = vst [vmem:[#allocation148_spill] sm:$0xff] %v7363_v60  ;;  %10251 = vst [vmem:[#allocation149_spill] sm:$0xff] %v7369_v52  ;;  %v7375_v54 = vld [vmem:[%s8930_s2 + $0x260] sm:$0xff]  ;;  %v7381_v62 = vld [vmem:[%s8930_s2 + $0x270] sm:$0xff] }
 0x4d2   :  { %1855 = vmatprep.subr.mxu0 %v7363_v60  ;;  %1926 = vmatprep.subr.mxu1 %v7369_v52  ;;  %10252 = vst [vmem:[#allocation150_spill] sm:$0xff] %v7375_v54  ;;  %10253 = vst [vmem:[#allocation151_spill] sm:$0xff] %v7381_v62  ;;  %v7387_v60 = vld [vmem:[%s8930_s2 + $0x248] sm:$0xff]  ;;  %v7393_v52 = vld [vmem:[%s8930_s2 + $0x258] sm:$0xff] }
 0x4d3   :  { %1856 = vmatpush2.msra.mxu0 %v7375_v54  ;;  %1927 = vmatpush2.msra.mxu1 %v7381_v62  ;;  %10254 = vst [vmem:[#allocation152_spill] sm:$0xff] %v7387_v60  ;;  %10255 = vst [vmem:[#allocation153_spill] sm:$0xff] %v7393_v52  ;;  %v7399_v54 = vld [vmem:[%s8930_s2 + $0x240] sm:$0xff]  ;;  %v7405_v62 = vld [vmem:[%s8930_s2 + $0x250] sm:$0xff] }
 0x4d4   :  { %1857 = vmatprep.subr.mxu0 %v7387_v60  ;;  %1928 = vmatprep.subr.mxu1 %v7393_v52  ;;  %10256 = vst [vmem:[#allocation154_spill] sm:$0xff] %v7399_v54  ;;  %10257 = vst [vmem:[#allocation155_spill] sm:$0xff] %v7405_v62  ;;  %v7411_v60 = vld [vmem:[%s8930_s2 + $0x228] sm:$0xff]  ;;  %v7417_v52 = vld [vmem:[%s8930_s2 + $0x238] sm:$0xff] }
 0x4d5   :  { %1858 = vmatpush2.msra.mxu0 %v7399_v54  ;;  %1929 = vmatpush2.msra.mxu1 %v7405_v62  ;;  %10258 = vst [vmem:[#allocation156_spill] sm:$0xff] %v7411_v60  ;;  %10259 = vst [vmem:[#allocation157_spill] sm:$0xff] %v7417_v52  ;;  %v7423_v54 = vld [vmem:[%s8930_s2 + $0x220] sm:$0xff]  ;;  %v7429_v62 = vld [vmem:[%s8930_s2 + $0x230] sm:$0xff] }
 0x4d6   :  { %1859 = vmatprep.subr.mxu0 %v7411_v60  ;;  %1930 = vmatprep.subr.mxu1 %v7417_v52  ;;  %10260 = vst [vmem:[#allocation158_spill] sm:$0xff] %v7423_v54  ;;  %10261 = vst [vmem:[#allocation159_spill] sm:$0xff] %v7429_v62  ;;  %v7435_v60 = vld [vmem:[%s8930_s2 + $0x208] sm:$0xff]  ;;  %v7441_v52 = vld [vmem:[%s8930_s2 + $0x218] sm:$0xff] }
 0x4d7   :  { %1860 = vmatpush2.msra.mxu0 %v7423_v54  ;;  %1931 = vmatpush2.msra.mxu1 %v7429_v62  ;;  %10262 = vst [vmem:[#allocation160_spill] sm:$0xff] %v7435_v60  ;;  %10263 = vst [vmem:[#allocation161_spill] sm:$0xff] %v7441_v52  ;;  %v7447_v54 = vld [vmem:[%s8930_s2 + $0x200] sm:$0xff]  ;;  %v7453_v62 = vld [vmem:[%s8930_s2 + $0x210] sm:$0xff] }
 0x4d8   :  { %1861 = vmatprep.subr.mxu0 %v7435_v60  ;;  %1932 = vmatprep.subr.mxu1 %v7441_v52  ;;  %10264 = vst [vmem:[#allocation162_spill] sm:$0xff] %v7447_v54  ;;  %10265 = vst [vmem:[#allocation163_spill] sm:$0xff] %v7453_v62 }
 0x4d9   :  { %1862 = vmatpush2.msra.mxu0 %v7447_v54  ;;  %1933 = vmatpush2.msra.mxu1 %v7453_v62 }
 0x4da   :  { %1970 = vmatprep.subr.mxu0 %v6464_v1  ;;  %2041 = vmatprep.subr.mxu1 %v6467_v9 }
 0x538   :  { %v1524_v60 = vpop.f32.mrf.mxu0  ;;  %v1595_v0 = vpop.f32.mrf.mxu1 }
 0x539   :  { %v1525_v52 = vadd.f32 %v1524_v60, %v5247_v30  ;;  %v1596_v63 = vadd.f32 %v1595_v0, %v10118_v8 }
 0x53a   :  { %v1526_v57 = vpop.f32.mrf.mxu0  ;;  %v1597_v53 = vpop.f32.mrf.mxu1 }
 0x53b   :  { %v3067_v58 = vmul.f32 -1.442695, %v1525_v52  ;;  %v1527_v50 = vadd.f32 %v1526_v57, %v10117_v4  ;;  %v3069_v51 = vmul.f32 -1.442695, %v1596_v63  ;;  %v1598_v1 = vadd.f32 %v1597_v53, %v10119_v14  ;;  %v3070_v57 = vld [vmem:[%s8928_s0 + $0x80] sm:$0xff]  ;;  %v3071_v63 = vld [vmem:[%s8928_s0 + $0x88] sm:$0xff] }
 0x53c   :  { %v3072_v4 = vld [vmem:[%s8928_s0 + $0x90] sm:$0xff] }
 0x53d   :  { %3230 = vpow2.f32 %v3067_v58  ;;  %v3068_v54 = vmul.f32 -1.442695, %v1527_v50 }
 0x53f   :  { %3232 = vpow2.f32 %v3068_v54 }
 0x540   :  { %3234 = vpow2.f32 %v3069_v51 }
 0x54a   :  { %v3231_v62 = vpop.eup %3230 }
 0x54b   :  { %v1609_v49 = vadd.f32 1.0, %v3231_v62 }
 0x54c   :  { %v3233_v9 = vpop.eup %3232 }
 0x54d   :  { %3236 = vrcp.f32 %v1609_v49  ;;  %v1610_v60 = vadd.f32 1.0, %v3233_v9  ;;  %v3235_v52 = vpop.eup %3234 }
 0x54e   :  { %3238 = vtanh.f32 %v1598_v1  ;;  %v1611_v9 = vadd.f32 1.0, %v3235_v52  ;;  %v3073_v52 = vld [vmem:[%s8928_s0 + $0x98] sm:$0xff] }
 0x54f   :  { %3240 = vrcp.f32 %v1610_v60 }
 0x559   :  { %v1695_v54 = vpop.f32.mrf.mxu0 }
 0x55a   :  { %v3237_v0 = vpop.eup %3236  ;;  %v1771_v50 = vadd.f32 %v3070_v57, %v1695_v54  ;;  %v1766_v57 = vpop.f32.mrf.mxu1 }
 0x55b   :  { %v3239_v53 = vpop.eup %3238  ;;  %v1697_v58 = vpop.f32.mrf.mxu0  ;;  %v1773_v54 = vadd.f32 %v3072_v4, %v1766_v57 }
 0x55c   :  { %v3241_v62 = vpop.eup %3240  ;;  %v3074_v51 = vmul.f32 -1.442695, %v1771_v50  ;;  %v1772_v49 = vadd.f32 %v3071_v63, %v1697_v58  ;;  %v1620_v60 = vmul.f32 %v3239_v53, %v3237_v0 }
 0x55d   :  { %v1619_v1 = vmul.f32 %v3241_v62, %v6481_v34  ;;  %v1768_v34 = vpop.f32.mrf.mxu1  ;;  %v3076_v63 = vmul.f32 -1.442695, %v1773_v54 }
 0x55e   :  { %3242 = vpow2.f32 %v3074_v51  ;;  %v3075_v14 = vmul.f32 -1.442695, %v1772_v49  ;;  %v1774_v50 = vadd.f32 %v3073_v52, %v1768_v34 }
 0x55f   :  { %v7469_v8 = vadd.f32 %v1620_v60, %v1619_v1 }
 0x560   :  { %3244 = vpow2.f32 %v3075_v14 }
 0x561   :  { %3246 = vrcp.f32 %v1611_v9 }
 0x562   :  { %3248 = vtanh.f32 %v7469_v8 }
 0x563   :  { %3250 = vpow2.f32 %v3076_v63 }
 0x56b   :  { %v3243_v0 = vpop.eup %3242 }
 0x56c   :  { %v1784_v53 = vadd.f32 1.0, %v3243_v0 }
 0x56d   :  { %v3245_v58 = vpop.eup %3244 }
 0x56e   :  { %v3247_v14 = vpop.eup %3246  ;;  %3252 = vrcp.f32 %v1784_v53  ;;  %v1785_v62 = vadd.f32 1.0, %v3245_v58  ;;  %v10311_v53 = vld [vmem:[#allocation62_spill] sm:$0xff]  ;;  %v10312_v58 = vld [vmem:[#allocation63_spill] sm:$0xff] }
 0x56f   :  { %v3249_v51 = vpop.eup %3248  ;;  %3254 = vtanh.f32 %v1774_v50 }
 0x570   :  { %3256 = vrcp.f32 %v1785_v62  ;;  %v1623_v49 = vmul.f32 %v3249_v51, %v3247_v14  ;;  %v3251_v4 = vpop.eup %3250  ;;  %v10313_v14 = vld [vmem:[#allocation64_spill] sm:$0xff]  ;;  %v10314_v62 = vld [vmem:[#allocation65_spill] sm:$0xff]  ;;  %v10315_v51 = vld [vmem:[#allocation66_spill] sm:$0xff] }
 0x571   :  { %v1786_v57 = vadd.f32 1.0, %v3251_v4  ;;  %v10317_v4 = vld [vmem:[#allocation68_spill] sm:$0xff] }
 0x572   :  { %1863 = vmatprep.mubr.f32.mxu0 %v1623_v49  ;;  %1934 = vmatprep.mubr.f32.mxu1 %v1623_v49  ;;  %v10316_v49 = vld [vmem:[#allocation67_spill] sm:$0xff] }
 0x573   :  { %3258 = vrcp.f32 %v1786_v57  ;;  %v10321_v57 = vld [vmem:[#allocation72_spill] sm:$0xff] }
 0x57b   :  { %v3253_v9 = vpop.eup %3252 }
 0x57c   :  { %v3255_v1 = vpop.eup %3254 }
 0x57d   :  { %v3257_v60 = vpop.eup %3256  ;;  %v1795_v52 = vmul.f32 %v3255_v1, %v3253_v9  ;;  %v10318_v9 = vld [vmem:[#allocation69_spill] sm:$0xff]  ;;  %v10319_v1 = vld [vmem:[#allocation70_spill] sm:$0xff] }
 0x57e   :  { %v1794_v54 = vmul.f32 %v3257_v60, %v6491_v56  ;;  %v10266_v56 = vld [vmem:[#allocation16_spill] sm:$0xff]  ;;  %v10320_v60 = vld [vmem:[#allocation71_spill] sm:$0xff] }
 0x580   :  { %v7479_v34 = vadd.f32 %v1795_v52, %v1794_v54  ;;  %v3259_v63 = vpop.eup %3258  ;;  %v10322_v54 = vld [vmem:[#allocation73_spill] sm:$0xff]  ;;  %v10323_v52 = vld [vmem:[#allocation74_spill] sm:$0xff] }
 0x582   :  { %3260 = vtanh.f32 %v7479_v34 }
 0x58f   :  { %v3261_v0 = vpop.eup %3260 }
 0x590   :  { %v7482_v50 = vmul.f32 %v3261_v0, %v3259_v63  ;;  %v10324_v63 = vld [vmem:[#allocation75_spill] sm:$0xff]  ;;  %v10325_v0 = vld [vmem:[#allocation76_spill] sm:$0xff] }
 0x592   :  { %1864 = vmatmul.mubr.f32.vlgmr.msra.gmra.mxu0 %v7482_v50  ;;  %1935 = vmatmul.mubr.f32.vlgmr.msra.gmra.mxu1 %v7482_v50 }
 0x593   :  { %1971 = vmatpush1.msra.mxu0 %v6498_v59  ;;  %2042 = vmatpush1.msra.mxu1 %v6501_v61  ;;  %v10267_v59 = vld [vmem:[#allocation24_spill] sm:$0xff]  ;;  %v10268_v61 = vld [vmem:[#allocation17_spill] sm:$0xff] }
 0x594   :  { %1972 = vmatprep.subr.mxu0 %v6504_v2  ;;  %2043 = vmatprep.subr.mxu1 %v6507_v48  ;;  %v10269_v2 = vld [vmem:[#allocation25_spill] sm:$0xff]  ;;  %v10270_v48 = vld [vmem:[#allocation18_spill] sm:$0xff] }
 0x595   :  { %1973 = vmatpush1.msra.mxu0 %v6510_v3  ;;  %2044 = vmatpush1.msra.mxu1 %v6513_v5  ;;  %v10271_v3 = vld [vmem:[#allocation26_spill] sm:$0xff]  ;;  %v10272_v5 = vld [vmem:[#allocation19_spill] sm:$0xff] }
 0x596   :  { %1974 = vmatprep.subr.mxu0 %v6516_v6  ;;  %2045 = vmatprep.subr.mxu1 %v6519_v7  ;;  %v10273_v6 = vld [vmem:[#allocation28_spill] sm:$0xff]  ;;  %v10274_v7 = vld [vmem:[#allocation21_spill] sm:$0xff] }
 0x597   :  { %1975 = vmatpush1.msra.mxu0 %v6522_v10  ;;  %2046 = vmatpush1.msra.mxu1 %v6525_v11  ;;  %v10275_v10 = vld [vmem:[#allocation30_spill] sm:$0xff]  ;;  %v10276_v11 = vld [vmem:[#allocation23_spill] sm:$0xff] }
 0x598   :  { %1976 = vmatprep.subr.mxu0 %v6528_v12  ;;  %2047 = vmatprep.subr.mxu1 %v6531_v13  ;;  %v10277_v12 = vld [vmem:[#allocation32_spill] sm:$0xff]  ;;  %v10278_v13 = vld [vmem:[#allocation27_spill] sm:$0xff] }
 0x599   :  { %1977 = vmatpush1.msra.mxu0 %v6534_v15  ;;  %2048 = vmatpush1.msra.mxu1 %v6537_v16  ;;  %v10279_v15 = vld [vmem:[#allocation34_spill] sm:$0xff]  ;;  %v10280_v16 = vld [vmem:[#allocation29_spill] sm:$0xff] }
 0x59a   :  { %1978 = vmatprep.subr.mxu0 %v6540_v20  ;;  %2049 = vmatprep.subr.mxu1 %v6543_v29  ;;  %v10281_v20 = vld [vmem:[#allocation35_spill] sm:$0xff] }
 0x59b   :  { %1979 = vmatpush1.msra.mxu0 %v6546_v43  ;;  %2050 = vmatpush1.msra.mxu1 %v6549_v33  ;;  %v10282_v29 = vld [vmem:[#allocation31_spill] sm:$0xff]  ;;  %v10283_v43 = vmov 0.0   ;;  %v10284_v33 = vld [vmem:[#allocation37_spill] sm:$0xff] }
 0x59c   :  { %1980 = vmatprep.subr.mxu0 %v6552_v19  ;;  %2051 = vmatprep.subr.mxu1 %v6555_v18  ;;  %v10285_v19 = vld [vmem:[#allocation33_spill] sm:$0xff]  ;;  %v10286_v18 = vld [vmem:[#allocation39_spill] sm:$0xff] }
 0x59d   :  { %1981 = vmatpush1.msra.mxu0 %v6558_v31  ;;  %2052 = vmatpush1.msra.mxu1 %v6561_v24  ;;  %v10287_v31 = vld [vmem:[#allocation36_spill] sm:$0xff]  ;;  %v10288_v24 = vld [vmem:[#allocation41_spill] sm:$0xff] }
 0x59e   :  { %1982 = vmatprep.subr.mxu0 %v6564_v23  ;;  %2053 = vmatprep.subr.mxu1 %v6567_v32  ;;  %v10289_v23 = vld [vmem:[#allocation38_spill] sm:$0xff]  ;;  %v10290_v32 = vld [vmem:[#allocation43_spill] sm:$0xff] }
 0x59f   :  { %1983 = vmatpush1.msra.mxu0 %v6570_v17  ;;  %2054 = vmatpush1.msra.mxu1 %v6573_v25  ;;  %v10291_v17 = vld [vmem:[#allocation40_spill] sm:$0xff] }
 0x5a0   :  { %1984 = vmatprep.subr.mxu0 %v6576_v22  ;;  %2055 = vmatprep.subr.mxu1 %v6579_v21  ;;  %v10292_v25 = vld [vmem:[#allocation44_spill] sm:$0xff]  ;;  %v10293_v22 = vld [vmem:[#allocation42_spill] sm:$0xff]  ;;  %v10294_v21 = vld [vmem:[#allocation45_spill] sm:$0xff] }
 0x5a1   :  { %1985 = vmatpush1.msra.mxu0 %v6582_v26  ;;  %2056 = vmatpush1.msra.mxu1 %v6585_v27  ;;  %v10295_v26 = vld [vmem:[#allocation46_spill] sm:$0xff]  ;;  %v10296_v27 = vld [vmem:[#allocation47_spill] sm:$0xff] }
 0x5a2   :  { %1986 = vmatprep.subr.mxu0 %v6588_v28  ;;  %2057 = vmatprep.subr.mxu1 %v6591_v35  ;;  %v10297_v28 = vld [vmem:[#allocation48_spill] sm:$0xff]  ;;  %v10298_v35 = vld [vmem:[#allocation49_spill] sm:$0xff] }
 0x5a3   :  { %1987 = vmatpush1.msra.mxu0 %v6594_v55  ;;  %2058 = vmatpush1.msra.mxu1 %v6597_v36  ;;  %v10299_v55 = vld [vmem:[#allocation50_spill] sm:$0xff]  ;;  %v10300_v36 = vld [vmem:[#allocation51_spill] sm:$0xff] }
 0x5a4   :  { %1988 = vmatprep.subr.mxu0 %v6600_v37  ;;  %2059 = vmatprep.subr.mxu1 %v6603_v39  ;;  %v10301_v37 = vld [vmem:[#allocation52_spill] sm:$0xff]  ;;  %v10302_v39 = vld [vmem:[#allocation53_spill] sm:$0xff] }
 0x5a5   :  { %1989 = vmatpush1.msra.mxu0 %v6606_v38  ;;  %2060 = vmatpush1.msra.mxu1 %v6609_v40  ;;  %v10303_v38 = vld [vmem:[#allocation54_spill] sm:$0xff]  ;;  %v10304_v40 = vld [vmem:[#allocation55_spill] sm:$0xff] }
 0x5a6   :  { %1990 = vmatprep.subr.mxu0 %v6612_v41  ;;  %2061 = vmatprep.subr.mxu1 %v6615_v42  ;;  %v10305_v41 = vld [vmem:[#allocation56_spill] sm:$0xff]  ;;  %v10306_v42 = vld [vmem:[#allocation57_spill] sm:$0xff] }
 0x5a7   :  { %1991 = vmatpush1.msra.mxu0 %v6618_v44  ;;  %2062 = vmatpush1.msra.mxu1 %v6621_v45  ;;  %v10307_v44 = vld [vmem:[#allocation58_spill] sm:$0xff]  ;;  %v10308_v45 = vld [vmem:[#allocation59_spill] sm:$0xff] }
 0x5a8   :  { %1992 = vmatprep.subr.mxu0 %v6624_v46  ;;  %2063 = vmatprep.subr.mxu1 %v6627_v47  ;;  %v10309_v46 = vld [vmem:[#allocation60_spill] sm:$0xff]  ;;  %v10310_v47 = vld [vmem:[#allocation61_spill] sm:$0xff] }
 0x5a9   :  { %1993 = vmatpush1.msra.mxu0 %v10266_v56  ;;  %2064 = vmatpush1.msra.mxu1 %v10267_v59  ;;  %v10327_v56 = vld [vmem:[#allocation78_spill] sm:$0xff]  ;;  %v10328_v59 = vld [vmem:[#allocation79_spill] sm:$0xff] }
 0x5aa   :  { %1994 = vmatprep.subr.mxu0 %v10268_v61  ;;  %2065 = vmatprep.subr.mxu1 %v10269_v2  ;;  %v10329_v61 = vld [vmem:[#allocation80_spill] sm:$0xff]  ;;  %v10330_v2 = vld [vmem:[#allocation81_spill] sm:$0xff] }
 0x5ab   :  { %1995 = vmatpush1.msra.mxu0 %v10270_v48  ;;  %2066 = vmatpush1.msra.mxu1 %v10271_v3  ;;  %v10331_v48 = vld [vmem:[#allocation82_spill] sm:$0xff]  ;;  %v10332_v3 = vld [vmem:[#allocation83_spill] sm:$0xff] }
 0x5ac   :  { %1996 = vmatprep.subr.mxu0 %v10272_v5  ;;  %2067 = vmatprep.subr.mxu1 %v10273_v6  ;;  %v10333_v5 = vld [vmem:[#allocation84_spill] sm:$0xff]  ;;  %v10334_v6 = vld [vmem:[#allocation85_spill] sm:$0xff] }
 0x5ad   :  { %1997 = vmatpush1.msra.mxu0 %v10274_v7  ;;  %2068 = vmatpush1.msra.mxu1 %v10275_v10  ;;  %v10335_v7 = vld [vmem:[#allocation86_spill] sm:$0xff]  ;;  %v10336_v10 = vld [vmem:[#allocation87_spill] sm:$0xff] }
 0x5ae   :  { %1998 = vmatprep.subr.mxu0 %v10276_v11  ;;  %2069 = vmatprep.subr.mxu1 %v10277_v12  ;;  %v10337_v11 = vld [vmem:[#allocation88_spill] sm:$0xff]  ;;  %v10338_v12 = vld [vmem:[#allocation89_spill] sm:$0xff] }
 0x5af   :  { %1999 = vmatpush1.msra.mxu0 %v10278_v13  ;;  %2070 = vmatpush1.msra.mxu1 %v10279_v15  ;;  %v10339_v13 = vld [vmem:[#allocation90_spill] sm:$0xff]  ;;  %v10340_v15 = vld [vmem:[#allocation91_spill] sm:$0xff] }
 0x5b0   :  { %2000 = vmatprep.subr.mxu0 %v10280_v16  ;;  %2071 = vmatprep.subr.mxu1 %v10281_v20  ;;  %v10341_v16 = vld [vmem:[#allocation92_spill] sm:$0xff]  ;;  %v10342_v20 = vld [vmem:[#allocation93_spill] sm:$0xff] }
 0x5b1   :  { %2001 = vmatpush1.msra.mxu0 %v10282_v29  ;;  %2034 = vmatprep.mubr.f32.mxu0 %v10283_v43  ;;  %v10343_v29 = vld [vmem:[#allocation94_spill] sm:$0xff] }
 0x5b2   :  { %2072 = vmatpush1.msra.mxu1 %v10284_v33  ;;  %2105 = vmatprep.mubr.f32.mxu1 %v10283_v43  ;;  %v10344_v33 = vld [vmem:[#allocation95_spill] sm:$0xff] }
 0x5b3   :  { %2035 = vmatmul.mubr.f32.vlgmr.msra.gmra.mxu0 %v7482_v50  ;;  %2106 = vmatmul.mubr.f32.vlgmr.msra.gmra.mxu1 %v7482_v50  ;;  %v10326_v50 = vld [vmem:[#allocation77_spill] sm:$0xff] }
 0x5b4   :  { %2140 = vmatprep.subr.mxu0 %v10285_v19  ;;  %2211 = vmatprep.subr.mxu1 %v10286_v18  ;;  %v10345_v19 = vld [vmem:[#allocation96_spill] sm:$0xff]  ;;  %v10346_v18 = vld [vmem:[#allocation97_spill] sm:$0xff] }
 0x5b5   :  { %2141 = vmatpush1.msra.mxu0 %v10287_v31  ;;  %2212 = vmatpush1.msra.mxu1 %v10288_v24  ;;  %v10347_v31 = vld [vmem:[#allocation98_spill] sm:$0xff]  ;;  %v10348_v24 = vld [vmem:[#allocation99_spill] sm:$0xff] }
 0x5b6   :  { %2142 = vmatprep.subr.mxu0 %v10289_v23  ;;  %2213 = vmatprep.subr.mxu1 %v10290_v32  ;;  %v10349_v23 = vld [vmem:[#allocation100_spill] sm:$0xff]  ;;  %v10350_v32 = vld [vmem:[#allocation101_spill] sm:$0xff] }
 0x5b7   :  { %2143 = vmatpush1.msra.mxu0 %v10291_v17  ;;  %2214 = vmatpush1.msra.mxu1 %v10292_v25  ;;  %v10351_v17 = vld [vmem:[#allocation102_spill] sm:$0xff]  ;;  %v10352_v25 = vld [vmem:[#allocation103_spill] sm:$0xff] }
 0x5b8   :  { %2144 = vmatprep.subr.mxu0 %v10293_v22  ;;  %2215 = vmatprep.subr.mxu1 %v10294_v21  ;;  %v10353_v22 = vld [vmem:[#allocation104_spill] sm:$0xff]  ;;  %v10354_v21 = vld [vmem:[#allocation105_spill] sm:$0xff] }
 0x5b9   :  { %2145 = vmatpush1.msra.mxu0 %v10295_v26  ;;  %2216 = vmatpush1.msra.mxu1 %v10296_v27  ;;  %v10355_v26 = vld [vmem:[#allocation106_spill] sm:$0xff]  ;;  %v10356_v27 = vld [vmem:[#allocation107_spill] sm:$0xff] }
 0x5ba   :  { %2146 = vmatprep.subr.mxu0 %v10297_v28  ;;  %2217 = vmatprep.subr.mxu1 %v10298_v35  ;;  %v10357_v28 = vld [vmem:[#allocation108_spill] sm:$0xff]  ;;  %v10358_v35 = vld [vmem:[#allocation109_spill] sm:$0xff] }
 0x5bb   :  { %2147 = vmatpush1.msra.mxu0 %v10299_v55  ;;  %2218 = vmatpush1.msra.mxu1 %v10300_v36  ;;  %v10359_v55 = vld [vmem:[#allocation110_spill] sm:$0xff]  ;;  %v10360_v36 = vld [vmem:[#allocation111_spill] sm:$0xff] }
 0x5bc   :  { %2148 = vmatprep.subr.mxu0 %v10301_v37  ;;  %2219 = vmatprep.subr.mxu1 %v10302_v39  ;;  %v10361_v37 = vld [vmem:[#allocation112_spill] sm:$0xff]  ;;  %v10362_v39 = vld [vmem:[#allocation113_spill] sm:$0xff] }
 0x5bd   :  { %2149 = vmatpush1.msra.mxu0 %v10303_v38  ;;  %2220 = vmatpush1.msra.mxu1 %v10304_v40  ;;  %v10363_v38 = vld [vmem:[#allocation114_spill] sm:$0xff]  ;;  %v10364_v40 = vld [vmem:[#allocation115_spill] sm:$0xff] }
 0x5be   :  { %2150 = vmatprep.subr.mxu0 %v10305_v41  ;;  %2221 = vmatprep.subr.mxu1 %v10306_v42  ;;  %v10365_v41 = vld [vmem:[#allocation116_spill] sm:$0xff]  ;;  %v10366_v42 = vld [vmem:[#allocation117_spill] sm:$0xff] }
 0x5bf   :  { %2151 = vmatpush1.msra.mxu0 %v10307_v44  ;;  %2222 = vmatpush1.msra.mxu1 %v10308_v45  ;;  %v10367_v44 = vld [vmem:[#allocation118_spill] sm:$0xff]  ;;  %v10368_v45 = vld [vmem:[#allocation119_spill] sm:$0xff] }
 0x5c0   :  { %2152 = vmatprep.subr.mxu0 %v10309_v46  ;;  %2223 = vmatprep.subr.mxu1 %v10310_v47  ;;  %v10369_v46 = vld [vmem:[#allocation120_spill] sm:$0xff]  ;;  %v10370_v47 = vld [vmem:[#allocation121_spill] sm:$0xff] }
 0x5c1   :  { %2153 = vmatpush1.msra.mxu0 %v10311_v53  ;;  %2224 = vmatpush1.msra.mxu1 %v10312_v58  ;;  %v10371_v53 = vld [vmem:[#allocation122_spill] sm:$0xff]  ;;  %v10372_v58 = vld [vmem:[#allocation123_spill] sm:$0xff] }
 0x5c2   :  { %2154 = vmatprep.subr.mxu0 %v10313_v14  ;;  %2225 = vmatprep.subr.mxu1 %v10314_v62  ;;  %v10373_v14 = vld [vmem:[#allocation124_spill] sm:$0xff]  ;;  %v10374_v62 = vld [vmem:[#allocation125_spill] sm:$0xff] }
 0x5c3   :  { %2155 = vmatpush1.msra.mxu0 %v10315_v51  ;;  %2226 = vmatpush1.msra.mxu1 %v10316_v49  ;;  %v10375_v51 = vld [vmem:[#allocation126_spill] sm:$0xff]  ;;  %v10376_v49 = vld [vmem:[#allocation127_spill] sm:$0xff] }
 0x5c4   :  { %2156 = vmatprep.subr.mxu0 %v10317_v4  ;;  %2227 = vmatprep.subr.mxu1 %v10318_v9  ;;  %v10377_v4 = vld [vmem:[#allocation128_spill] sm:$0xff]  ;;  %v10378_v9 = vld [vmem:[#allocation129_spill] sm:$0xff] }
 0x5c5   :  { %2157 = vmatpush1.msra.mxu0 %v10319_v1  ;;  %2228 = vmatpush1.msra.mxu1 %v10320_v60  ;;  %v10379_v1 = vld [vmem:[#allocation130_spill] sm:$0xff]  ;;  %v10380_v60 = vld [vmem:[#allocation131_spill] sm:$0xff] }
 0x5c6   :  { %2158 = vmatprep.subr.mxu0 %v10321_v57  ;;  %2229 = vmatprep.subr.mxu1 %v10322_v54  ;;  %v10381_v57 = vld [vmem:[#allocation132_spill] sm:$0xff]  ;;  %v10382_v54 = vld [vmem:[#allocation133_spill] sm:$0xff] }
 0x5c7   :  { %2159 = vmatpush1.msra.mxu0 %v10323_v52  ;;  %2230 = vmatpush1.msra.mxu1 %v10324_v63  ;;  %v10383_v52 = vld [vmem:[#allocation134_spill] sm:$0xff]  ;;  %v10384_v63 = vld [vmem:[#allocation135_spill] sm:$0xff] }
 0x5c8   :  { %2160 = vmatprep.subr.mxu0 %v10325_v0  ;;  %2231 = vmatprep.subr.mxu1 %v10326_v50  ;;  %v10385_v0 = vld [vmem:[#allocation136_spill] sm:$0xff]  ;;  %v10386_v50 = vld [vmem:[#allocation137_spill] sm:$0xff] }
 0x5c9   :  { %2161 = vmatpush1.msra.mxu0 %v10327_v56  ;;  %2232 = vmatpush1.msra.mxu1 %v10328_v59  ;;  %v10387_v56 = vld [vmem:[#allocation138_spill] sm:$0xff]  ;;  %v10388_v59 = vld [vmem:[#allocation139_spill] sm:$0xff] }
 0x5ca   :  { %2162 = vmatprep.subr.mxu0 %v10329_v61  ;;  %2233 = vmatprep.subr.mxu1 %v10330_v2  ;;  %v10389_v61 = vld [vmem:[#allocation140_spill] sm:$0xff]  ;;  %v10390_v2 = vld [vmem:[#allocation141_spill] sm:$0xff] }
 0x5cb   :  { %2163 = vmatpush1.msra.mxu0 %v10331_v48  ;;  %2234 = vmatpush1.msra.mxu1 %v10332_v3  ;;  %v10391_v48 = vld [vmem:[#allocation142_spill] sm:$0xff]  ;;  %v10392_v3 = vld [vmem:[#allocation143_spill] sm:$0xff] }
 0x5cc   :  { %2164 = vmatprep.subr.mxu0 %v10333_v5  ;;  %2235 = vmatprep.subr.mxu1 %v10334_v6  ;;  %v10393_v5 = vld [vmem:[#allocation144_spill] sm:$0xff]  ;;  %v10394_v6 = vld [vmem:[#allocation145_spill] sm:$0xff] }
 0x5cd   :  { %2165 = vmatpush1.msra.mxu0 %v10335_v7  ;;  %2236 = vmatpush1.msra.mxu1 %v10336_v10  ;;  %v10395_v7 = vld [vmem:[#allocation146_spill] sm:$0xff]  ;;  %v10396_v10 = vld [vmem:[#allocation147_spill] sm:$0xff] }
 0x5ce   :  { %2166 = vmatprep.subr.mxu0 %v10337_v11  ;;  %2237 = vmatprep.subr.mxu1 %v10338_v12  ;;  %v10397_v11 = vld [vmem:[#allocation148_spill] sm:$0xff]  ;;  %v10398_v12 = vld [vmem:[#allocation149_spill] sm:$0xff] }
 0x5cf   :  { %2167 = vmatpush1.msra.mxu0 %v10339_v13  ;;  %2238 = vmatpush1.msra.mxu1 %v10340_v15  ;;  %v10399_v13 = vld [vmem:[#allocation150_spill] sm:$0xff]  ;;  %v10400_v15 = vld [vmem:[#allocation151_spill] sm:$0xff] }
 0x5d0   :  { %2168 = vmatprep.subr.mxu0 %v10341_v16  ;;  %2239 = vmatprep.subr.mxu1 %v10342_v20  ;;  %v10401_v16 = vld [vmem:[#allocation152_spill] sm:$0xff]  ;;  %v10402_v20 = vld [vmem:[#allocation153_spill] sm:$0xff] }
 0x5d1   :  { %2169 = vmatpush1.msra.mxu0 %v10343_v29  ;;  %2240 = vmatpush1.msra.mxu1 %v10344_v33  ;;  %v10403_v29 = vld [vmem:[#allocation154_spill] sm:$0xff]  ;;  %v10404_v33 = vld [vmem:[#allocation155_spill] sm:$0xff] }
 0x5d2   :  { %2170 = vmatprep.subr.mxu0 %v10345_v19  ;;  %2241 = vmatprep.subr.mxu1 %v10346_v18  ;;  %v10405_v19 = vld [vmem:[#allocation156_spill] sm:$0xff]  ;;  %v10406_v18 = vld [vmem:[#allocation157_spill] sm:$0xff] }
 0x5d3   :  { %2171 = vmatpush1.msra.mxu0 %v10347_v31  ;;  %2242 = vmatpush1.msra.mxu1 %v10348_v24  ;;  %v10407_v31 = vld [vmem:[#allocation158_spill] sm:$0xff]  ;;  %v10408_v24 = vld [vmem:[#allocation159_spill] sm:$0xff] }
 0x5d4   :  { %2172 = vmatprep.subr.mxu0 %v10349_v23  ;;  %2243 = vmatprep.subr.mxu1 %v10350_v32  ;;  %v10409_v23 = vld [vmem:[#allocation160_spill] sm:$0xff]  ;;  %v10410_v32 = vld [vmem:[#allocation161_spill] sm:$0xff] }
 0x5d5   :  { %2173 = vmatpush2.msra.mxu0 %v10351_v17  ;;  %2244 = vmatpush2.msra.mxu1 %v10352_v25  ;;  %v10411_v17 = vld [vmem:[#allocation162_spill] sm:$0xff]  ;;  %v10412_v25 = vld [vmem:[#allocation163_spill] sm:$0xff] }
 0x5d6   :  { %2174 = vmatprep.subr.mxu0 %v10353_v22  ;;  %2245 = vmatprep.subr.mxu1 %v10354_v21  ;;  %v7680_v22 = vld [vmem:[#allocation6 + $0x1e8] sm:$0xff]  ;;  %v7683_v21 = vld [vmem:[#allocation6 + $0x1f8] sm:$0xff] }
 0x5d7   :  { %2175 = vmatpush2.msra.mxu0 %v10355_v26  ;;  %2246 = vmatpush2.msra.mxu1 %v10356_v27 }
 0x5d8   :  { %2176 = vmatprep.subr.mxu0 %v10357_v28  ;;  %2247 = vmatprep.subr.mxu1 %v10358_v35 }
 0x5d9   :  { %2177 = vmatpush2.msra.mxu0 %v10359_v55  ;;  %2248 = vmatpush2.msra.mxu1 %v10360_v36  ;;  %v10413_v55 = vld [vmem:[#allocation20_spill] sm:$0xff] }
 0x5da   :  { %2178 = vmatprep.subr.mxu0 %v10361_v37  ;;  %2249 = vmatprep.subr.mxu1 %v10362_v39 }
 0x5db   :  { %2179 = vmatpush2.msra.mxu0 %v10363_v38  ;;  %2250 = vmatpush2.msra.mxu1 %v10364_v40  ;;  %v10414_v38 = vld [vmem:[#allocation15_spill] sm:$0xff] }
 0x5dc   :  { %2180 = vmatprep.subr.mxu0 %v10365_v41  ;;  %2251 = vmatprep.subr.mxu1 %v10366_v42 }
 0x5dd   :  { %2181 = vmatpush2.msra.mxu0 %v10367_v44  ;;  %2252 = vmatpush2.msra.mxu1 %v10368_v45  ;;  %v10415_v45 = vld [vmem:[#allocation22_spill] sm:$0xff] }
 0x5de   :  { %2182 = vmatprep.subr.mxu0 %v10369_v46  ;;  %2253 = vmatprep.subr.mxu1 %v10370_v47 }
 0x5df   :  { %2183 = vmatpush2.msra.mxu0 %v10371_v53  ;;  %2254 = vmatpush2.msra.mxu1 %v10372_v58 }
 0x5e0   :  { %2184 = vmatprep.subr.mxu0 %v10373_v14  ;;  %2255 = vmatprep.subr.mxu1 %v10374_v62  ;;  %v3080_v14 = vld [vmem:[%s8928_s0 + $0xa0] sm:$0xff] }
 0x5e1   :  { %2185 = vmatpush2.msra.mxu0 %v10375_v51  ;;  %2256 = vmatpush2.msra.mxu1 %v10376_v49  ;;  %v3081_v49 = vld [vmem:[%s8928_s0 + $0xa8] sm:$0xff] }
 0x5e2   :  { %2186 = vmatprep.subr.mxu0 %v10377_v4  ;;  %2257 = vmatprep.subr.mxu1 %v10378_v9 }
 0x5e3   :  { %2187 = vmatpush2.msra.mxu0 %v10379_v1  ;;  %2258 = vmatpush2.msra.mxu1 %v10380_v60 }
 0x5e4   :  { %2188 = vmatprep.subr.mxu0 %v10381_v57  ;;  %2259 = vmatprep.subr.mxu1 %v10382_v54 }
 0x5e5   :  { %2189 = vmatpush2.msra.mxu0 %v10383_v52  ;;  %2260 = vmatpush2.msra.mxu1 %v10384_v63 }
 0x5e6   :  { %2190 = vmatprep.subr.mxu0 %v10385_v0  ;;  %2261 = vmatprep.subr.mxu1 %v10386_v50 }
 0x5e7   :  { %2191 = vmatpush2.msra.mxu0 %v10387_v56  ;;  %2262 = vmatpush2.msra.mxu1 %v10388_v59 }
 0x5e8   :  { %2192 = vmatprep.subr.mxu0 %v10389_v61  ;;  %2263 = vmatprep.subr.mxu1 %v10390_v2  ;;  %v3082_v61 = vld [vmem:[%s8928_s0 + $0xb0] sm:$0xff] }
 0x5e9   :  { %2193 = vmatpush2.msra.mxu0 %v10391_v48  ;;  %2264 = vmatpush2.msra.mxu1 %v10392_v3  ;;  %v3083_v3 = vld [vmem:[%s8928_s0 + $0xb8] sm:$0xff] }
 0x5ea   :  { %2194 = vmatprep.subr.mxu0 %v10393_v5  ;;  %2265 = vmatprep.subr.mxu1 %v10394_v6 }
 0x5eb   :  { %2195 = vmatpush2.msra.mxu0 %v10395_v7  ;;  %2266 = vmatpush2.msra.mxu1 %v10396_v10 }
 0x5ec   :  { %2196 = vmatprep.subr.mxu0 %v10397_v11  ;;  %2267 = vmatprep.subr.mxu1 %v10398_v12 }
 0x5ed   :  { %2197 = vmatpush2.msra.mxu0 %v10399_v13  ;;  %2268 = vmatpush2.msra.mxu1 %v10400_v15 }
 0x5ee   :  { %2198 = vmatprep.subr.mxu0 %v10401_v16  ;;  %2269 = vmatprep.subr.mxu1 %v10402_v20 }
 0x5ef   :  { %2199 = vmatpush2.msra.mxu0 %v10403_v29  ;;  %2270 = vmatpush2.msra.mxu1 %v10404_v33 }
 0x5f0   :  { %2200 = vmatprep.subr.mxu0 %v10405_v19  ;;  %2271 = vmatprep.subr.mxu1 %v10406_v18 }
 0x5f1   :  { %2201 = vmatpush2.msra.mxu0 %v10407_v31  ;;  %2272 = vmatpush2.msra.mxu1 %v10408_v24 }
 0x5f2   :  { %2202 = vmatprep.subr.mxu0 %v10409_v23  ;;  %2273 = vmatprep.subr.mxu1 %v10410_v32 }
 0x5f3   :  { %2203 = vmatpush2.msra.mxu0 %v10411_v17  ;;  %2274 = vmatpush2.msra.mxu1 %v10412_v25 }
 0x5f4   :  { %2311 = vmatprep.subr.mxu0 %v7680_v22  ;;  %2382 = vmatprep.subr.mxu1 %v7683_v21 }
 0x652   :  { %v1865_v26 = vpop.f32.mrf.mxu0  ;;  %v1936_v39 = vpop.f32.mrf.mxu1 }
 0x653   :  { %v1866_v27 = vadd.f32 %v1865_v26, %v5247_v30  ;;  %v1937_v40 = vadd.f32 %v1936_v39, %v10414_v38  ;;  %v7714_v26 = vld [vmem:[#allocation6 + $0x1e0] sm:$0xff]  ;;  %v7735_v39 = vld [vmem:[#allocation6 + $0x1b8] sm:$0xff] }
 0x654   :  { %v1867_v28 = vpop.f32.mrf.mxu0  ;;  %v1938_v41 = vpop.f32.mrf.mxu1 }
 0x655   :  { %v3077_v35 = vmul.f32 -1.442695, %v1866_v27  ;;  %v1868_v36 = vadd.f32 %v1867_v28, %v10413_v55  ;;  %v3079_v42 = vmul.f32 -1.442695, %v1937_v40  ;;  %v1939_v46 = vadd.f32 %v1938_v41, %v10415_v45  ;;  %v7717_v27 = vld [vmem:[#allocation6 + $0x1f0] sm:$0xff]  ;;  %v7723_v28 = vld [vmem:[#allocation6 + $0x1d8] sm:$0xff] }
 0x656   :  { %v7738_v40 = vld [vmem:[#allocation6 + $0x1a0] sm:$0xff]  ;;  %v7741_v41 = vld [vmem:[#allocation6 + $0x1b0] sm:$0xff] }
 0x657   :  { %3262 = vpow2.f32 %v3077_v35  ;;  %v3078_v37 = vmul.f32 -1.442695, %v1868_v36  ;;  %v7726_v35 = vld [vmem:[#allocation6 + $0x1c0] sm:$0xff]  ;;  %v7729_v36 = vld [vmem:[#allocation6 + $0x1d0] sm:$0xff] }
 0x659   :  { %3264 = vpow2.f32 %v3078_v37  ;;  %v7732_v37 = vld [vmem:[#allocation6 + $0x1a8] sm:$0xff] }
 0x65a   :  { %3266 = vpow2.f32 %v3079_v42  ;;  %v7744_v42 = vld [vmem:[#allocation6 + $0x188] sm:$0xff] }
 0x664   :  { %v3263_v44 = vpop.eup %3262 }
 0x665   :  { %v1950_v47 = vadd.f32 1.0, %v3263_v44  ;;  %v7747_v44 = vld [vmem:[#allocation6 + $0x198] sm:$0xff] }
 0x666   :  { %v3265_v53 = vpop.eup %3264 }
 0x667   :  { %3268 = vrcp.f32 %v1950_v47  ;;  %v1951_v58 = vadd.f32 1.0, %v3265_v53  ;;  %v3267_v62 = vpop.eup %3266  ;;  %v7753_v47 = vld [vmem:[#allocation6 + $0x190] sm:$0xff]  ;;  %v7756_v53 = vld [vmem:[#allocation6 + $0x168] sm:$0xff] }
 0x668   :  { %3270 = vtanh.f32 %v1939_v46  ;;  %v1952_v63 = vadd.f32 1.0, %v3267_v62  ;;  %v7750_v46 = vld [vmem:[#allocation6 + $0x180] sm:$0xff]  ;;  %v7765_v62 = vld [vmem:[#allocation6 + $0x170] sm:$0xff] }
 0x669   :  { %3272 = vrcp.f32 %v1951_v58  ;;  %v7759_v58 = vld [vmem:[#allocation6 + $0x178] sm:$0xff] }
 0x673   :  { %v2036_v51 = vpop.f32.mrf.mxu0  ;;  %v2107_v2 = vpop.f32.mrf.mxu1 }
 0x674   :  { %v3269_v4 = vpop.eup %3268  ;;  %v2112_v9 = vadd.f32 %v3080_v14, %v2036_v51  ;;  %v2114_v48 = vadd.f32 %v3082_v61, %v2107_v2  ;;  %v7762_v14 = vld [vmem:[#allocation6 + $0x160] sm:$0xff]  ;;  %v7768_v51 = vld [vmem:[#allocation6 + $0x148] sm:$0xff]  ;;  %v7807_v61 = vld [vmem:[#allocation6 + $0xf8] sm:$0xff] }
 0x675   :  { %v3271_v1 = vpop.eup %3270  ;;  %v2038_v60 = vpop.f32.mrf.mxu0  ;;  %v7810_v2 = vld [vmem:[#allocation6 + $0xe0] sm:$0xff] }
 0x676   :  { %v3273_v57 = vpop.eup %3272  ;;  %v3084_v54 = vmul.f32 -1.442695, %v2112_v9  ;;  %v2113_v52 = vadd.f32 %v3081_v49, %v2038_v60  ;;  %v1961_v50 = vmul.f32 %v3271_v1, %v3269_v4  ;;  %v3086_v5 = vmul.f32 -1.442695, %v2114_v48  ;;  %v7771_v49 = vld [vmem:[#allocation6 + $0x158] sm:$0xff]  ;;  %v7774_v4 = vld [vmem:[#allocation6 + $0x140] sm:$0xff] }
 0x677   :  { %v1960_v0 = vmul.f32 %v3273_v57, %v7469_v8  ;;  %v2109_v8 = vpop.f32.mrf.mxu1  ;;  %v7777_v9 = vld [vmem:[#allocation6 + $0x150] sm:$0xff]  ;;  %v7780_v1 = vld [vmem:[#allocation6 + $0x128] sm:$0xff]  ;;  %v7783_v60 = vld [vmem:[#allocation6 + $0x138] sm:$0xff] }
 0x678   :  { %3274 = vpow2.f32 %v3084_v54  ;;  %v3085_v56 = vmul.f32 -1.442695, %v2113_v52  ;;  %v2115_v7 = vadd.f32 %v3083_v3, %v2109_v8  ;;  %v7786_v57 = vld [vmem:[#allocation6 + $0x120] sm:$0xff]  ;;  %v7789_v54 = vld [vmem:[#allocation6 + $0x130] sm:$0xff]  ;;  %v7792_v52 = vld [vmem:[#allocation6 + $0x108] sm:$0xff] }
 0x679   :  { %v7697_v59 = vadd.f32 %v1961_v50, %v1960_v0  ;;  %v7798_v0 = vld [vmem:[#allocation6 + $0x100] sm:$0xff]  ;;  %v7801_v50 = vld [vmem:[#allocation6 + $0x110] sm:$0xff]  ;;  %v7816_v3 = vld [vmem:[#allocation6 + $0xc8] sm:$0xff] }
 0x67a   :  { %3276 = vpow2.f32 %v3085_v56  ;;  %v7804_v56 = vld [vmem:[#allocation6 + $0xe8] sm:$0xff]  ;;  %v7813_v48 = vld [vmem:[#allocation6 + $0xf0] sm:$0xff]  ;;  %v7819_v8 = vld [vmem:[#allocation6 + $0xd8] sm:$0xff] }
 0x67b   :  { %3278 = vrcp.f32 %v1952_v63  ;;  %v7795_v63 = vld [vmem:[#allocation6 + $0x118] sm:$0xff] }
 0x67c   :  { %3280 = vtanh.f32 %v7697_v59 }
 0x67d   :  { %3282 = vpow2.f32 %v3086_v5  ;;  %v7822_v5 = vld [vmem:[#allocation6 + $0xc0] sm:$0xff] }
 0x685   :  { %v3275_v6 = vpop.eup %3274 }
 0x686   :  { %v2125_v10 = vadd.f32 1.0, %v3275_v6  ;;  %v7825_v6 = vld [vmem:[#allocation6 + $0xd0] sm:$0xff] }
 0x687   :  { %v3277_v11 = vpop.eup %3276 }
 0x688   :  { %v3279_v12 = vpop.eup %3278  ;;  %3284 = vrcp.f32 %v2125_v10  ;;  %v2126_v13 = vadd.f32 1.0, %v3277_v11  ;;  %v7831_v10 = vld [vmem:[#allocation6 + $0xb8] sm:$0xff]  ;;  %v7834_v11 = vld [vmem:[#allocation6 + $0xa0] sm:$0xff] }
 0x689   :  { %v3281_v15 = vpop.eup %3280  ;;  %3286 = vtanh.f32 %v2115_v7  ;;  %v7828_v7 = vld [vmem:[#allocation6 + $0xa8] sm:$0xff] }
 0x68a   :  { %3288 = vrcp.f32 %v2126_v13  ;;  %v1964_v16 = vmul.f32 %v3281_v15, %v3279_v12  ;;  %v3283_v20 = vpop.eup %3282  ;;  %v7837_v12 = vld [vmem:[#allocation6 + $0xb0] sm:$0xff]  ;;  %v7840_v13 = vld [vmem:[#allocation6 + $0x88] sm:$0xff]  ;;  %v7843_v15 = vld [vmem:[#allocation6 + $0x98] sm:$0xff] }
 0x68b   :  { %v2127_v18 = vadd.f32 1.0, %v3283_v20  ;;  %v7849_v20 = vld [vmem:[#allocation6 + $0x90] sm:$0xff] }
 0x68c   :  { %2204 = vmatprep.mubr.f32.mxu0 %v1964_v16  ;;  %2275 = vmatprep.mubr.f32.mxu1 %v1964_v16  ;;  %v7846_v16 = vld [vmem:[#allocation6 + $0x80] sm:$0xff]  ;;  %10417 = vst [vmem:[#allocation24_spill] sm:$0xff] %v7849_v20 }
 0x68d   :  { %3290 = vrcp.f32 %v2127_v18  ;;  %10416 = vst [vmem:[#allocation16_spill] sm:$0xff] %v7846_v16  ;;  %v7861_v18 = vld [vmem:[#allocation6 + $0x70] sm:$0xff] }
 0x68e   :  { %10421 = vst [vmem:[#allocation26_spill] sm:$0xff] %v7861_v18 }
 0x695   :  { %v3285_v29 = vpop.eup %3284 }
 0x696   :  { %v3287_v33 = vpop.eup %3286 }
 0x697   :  { %v3289_v19 = vpop.eup %3288  ;;  %v2136_v24 = vmul.f32 %v3287_v33, %v3285_v29  ;;  %v7852_v29 = vld [vmem:[#allocation6 + $0x68] sm:$0xff]  ;;  %v7855_v33 = vld [vmem:[#allocation6 + $0x78] sm:$0xff] }
 0x698   :  { %v2135_v31 = vmul.f32 %v3289_v19, %v7479_v34  ;;  %v7720_v34 = vld [vmem:[#allocation6 + $0x1c8] sm:$0xff]  ;;  %10418 = vst [vmem:[#allocation17_spill] sm:$0xff] %v7852_v29  ;;  %10419 = vst [vmem:[#allocation25_spill] sm:$0xff] %v7855_v33  ;;  %v7858_v19 = vld [vmem:[#allocation6 + $0x60] sm:$0xff] }
 0x699   :  { %10420 = vst [vmem:[#allocation18_spill] sm:$0xff] %v7858_v19 }
 0x69a   :  { %v7707_v23 = vadd.f32 %v2136_v24, %v2135_v31  ;;  %v3291_v32 = vpop.eup %3290  ;;  %v7864_v31 = vld [vmem:[#allocation6 + $0x48] sm:$0xff]  ;;  %v7867_v24 = vld [vmem:[#allocation6 + $0x58] sm:$0xff] }
 0x69b   :  { %10422 = vst [vmem:[#allocation19_spill] sm:$0xff] %v7864_v31  ;;  %10423 = vst [vmem:[#allocation28_spill] sm:$0xff] %v7867_v24 }
 0x69c   :  { %3292 = vtanh.f32 %v7707_v23 }
 0x6a9   :  { %v3293_v17 = vpop.eup %3292 }
 0x6aa   :  { %v7710_v25 = vmul.f32 %v3293_v17, %v3291_v32  ;;  %v7870_v32 = vld [vmem:[#allocation6 + $0x40] sm:$0xff]  ;;  %v7873_v17 = vld [vmem:[#allocation6 + $0x50] sm:$0xff] }
 0x6ab   :  { %10424 = vst [vmem:[#allocation21_spill] sm:$0xff] %v7870_v32  ;;  %10425 = vst [vmem:[#allocation30_spill] sm:$0xff] %v7873_v17 }
 0x6ac   :  { %2205 = vmatmul.mubr.f32.vlgmr.msra.gmra.mxu0 %v7710_v25  ;;  %2276 = vmatmul.mubr.f32.vlgmr.msra.gmra.mxu1 %v7710_v25 }
 0x6ad   :  { %2312 = vmatpush1.msra.mxu0 %v7714_v26  ;;  %2383 = vmatpush1.msra.mxu1 %v7717_v27 }
 0x6ae   :  { %2313 = vmatprep.subr.mxu0 %v7720_v34  ;;  %2384 = vmatprep.subr.mxu1 %v7723_v28 }
 0x6af   :  { %2314 = vmatpush1.msra.mxu0 %v7726_v35  ;;  %2385 = vmatpush1.msra.mxu1 %v7729_v36 }
 0x6b0   :  { %2315 = vmatprep.subr.mxu0 %v7732_v37  ;;  %2386 = vmatprep.subr.mxu1 %v7735_v39 }
 0x6b1   :  { %2316 = vmatpush1.msra.mxu0 %v7738_v40  ;;  %2387 = vmatpush1.msra.mxu1 %v7741_v41 }
 0x6b2   :  { %2317 = vmatprep.subr.mxu0 %v7744_v42  ;;  %2388 = vmatprep.subr.mxu1 %v7747_v44 }
 0x6b3   :  { %2318 = vmatpush1.msra.mxu0 %v7750_v46  ;;  %2389 = vmatpush1.msra.mxu1 %v7753_v47 }
 0x6b4   :  { %2319 = vmatprep.subr.mxu0 %v7756_v53  ;;  %2390 = vmatprep.subr.mxu1 %v7759_v58 }
 0x6b5   :  { %2320 = vmatpush1.msra.mxu0 %v7762_v14  ;;  %2391 = vmatpush1.msra.mxu1 %v7765_v62 }
 0x6b6   :  { %2321 = vmatprep.subr.mxu0 %v7768_v51  ;;  %2392 = vmatprep.subr.mxu1 %v7771_v49 }
 0x6b7   :  { %2322 = vmatpush1.msra.mxu0 %v7774_v4  ;;  %2393 = vmatpush1.msra.mxu1 %v7777_v9 }
 0x6b8   :  { %2323 = vmatprep.subr.mxu0 %v7780_v1  ;;  %2394 = vmatprep.subr.mxu1 %v7783_v60 }
 0x6b9   :  { %2324 = vmatpush1.msra.mxu0 %v7786_v57  ;;  %2395 = vmatpush1.msra.mxu1 %v7789_v54 }
 0x6ba   :  { %2325 = vmatprep.subr.mxu0 %v7792_v52  ;;  %2396 = vmatprep.subr.mxu1 %v7795_v63 }
 0x6bb   :  { %2326 = vmatpush1.msra.mxu0 %v7798_v0  ;;  %2397 = vmatpush1.msra.mxu1 %v7801_v50 }
 0x6bc   :  { %2327 = vmatprep.subr.mxu0 %v7804_v56  ;;  %2398 = vmatprep.subr.mxu1 %v7807_v61 }
 0x6bd   :  { %2328 = vmatpush1.msra.mxu0 %v7810_v2  ;;  %2399 = vmatpush1.msra.mxu1 %v7813_v48 }
 0x6be   :  { %2329 = vmatprep.subr.mxu0 %v7816_v3  ;;  %2400 = vmatprep.subr.mxu1 %v7819_v8 }
 0x6bf   :  { %2330 = vmatpush1.msra.mxu0 %v7822_v5  ;;  %2401 = vmatpush1.msra.mxu1 %v7825_v6 }
 0x6c0   :  { %2331 = vmatprep.subr.mxu0 %v7828_v7  ;;  %2402 = vmatprep.subr.mxu1 %v7831_v10 }
 0x6c1   :  { %2332 = vmatpush1.msra.mxu0 %v7834_v11  ;;  %2403 = vmatpush1.msra.mxu1 %v7837_v12 }
 0x6c2   :  { %2333 = vmatprep.subr.mxu0 %v7840_v13  ;;  %2404 = vmatprep.subr.mxu1 %v7843_v15 }
 0x6c3   :  { %2334 = vmatpush1.msra.mxu0 %v7846_v16  ;;  %2405 = vmatpush1.msra.mxu1 %v7849_v20 }
 0x6c4   :  { %2335 = vmatprep.subr.mxu0 %v7852_v29  ;;  %2406 = vmatprep.subr.mxu1 %v7855_v33 }
 0x6c5   :  { %2336 = vmatpush1.msra.mxu0 %v7858_v19  ;;  %2407 = vmatpush1.msra.mxu1 %v7861_v18  ;;  %v7876_v19 = vld [vmem:[#allocation6 + $0x28] sm:$0xff]  ;;  %v7879_v18 = vld [vmem:[#allocation6 + $0x38] sm:$0xff] }
 0x6c6   :  { %2337 = vmatprep.subr.mxu0 %v7864_v31  ;;  %2408 = vmatprep.subr.mxu1 %v7867_v24  ;;  %10426 = vst [vmem:[#allocation23_spill] sm:$0xff] %v7876_v19  ;;  %10427 = vst [vmem:[#allocation32_spill] sm:$0xff] %v7879_v18  ;;  %v7882_v31 = vld [vmem:[#allocation6 + $0x20] sm:$0xff]  ;;  %v7885_v24 = vld [vmem:[#allocation6 + $0x30] sm:$0xff] }
 0x6c7   :  { %2338 = vmatpush1.msra.mxu0 %v7870_v32  ;;  %2409 = vmatpush1.msra.mxu1 %v7873_v17  ;;  %10428 = vst [vmem:[#allocation27_spill] sm:$0xff] %v7882_v31  ;;  %10429 = vst [vmem:[#allocation34_spill] sm:$0xff] %v7885_v24  ;;  %v7888_v32 = vld [vmem:[#allocation6 + $0x8] sm:$0xff]  ;;  %v7891_v17 = vld [vmem:[#allocation6 + $0x18] sm:$0xff] }
 0x6c8   :  { %2339 = vmatprep.subr.mxu0 %v7876_v19  ;;  %2410 = vmatprep.subr.mxu1 %v7879_v18  ;;  %10430 = vst [vmem:[#allocation29_spill] sm:$0xff] %v7888_v32  ;;  %10431 = vst [vmem:[#allocation35_spill] sm:$0xff] %v7891_v17  ;;  %v7894_v19 = vld [vmem:[#allocation6] sm:$0xff]  ;;  %v7898_v18 = vld [vmem:[#allocation6 + $0x10] sm:$0xff] }
 0x6c9   :  { %2340 = vmatpush1.msra.mxu0 %v7882_v31  ;;  %2411 = vmatpush1.msra.mxu1 %v7885_v24  ;;  %10432 = vst [vmem:[#allocation31_spill] sm:$0xff] %v7894_v19  ;;  %10433 = vst [vmem:[#allocation37_spill] sm:$0xff] %v7898_v18 }
 0x6ca   :  { %2341 = vmatprep.subr.mxu0 %v7888_v32  ;;  %2412 = vmatprep.subr.mxu1 %v7891_v17  ;;  %v7907_v17 = vld [vmem:[%s8930_s2 + $0x1e8] sm:$0xff] }
 0x6cb   :  { %2342 = vmatpush1.msra.mxu0 %v7894_v19  ;;  %2375 = vmatprep.mubr.f32.mxu0 %v10283_v43  ;;  %10434 = vst [vmem:[#allocation33_spill] sm:$0xff] %v7907_v17  ;;  %v7913_v19 = vld [vmem:[%s8930_s2 + $0x1f8] sm:$0xff] }
 0x6cc   :  { %2413 = vmatpush1.msra.mxu1 %v7898_v18  ;;  %2446 = vmatprep.mubr.f32.mxu1 %v10283_v43  ;;  %10435 = vst [vmem:[#allocation39_spill] sm:$0xff] %v7913_v19  ;;  %v7919_v18 = vld [vmem:[%s8930_s2 + $0x1e0] sm:$0xff] }
 0x6cd   :  { %2376 = vmatmul.mubr.f32.vlgmr.msra.gmra.mxu0 %v7710_v25  ;;  %2447 = vmatmul.mubr.f32.vlgmr.msra.gmra.mxu1 %v7710_v25  ;;  %10436 = vst [vmem:[#allocation36_spill] sm:$0xff] %v7919_v18  ;;  %v7925_v25 = vld [vmem:[%s8930_s2 + $0x1f0] sm:$0xff] }
 0x6ce   :  { %2481 = vmatprep.subr.mxu0 %v7907_v17  ;;  %2552 = vmatprep.subr.mxu1 %v7913_v19  ;;  %10437 = vst [vmem:[#allocation41_spill] sm:$0xff] %v7925_v25  ;;  %v7931_v17 = vld [vmem:[%s8930_s2 + $0x1c8] sm:$0xff]  ;;  %v7937_v19 = vld [vmem:[%s8930_s2 + $0x1d8] sm:$0xff] }
 0x6cf   :  { %2482 = vmatpush1.msra.mxu0 %v7919_v18  ;;  %2553 = vmatpush1.msra.mxu1 %v7925_v25  ;;  %10438 = vst [vmem:[#allocation38_spill] sm:$0xff] %v7931_v17  ;;  %10439 = vst [vmem:[#allocation43_spill] sm:$0xff] %v7937_v19  ;;  %v7943_v18 = vld [vmem:[%s8930_s2 + $0x1c0] sm:$0xff]  ;;  %v7949_v25 = vld [vmem:[%s8930_s2 + $0x1d0] sm:$0xff] }
 0x6d0   :  { %2483 = vmatprep.subr.mxu0 %v7931_v17  ;;  %2554 = vmatprep.subr.mxu1 %v7937_v19  ;;  %10440 = vst [vmem:[#allocation40_spill] sm:$0xff] %v7943_v18  ;;  %10441 = vst [vmem:[#allocation44_spill] sm:$0xff] %v7949_v25  ;;  %v7955_v17 = vld [vmem:[%s8930_s2 + $0x1a8] sm:$0xff]  ;;  %v7961_v19 = vld [vmem:[%s8930_s2 + $0x1b8] sm:$0xff] }
 0x6d1   :  { %2484 = vmatpush1.msra.mxu0 %v7943_v18  ;;  %2555 = vmatpush1.msra.mxu1 %v7949_v25  ;;  %10442 = vst [vmem:[#allocation42_spill] sm:$0xff] %v7955_v17  ;;  %10443 = vst [vmem:[#allocation45_spill] sm:$0xff] %v7961_v19  ;;  %v7967_v18 = vld [vmem:[%s8930_s2 + $0x1a0] sm:$0xff]  ;;  %v7973_v25 = vld [vmem:[%s8930_s2 + $0x1b0] sm:$0xff] }
 0x6d2   :  { %2485 = vmatprep.subr.mxu0 %v7955_v17  ;;  %2556 = vmatprep.subr.mxu1 %v7961_v19  ;;  %10444 = vst [vmem:[#allocation46_spill] sm:$0xff] %v7967_v18  ;;  %10445 = vst [vmem:[#allocation47_spill] sm:$0xff] %v7973_v25  ;;  %v7979_v17 = vld [vmem:[%s8930_s2 + $0x188] sm:$0xff]  ;;  %v7985_v19 = vld [vmem:[%s8930_s2 + $0x198] sm:$0xff] }
 0x6d3   :  { %2486 = vmatpush1.msra.mxu0 %v7967_v18  ;;  %2557 = vmatpush1.msra.mxu1 %v7973_v25  ;;  %10446 = vst [vmem:[#allocation48_spill] sm:$0xff] %v7979_v17  ;;  %10447 = vst [vmem:[#allocation49_spill] sm:$0xff] %v7985_v19  ;;  %v7991_v18 = vld [vmem:[%s8930_s2 + $0x180] sm:$0xff]  ;;  %v7997_v25 = vld [vmem:[%s8930_s2 + $0x190] sm:$0xff] }
 0x6d4   :  { %2487 = vmatprep.subr.mxu0 %v7979_v17  ;;  %2558 = vmatprep.subr.mxu1 %v7985_v19  ;;  %10448 = vst [vmem:[#allocation50_spill] sm:$0xff] %v7991_v18  ;;  %10449 = vst [vmem:[#allocation51_spill] sm:$0xff] %v7997_v25  ;;  %v8003_v17 = vld [vmem:[%s8930_s2 + $0x168] sm:$0xff]  ;;  %v8009_v19 = vld [vmem:[%s8930_s2 + $0x178] sm:$0xff] }
 0x6d5   :  { %2488 = vmatpush1.msra.mxu0 %v7991_v18  ;;  %2559 = vmatpush1.msra.mxu1 %v7997_v25  ;;  %10450 = vst [vmem:[#allocation52_spill] sm:$0xff] %v8003_v17  ;;  %10451 = vst [vmem:[#allocation53_spill] sm:$0xff] %v8009_v19  ;;  %v8015_v18 = vld [vmem:[%s8930_s2 + $0x160] sm:$0xff]  ;;  %v8021_v25 = vld [vmem:[%s8930_s2 + $0x170] sm:$0xff] }
 0x6d6   :  { %2489 = vmatprep.subr.mxu0 %v8003_v17  ;;  %2560 = vmatprep.subr.mxu1 %v8009_v19  ;;  %10452 = vst [vmem:[#allocation54_spill] sm:$0xff] %v8015_v18  ;;  %10453 = vst [vmem:[#allocation55_spill] sm:$0xff] %v8021_v25  ;;  %v8027_v17 = vld [vmem:[%s8930_s2 + $0x148] sm:$0xff]  ;;  %v8033_v19 = vld [vmem:[%s8930_s2 + $0x158] sm:$0xff] }
 0x6d7   :  { %2490 = vmatpush1.msra.mxu0 %v8015_v18  ;;  %2561 = vmatpush1.msra.mxu1 %v8021_v25  ;;  %10454 = vst [vmem:[#allocation56_spill] sm:$0xff] %v8027_v17  ;;  %10455 = vst [vmem:[#allocation57_spill] sm:$0xff] %v8033_v19  ;;  %v8039_v18 = vld [vmem:[%s8930_s2 + $0x140] sm:$0xff]  ;;  %v8045_v25 = vld [vmem:[%s8930_s2 + $0x150] sm:$0xff] }
 0x6d8   :  { %2491 = vmatprep.subr.mxu0 %v8027_v17  ;;  %2562 = vmatprep.subr.mxu1 %v8033_v19  ;;  %10456 = vst [vmem:[#allocation58_spill] sm:$0xff] %v8039_v18  ;;  %10457 = vst [vmem:[#allocation59_spill] sm:$0xff] %v8045_v25  ;;  %v8051_v17 = vld [vmem:[%s8930_s2 + $0x128] sm:$0xff]  ;;  %v8057_v19 = vld [vmem:[%s8930_s2 + $0x138] sm:$0xff] }
 0x6d9   :  { %2492 = vmatpush1.msra.mxu0 %v8039_v18  ;;  %2563 = vmatpush1.msra.mxu1 %v8045_v25  ;;  %10458 = vst [vmem:[#allocation60_spill] sm:$0xff] %v8051_v17  ;;  %10459 = vst [vmem:[#allocation61_spill] sm:$0xff] %v8057_v19  ;;  %v8063_v18 = vld [vmem:[%s8930_s2 + $0x120] sm:$0xff]  ;;  %v8069_v25 = vld [vmem:[%s8930_s2 + $0x130] sm:$0xff] }
 0x6da   :  { %2493 = vmatprep.subr.mxu0 %v8051_v17  ;;  %2564 = vmatprep.subr.mxu1 %v8057_v19  ;;  %10460 = vst [vmem:[#allocation62_spill] sm:$0xff] %v8063_v18  ;;  %10461 = vst [vmem:[#allocation63_spill] sm:$0xff] %v8069_v25  ;;  %v8075_v17 = vld [vmem:[%s8930_s2 + $0x108] sm:$0xff]  ;;  %v8081_v19 = vld [vmem:[%s8930_s2 + $0x118] sm:$0xff] }
 0x6db   :  { %2494 = vmatpush1.msra.mxu0 %v8063_v18  ;;  %2565 = vmatpush1.msra.mxu1 %v8069_v25  ;;  %10462 = vst [vmem:[#allocation64_spill] sm:$0xff] %v8075_v17  ;;  %10463 = vst [vmem:[#allocation65_spill] sm:$0xff] %v8081_v19  ;;  %v8087_v18 = vld [vmem:[%s8930_s2 + $0x100] sm:$0xff]  ;;  %v8093_v25 = vld [vmem:[%s8930_s2 + $0x110] sm:$0xff] }
 0x6dc   :  { %2495 = vmatprep.subr.mxu0 %v8075_v17  ;;  %2566 = vmatprep.subr.mxu1 %v8081_v19  ;;  %10464 = vst [vmem:[#allocation66_spill] sm:$0xff] %v8087_v18  ;;  %10465 = vst [vmem:[#allocation67_spill] sm:$0xff] %v8093_v25  ;;  %v8099_v17 = vld [vmem:[%s8930_s2 + $0xe8] sm:$0xff]  ;;  %v8105_v19 = vld [vmem:[%s8930_s2 + $0xf8] sm:$0xff] }
 0x6dd   :  { %2496 = vmatpush1.msra.mxu0 %v8087_v18  ;;  %2567 = vmatpush1.msra.mxu1 %v8093_v25  ;;  %10466 = vst [vmem:[#allocation68_spill] sm:$0xff] %v8099_v17  ;;  %10467 = vst [vmem:[#allocation69_spill] sm:$0xff] %v8105_v19  ;;  %v8111_v18 = vld [vmem:[%s8930_s2 + $0xe0] sm:$0xff]  ;;  %v8117_v25 = vld [vmem:[%s8930_s2 + $0xf0] sm:$0xff] }
 0x6de   :  { %2497 = vmatprep.subr.mxu0 %v8099_v17  ;;  %2568 = vmatprep.subr.mxu1 %v8105_v19  ;;  %10468 = vst [vmem:[#allocation70_spill] sm:$0xff] %v8111_v18  ;;  %10469 = vst [vmem:[#allocation71_spill] sm:$0xff] %v8117_v25  ;;  %v8123_v17 = vld [vmem:[%s8930_s2 + $0xc8] sm:$0xff]  ;;  %v8129_v19 = vld [vmem:[%s8930_s2 + $0xd8] sm:$0xff] }
 0x6df   :  { %2498 = vmatpush1.msra.mxu0 %v8111_v18  ;;  %2569 = vmatpush1.msra.mxu1 %v8117_v25  ;;  %10470 = vst [vmem:[#allocation72_spill] sm:$0xff] %v8123_v17  ;;  %10471 = vst [vmem:[#allocation73_spill] sm:$0xff] %v8129_v19  ;;  %v8135_v18 = vld [vmem:[%s8930_s2 + $0xc0] sm:$0xff]  ;;  %v8141_v25 = vld [vmem:[%s8930_s2 + $0xd0] sm:$0xff] }
 0x6e0   :  { %2499 = vmatprep.subr.mxu0 %v8123_v17  ;;  %2570 = vmatprep.subr.mxu1 %v8129_v19  ;;  %10472 = vst [vmem:[#allocation74_spill] sm:$0xff] %v8135_v18  ;;  %10473 = vst [vmem:[#allocation75_spill] sm:$0xff] %v8141_v25  ;;  %v8147_v17 = vld [vmem:[%s8930_s2 + $0xa8] sm:$0xff]  ;;  %v8153_v19 = vld [vmem:[%s8930_s2 + $0xb8] sm:$0xff] }
 0x6e1   :  { %2500 = vmatpush1.msra.mxu0 %v8135_v18  ;;  %2571 = vmatpush1.msra.mxu1 %v8141_v25  ;;  %10474 = vst [vmem:[#allocation76_spill] sm:$0xff] %v8147_v17  ;;  %10475 = vst [vmem:[#allocation77_spill] sm:$0xff] %v8153_v19  ;;  %v8159_v18 = vld [vmem:[%s8930_s2 + $0xa0] sm:$0xff]  ;;  %v8165_v25 = vld [vmem:[%s8930_s2 + $0xb0] sm:$0xff] }
 0x6e2   :  { %2501 = vmatprep.subr.mxu0 %v8147_v17  ;;  %2572 = vmatprep.subr.mxu1 %v8153_v19  ;;  %10476 = vst [vmem:[#allocation78_spill] sm:$0xff] %v8159_v18  ;;  %10477 = vst [vmem:[#allocation79_spill] sm:$0xff] %v8165_v25  ;;  %v8171_v17 = vld [vmem:[%s8930_s2 + $0x88] sm:$0xff]  ;;  %v8177_v19 = vld [vmem:[%s8930_s2 + $0x98] sm:$0xff] }
 0x6e3   :  { %2502 = vmatpush1.msra.mxu0 %v8159_v18  ;;  %2573 = vmatpush1.msra.mxu1 %v8165_v25  ;;  %10478 = vst [vmem:[#allocation80_spill] sm:$0xff] %v8171_v17  ;;  %10479 = vst [vmem:[#allocation81_spill] sm:$0xff] %v8177_v19  ;;  %v8183_v18 = vld [vmem:[%s8930_s2 + $0x80] sm:$0xff]  ;;  %v8189_v25 = vld [vmem:[%s8930_s2 + $0x90] sm:$0xff] }
 0x6e4   :  { %2503 = vmatprep.subr.mxu0 %v8171_v17  ;;  %2574 = vmatprep.subr.mxu1 %v8177_v19  ;;  %10480 = vst [vmem:[#allocation82_spill] sm:$0xff] %v8183_v18  ;;  %10481 = vst [vmem:[#allocation83_spill] sm:$0xff] %v8189_v25  ;;  %v8195_v17 = vld [vmem:[%s8930_s2 + $0x68] sm:$0xff]  ;;  %v8201_v19 = vld [vmem:[%s8930_s2 + $0x78] sm:$0xff] }
 0x6e5   :  { %2504 = vmatpush1.msra.mxu0 %v8183_v18  ;;  %2575 = vmatpush1.msra.mxu1 %v8189_v25  ;;  %10482 = vst [vmem:[#allocation84_spill] sm:$0xff] %v8195_v17  ;;  %10483 = vst [vmem:[#allocation85_spill] sm:$0xff] %v8201_v19  ;;  %v8207_v18 = vld [vmem:[%s8930_s2 + $0x60] sm:$0xff]  ;;  %v8213_v25 = vld [vmem:[%s8930_s2 + $0x70] sm:$0xff] }
 0x6e6   :  { %2505 = vmatprep.subr.mxu0 %v8195_v17  ;;  %2576 = vmatprep.subr.mxu1 %v8201_v19  ;;  %10484 = vst [vmem:[#allocation86_spill] sm:$0xff] %v8207_v18  ;;  %10485 = vst [vmem:[#allocation87_spill] sm:$0xff] %v8213_v25  ;;  %v8219_v17 = vld [vmem:[%s8930_s2 + $0x48] sm:$0xff]  ;;  %v8225_v19 = vld [vmem:[%s8930_s2 + $0x58] sm:$0xff] }
 0x6e7   :  { %2506 = vmatpush1.msra.mxu0 %v8207_v18  ;;  %2577 = vmatpush1.msra.mxu1 %v8213_v25  ;;  %10486 = vst [vmem:[#allocation88_spill] sm:$0xff] %v8219_v17  ;;  %10487 = vst [vmem:[#allocation89_spill] sm:$0xff] %v8225_v19  ;;  %v8231_v18 = vld [vmem:[%s8930_s2 + $0x40] sm:$0xff]  ;;  %v8237_v25 = vld [vmem:[%s8930_s2 + $0x50] sm:$0xff] }
 0x6e8   :  { %2507 = vmatprep.subr.mxu0 %v8219_v17  ;;  %2578 = vmatprep.subr.mxu1 %v8225_v19  ;;  %10488 = vst [vmem:[#allocation90_spill] sm:$0xff] %v8231_v18  ;;  %10489 = vst [vmem:[#allocation91_spill] sm:$0xff] %v8237_v25  ;;  %v8243_v17 = vld [vmem:[%s8930_s2 + $0x28] sm:$0xff]  ;;  %v8249_v19 = vld [vmem:[%s8930_s2 + $0x38] sm:$0xff] }
 0x6e9   :  { %2508 = vmatpush1.msra.mxu0 %v8231_v18  ;;  %2579 = vmatpush1.msra.mxu1 %v8237_v25  ;;  %10490 = vst [vmem:[#allocation92_spill] sm:$0xff] %v8243_v17  ;;  %10491 = vst [vmem:[#allocation93_spill] sm:$0xff] %v8249_v19  ;;  %v8255_v18 = vld [vmem:[%s8930_s2 + $0x20] sm:$0xff]  ;;  %v8261_v25 = vld [vmem:[%s8930_s2 + $0x30] sm:$0xff] }
 0x6ea   :  { %2509 = vmatprep.subr.mxu0 %v8243_v17  ;;  %2580 = vmatprep.subr.mxu1 %v8249_v19  ;;  %10492 = vst [vmem:[#allocation94_spill] sm:$0xff] %v8255_v18  ;;  %10493 = vst [vmem:[#allocation95_spill] sm:$0xff] %v8261_v25  ;;  %v8267_v17 = vld [vmem:[%s8930_s2 + $0x8] sm:$0xff]  ;;  %v8273_v19 = vld [vmem:[%s8930_s2 + $0x18] sm:$0xff] }
 0x6eb   :  { %2510 = vmatpush1.msra.mxu0 %v8255_v18  ;;  %2581 = vmatpush1.msra.mxu1 %v8261_v25  ;;  %10494 = vst [vmem:[#allocation96_spill] sm:$0xff] %v8267_v17  ;;  %10495 = vst [vmem:[#allocation97_spill] sm:$0xff] %v8273_v19  ;;  %v8279_v18 = vld [vmem:[%s8930_s2] sm:$0xff]  ;;  %v8285_v25 = vld [vmem:[%s8930_s2 + $0x10] sm:$0xff] }
 0x6ec   :  { %2511 = vmatprep.subr.mxu0 %v8267_v17  ;;  %2582 = vmatprep.subr.mxu1 %v8273_v19  ;;  %10496 = vst [vmem:[#allocation98_spill] sm:$0xff] %v8279_v18  ;;  %10497 = vst [vmem:[#allocation99_spill] sm:$0xff] %v8285_v25  ;;  %v8291_v17 = vld [vmem:[%s8930_s2 + $0x3e8] sm:$0xff]  ;;  %v8297_v19 = vld [vmem:[%s8930_s2 + $0x3f8] sm:$0xff] }
 0x6ed   :  { %2512 = vmatpush1.msra.mxu0 %v8279_v18  ;;  %2583 = vmatpush1.msra.mxu1 %v8285_v25  ;;  %10498 = vst [vmem:[#allocation100_spill] sm:$0xff] %v8291_v17  ;;  %10499 = vst [vmem:[#allocation101_spill] sm:$0xff] %v8297_v19  ;;  %v8303_v18 = vld [vmem:[%s8930_s2 + $0x3e0] sm:$0xff]  ;;  %v8309_v25 = vld [vmem:[%s8930_s2 + $0x3f0] sm:$0xff] }
 0x6ee   :  { %2513 = vmatprep.subr.mxu0 %v8291_v17  ;;  %2584 = vmatprep.subr.mxu1 %v8297_v19  ;;  %10500 = vst [vmem:[#allocation102_spill] sm:$0xff] %v8303_v18  ;;  %10501 = vst [vmem:[#allocation103_spill] sm:$0xff] %v8309_v25  ;;  %v8315_v17 = vld [vmem:[%s8930_s2 + $0x3c8] sm:$0xff]  ;;  %v8321_v19 = vld [vmem:[%s8930_s2 + $0x3d8] sm:$0xff] }
 0x6ef   :  { %2514 = vmatpush2.msra.mxu0 %v8303_v18  ;;  %2585 = vmatpush2.msra.mxu1 %v8309_v25  ;;  %10502 = vst [vmem:[#allocation104_spill] sm:$0xff] %v8315_v17  ;;  %10503 = vst [vmem:[#allocation105_spill] sm:$0xff] %v8321_v19  ;;  %v8327_v18 = vld [vmem:[%s8930_s2 + $0x3c0] sm:$0xff]  ;;  %v8333_v25 = vld [vmem:[%s8930_s2 + $0x3d0] sm:$0xff] }
 0x6f0   :  { %2515 = vmatprep.subr.mxu0 %v8315_v17  ;;  %2586 = vmatprep.subr.mxu1 %v8321_v19  ;;  %10504 = vst [vmem:[#allocation106_spill] sm:$0xff] %v8327_v18  ;;  %10505 = vst [vmem:[#allocation107_spill] sm:$0xff] %v8333_v25  ;;  %v8339_v17 = vld [vmem:[%s8930_s2 + $0x3a8] sm:$0xff]  ;;  %v8345_v19 = vld [vmem:[%s8930_s2 + $0x3b8] sm:$0xff] }
 0x6f1   :  { %2516 = vmatpush2.msra.mxu0 %v8327_v18  ;;  %2587 = vmatpush2.msra.mxu1 %v8333_v25  ;;  %10506 = vst [vmem:[#allocation108_spill] sm:$0xff] %v8339_v17  ;;  %10507 = vst [vmem:[#allocation109_spill] sm:$0xff] %v8345_v19  ;;  %v8351_v18 = vld [vmem:[%s8930_s2 + $0x3a0] sm:$0xff]  ;;  %v8357_v25 = vld [vmem:[%s8930_s2 + $0x3b0] sm:$0xff] }
 0x6f2   :  { %2517 = vmatprep.subr.mxu0 %v8339_v17  ;;  %2588 = vmatprep.subr.mxu1 %v8345_v19  ;;  %10508 = vst [vmem:[#allocation110_spill] sm:$0xff] %v8351_v18  ;;  %10509 = vst [vmem:[#allocation111_spill] sm:$0xff] %v8357_v25  ;;  %v8363_v17 = vld [vmem:[%s8930_s2 + $0x388] sm:$0xff]  ;;  %v8369_v19 = vld [vmem:[%s8930_s2 + $0x398] sm:$0xff] }
 0x6f3   :  { %2518 = vmatpush2.msra.mxu0 %v8351_v18  ;;  %2589 = vmatpush2.msra.mxu1 %v8357_v25  ;;  %10510 = vst [vmem:[#allocation112_spill] sm:$0xff] %v8363_v17  ;;  %10511 = vst [vmem:[#allocation113_spill] sm:$0xff] %v8369_v19  ;;  %v8375_v18 = vld [vmem:[%s8930_s2 + $0x380] sm:$0xff]  ;;  %v8381_v25 = vld [vmem:[%s8930_s2 + $0x390] sm:$0xff] }
 0x6f4   :  { %2519 = vmatprep.subr.mxu0 %v8363_v17  ;;  %2590 = vmatprep.subr.mxu1 %v8369_v19  ;;  %10512 = vst [vmem:[#allocation114_spill] sm:$0xff] %v8375_v18  ;;  %10513 = vst [vmem:[#allocation115_spill] sm:$0xff] %v8381_v25  ;;  %v8387_v17 = vld [vmem:[%s8930_s2 + $0x368] sm:$0xff]  ;;  %v8393_v19 = vld [vmem:[%s8930_s2 + $0x378] sm:$0xff] }
 0x6f5   :  { %2520 = vmatpush2.msra.mxu0 %v8375_v18  ;;  %2591 = vmatpush2.msra.mxu1 %v8381_v25  ;;  %10514 = vst [vmem:[#allocation116_spill] sm:$0xff] %v8387_v17  ;;  %10515 = vst [vmem:[#allocation117_spill] sm:$0xff] %v8393_v19  ;;  %v8399_v18 = vld [vmem:[%s8930_s2 + $0x360] sm:$0xff]  ;;  %v8405_v25 = vld [vmem:[%s8930_s2 + $0x370] sm:$0xff] }
 0x6f6   :  { %2521 = vmatprep.subr.mxu0 %v8387_v17  ;;  %2592 = vmatprep.subr.mxu1 %v8393_v19  ;;  %10516 = vst [vmem:[#allocation118_spill] sm:$0xff] %v8399_v18  ;;  %10517 = vst [vmem:[#allocation119_spill] sm:$0xff] %v8405_v25  ;;  %v8411_v17 = vld [vmem:[%s8930_s2 + $0x348] sm:$0xff]  ;;  %v8417_v19 = vld [vmem:[%s8930_s2 + $0x358] sm:$0xff] }
 0x6f7   :  { %2522 = vmatpush2.msra.mxu0 %v8399_v18  ;;  %2593 = vmatpush2.msra.mxu1 %v8405_v25  ;;  %10518 = vst [vmem:[#allocation120_spill] sm:$0xff] %v8411_v17  ;;  %10519 = vst [vmem:[#allocation121_spill] sm:$0xff] %v8417_v19  ;;  %v8423_v18 = vld [vmem:[%s8930_s2 + $0x340] sm:$0xff]  ;;  %v8429_v25 = vld [vmem:[%s8930_s2 + $0x350] sm:$0xff] }
 0x6f8   :  { %2523 = vmatprep.subr.mxu0 %v8411_v17  ;;  %2594 = vmatprep.subr.mxu1 %v8417_v19  ;;  %10520 = vst [vmem:[#allocation122_spill] sm:$0xff] %v8423_v18  ;;  %10521 = vst [vmem:[#allocation123_spill] sm:$0xff] %v8429_v25  ;;  %v8435_v17 = vld [vmem:[%s8930_s2 + $0x328] sm:$0xff]  ;;  %v8441_v19 = vld [vmem:[%s8930_s2 + $0x338] sm:$0xff] }
 0x6f9   :  { %2524 = vmatpush2.msra.mxu0 %v8423_v18  ;;  %2595 = vmatpush2.msra.mxu1 %v8429_v25  ;;  %10522 = vst [vmem:[#allocation124_spill] sm:$0xff] %v8435_v17  ;;  %10523 = vst [vmem:[#allocation125_spill] sm:$0xff] %v8441_v19  ;;  %v8447_v18 = vld [vmem:[%s8930_s2 + $0x320] sm:$0xff]  ;;  %v8453_v25 = vld [vmem:[%s8930_s2 + $0x330] sm:$0xff] }
 0x6fa   :  { %2525 = vmatprep.subr.mxu0 %v8435_v17  ;;  %2596 = vmatprep.subr.mxu1 %v8441_v19  ;;  %10524 = vst [vmem:[#allocation126_spill] sm:$0xff] %v8447_v18  ;;  %10525 = vst [vmem:[#allocation127_spill] sm:$0xff] %v8453_v25  ;;  %v8459_v17 = vld [vmem:[%s8930_s2 + $0x308] sm:$0xff]  ;;  %v8465_v19 = vld [vmem:[%s8930_s2 + $0x318] sm:$0xff] }
 0x6fb   :  { %2526 = vmatpush2.msra.mxu0 %v8447_v18  ;;  %2597 = vmatpush2.msra.mxu1 %v8453_v25  ;;  %10526 = vst [vmem:[#allocation128_spill] sm:$0xff] %v8459_v17  ;;  %10527 = vst [vmem:[#allocation129_spill] sm:$0xff] %v8465_v19  ;;  %v8471_v18 = vld [vmem:[%s8930_s2 + $0x300] sm:$0xff]  ;;  %v8477_v25 = vld [vmem:[%s8930_s2 + $0x310] sm:$0xff] }
 0x6fc   :  { %2527 = vmatprep.subr.mxu0 %v8459_v17  ;;  %2598 = vmatprep.subr.mxu1 %v8465_v19  ;;  %10528 = vst [vmem:[#allocation130_spill] sm:$0xff] %v8471_v18  ;;  %10529 = vst [vmem:[#allocation131_spill] sm:$0xff] %v8477_v25  ;;  %v8483_v17 = vld [vmem:[%s8930_s2 + $0x2e8] sm:$0xff]  ;;  %v8489_v19 = vld [vmem:[%s8930_s2 + $0x2f8] sm:$0xff] }
 0x6fd   :  { %2528 = vmatpush2.msra.mxu0 %v8471_v18  ;;  %2599 = vmatpush2.msra.mxu1 %v8477_v25  ;;  %10530 = vst [vmem:[#allocation132_spill] sm:$0xff] %v8483_v17  ;;  %10531 = vst [vmem:[#allocation133_spill] sm:$0xff] %v8489_v19  ;;  %v8495_v18 = vld [vmem:[%s8930_s2 + $0x2e0] sm:$0xff]  ;;  %v8501_v25 = vld [vmem:[%s8930_s2 + $0x2f0] sm:$0xff] }
 0x6fe   :  { %2529 = vmatprep.subr.mxu0 %v8483_v17  ;;  %2600 = vmatprep.subr.mxu1 %v8489_v19  ;;  %10532 = vst [vmem:[#allocation134_spill] sm:$0xff] %v8495_v18  ;;  %10533 = vst [vmem:[#allocation135_spill] sm:$0xff] %v8501_v25  ;;  %v8507_v17 = vld [vmem:[%s8930_s2 + $0x2c8] sm:$0xff]  ;;  %v8513_v19 = vld [vmem:[%s8930_s2 + $0x2d8] sm:$0xff] }
 0x6ff   :  { %2530 = vmatpush2.msra.mxu0 %v8495_v18  ;;  %2601 = vmatpush2.msra.mxu1 %v8501_v25  ;;  %10534 = vst [vmem:[#allocation136_spill] sm:$0xff] %v8507_v17  ;;  %10535 = vst [vmem:[#allocation137_spill] sm:$0xff] %v8513_v19  ;;  %v8519_v18 = vld [vmem:[%s8930_s2 + $0x2c0] sm:$0xff]  ;;  %v8525_v25 = vld [vmem:[%s8930_s2 + $0x2d0] sm:$0xff] }
 0x700   :  { %2531 = vmatprep.subr.mxu0 %v8507_v17  ;;  %2602 = vmatprep.subr.mxu1 %v8513_v19  ;;  %10536 = vst [vmem:[#allocation138_spill] sm:$0xff] %v8519_v18  ;;  %10537 = vst [vmem:[#allocation139_spill] sm:$0xff] %v8525_v25  ;;  %v8531_v17 = vld [vmem:[%s8930_s2 + $0x2a8] sm:$0xff]  ;;  %v8537_v19 = vld [vmem:[%s8930_s2 + $0x2b8] sm:$0xff] }
 0x701   :  { %2532 = vmatpush2.msra.mxu0 %v8519_v18  ;;  %2603 = vmatpush2.msra.mxu1 %v8525_v25  ;;  %10538 = vst [vmem:[#allocation140_spill] sm:$0xff] %v8531_v17  ;;  %10539 = vst [vmem:[#allocation141_spill] sm:$0xff] %v8537_v19  ;;  %v8543_v18 = vld [vmem:[%s8930_s2 + $0x2a0] sm:$0xff]  ;;  %v8549_v25 = vld [vmem:[%s8930_s2 + $0x2b0] sm:$0xff] }
 0x702   :  { %2533 = vmatprep.subr.mxu0 %v8531_v17  ;;  %2604 = vmatprep.subr.mxu1 %v8537_v19  ;;  %10540 = vst [vmem:[#allocation142_spill] sm:$0xff] %v8543_v18  ;;  %10541 = vst [vmem:[#allocation143_spill] sm:$0xff] %v8549_v25  ;;  %v8555_v17 = vld [vmem:[%s8930_s2 + $0x288] sm:$0xff]  ;;  %v8561_v19 = vld [vmem:[%s8930_s2 + $0x298] sm:$0xff] }
 0x703   :  { %2534 = vmatpush2.msra.mxu0 %v8543_v18  ;;  %2605 = vmatpush2.msra.mxu1 %v8549_v25  ;;  %10542 = vst [vmem:[#allocation144_spill] sm:$0xff] %v8555_v17  ;;  %10543 = vst [vmem:[#allocation145_spill] sm:$0xff] %v8561_v19  ;;  %v8567_v18 = vld [vmem:[%s8930_s2 + $0x280] sm:$0xff]  ;;  %v8573_v25 = vld [vmem:[%s8930_s2 + $0x290] sm:$0xff] }
 0x704   :  { %2535 = vmatprep.subr.mxu0 %v8555_v17  ;;  %2606 = vmatprep.subr.mxu1 %v8561_v19  ;;  %10544 = vst [vmem:[#allocation146_spill] sm:$0xff] %v8567_v18  ;;  %10545 = vst [vmem:[#allocation147_spill] sm:$0xff] %v8573_v25  ;;  %v8579_v17 = vld [vmem:[%s8930_s2 + $0x268] sm:$0xff]  ;;  %v8585_v19 = vld [vmem:[%s8930_s2 + $0x278] sm:$0xff] }
 0x705   :  { %2536 = vmatpush2.msra.mxu0 %v8567_v18  ;;  %2607 = vmatpush2.msra.mxu1 %v8573_v25  ;;  %10546 = vst [vmem:[#allocation148_spill] sm:$0xff] %v8579_v17  ;;  %10547 = vst [vmem:[#allocation149_spill] sm:$0xff] %v8585_v19  ;;  %v8591_v18 = vld [vmem:[%s8930_s2 + $0x260] sm:$0xff]  ;;  %v8597_v25 = vld [vmem:[%s8930_s2 + $0x270] sm:$0xff] }
 0x706   :  { %2537 = vmatprep.subr.mxu0 %v8579_v17  ;;  %2608 = vmatprep.subr.mxu1 %v8585_v19  ;;  %10548 = vst [vmem:[#allocation150_spill] sm:$0xff] %v8591_v18  ;;  %10549 = vst [vmem:[#allocation151_spill] sm:$0xff] %v8597_v25  ;;  %v8603_v17 = vld [vmem:[%s8930_s2 + $0x248] sm:$0xff]  ;;  %v8609_v19 = vld [vmem:[%s8930_s2 + $0x258] sm:$0xff] }
 0x707   :  { %2538 = vmatpush2.msra.mxu0 %v8591_v18  ;;  %2609 = vmatpush2.msra.mxu1 %v8597_v25  ;;  %10550 = vst [vmem:[#allocation152_spill] sm:$0xff] %v8603_v17  ;;  %10551 = vst [vmem:[#allocation153_spill] sm:$0xff] %v8609_v19  ;;  %v8615_v18 = vld [vmem:[%s8930_s2 + $0x240] sm:$0xff]  ;;  %v8621_v25 = vld [vmem:[%s8930_s2 + $0x250] sm:$0xff] }
 0x708   :  { %2539 = vmatprep.subr.mxu0 %v8603_v17  ;;  %2610 = vmatprep.subr.mxu1 %v8609_v19  ;;  %10552 = vst [vmem:[#allocation154_spill] sm:$0xff] %v8615_v18  ;;  %10553 = vst [vmem:[#allocation155_spill] sm:$0xff] %v8621_v25  ;;  %v8627_v17 = vld [vmem:[%s8930_s2 + $0x228] sm:$0xff]  ;;  %v8633_v19 = vld [vmem:[%s8930_s2 + $0x238] sm:$0xff] }
 0x709   :  { %2540 = vmatpush2.msra.mxu0 %v8615_v18  ;;  %2611 = vmatpush2.msra.mxu1 %v8621_v25  ;;  %10554 = vst [vmem:[#allocation156_spill] sm:$0xff] %v8627_v17  ;;  %10555 = vst [vmem:[#allocation157_spill] sm:$0xff] %v8633_v19  ;;  %v8639_v18 = vld [vmem:[%s8930_s2 + $0x220] sm:$0xff]  ;;  %v8645_v25 = vld [vmem:[%s8930_s2 + $0x230] sm:$0xff] }
 0x70a   :  { %2541 = vmatprep.subr.mxu0 %v8627_v17  ;;  %2612 = vmatprep.subr.mxu1 %v8633_v19  ;;  %10556 = vst [vmem:[#allocation158_spill] sm:$0xff] %v8639_v18  ;;  %10557 = vst [vmem:[#allocation159_spill] sm:$0xff] %v8645_v25  ;;  %v8651_v17 = vld [vmem:[%s8930_s2 + $0x208] sm:$0xff]  ;;  %v8657_v19 = vld [vmem:[%s8930_s2 + $0x218] sm:$0xff] }
 0x70b   :  { %2542 = vmatpush2.msra.mxu0 %v8639_v18  ;;  %2613 = vmatpush2.msra.mxu1 %v8645_v25  ;;  %10558 = vst [vmem:[#allocation160_spill] sm:$0xff] %v8651_v17  ;;  %10559 = vst [vmem:[#allocation161_spill] sm:$0xff] %v8657_v19  ;;  %v8663_v18 = vld [vmem:[%s8930_s2 + $0x200] sm:$0xff]  ;;  %v8669_v25 = vld [vmem:[%s8930_s2 + $0x210] sm:$0xff] }
 0x70c   :  { %2543 = vmatprep.subr.mxu0 %v8651_v17  ;;  %2614 = vmatprep.subr.mxu1 %v8657_v19  ;;  %10560 = vst [vmem:[#allocation162_spill] sm:$0xff] %v8663_v18  ;;  %10561 = vst [vmem:[#allocation163_spill] sm:$0xff] %v8669_v25 }
 0x70d   :  { %2544 = vmatpush2.msra.mxu0 %v8663_v18  ;;  %2615 = vmatpush2.msra.mxu1 %v8669_v25 }
 0x70e   :  { %2652 = vmatprep.subr.mxu0 %v7680_v22  ;;  %2723 = vmatprep.subr.mxu1 %v7683_v21 }
 0x76c   :  { %v2206_v17 = vpop.f32.mrf.mxu0  ;;  %v2277_v31 = vpop.f32.mrf.mxu1 }
 0x76d   :  { %v2207_v19 = vadd.f32 %v2206_v17, %v5247_v30  ;;  %v2278_v33 = vadd.f32 %v2277_v31, %v10414_v38 }
 0x76e   :  { %v2208_v43 = vpop.f32.mrf.mxu0  ;;  %v2279_v29 = vpop.f32.mrf.mxu1 }
 0x76f   :  { %v3087_v32 = vmul.f32 -1.442695, %v2207_v19  ;;  %v2209_v24 = vadd.f32 %v2208_v43, %v10413_v55  ;;  %v3089_v20 = vmul.f32 -1.442695, %v2278_v33  ;;  %v2280_v22 = vadd.f32 %v2279_v29, %v10415_v45  ;;  %v3090_v43 = vld [vmem:[%s8928_s0 + $0xc0] sm:$0xff]  ;;  %v3091_v33 = vld [vmem:[%s8928_s0 + $0xc8] sm:$0xff] }
 0x770   :  { %v3092_v55 = vld [vmem:[%s8928_s0 + $0xd0] sm:$0xff] }
 0x771   :  { %3294 = vpow2.f32 %v3087_v32  ;;  %v3088_v18 = vmul.f32 -1.442695, %v2209_v24 }
 0x773   :  { %3296 = vpow2.f32 %v3088_v18 }
 0x774   :  { %3298 = vpow2.f32 %v3089_v20 }
 0x77e   :  { %v3295_v25 = vpop.eup %3294 }
 0x77f   :  { %v2291_v16 = vadd.f32 1.0, %v3295_v25 }
 0x780   :  { %v3297_v21 = vpop.eup %3296 }
 0x781   :  { %3300 = vrcp.f32 %v2291_v16  ;;  %v2292_v17 = vadd.f32 1.0, %v3297_v21  ;;  %v3299_v19 = vpop.eup %3298 }
 0x782   :  { %3302 = vtanh.f32 %v2280_v22  ;;  %v2293_v21 = vadd.f32 1.0, %v3299_v19  ;;  %v3093_v19 = vld [vmem:[%s8928_s0 + $0xd8] sm:$0xff] }
 0x783   :  { %3304 = vrcp.f32 %v2292_v17 }
 0x78d   :  { %v2377_v18 = vpop.f32.mrf.mxu0 }
 0x78e   :  { %v3301_v31 = vpop.eup %3300  ;;  %v2453_v24 = vadd.f32 %v3090_v43, %v2377_v18  ;;  %v2448_v43 = vpop.f32.mrf.mxu1 }
 0x78f   :  { %v3303_v29 = vpop.eup %3302  ;;  %v2379_v32 = vpop.f32.mrf.mxu0  ;;  %v2455_v18 = vadd.f32 %v3092_v55, %v2448_v43 }
 0x790   :  { %v3305_v25 = vpop.eup %3304  ;;  %v3094_v20 = vmul.f32 -1.442695, %v2453_v24  ;;  %v2454_v16 = vadd.f32 %v3091_v33, %v2379_v32  ;;  %v2302_v17 = vmul.f32 %v3303_v29, %v3301_v31 }
 0x791   :  { %v2301_v22 = vmul.f32 %v3305_v25, %v7697_v59  ;;  %v2450_v59 = vpop.f32.mrf.mxu1  ;;  %v3096_v33 = vmul.f32 -1.442695, %v2455_v18 }
 0x792   :  { %3306 = vpow2.f32 %v3094_v20  ;;  %v3095_v45 = vmul.f32 -1.442695, %v2454_v16  ;;  %v2456_v24 = vadd.f32 %v3093_v19, %v2450_v59 }
 0x793   :  { %v8685_v38 = vadd.f32 %v2302_v17, %v2301_v22 }
 0x794   :  { %3308 = vpow2.f32 %v3095_v45 }
 0x795   :  { %3310 = vrcp.f32 %v2293_v21 }
 0x796   :  { %3312 = vtanh.f32 %v8685_v38 }
 0x797   :  { %3314 = vpow2.f32 %v3096_v33 }
 0x79f   :  { %v3307_v31 = vpop.eup %3306 }
 0x7a0   :  { %v2466_v29 = vadd.f32 1.0, %v3307_v31 }
 0x7a1   :  { %v3309_v32 = vpop.eup %3308 }
 0x7a2   :  { %v3311_v45 = vpop.eup %3310  ;;  %3316 = vrcp.f32 %v2466_v29  ;;  %v2467_v25 = vadd.f32 1.0, %v3309_v32  ;;  %v10607_v29 = vld [vmem:[#allocation62_spill] sm:$0xff]  ;;  %v10608_v32 = vld [vmem:[#allocation63_spill] sm:$0xff] }
 0x7a3   :  { %v3313_v20 = vpop.eup %3312  ;;  %3318 = vtanh.f32 %v2456_v24 }
 0x7a4   :  { %3320 = vrcp.f32 %v2467_v25  ;;  %v2305_v16 = vmul.f32 %v3313_v20, %v3311_v45  ;;  %v3315_v55 = vpop.eup %3314  ;;  %v10609_v45 = vld [vmem:[#allocation64_spill] sm:$0xff]  ;;  %v10610_v25 = vld [vmem:[#allocation65_spill] sm:$0xff]  ;;  %v10611_v20 = vld [vmem:[#allocation66_spill] sm:$0xff] }
 0x7a5   :  { %v2468_v43 = vadd.f32 1.0, %v3315_v55  ;;  %v10613_v55 = vld [vmem:[#allocation68_spill] sm:$0xff] }
 0x7a6   :  { %2545 = vmatprep.mubr.f32.mxu0 %v2305_v16  ;;  %2616 = vmatprep.mubr.f32.mxu1 %v2305_v16  ;;  %v10612_v16 = vld [vmem:[#allocation67_spill] sm:$0xff] }
 0x7a7   :  { %3322 = vrcp.f32 %v2468_v43  ;;  %v10617_v43 = vld [vmem:[#allocation72_spill] sm:$0xff] }
 0x7af   :  { %v3317_v21 = vpop.eup %3316 }
 0x7b0   :  { %v3319_v22 = vpop.eup %3318 }
 0x7b1   :  { %v3321_v17 = vpop.eup %3320  ;;  %v2477_v19 = vmul.f32 %v3319_v22, %v3317_v21  ;;  %v10614_v21 = vld [vmem:[#allocation69_spill] sm:$0xff]  ;;  %v10615_v22 = vld [vmem:[#allocation70_spill] sm:$0xff] }
 0x7b2   :  { %v2476_v18 = vmul.f32 %v3321_v17, %v7707_v23  ;;  %v10562_v23 = vld [vmem:[#allocation16_spill] sm:$0xff]  ;;  %v10616_v17 = vld [vmem:[#allocation71_spill] sm:$0xff] }
 0x7b4   :  { %v8695_v59 = vadd.f32 %v2477_v19, %v2476_v18  ;;  %v3323_v33 = vpop.eup %3322  ;;  %v10618_v18 = vld [vmem:[#allocation73_spill] sm:$0xff]  ;;  %v10619_v19 = vld [vmem:[#allocation74_spill] sm:$0xff] }
 0x7b6   :  { %3324 = vtanh.f32 %v8695_v59 }
 0x7c3   :  { %v3325_v31 = vpop.eup %3324 }
 0x7c4   :  { %v8698_v24 = vmul.f32 %v3325_v31, %v3323_v33  ;;  %v10620_v33 = vld [vmem:[#allocation75_spill] sm:$0xff]  ;;  %v10621_v31 = vld [vmem:[#allocation76_spill] sm:$0xff] }
 0x7c6   :  { %2546 = vmatmul.mubr.f32.vlgmr.msra.gmra.mxu0 %v8698_v24  ;;  %2617 = vmatmul.mubr.f32.vlgmr.msra.gmra.mxu1 %v8698_v24 }
 0x7c7   :  { %2653 = vmatpush1.msra.mxu0 %v7714_v26  ;;  %2724 = vmatpush1.msra.mxu1 %v7717_v27  ;;  %v10563_v26 = vld [vmem:[#allocation24_spill] sm:$0xff]  ;;  %v10564_v27 = vld [vmem:[#allocation17_spill] sm:$0xff] }
 0x7c8   :  { %2654 = vmatprep.subr.mxu0 %v7720_v34  ;;  %2725 = vmatprep.subr.mxu1 %v7723_v28  ;;  %v10565_v34 = vld [vmem:[#allocation25_spill] sm:$0xff]  ;;  %v10566_v28 = vld [vmem:[#allocation18_spill] sm:$0xff] }
 0x7c9   :  { %2655 = vmatpush1.msra.mxu0 %v7726_v35  ;;  %2726 = vmatpush1.msra.mxu1 %v7729_v36  ;;  %v10567_v35 = vld [vmem:[#allocation26_spill] sm:$0xff]  ;;  %v10568_v36 = vld [vmem:[#allocation19_spill] sm:$0xff] }
 0x7ca   :  { %2656 = vmatprep.subr.mxu0 %v7732_v37  ;;  %2727 = vmatprep.subr.mxu1 %v7735_v39  ;;  %v10569_v37 = vld [vmem:[#allocation28_spill] sm:$0xff]  ;;  %v10570_v39 = vld [vmem:[#allocation21_spill] sm:$0xff] }
 0x7cb   :  { %2657 = vmatpush1.msra.mxu0 %v7738_v40  ;;  %2728 = vmatpush1.msra.mxu1 %v7741_v41  ;;  %v10571_v40 = vld [vmem:[#allocation30_spill] sm:$0xff]  ;;  %v10572_v41 = vld [vmem:[#allocation23_spill] sm:$0xff] }
 0x7cc   :  { %2658 = vmatprep.subr.mxu0 %v7744_v42  ;;  %2729 = vmatprep.subr.mxu1 %v7747_v44  ;;  %v10573_v42 = vld [vmem:[#allocation32_spill] sm:$0xff]  ;;  %v10574_v44 = vld [vmem:[#allocation27_spill] sm:$0xff] }
 0x7cd   :  { %2659 = vmatpush1.msra.mxu0 %v7750_v46  ;;  %2730 = vmatpush1.msra.mxu1 %v7753_v47  ;;  %v10575_v46 = vld [vmem:[#allocation34_spill] sm:$0xff]  ;;  %v10576_v47 = vld [vmem:[#allocation29_spill] sm:$0xff] }
 0x7ce   :  { %2660 = vmatprep.subr.mxu0 %v7756_v53  ;;  %2731 = vmatprep.subr.mxu1 %v7759_v58  ;;  %v10577_v53 = vld [vmem:[#allocation35_spill] sm:$0xff] }
 0x7cf   :  { %2661 = vmatpush1.msra.mxu0 %v7762_v14  ;;  %2732 = vmatpush1.msra.mxu1 %v7765_v62  ;;  %v10578_v58 = vld [vmem:[#allocation31_spill] sm:$0xff]  ;;  %v10579_v14 = vmov 0.0   ;;  %v10580_v62 = vld [vmem:[#allocation37_spill] sm:$0xff] }
 0x7d0   :  { %2662 = vmatprep.subr.mxu0 %v7768_v51  ;;  %2733 = vmatprep.subr.mxu1 %v7771_v49  ;;  %v10581_v51 = vld [vmem:[#allocation33_spill] sm:$0xff]  ;;  %v10582_v49 = vld [vmem:[#allocation39_spill] sm:$0xff] }
 0x7d1   :  { %2663 = vmatpush1.msra.mxu0 %v7774_v4  ;;  %2734 = vmatpush1.msra.mxu1 %v7777_v9  ;;  %v10583_v4 = vld [vmem:[#allocation36_spill] sm:$0xff]  ;;  %v10584_v9 = vld [vmem:[#allocation41_spill] sm:$0xff] }
 0x7d2   :  { %2664 = vmatprep.subr.mxu0 %v7780_v1  ;;  %2735 = vmatprep.subr.mxu1 %v7783_v60  ;;  %v10585_v1 = vld [vmem:[#allocation38_spill] sm:$0xff]  ;;  %v10586_v60 = vld [vmem:[#allocation43_spill] sm:$0xff] }
 0x7d3   :  { %2665 = vmatpush1.msra.mxu0 %v7786_v57  ;;  %2736 = vmatpush1.msra.mxu1 %v7789_v54  ;;  %v10587_v57 = vld [vmem:[#allocation40_spill] sm:$0xff] }
 0x7d4   :  { %2666 = vmatprep.subr.mxu0 %v7792_v52  ;;  %2737 = vmatprep.subr.mxu1 %v7795_v63  ;;  %v10588_v54 = vld [vmem:[#allocation44_spill] sm:$0xff]  ;;  %v10589_v52 = vld [vmem:[#allocation42_spill] sm:$0xff]  ;;  %v10590_v63 = vld [vmem:[#allocation45_spill] sm:$0xff] }
 0x7d5   :  { %2667 = vmatpush1.msra.mxu0 %v7798_v0  ;;  %2738 = vmatpush1.msra.mxu1 %v7801_v50  ;;  %v10591_v0 = vld [vmem:[#allocation46_spill] sm:$0xff]  ;;  %v10592_v50 = vld [vmem:[#allocation47_spill] sm:$0xff] }
 0x7d6   :  { %2668 = vmatprep.subr.mxu0 %v7804_v56  ;;  %2739 = vmatprep.subr.mxu1 %v7807_v61  ;;  %v10593_v56 = vld [vmem:[#allocation48_spill] sm:$0xff]  ;;  %v10594_v61 = vld [vmem:[#allocation49_spill] sm:$0xff] }
 0x7d7   :  { %2669 = vmatpush1.msra.mxu0 %v7810_v2  ;;  %2740 = vmatpush1.msra.mxu1 %v7813_v48  ;;  %v10595_v2 = vld [vmem:[#allocation50_spill] sm:$0xff]  ;;  %v10596_v48 = vld [vmem:[#allocation51_spill] sm:$0xff] }
 0x7d8   :  { %2670 = vmatprep.subr.mxu0 %v7816_v3  ;;  %2741 = vmatprep.subr.mxu1 %v7819_v8  ;;  %v10597_v3 = vld [vmem:[#allocation52_spill] sm:$0xff]  ;;  %v10598_v8 = vld [vmem:[#allocation53_spill] sm:$0xff] }
 0x7d9   :  { %2671 = vmatpush1.msra.mxu0 %v7822_v5  ;;  %2742 = vmatpush1.msra.mxu1 %v7825_v6  ;;  %v10599_v5 = vld [vmem:[#allocation54_spill] sm:$0xff]  ;;  %v10600_v6 = vld [vmem:[#allocation55_spill] sm:$0xff] }
 0x7da   :  { %2672 = vmatprep.subr.mxu0 %v7828_v7  ;;  %2743 = vmatprep.subr.mxu1 %v7831_v10  ;;  %v10601_v7 = vld [vmem:[#allocation56_spill] sm:$0xff]  ;;  %v10602_v10 = vld [vmem:[#allocation57_spill] sm:$0xff] }
 0x7db   :  { %2673 = vmatpush1.msra.mxu0 %v7834_v11  ;;  %2744 = vmatpush1.msra.mxu1 %v7837_v12  ;;  %v10603_v11 = vld [vmem:[#allocation58_spill] sm:$0xff]  ;;  %v10604_v12 = vld [vmem:[#allocation59_spill] sm:$0xff] }
 0x7dc   :  { %2674 = vmatprep.subr.mxu0 %v7840_v13  ;;  %2745 = vmatprep.subr.mxu1 %v7843_v15  ;;  %v10605_v13 = vld [vmem:[#allocation60_spill] sm:$0xff]  ;;  %v10606_v15 = vld [vmem:[#allocation61_spill] sm:$0xff] }
 0x7dd   :  { %2675 = vmatpush1.msra.mxu0 %v10562_v23  ;;  %2746 = vmatpush1.msra.mxu1 %v10563_v26  ;;  %v10623_v23 = vld [vmem:[#allocation78_spill] sm:$0xff]  ;;  %v10624_v26 = vld [vmem:[#allocation79_spill] sm:$0xff] }
 0x7de   :  { %2676 = vmatprep.subr.mxu0 %v10564_v27  ;;  %2747 = vmatprep.subr.mxu1 %v10565_v34  ;;  %v10625_v27 = vld [vmem:[#allocation80_spill] sm:$0xff]  ;;  %v10626_v34 = vld [vmem:[#allocation81_spill] sm:$0xff] }
 0x7df   :  { %2677 = vmatpush1.msra.mxu0 %v10566_v28  ;;  %2748 = vmatpush1.msra.mxu1 %v10567_v35  ;;  %v10627_v28 = vld [vmem:[#allocation82_spill] sm:$0xff]  ;;  %v10628_v35 = vld [vmem:[#allocation83_spill] sm:$0xff] }
 0x7e0   :  { %2678 = vmatprep.subr.mxu0 %v10568_v36  ;;  %2749 = vmatprep.subr.mxu1 %v10569_v37  ;;  %v10629_v36 = vld [vmem:[#allocation84_spill] sm:$0xff]  ;;  %v10630_v37 = vld [vmem:[#allocation85_spill] sm:$0xff] }
 0x7e1   :  { %2679 = vmatpush1.msra.mxu0 %v10570_v39  ;;  %2750 = vmatpush1.msra.mxu1 %v10571_v40  ;;  %v10631_v39 = vld [vmem:[#allocation86_spill] sm:$0xff]  ;;  %v10632_v40 = vld [vmem:[#allocation87_spill] sm:$0xff] }
 0x7e2   :  { %2680 = vmatprep.subr.mxu0 %v10572_v41  ;;  %2751 = vmatprep.subr.mxu1 %v10573_v42  ;;  %v10633_v41 = vld [vmem:[#allocation88_spill] sm:$0xff]  ;;  %v10634_v42 = vld [vmem:[#allocation89_spill] sm:$0xff] }
 0x7e3   :  { %2681 = vmatpush1.msra.mxu0 %v10574_v44  ;;  %2752 = vmatpush1.msra.mxu1 %v10575_v46  ;;  %v10635_v44 = vld [vmem:[#allocation90_spill] sm:$0xff]  ;;  %v10636_v46 = vld [vmem:[#allocation91_spill] sm:$0xff] }
 0x7e4   :  { %2682 = vmatprep.subr.mxu0 %v10576_v47  ;;  %2753 = vmatprep.subr.mxu1 %v10577_v53  ;;  %v10637_v47 = vld [vmem:[#allocation92_spill] sm:$0xff]  ;;  %v10638_v53 = vld [vmem:[#allocation93_spill] sm:$0xff] }
 0x7e5   :  { %2683 = vmatpush1.msra.mxu0 %v10578_v58  ;;  %2716 = vmatprep.mubr.f32.mxu0 %v10579_v14  ;;  %v10639_v58 = vld [vmem:[#allocation94_spill] sm:$0xff] }
 0x7e6   :  { %2754 = vmatpush1.msra.mxu1 %v10580_v62  ;;  %2787 = vmatprep.mubr.f32.mxu1 %v10579_v14  ;;  %v10640_v14 = vld [vmem:[#allocation95_spill] sm:$0xff]  ;;  %v10641_v62 = vld [vmem:[#allocation96_spill] sm:$0xff] }
 0x7e7   :  { %2717 = vmatmul.mubr.f32.vlgmr.msra.gmra.mxu0 %v8698_v24  ;;  %2788 = vmatmul.mubr.f32.vlgmr.msra.gmra.mxu1 %v8698_v24  ;;  %v10622_v24 = vld [vmem:[#allocation77_spill] sm:$0xff] }
 0x7e8   :  { %2822 = vmatprep.subr.mxu0 %v10581_v51  ;;  %2893 = vmatprep.subr.mxu1 %v10582_v49  ;;  %v10642_v51 = vld [vmem:[#allocation97_spill] sm:$0xff]  ;;  %v10643_v49 = vld [vmem:[#allocation98_spill] sm:$0xff] }
 0x7e9   :  { %2823 = vmatpush1.msra.mxu0 %v10583_v4  ;;  %2894 = vmatpush1.msra.mxu1 %v10584_v9  ;;  %v10644_v4 = vld [vmem:[#allocation99_spill] sm:$0xff]  ;;  %v10645_v9 = vld [vmem:[#allocation100_spill] sm:$0xff] }
 0x7ea   :  { %2824 = vmatprep.subr.mxu0 %v10585_v1  ;;  %2895 = vmatprep.subr.mxu1 %v10586_v60  ;;  %v10646_v1 = vld [vmem:[#allocation101_spill] sm:$0xff]  ;;  %v10647_v60 = vld [vmem:[#allocation102_spill] sm:$0xff] }
 0x7eb   :  { %2825 = vmatpush1.msra.mxu0 %v10587_v57  ;;  %2896 = vmatpush1.msra.mxu1 %v10588_v54  ;;  %v10648_v57 = vld [vmem:[#allocation103_spill] sm:$0xff]  ;;  %v10649_v54 = vld [vmem:[#allocation104_spill] sm:$0xff] }
 0x7ec   :  { %2826 = vmatprep.subr.mxu0 %v10589_v52  ;;  %2897 = vmatprep.subr.mxu1 %v10590_v63  ;;  %v10650_v52 = vld [vmem:[#allocation105_spill] sm:$0xff]  ;;  %v10651_v63 = vld [vmem:[#allocation106_spill] sm:$0xff] }
 0x7ed   :  { %2827 = vmatpush1.msra.mxu0 %v10591_v0  ;;  %2898 = vmatpush1.msra.mxu1 %v10592_v50  ;;  %v10652_v0 = vld [vmem:[#allocation107_spill] sm:$0xff]  ;;  %v10653_v50 = vld [vmem:[#allocation108_spill] sm:$0xff] }
 0x7ee   :  { %2828 = vmatprep.subr.mxu0 %v10593_v56  ;;  %2899 = vmatprep.subr.mxu1 %v10594_v61  ;;  %v10654_v56 = vld [vmem:[#allocation109_spill] sm:$0xff]  ;;  %v10655_v61 = vld [vmem:[#allocation110_spill] sm:$0xff] }
 0x7ef   :  { %2829 = vmatpush1.msra.mxu0 %v10595_v2  ;;  %2900 = vmatpush1.msra.mxu1 %v10596_v48  ;;  %v10656_v2 = vld [vmem:[#allocation111_spill] sm:$0xff]  ;;  %v10657_v48 = vld [vmem:[#allocation112_spill] sm:$0xff] }
 0x7f0   :  { %2830 = vmatprep.subr.mxu0 %v10597_v3  ;;  %2901 = vmatprep.subr.mxu1 %v10598_v8  ;;  %v10658_v3 = vld [vmem:[#allocation113_spill] sm:$0xff]  ;;  %v10659_v8 = vld [vmem:[#allocation114_spill] sm:$0xff] }
 0x7f1   :  { %2831 = vmatpush1.msra.mxu0 %v10599_v5  ;;  %2902 = vmatpush1.msra.mxu1 %v10600_v6  ;;  %v10660_v5 = vld [vmem:[#allocation115_spill] sm:$0xff]  ;;  %v10661_v6 = vld [vmem:[#allocation116_spill] sm:$0xff] }
 0x7f2   :  { %2832 = vmatprep.subr.mxu0 %v10601_v7  ;;  %2903 = vmatprep.subr.mxu1 %v10602_v10  ;;  %v10662_v7 = vld [vmem:[#allocation117_spill] sm:$0xff]  ;;  %v10663_v10 = vld [vmem:[#allocation118_spill] sm:$0xff] }
 0x7f3   :  { %2833 = vmatpush1.msra.mxu0 %v10603_v11  ;;  %2904 = vmatpush1.msra.mxu1 %v10604_v12  ;;  %v10664_v11 = vld [vmem:[#allocation119_spill] sm:$0xff]  ;;  %v10665_v12 = vld [vmem:[#allocation120_spill] sm:$0xff] }
 0x7f4   :  { %2834 = vmatprep.subr.mxu0 %v10605_v13  ;;  %2905 = vmatprep.subr.mxu1 %v10606_v15  ;;  %v10666_v13 = vld [vmem:[#allocation121_spill] sm:$0xff]  ;;  %v10667_v15 = vld [vmem:[#allocation122_spill] sm:$0xff] }
 0x7f5   :  { %2835 = vmatpush1.msra.mxu0 %v10607_v29  ;;  %2906 = vmatpush1.msra.mxu1 %v10608_v32  ;;  %v10668_v29 = vld [vmem:[#allocation123_spill] sm:$0xff]  ;;  %v10669_v32 = vld [vmem:[#allocation124_spill] sm:$0xff] }
 0x7f6   :  { %2836 = vmatprep.subr.mxu0 %v10609_v45  ;;  %2907 = vmatprep.subr.mxu1 %v10610_v25  ;;  %v10670_v45 = vld [vmem:[#allocation125_spill] sm:$0xff]  ;;  %v10671_v25 = vld [vmem:[#allocation126_spill] sm:$0xff] }
 0x7f7   :  { %2837 = vmatpush1.msra.mxu0 %v10611_v20  ;;  %2908 = vmatpush1.msra.mxu1 %v10612_v16  ;;  %v10672_v20 = vld [vmem:[#allocation127_spill] sm:$0xff]  ;;  %v10673_v16 = vld [vmem:[#allocation128_spill] sm:$0xff] }
 0x7f8   :  { %2838 = vmatprep.subr.mxu0 %v10613_v55  ;;  %2909 = vmatprep.subr.mxu1 %v10614_v21  ;;  %v10674_v55 = vld [vmem:[#allocation129_spill] sm:$0xff]  ;;  %v10675_v21 = vld [vmem:[#allocation130_spill] sm:$0xff] }
 0x7f9   :  { %2839 = vmatpush1.msra.mxu0 %v10615_v22  ;;  %2910 = vmatpush1.msra.mxu1 %v10616_v17  ;;  %v10676_v22 = vld [vmem:[#allocation131_spill] sm:$0xff]  ;;  %v10677_v17 = vld [vmem:[#allocation132_spill] sm:$0xff] }
 0x7fa   :  { %2840 = vmatprep.subr.mxu0 %v10617_v43  ;;  %2911 = vmatprep.subr.mxu1 %v10618_v18  ;;  %v10678_v43 = vld [vmem:[#allocation133_spill] sm:$0xff]  ;;  %v10679_v18 = vld [vmem:[#allocation134_spill] sm:$0xff] }
 0x7fb   :  { %2841 = vmatpush1.msra.mxu0 %v10619_v19  ;;  %2912 = vmatpush1.msra.mxu1 %v10620_v33  ;;  %v10680_v19 = vld [vmem:[#allocation135_spill] sm:$0xff]  ;;  %v10681_v33 = vld [vmem:[#allocation136_spill] sm:$0xff] }
 0x7fc   :  { %2842 = vmatprep.subr.mxu0 %v10621_v31  ;;  %2913 = vmatprep.subr.mxu1 %v10622_v24  ;;  %v10682_v31 = vld [vmem:[#allocation137_spill] sm:$0xff]  ;;  %v10683_v24 = vld [vmem:[#allocation138_spill] sm:$0xff] }
 0x7fd   :  { %2843 = vmatpush1.msra.mxu0 %v10623_v23  ;;  %2914 = vmatpush1.msra.mxu1 %v10624_v26  ;;  %v10684_v23 = vld [vmem:[#allocation139_spill] sm:$0xff]  ;;  %v10685_v26 = vld [vmem:[#allocation140_spill] sm:$0xff] }
 0x7fe   :  { %2844 = vmatprep.subr.mxu0 %v10625_v27  ;;  %2915 = vmatprep.subr.mxu1 %v10626_v34  ;;  %v10686_v27 = vld [vmem:[#allocation141_spill] sm:$0xff]  ;;  %v10687_v34 = vld [vmem:[#allocation142_spill] sm:$0xff] }
 0x7ff   :  { %2845 = vmatpush1.msra.mxu0 %v10627_v28  ;;  %2916 = vmatpush1.msra.mxu1 %v10628_v35  ;;  %v10688_v28 = vld [vmem:[#allocation143_spill] sm:$0xff]  ;;  %v10689_v35 = vld [vmem:[#allocation144_spill] sm:$0xff] }
 0x800   :  { %2846 = vmatprep.subr.mxu0 %v10629_v36  ;;  %2917 = vmatprep.subr.mxu1 %v10630_v37  ;;  %v10690_v36 = vld [vmem:[#allocation145_spill] sm:$0xff]  ;;  %v10691_v37 = vld [vmem:[#allocation146_spill] sm:$0xff] }
 0x801   :  { %2847 = vmatpush1.msra.mxu0 %v10631_v39  ;;  %2918 = vmatpush1.msra.mxu1 %v10632_v40  ;;  %v10692_v39 = vld [vmem:[#allocation147_spill] sm:$0xff]  ;;  %v10693_v40 = vld [vmem:[#allocation148_spill] sm:$0xff] }
 0x802   :  { %2848 = vmatprep.subr.mxu0 %v10633_v41  ;;  %2919 = vmatprep.subr.mxu1 %v10634_v42  ;;  %v10694_v41 = vld [vmem:[#allocation149_spill] sm:$0xff]  ;;  %v10695_v42 = vld [vmem:[#allocation150_spill] sm:$0xff] }
 0x803   :  { %2849 = vmatpush1.msra.mxu0 %v10635_v44  ;;  %2920 = vmatpush1.msra.mxu1 %v10636_v46  ;;  %v10696_v44 = vld [vmem:[#allocation151_spill] sm:$0xff]  ;;  %v10697_v46 = vld [vmem:[#allocation152_spill] sm:$0xff] }
 0x804   :  { %2850 = vmatprep.subr.mxu0 %v10637_v47  ;;  %2921 = vmatprep.subr.mxu1 %v10638_v53  ;;  %v10698_v47 = vld [vmem:[#allocation153_spill] sm:$0xff]  ;;  %v10699_v53 = vld [vmem:[#allocation154_spill] sm:$0xff] }
 0x805   :  { %2851 = vmatpush1.msra.mxu0 %v10639_v58  ;;  %2922 = vmatpush1.msra.mxu1 %v10640_v14  ;;  %v10700_v58 = vld [vmem:[#allocation155_spill] sm:$0xff]  ;;  %v10701_v14 = vld [vmem:[#allocation156_spill] sm:$0xff] }
 0x806   :  { %2852 = vmatprep.subr.mxu0 %v10641_v62  ;;  %2923 = vmatprep.subr.mxu1 %v10642_v51  ;;  %v10702_v62 = vld [vmem:[#allocation157_spill] sm:$0xff]  ;;  %v10703_v51 = vld [vmem:[#allocation158_spill] sm:$0xff] }
 0x807   :  { %2853 = vmatpush1.msra.mxu0 %v10643_v49  ;;  %2924 = vmatpush1.msra.mxu1 %v10644_v4  ;;  %v10704_v49 = vld [vmem:[#allocation159_spill] sm:$0xff]  ;;  %v10705_v4 = vld [vmem:[#allocation160_spill] sm:$0xff] }
 0x808   :  { %2854 = vmatprep.subr.mxu0 %v10645_v9  ;;  %2925 = vmatprep.subr.mxu1 %v10646_v1  ;;  %v10706_v9 = vld [vmem:[#allocation161_spill] sm:$0xff]  ;;  %v10707_v1 = vld [vmem:[#allocation162_spill] sm:$0xff] }
 0x809   :  { %2855 = vmatpush2.msra.mxu0 %v10647_v60  ;;  %2926 = vmatpush2.msra.mxu1 %v10648_v57  ;;  %v10708_v60 = vld [vmem:[#allocation163_spill] sm:$0xff] }
 0x80a   :  { %2856 = vmatprep.subr.mxu0 %v10649_v54  ;;  %2927 = vmatprep.subr.mxu1 %v10650_v52 }
 0x80b   :  { %2857 = vmatpush2.msra.mxu0 %v10651_v63  ;;  %2928 = vmatpush2.msra.mxu1 %v10652_v0  ;;  %v10709_v0 = vld [vmem:[#allocation20_spill] sm:$0xff] }
 0x80c   :  { %2858 = vmatprep.subr.mxu0 %v10653_v50  ;;  %2929 = vmatprep.subr.mxu1 %v10654_v56 }
 0x80d   :  { %2859 = vmatpush2.msra.mxu0 %v10655_v61  ;;  %2930 = vmatpush2.msra.mxu1 %v10656_v2  ;;  %v10710_v2 = vld [vmem:[#allocation15_spill] sm:$0xff] }
 0x80e   :  { %2860 = vmatprep.subr.mxu0 %v10657_v48  ;;  %2931 = vmatprep.subr.mxu1 %v10658_v3 }
 0x80f   :  { %2861 = vmatpush2.msra.mxu0 %v10659_v8  ;;  %2932 = vmatpush2.msra.mxu1 %v10660_v5 }
 0x810   :  { %2862 = vmatprep.subr.mxu0 %v10661_v6  ;;  %2933 = vmatprep.subr.mxu1 %v10662_v7  ;;  %v10711_v6 = vld [vmem:[#allocation22_spill] sm:$0xff] }
 0x811   :  { %2863 = vmatpush2.msra.mxu0 %v10663_v10  ;;  %2934 = vmatpush2.msra.mxu1 %v10664_v11 }
 0x812   :  { %2864 = vmatprep.subr.mxu0 %v10665_v12  ;;  %2935 = vmatprep.subr.mxu1 %v10666_v13  ;;  %v3100_v13 = vld [vmem:[%s8928_s0 + $0xe0] sm:$0xff] }
 0x813   :  { %2865 = vmatpush2.msra.mxu0 %v10667_v15  ;;  %2936 = vmatpush2.msra.mxu1 %v10668_v29 }
 0x814   :  { %2866 = vmatprep.subr.mxu0 %v10669_v32  ;;  %2937 = vmatprep.subr.mxu1 %v10670_v45  ;;  %v3101_v32 = vld [vmem:[%s8928_s0 + $0xe8] sm:$0xff] }
 0x815   :  { %2867 = vmatpush2.msra.mxu0 %v10671_v25  ;;  %2938 = vmatpush2.msra.mxu1 %v10672_v20 }
 0x816   :  { %2868 = vmatprep.subr.mxu0 %v10673_v16  ;;  %2939 = vmatprep.subr.mxu1 %v10674_v55 }
 0x817   :  { %2869 = vmatpush2.msra.mxu0 %v10675_v21  ;;  %2940 = vmatpush2.msra.mxu1 %v10676_v22 }
 0x818   :  { %2870 = vmatprep.subr.mxu0 %v10677_v17  ;;  %2941 = vmatprep.subr.mxu1 %v10678_v43 }
 0x819   :  { %2871 = vmatpush2.msra.mxu0 %v10679_v18  ;;  %2942 = vmatpush2.msra.mxu1 %v10680_v19 }
 0x81a   :  { %2872 = vmatprep.subr.mxu0 %v10681_v33  ;;  %2943 = vmatprep.subr.mxu1 %v10682_v31  ;;  %v3102_v31 = vld [vmem:[%s8928_s0 + $0xf0] sm:$0xff] }
 0x81b   :  { %2873 = vmatpush2.msra.mxu0 %v10683_v24  ;;  %2944 = vmatpush2.msra.mxu1 %v10684_v23 }
 0x81c   :  { %2874 = vmatprep.subr.mxu0 %v10685_v26  ;;  %2945 = vmatprep.subr.mxu1 %v10686_v27  ;;  %v3103_v26 = vld [vmem:[%s8928_s0 + $0xf8] sm:$0xff]  ;;  %s4020_s0 = smov [#allocation10]  }
 0x81d   :  { %2875 = vmatpush2.msra.mxu0 %v10687_v34  ;;  %2946 = vmatpush2.msra.mxu1 %v10688_v28  ;;  %s3018_s17 = sshll.u32 %s4020_s0, 4  ;;  %s3019_s17 = int_to_ptr.vmem [resolvable:$true] %s3018_s17 }
 0x81e   :  { %2876 = vmatprep.subr.mxu0 %v10689_v35  ;;  %2947 = vmatprep.subr.mxu1 %v10690_v36  ;;  %s3970_s18 = scalar_lea.vmem %s3019_s17, 256  ;;  %p3975_p6 = scmp.lt.s32.totalorder %s3019_s17, %s3019_s17 }
 0x81f   :  { %2877 = vmatpush2.msra.mxu0 %v10691_v37  ;;  %2948 = vmatpush2.msra.mxu1 %v10692_v39  ;;  %p3971_p5 = scmp.ne.s32.totalorder %s3019_s17, %s3970_s18  ;;  %p3976_p7 = scmp.lt.s32.totalorder %s3970_s18, %s3970_s18 }
 0x820   :  { %2878 = vmatprep.subr.mxu0 %v10693_v40  ;;  %2949 = vmatprep.subr.mxu1 %v10694_v41 }
 0x821   :  { %2879 = vmatpush2.msra.mxu0 %v10695_v42  ;;  %2950 = vmatpush2.msra.mxu1 %v10696_v44  ;;  %p3977_p8 = por %p3976_p7, %p3975_p6 }
 0x822   :  { %2880 = vmatprep.subr.mxu0 %v10697_v46  ;;  %2951 = vmatprep.subr.mxu1 %v10698_v47 }
 0x823   :  { %2881 = vmatpush2.msra.mxu0 %v10699_v53  ;;  %2952 = vmatpush2.msra.mxu1 %v10700_v58  ;;  %p3978_p9 = pnand %p3977_p8, %p3971_p5 }
 0x824   :  { %2882 = vmatprep.subr.mxu0 %v10701_v14  ;;  %2953 = vmatprep.subr.mxu1 %v10702_v62 }
 0x825   :  { %2883 = vmatpush2.msra.mxu0 %v10703_v51  ;;  %2954 = vmatpush2.msra.mxu1 %v10704_v49 }
 0x826   :  { %2884 = vmatprep.subr.mxu0 %v10705_v4  ;;  %2955 = vmatprep.subr.mxu1 %v10706_v9 }
 0x827   :  { %2885 = vmatpush2.msra.mxu0 %v10707_v1  ;;  %2956 = vmatpush2.msra.mxu1 %v10708_v60 }
 0x886   :  { %v2547_v57 = vpop.f32.mrf.mxu0  ;;  %v2618_v61 = vpop.f32.mrf.mxu1 }
 0x887   :  { %v2548_v54 = vadd.f32 %v2547_v57, %v5247_v30  ;;  %v2619_v48 = vadd.f32 %v2618_v61, %v10710_v2 }
 0x888   :  { %v2549_v52 = vpop.f32.mrf.mxu0  ;;  %v2620_v3 = vpop.f32.mrf.mxu1 }
 0x889   :  { %v3097_v63 = vmul.f32 -1.442695, %v2548_v54  ;;  %v2550_v50 = vadd.f32 %v2549_v52, %v10709_v0  ;;  %v3099_v8 = vmul.f32 -1.442695, %v2619_v48  ;;  %v2621_v7 = vadd.f32 %v2620_v3, %v10711_v6 }
 0x88b   :  { %3326 = vpow2.f32 %v3097_v63  ;;  %v3098_v56 = vmul.f32 -1.442695, %v2550_v50 }
 0x88d   :  { %3328 = vpow2.f32 %v3098_v56 }
 0x88e   :  { %3330 = vpow2.f32 %v3099_v8 }
 0x898   :  { %v3327_v5 = vpop.eup %3326 }
 0x899   :  { %v2632_v10 = vadd.f32 1.0, %v3327_v5 }
 0x89a   :  { %v3329_v11 = vpop.eup %3328 }
 0x89b   :  { %3332 = vrcp.f32 %v2632_v10  ;;  %v2633_v12 = vadd.f32 1.0, %v3329_v11  ;;  %v3331_v15 = vpop.eup %3330 }
 0x89c   :  { %3334 = vtanh.f32 %v2621_v7  ;;  %v2634_v17 = vadd.f32 1.0, %v3331_v15 }
 0x89d   :  { %3336 = vrcp.f32 %v2633_v12 }
 0x8a7   :  { %v2718_v29 = vpop.f32.mrf.mxu0  ;;  %v2789_v24 = vpop.f32.mrf.mxu1 }
 0x8a8   :  { %v3333_v45 = vpop.eup %3332  ;;  %v2794_v25 = vadd.f32 %v3100_v13, %v2718_v29  ;;  %v2796_v23 = vadd.f32 %v3102_v31, %v2789_v24 }
 0x8a9   :  { %v3335_v20 = vpop.eup %3334  ;;  %v2720_v16 = vpop.f32.mrf.mxu0 }
 0x8aa   :  { %v3337_v55 = vpop.eup %3336  ;;  %v3104_v21 = vmul.f32 -1.442695, %v2794_v25  ;;  %v2795_v22 = vadd.f32 %v3101_v32, %v2720_v16  ;;  %v2643_v18 = vmul.f32 %v3335_v20, %v3333_v45  ;;  %v3106_v27 = vmul.f32 -1.442695, %v2796_v23 }
 0x8ab   :  { %v2642_v43 = vmul.f32 %v3337_v55, %v8685_v38  ;;  %v2791_v38 = vpop.f32.mrf.mxu1 }
 0x8ac   :  { %3338 = vpow2.f32 %v3104_v21  ;;  %v3105_v19 = vmul.f32 -1.442695, %v2795_v22  ;;  %v2797_v28 = vadd.f32 %v3103_v26, %v2791_v38 }
 0x8ad   :  { %v8907_v33 = vadd.f32 %v2643_v18, %v2642_v43 }
 0x8ae   :  { %3340 = vpow2.f32 %v3105_v19 }
 0x8af   :  { %3342 = vrcp.f32 %v2634_v17 }
 0x8b0   :  { %3344 = vtanh.f32 %v8907_v33 }
 0x8b1   :  { %3346 = vpow2.f32 %v3106_v27 }
 0x8b9   :  { %v3339_v34 = vpop.eup %3338 }
 0x8ba   :  { %v2807_v35 = vadd.f32 1.0, %v3339_v34 }
 0x8bb   :  { %v3341_v36 = vpop.eup %3340 }
 0x8bc   :  { %v3343_v37 = vpop.eup %3342  ;;  %3348 = vrcp.f32 %v2807_v35  ;;  %v2808_v39 = vadd.f32 1.0, %v3341_v36 }
 0x8bd   :  { %v3345_v40 = vpop.eup %3344  ;;  %3350 = vtanh.f32 %v2797_v28 }
 0x8be   :  { %3352 = vrcp.f32 %v2808_v39  ;;  %v2646_v41 = vmul.f32 %v3345_v40, %v3343_v37  ;;  %v3347_v42 = vpop.eup %3346 }
 0x8bf   :  { %v2809_v53 = vadd.f32 1.0, %v3347_v42 }
 0x8c0   :  { %2886 = vmatprep.mubr.f32.mxu0 %v2646_v41  ;;  %2957 = vmatprep.mubr.f32.mxu1 %v2646_v41 }
 0x8c1   :  { %3354 = vrcp.f32 %v2809_v53 }
 0x8c9   :  { %v3349_v44 = vpop.eup %3348 }
 0x8ca   :  { %v3351_v46 = vpop.eup %3350 }
 0x8cb   :  { %v3353_v47 = vpop.eup %3352  ;;  %v2818_v14 = vmul.f32 %v3351_v46, %v3349_v44 }
 0x8cc   :  { %v2817_v58 = vmul.f32 %v3353_v47, %v8695_v59 }
 0x8ce   :  { %v2819_v62 = vadd.f32 %v2818_v14, %v2817_v58  ;;  %v3355_v51 = vpop.eup %3354 }
 0x8d0   :  { %3356 = vtanh.f32 %v2819_v62  ;;  %2998 = vst [vmem:[#allocation10] sm:$0xff] %v2819_v62 }
 0x8dd   :  { %v3357_v49 = vpop.eup %3356 }
 0x8de   :  { %v2821_v4 = vmul.f32 %v3357_v49, %v3355_v51 }
 0x8e0   :  { %2887 = vmatmul.mubr.f32.vlgmr.msra.gmra.mxu0 %v2821_v4  ;;  %2995 = vst [vmem:[#allocation9] sm:$0xff] %v2821_v4  ;;  %2958 = vmatmul.mubr.f32.vlgmr.msra.gmra.mxu1 %v2821_v4 }
 0x9a0   :  { %v2888_v9 = vpop.f32.mrf.mxu0  ;;  %v2959_v52 = vpop.f32.mrf.mxu1 }
 0x9a1   :  { %v2889_v1 = vadd.f32 %v2888_v9, %v5247_v30  ;;  %v2960_v63 = vadd.f32 %v2959_v52, %v10710_v2 }
 0x9a2   :  { %v2890_v60 = vpop.f32.mrf.mxu0  ;;  %v2961_v50 = vpop.f32.mrf.mxu1 }
 0x9a3   :  { %v3107_v57 = vmul.f32 -1.442695, %v2889_v1  ;;  %v2891_v54 = vadd.f32 %v2890_v60, %v10709_v0  ;;  %v3109_v56 = vmul.f32 -1.442695, %v2960_v63  ;;  %v2962_v48 = vadd.f32 %v2961_v50, %v10711_v6 }
 0x9a5   :  { %3358 = vpow2.f32 %v3107_v57  ;;  %v3108_v59 = vmul.f32 -1.442695, %v2891_v54 }
 0x9a7   :  { %3360 = vpow2.f32 %v3108_v59 }
 0x9a8   :  { %3362 = vpow2.f32 %v3109_v56 }
 0x9b2   :  { %v3359_v61 = vpop.eup %3358 }
 0x9b3   :  { %v2973_v3 = vadd.f32 1.0, %v3359_v61 }
 0x9b4   :  { %v3361_v8 = vpop.eup %3360 }
 0x9b5   :  { %3364 = vrcp.f32 %v2973_v3  ;;  %v2974_v30 = vadd.f32 1.0, %v3361_v8  ;;  %v3363_v5 = vpop.eup %3362 }
 0x9b6   :  { %3366 = vtanh.f32 %v2962_v48  ;;  %v2975_v11 = vadd.f32 1.0, %v3363_v5 }
 0x9b7   :  { %3368 = vrcp.f32 %v2974_v30 }
 0x9b8   :  { %3370 = vrcp.f32 %v2975_v11 }
 0x9c2   :  { %v3365_v0 = vpop.eup %3364 }
 0x9c3   :  { %v3367_v7 = vpop.eup %3366 }
 0x9c4   :  { %v3369_v10 = vpop.eup %3368  ;;  %v2984_v12 = vmul.f32 %v3367_v7, %v3365_v0 }
 0x9c5   :  { %v2983_v2 = vmul.f32 %v3369_v10, %v8907_v33 }
 0x9c7   :  { %v2985_v13 = vadd.f32 %v2984_v12, %v2983_v2 }
 0x9c9   :  { %3372 = vtanh.f32 %v2985_v13  ;;  %3000 = vst [vmem:[#allocation10 + $0x8] sm:$0xff] %v2985_v13 }
 0x9ca   :  { %3981 = shalt.err (!%p3978_p9)
}
 0x9cb   :  { %s4021_s19 = smov 128   ;;  %s4022_s20 = smov 8   ;;  %v3371_v6 = vpop.eup %3370 }
 0x9cc   :  { %3024 = dma.vmem_to_hbm [thread:$0]  %s3019_s17, 256, %s8933_s5, [#allocation11], %s4021_s19, %s4021_s19, %s4022_s20  }
 0x9cd   :  { %s4023_s23 = smov [#allocation9]  }
 0x9ce   :  { %s3006_s24 = sshll.u32 %s4023_s23, 4  ;;  %s3007_s24 = int_to_ptr.vmem [resolvable:$true] %s3006_s24 }
 0x9cf   :  { %s3990_s1 = scalar_lea.vmem %s3007_s24, 256  ;;  %p3995_p11 = scmp.lt.s32.totalorder %s3007_s24, %s3007_s24 }
 0x9d0   :  { %p3991_p10 = scmp.ne.s32.totalorder %s3007_s24, %s3990_s1  ;;  %p3996_p12 = scmp.lt.s32.totalorder %s3990_s1, %s3990_s1 }
 0x9d2   :  { %p3997_p13 = por %p3996_p12, %p3995_p11 }
 0x9d4   :  { %p3998_p0 = pnand %p3997_p13, %p3991_p10 }
 0x9d6   :  { %v3373_v15 = vpop.eup %3372 }
 0x9d7   :  { %v2987_v29 = vmul.f32 %v3373_v15, %v3371_v6 }
 0x9d9   :  { %2997 = vst [vmem:[#allocation9 + $0x8] sm:$0xff] %v2987_v29 }
 0x9da   :  { %4001 = shalt.err (!%p3998_p0)
}
 0x9db   :  { %3012 = dma.vmem_to_hbm [thread:$0]  %s3007_s24, 256, %s8932_s4, [#allocation8], %s4021_s19, %s4021_s19, %s4022_s20  }
 0x9dc   :  { %4012 = dma.done.wait [#allocation8], 256  }
 0x9dd   :  { %4013 = vsyncadd [#allocation8], 4294967040 }
 0x9de   :  { %4014 = dma.done.wait [#allocation11], 256  }
 0x9df   :  { %4015 = vsyncadd [#allocation11], 4294967040 }
 0x9e0   :  { %3031 = vsyncpa [#allocation7], 1 }
 0x9e1   :  { %3032 = vsyncpa [#allocation8], 1 }
 0x9e2   :  { %3033 = vsyncpa [#allocation11], 1 }

</bundles_post_ra>
